<compile_context>
chip_gen: v5e
topology: v5e:2x2
jax: 0.10.0
libtpu: 0.0.40
codegen_flags: <defaults>
</compile_context>

<pallas_src>
import jax
import jax.numpy as jnp
from jax.experimental import pallas as pl
from jax.experimental.pallas import tpu as pltpu

IN_DIM = 1024
HID_DIM = 1024
OUT_DIM = 2
OUT_PAD = 128          # lane-dense padded width for the fc3 / log_softmax compute
BN_EPS = 1e-5


# ----------------------------------------------------------------------------
# Kernel: one batch tile of x -> (f tile, log_softmax tile)
# ----------------------------------------------------------------------------
def hdc_kernel(x_ref,
               w1_ref, t1_ref,
               w2_ref, t2_ref,
               w3_ref, b3_ref,
               f_ref, out_ref):
    # In-kernel cast to the compute dtype (hidden under MXU time; avoids a
    # separate wrapper-side XLA pass over x in HBM).
    x = x_ref[...].astype(w1_ref.dtype)                       # (tm, 1024)

    # fc1 + folded bn1 + relu   (bias & BN affine pre-folded into w1/t1)
    h1 = jnp.dot(x, w1_ref[...], preferred_element_type=jnp.float32) + t1_ref[...]
    f1 = jnp.maximum(h1, 0.0)

    # fc2 + folded bn2 + relu
    h2 = jnp.dot(f1.astype(w2_ref.dtype), w2_ref[...],
                 preferred_element_type=jnp.float32) + t2_ref[...]
    f2 = jnp.maximum(h2, 0.0)
    f_ref[...] = f2.astype(f_ref.dtype)

    # fc3 (lane-dense 128-wide padded compute) + log_softmax over dim=1.
    # Keep the softmax math in f32: the -1e30 pad bias only stays finite in f32.
    logits = jnp.dot(f2.astype(w3_ref.dtype), w3_ref[...],
                     preferred_element_type=jnp.float32) + b3_ref[...]
    m = jnp.max(logits, axis=1, keepdims=True)
    lse = m + jnp.log(jnp.sum(jnp.exp(logits - m), axis=1, keepdims=True))
    out_ref[...] = (logits - lse)[:, :OUT_DIM].astype(out_ref.dtype)


# ----------------------------------------------------------------------------
# One-time parameter preparation (transpose + BN/bias fold + bf16 + fc3 padding)
# ----------------------------------------------------------------------------
def prepare_params(params, compute_dtype=jnp.bfloat16):
    (w1, b1, g1, be1, rm1, rv1,
     w2, b2, g2, be2, rm2, rv2,
     w3, b3) = params

    s1 = g1 / jnp.sqrt(rv1 + BN_EPS)
    t1 = be1 + s1 * (b1 - rm1)
    s2 = g2 / jnp.sqrt(rv2 + BN_EPS)
    t2 = be2 + s2 * (b2 - rm2)

    w1f = (w1.T * s1[None, :]).astype(compute_dtype)           # (1024, 1024)
    w2f = (w2.T * s2[None, :]).astype(compute_dtype)           # (1024, 1024)

    # Pad fc3 to 128 output lanes; padded bias is very negative so those columns
    # contribute exp(~-inf) = 0 to the softmax normalizer (f32 math only).
    w3p = jnp.zeros((HID_DIM, OUT_PAD), jnp.float32)
    w3p = w3p.at[:, :OUT_DIM].set(w3.T).astype(compute_dtype)  # (1024, 128)
    b3p = jnp.full((OUT_PAD,), -1e30, jnp.float32)
    b3p = b3p.at[:OUT_DIM].set(b3)

    return (w1f, t1.reshape(1, HID_DIM),
            w2f, t2.reshape(1, HID_DIM),
            w3p, b3p.reshape(1, OUT_PAD))


# ----------------------------------------------------------------------------
# Batch-tile selection: big tiles to amortize per-step overhead / MXU weight
# pushes; prefer a tile that divides B exactly (no padding, no ragged tile);
# split medium batches in two so v7x's second TensorCore gets work.
# ----------------------------------------------------------------------------
def _pick_tm(B, max_tm=512):
    if B <= 256:
        return B                              # single tile == full array dim (legal)
    if B <= max_tm:
        if B % 16 == 0:
            return B // 2                     # 2 tiles -> both v7x TCs get work
        return B
    for tm in range(max_tm, 127, -8):         # multiple of 8, >= 128, divides B
        if B % tm == 0:
            return tm
    return max_tm                             # ragged last tile: OOB reads are
                                              # per-row garbage, OOB writes dropped


# ----------------------------------------------------------------------------
# Wrapper: batch tiling + pallas_call
# ----------------------------------------------------------------------------
def hdc_encoding(x, prepped, *, block_m=512, f_dtype=jnp.float32,
                 out_dtype=jnp.float32):
    B = x.shape[0]
    w1f, t1, w2f, t2, w3p, b3p = prepped

    tm = _pick_tm(B, block_m)
    grid = (pl.cdiv(B, tm),)

    resident = dict(pipeline_mode=pl.Buffered(1))   # single-buffer constant operands

    in_specs = [
        pl.BlockSpec((tm, IN_DIM), lambda i: (i, 0)),                       # x (tiled)
        pl.BlockSpec((IN_DIM, HID_DIM), lambda i: (0, 0), **resident),      # w1
        pl.BlockSpec((1, HID_DIM), lambda i: (0, 0), **resident),           # t1
        pl.BlockSpec((HID_DIM, HID_DIM), lambda i: (0, 0), **resident),     # w2
        pl.BlockSpec((1, HID_DIM), lambda i: (0, 0), **resident),           # t2
        pl.BlockSpec((HID_DIM, OUT_PAD), lambda i: (0, 0), **resident),     # w3 (padded)
        pl.BlockSpec((1, OUT_PAD), lambda i: (0, 0), **resident),           # b3 (padded)
    ]
    out_specs = (
        pl.BlockSpec((tm, HID_DIM), lambda i: (i, 0)),                      # f
        pl.BlockSpec((tm, OUT_DIM), lambda i: (i, 0)),                      # log_softmax
    )

    f, out = pl.pallas_call(
        hdc_kernel,
        out_shape=(
            jax.ShapeDtypeStruct((B, HID_DIM), f_dtype),
            jax.ShapeDtypeStruct((B, OUT_DIM), out_dtype),
        ),
        grid=grid,
        in_specs=in_specs,
        out_specs=out_specs,
        compiler_params=pltpu.CompilerParams(
            dimension_semantics=("parallel",),
            vmem_limit_bytes=48 * 1024 * 1024,
        ),
    )(x, w1f, t1, w2f, t2, w3p, b3p)

    return f, out


# ----------------------------------------------------------------------------
# Parameter init + references
# ----------------------------------------------------------------------------
def init_params(key):
    ks = jax.random.split(key, 8)
    w1 = jax.random.normal(ks[0], (HID_DIM, IN_DIM), jnp.float32) * 0.02
    b1 = jax.random.normal(ks[1], (HID_DIM,), jnp.float32) * 0.02
    g1 = jnp.ones((HID_DIM,), jnp.float32)
    be1 = jnp.zeros((HID_DIM,), jnp.float32)
    rm1 = jnp.zeros((HID_DIM,), jnp.float32)
    rv1 = jnp.ones((HID_DIM,), jnp.float32)

    w2 = jax.random.normal(ks[2], (HID_DIM, HID_DIM), jnp.float32) * 0.02
    b2 = jax.random.normal(ks[3], (HID_DIM,), jnp.float32) * 0.02
    g2 = jnp.ones((HID_DIM,), jnp.float32)
    be2 = jnp.zeros((HID_DIM,), jnp.float32)
    rm2 = jnp.zeros((HID_DIM,), jnp.float32)
    rv2 = jnp.ones((HID_DIM,), jnp.float32)

    w3 = jax.random.normal(ks[4], (OUT_DIM, HID_DIM), jnp.float32) * 0.02
    b3 = jax.random.normal(ks[5], (OUT_DIM,), jnp.float32) * 0.02

    return (w1, b1, g1, be1, rm1, rv1,
            w2, b2, g2, be2, rm2, rv2,
            w3, b3)


def reference_bf16(x, prepped):
    """Mirrors the kernel's bf16-input / f32-accumulate arithmetic."""
    w1f, t1, w2f, t2, w3p, b3p = prepped
    xc = x.astype(w1f.dtype)
    f1 = jnp.maximum(jnp.dot(xc, w1f, preferred_element_type=jnp.float32) + t1, 0.0)
    f2 = jnp.maximum(jnp.dot(f1.astype(w2f.dtype), w2f,
                             preferred_element_type=jnp.float32) + t2, 0.0)
    logits = jnp.dot(f2.astype(w3p.dtype), w3p,
                     preferred_element_type=jnp.float32) + b3p
    out = logits - jax.scipy.special.logsumexp(logits, axis=1, keepdims=True)
    return f2, out[:, :OUT_DIM]


def reference_f32(x, params):
    (w1, b1, g1, be1, rm1, rv1,
     w2, b2, g2, be2, rm2, rv2,
     w3, b3) = params
    y1 = x @ w1.T + b1
    f1 = jnp.maximum((y1 - rm1) / jnp.sqrt(rv1 + BN_EPS) * g1 + be1, 0.0)
    y2 = f1 @ w2.T + b2
    f2 = jnp.maximum((y2 - rm2) / jnp.sqrt(rv2 + BN_EPS) * g2 + be2, 0.0)
    logits = f2 @ w3.T + b3
    out = logits - jax.scipy.special.logsumexp(logits, axis=1, keepdims=True)
    return f2, out


if __name__ == "__main__":
    key = jax.random.PRNGKey(0)
    k_x, k_p = jax.random.split(key)
    B = 8
    x = jax.random.normal(k_x, (B, IN_DIM), jnp.float32)
    params = init_params(k_p)
    prepped = prepare_params(params)          # one-time fold / transposes / bf16 cast

    f, out = hdc_encoding(x, prepped)
    jax.block_until_ready((f, out))

    # Strict check against a reference using identical bf16/f32 arithmetic.
    f_ref, out_ref = reference_bf16(x, prepped)
    assert jnp.allclose(f, f_ref, atol=2e-3, rtol=2e-3)
    assert jnp.allclose(out, out_ref, atol=2e-3, rtol=2e-3)

    # Loose sanity check against the pure-f32 module semantics.
    f32_f, f32_out = reference_f32(x, params)
    assert jnp.allclose(f, f32_f, atol=5e-2, rtol=5e-2)
    assert jnp.allclose(out, f32_out, atol=5e-2, rtol=5e-2)

    print("KERNEL_OK")
</pallas_src>

<mosaic_0001>
module attributes {stable_mosaic.version = 11 : i64} {
  func.func @hdc_kernel(%arg0: i32, %arg1: memref<8x1024xf32, #tpu.memory_space<vmem>>, %arg2: memref<1024x1024xbf16, #tpu.memory_space<vmem>>, %arg3: memref<1x1024xf32, #tpu.memory_space<vmem>>, %arg4: memref<1024x1024xbf16, #tpu.memory_space<vmem>>, %arg5: memref<1x1024xf32, #tpu.memory_space<vmem>>, %arg6: memref<1024x128xbf16, #tpu.memory_space<vmem>>, %arg7: memref<1x128xf32, #tpu.memory_space<vmem>>, %arg8: memref<8x1024xf32, #tpu.memory_space<vmem>>, %arg9: memref<8x2xf32, #tpu.memory_space<vmem>>) attributes {dimension_semantics = [#tpu.dimension_semantics<parallel>], iteration_bounds = array<i64: 1>, scalar_prefetch = 0 : i64, scratch_operands = 0 : i64, tpu.core_type = #tpu.core_type<tc>, window_params = [{transform_indices = @transform_0, window_bounds = array<i64: 8, 1024>}, {pipeline_mode = #tpu.pipeline_mode<synchronous>, transform_indices = @transform_1, window_bounds = array<i64: 1024, 1024>}, {pipeline_mode = #tpu.pipeline_mode<synchronous>, transform_indices = @transform_2, window_bounds = array<i64: 1, 1024>}, {pipeline_mode = #tpu.pipeline_mode<synchronous>, transform_indices = @transform_3, window_bounds = array<i64: 1024, 1024>}, {pipeline_mode = #tpu.pipeline_mode<synchronous>, transform_indices = @transform_4, window_bounds = array<i64: 1, 1024>}, {pipeline_mode = #tpu.pipeline_mode<synchronous>, transform_indices = @transform_5, window_bounds = array<i64: 1024, 128>}, {pipeline_mode = #tpu.pipeline_mode<synchronous>, transform_indices = @transform_6, window_bounds = array<i64: 1, 128>}, {transform_indices = @transform_7, window_bounds = array<i64: 8, 1024>}, {transform_indices = @transform_8, window_bounds = array<i64: 8, 2>}]} {
    %c0 = arith.constant 0 : index
    %c0_0 = arith.constant 0 : index
    %0 = vector.load %arg1[%c0, %c0_0] : memref<8x1024xf32, #tpu.memory_space<vmem>>, vector<8x1024xf32>
    %1 = arith.truncf %0 : vector<8x1024xf32> to vector<8x1024xbf16>
    %c0_1 = arith.constant 0 : index
    %c0_2 = arith.constant 0 : index
    %2 = vector.load %arg2[%c0_1, %c0_2] : memref<1024x1024xbf16, #tpu.memory_space<vmem>>, vector<1024x1024xbf16>
    %cst = arith.constant dense<0.000000e+00> : vector<8x1024xf32>
    %3 = tpu.matmul %1, %2, %cst {dimension_numbers = #tpu.dot_dimension_numbers<[1], [0], [0], [1], [0, 0, 1, 1], [], []>} : vector<8x1024xbf16>, vector<1024x1024xbf16>, vector<8x1024xf32> -> vector<8x1024xf32>
    %c0_3 = arith.constant 0 : index
    %c0_4 = arith.constant 0 : index
    %4 = vector.load %arg3[%c0_3, %c0_4] : memref<1x1024xf32, #tpu.memory_space<vmem>>, vector<1x1024xf32>
    %5 = vector.broadcast %4 : vector<1x1024xf32> to vector<8x1024xf32>
    %6 = arith.addf %3, %5 : vector<8x1024xf32>
    %cst_5 = arith.constant 0.000000e+00 : f32
    %7 = vector.broadcast %cst_5 : f32 to vector<8x1024xf32>
    %8 = arith.maximumf %6, %7 : vector<8x1024xf32>
    %9 = arith.truncf %8 : vector<8x1024xf32> to vector<8x1024xbf16>
    %c0_6 = arith.constant 0 : index
    %c0_7 = arith.constant 0 : index
    %10 = vector.load %arg4[%c0_6, %c0_7] : memref<1024x1024xbf16, #tpu.memory_space<vmem>>, vector<1024x1024xbf16>
    %cst_8 = arith.constant dense<0.000000e+00> : vector<8x1024xf32>
    %11 = tpu.matmul %9, %10, %cst_8 {dimension_numbers = #tpu.dot_dimension_numbers<[1], [0], [0], [1], [0, 0, 1, 1], [], []>} : vector<8x1024xbf16>, vector<1024x1024xbf16>, vector<8x1024xf32> -> vector<8x1024xf32>
    %c0_9 = arith.constant 0 : index
    %c0_10 = arith.constant 0 : index
    %12 = vector.load %arg5[%c0_9, %c0_10] : memref<1x1024xf32, #tpu.memory_space<vmem>>, vector<1x1024xf32>
    %13 = vector.broadcast %12 : vector<1x1024xf32> to vector<8x1024xf32>
    %14 = arith.addf %11, %13 : vector<8x1024xf32>
    %cst_11 = arith.constant 0.000000e+00 : f32
    %15 = vector.broadcast %cst_11 : f32 to vector<8x1024xf32>
    %16 = arith.maximumf %14, %15 : vector<8x1024xf32>
    %c0_12 = arith.constant 0 : index
    %c0_13 = arith.constant 0 : index
    %17 = vector.load %arg8[%c0_12, %c0_13] : memref<8x1024xf32, #tpu.memory_space<vmem>>, vector<8x1024xf32>
    tpu.vector_store %arg8[%c0_12, %c0_13], %16 {strides = array<i32>} : memref<8x1024xf32, #tpu.memory_space<vmem>>, vector<8x1024xf32>,
    %18 = arith.truncf %16 : vector<8x1024xf32> to vector<8x1024xbf16>
    %c0_14 = arith.constant 0 : index
    %c0_15 = arith.constant 0 : index
    %19 = vector.load %arg6[%c0_14, %c0_15] : memref<1024x128xbf16, #tpu.memory_space<vmem>>, vector<1024x128xbf16>
    %cst_16 = arith.constant dense<0.000000e+00> : vector<8x128xf32>
    %20 = tpu.matmul %18, %19, %cst_16 {dimension_numbers = #tpu.dot_dimension_numbers<[1], [0], [0], [1], [0, 0, 1, 1], [], []>} : vector<8x1024xbf16>, vector<1024x128xbf16>, vector<8x128xf32> -> vector<8x128xf32>
    %c0_17 = arith.constant 0 : index
    %c0_18 = arith.constant 0 : index
    %21 = vector.load %arg7[%c0_17, %c0_18] : memref<1x128xf32, #tpu.memory_space<vmem>>, vector<1x128xf32>
    %22 = vector.broadcast %21 : vector<1x128xf32> to vector<8x128xf32>
    %23 = arith.addf %20, %22 : vector<8x128xf32>
    %cst_19 = arith.constant dense<0xFF800000> : vector<8xf32>
    %24 = vector.multi_reduction <maximumf>, %23, %cst_19 [1] : vector<8x128xf32> to vector<8xf32>
    %25 = vector.shape_cast %24 : vector<8xf32> to vector<8x1xf32>
    %26 = vector.broadcast %25 : vector<8x1xf32> to vector<8x128xf32>
    %27 = arith.subf %23, %26 : vector<8x128xf32>
    %28 = math.exp %27 : vector<8x128xf32>
    %cst_20 = arith.constant dense<0.000000e+00> : vector<8xf32>
    %29 = vector.multi_reduction <add>, %28, %cst_20 [1] : vector<8x128xf32> to vector<8xf32>
    %30 = vector.shape_cast %29 : vector<8xf32> to vector<8x1xf32>
    %31 = math.log %30 : vector<8x1xf32>
    %32 = arith.addf %25, %31 : vector<8x1xf32>
    %33 = vector.broadcast %32 : vector<8x1xf32> to vector<8x128xf32>
    %34 = arith.subf %23, %33 : vector<8x128xf32>
    %35 = vector.extract_strided_slice %34 {offsets = [0, 0], sizes = [8, 2], strides = [1, 1]} : vector<8x128xf32> to vector<8x2xf32>
    %c0_21 = arith.constant 0 : index
    %c0_22 = arith.constant 0 : index
    %36 = vector.load %arg9[%c0_21, %c0_22] : memref<8x2xf32, #tpu.memory_space<vmem>>, vector<8x2xf32>
    tpu.vector_store %arg9[%c0_21, %c0_22], %35 {strides = array<i32>} : memref<8x2xf32, #tpu.memory_space<vmem>>, vector<8x2xf32>,
    return
  }
  func.func @transform_0(%arg0: i32) -> (i32, i32) {
    %c0_i32 = arith.constant 0 : i32
    %c0_i32_0 = arith.constant 0 : i32
    return %arg0, %c0_i32 : i32, i32
  }
  func.func @transform_1(%arg0: i32) -> (i32, i32) {
    %c0_i32 = arith.constant 0 : i32
    %c0_i32_0 = arith.constant 0 : i32
    %c0_i32_1 = arith.constant 0 : i32
    return %c0_i32, %c0_i32_0 : i32, i32
  }
  func.func @transform_2(%arg0: i32) -> (i32, i32) {
    %c0_i32 = arith.constant 0 : i32
    %c0_i32_0 = arith.constant 0 : i32
    %c0_i32_1 = arith.constant 0 : i32
    return %c0_i32, %c0_i32_0 : i32, i32
  }
  func.func @transform_3(%arg0: i32) -> (i32, i32) {
    %c0_i32 = arith.constant 0 : i32
    %c0_i32_0 = arith.constant 0 : i32
    %c0_i32_1 = arith.constant 0 : i32
    return %c0_i32, %c0_i32_0 : i32, i32
  }
  func.func @transform_4(%arg0: i32) -> (i32, i32) {
    %c0_i32 = arith.constant 0 : i32
    %c0_i32_0 = arith.constant 0 : i32
    %c0_i32_1 = arith.constant 0 : i32
    return %c0_i32, %c0_i32_0 : i32, i32
  }
  func.func @transform_5(%arg0: i32) -> (i32, i32) {
    %c0_i32 = arith.constant 0 : i32
    %c0_i32_0 = arith.constant 0 : i32
    %c0_i32_1 = arith.constant 0 : i32
    return %c0_i32, %c0_i32_0 : i32, i32
  }
  func.func @transform_6(%arg0: i32) -> (i32, i32) {
    %c0_i32 = arith.constant 0 : i32
    %c0_i32_0 = arith.constant 0 : i32
    %c0_i32_1 = arith.constant 0 : i32
    return %c0_i32, %c0_i32_0 : i32, i32
  }
  func.func @transform_7(%arg0: i32) -> (i32, i32) {
    %c0_i32 = arith.constant 0 : i32
    %c0_i32_0 = arith.constant 0 : i32
    return %arg0, %c0_i32 : i32, i32
  }
  func.func @transform_8(%arg0: i32) -> (i32, i32) {
    %c0_i32 = arith.constant 0 : i32
    %c0_i32_0 = arith.constant 0 : i32
    return %arg0, %c0_i32 : i32, i32
  }
}

</mosaic_0001>

<bundles_post_ra>
// kernel: tpu_custom_call.1
= control target key start
LH: loop header
LB: loop body
LE: loop exit
PB: predicated region body
PF: predicated region fallthrough
CT: control target
= control target key end

     0   :  { %14 = vsyncpa [#allocation3], 0  ;;  %s14800_s0 = inlined_call_operand.hbm [shape: f32[8,1024], index: 0, kind: input, shape index: {}]   ;;  %s14801_s1 = inlined_call_operand.hbm [shape: bf16[1024,1024], index: 1, kind: input, shape index: {}]   ;;  %s14802_s2 = inlined_call_operand.hbm [shape: f32[1,1024], index: 2, kind: input, shape index: {}]   ;;  %s14803_s3 = inlined_call_operand.hbm [shape: bf16[1024,1024], index: 3, kind: input, shape index: {}]   ;;  %s14804_s4 = inlined_call_operand.hbm [shape: f32[1,1024], index: 4, kind: input, shape index: {}]   ;;  %s14805_s5 = inlined_call_operand.hbm [shape: bf16[1024,128], index: 5, kind: input, shape index: {}]   ;;  %s14806_s6 = inlined_call_operand.hbm [shape: f32[1,128], index: 6, kind: input, shape index: {}]   ;;  %s14807_s7 = inlined_call_operand.hbm [shape: f32[8,1024], index: 7, kind: output, shape index: {0}]   ;;  %s14808_s8 = inlined_call_operand.vmem [shape: f32[8,2], index: 8, kind: output, shape index: {1}]  }
   0x1   :  { %15 = vsyncpa [#allocation6], 0 }
   0x2   :  { %16 = vsyncpa [#allocation9], 0 }
   0x3   :  { %17 = vsyncpa [#allocation12], 0  ;;  %s34_s29 = sshll.u32 %s14801_s1, 4  ;;  %s35_s29 = int_to_ptr.hbm [resolvable:$true] %s34_s29 }
   0x4   :  { %18 = vsyncpa [#allocation4], 0  ;;  %s14355_s30 = smov [#allocation5]   ;;  %s58_s12 = sshll.u32 %s14803_s3, 4  ;;  %s59_s12 = int_to_ptr.hbm [resolvable:$true] %s58_s12 }
   0x5   :  { %s36_s9 = sshll.u32 %s14355_s30, 4  ;;  %s14356_s13 = smov 512   ;;  %s37_s9 = int_to_ptr.vmem [resolvable:$true] %s36_s9 }
   0x6   :  { %s14357_s14 = smov 32   ;;  %s14358_s15 = smov [#allocation8]  }
   0x7   :  { %42 = dma.hbm_to_vmem [thread:$0]  %s35_s29, 65536, %s37_s9, [#allocation6], %s14356_s13, %s14356_s13, %s14357_s14  }
   0x8   :  { %s60_s16 = sshll.u32 %s14358_s15, 4  ;;  %s82_s19 = sshll.u32 %s14805_s5, 4  ;;  %s61_s16 = int_to_ptr.vmem [resolvable:$true] %s60_s16  ;;  %s83_s19 = int_to_ptr.hbm [resolvable:$true] %s82_s19 }
   0x9   :  { %66 = dma.hbm_to_vmem [thread:$0]  %s59_s12, 65536, %s61_s16, [#allocation9], %s14356_s13, %s14356_s13, %s14357_s14  }
   0xa   :  { %s14359_s1 = smov [#allocation11]   ;;  %s24_s3 = sshll.u32 %s14800_s0, 4  ;;  %s25_s3 = int_to_ptr.hbm [resolvable:$true] %s24_s3 }
   0xb   :  { %s84_s20 = sshll.u32 %s14359_s1, 4  ;;  %s14360_s23 = smov 64   ;;  %s85_s20 = int_to_ptr.vmem [resolvable:$true] %s84_s20 }
   0xc   :  { %s14361_s24 = smov 4   ;;  %s14362_s25 = smov [#allocation2]  }
   0xd   :  { %90 = dma.hbm_to_vmem [thread:$0]  %s83_s19, 8192, %s85_s20, [#allocation12], %s14360_s23, %s14360_s23, %s14361_s24  }
   0xe   :  { %s26_s26 = sshll.u32 %s14362_s25, 4  ;;  %s48_s5 = sshll.u32 %s14802_s2, 4  ;;  %s27_s26 = int_to_ptr.vmem [resolvable:$true] %s26_s26  ;;  %s49_s5 = int_to_ptr.hbm [resolvable:$true] %s48_s5 }
   0xf   :  { %29 = dma.hbm_to_vmem [thread:$0]  %s25_s3, 1024, %s27_s26, [#allocation3]  }
  0x10   :  { %s72_s9 = sshll.u32 %s14804_s4, 4  ;;  %s14363_s10 = smov [#allocation7]   ;;  %s73_s9 = int_to_ptr.hbm [resolvable:$true] %s72_s9 }
  0x11   :  { %s50_s11 = sshll.u32 %s14363_s10, 4  ;;  %s14364_s0 = smov [#allocation10]   ;;  %s51_s11 = int_to_ptr.vmem [resolvable:$true] %s50_s11 }
  0x12   :  { %53 = dma.hbm_to_vmem [thread:$0]  %s49_s5, 128, %s51_s11, [#allocation6]  }
  0x13   :  { %s74_s12 = sshll.u32 %s14364_s0, 4  ;;  %s96_s15 = sshll.u32 %s14806_s6, 4  ;;  %s75_s12 = int_to_ptr.vmem [resolvable:$true] %s74_s12  ;;  %s97_s15 = int_to_ptr.hbm [resolvable:$true] %s96_s15 }
  0x14   :  { %77 = dma.hbm_to_vmem [thread:$0]  %s73_s9, 128, %s75_s12, [#allocation9]  }
  0x15   :  { %s14365_s2 = smov [#allocation13]  }
  0x16   :  { %s98_s16 = sshll.u32 %s14365_s2, 4  ;;  %s99_s16 = int_to_ptr.vmem [resolvable:$true] %s98_s16 }
  0x17   :  { %101 = dma.hbm_to_vmem [thread:$0]  %s97_s15, 16, %s99_s16, [#allocation12]  }
  0x18   :  { %14345 = dma.done.wait [#allocation3], 1024  }
  0x19   :  { %14346 = vsyncadd [#allocation3], 4294966272 }
  0x1a   :  { %14347 = dma.done.wait [#allocation6], 65664  }
  0x1b   :  { %14348 = vsyncadd [#allocation6], 4294901632 }
  0x1c   :  { %14349 = dma.done.wait [#allocation9], 65664  }
  0x1d   :  { %14350 = vsyncadd [#allocation9], 4294901632 }
  0x1e   :  { %14351 = dma.done.wait [#allocation12], 8208  }
  0x1f   :  { %14352 = vsyncadd [#allocation12], 4294959088  ;;  %v8913_v0 = vld [vmem:[#allocation5 + $0x1c0] sm:$0xf]  ;;  %s14366_s4 = smov [#allocation14]   ;;  %s8670_s19 = sshll.u32 %s14807_s7, 4  ;;  %s8671_s19 = int_to_ptr.hbm [resolvable:$true] %s8670_s19 }
  0x20   :  { %v13099_v1 = vld [vmem:[#allocation5 + $0x1dc] sm:$0xf0]  ;;  %s8668_s6 = sshll.u32 %s14366_s4, 4  ;;  %vm8661_vm0 = vcmask 15360   ;;  %s8669_s6 = int_to_ptr.vmem [resolvable:$true] %s8668_s6 }
  0x21   :  { %v9169_v2 = vld [vmem:[#allocation5 + $0x3c0] sm:$0xf]  ;;  %v8914_v3 = vor.u32 %v13099_v1, %v8913_v0 }
  0x22   :  { %v13163_v4 = vld [vmem:[#allocation5 + $0x3dc] sm:$0xf0] }
  0x23   :  { %v9425_v5 = vld [vmem:[#allocation5 + $0x5c0] sm:$0xf]  ;;  %v9170_v7 = vor.u32 %v13163_v4, %v9169_v2  ;;  %3236 = vmatpush.bf16.msra.mxu0 %v8914_v3 }
  0x24   :  { %v13227_v6 = vld [vmem:[#allocation5 + $0x5dc] sm:$0xf0] }
  0x25   :  { %v9426_v8 = vor.u32 %v13227_v6, %v9425_v5  ;;  %v9681_v9 = vld [vmem:[#allocation5 + $0x7c0] sm:$0xf]  ;;  %3249 = vmatpush.bf16.msra.mxu1 %v9170_v7 }
  0x26   :  { %v13291_v10 = vld [vmem:[#allocation5 + $0x7dc] sm:$0xf0] }
  0x27   :  { %v8881_v11 = vld [vmem:[#allocation5 + $0x180] sm:$0xf]  ;;  %v9682_v12 = vor.u32 %v13291_v10, %v9681_v9  ;;  %3262 = vmatpush.bf16.msra.mxu2 %v9426_v8 }
  0x28   :  { %v13091_v13 = vld [vmem:[#allocation5 + $0x19c] sm:$0xf0] }
  0x29   :  { %v9137_v14 = vld [vmem:[#allocation5 + $0x380] sm:$0xf]  ;;  %v8882_v16 = vor.u32 %v13091_v13, %v8881_v11  ;;  %3275 = vmatpush.bf16.msra.mxu3 %v9682_v12 }
  0x2a   :  { %v13155_v15 = vld [vmem:[#allocation5 + $0x39c] sm:$0xf0] }
  0x2b   :  { %v9138_v17 = vor.u32 %v13155_v15, %v9137_v14  ;;  %v9393_v18 = vld [vmem:[#allocation5 + $0x580] sm:$0xf]  ;;  %3237 = vmatpush.bf16.msra.mxu0 %v8882_v16 }
  0x2c   :  { %v13219_v19 = vld [vmem:[#allocation5 + $0x59c] sm:$0xf0] }
  0x2d   :  { %v9649_v20 = vld [vmem:[#allocation5 + $0x780] sm:$0xf]  ;;  %v9394_v21 = vor.u32 %v13219_v19, %v9393_v18  ;;  %3250 = vmatpush.bf16.msra.mxu1 %v9138_v17 }
  0x2e   :  { %v13283_v22 = vld [vmem:[#allocation5 + $0x79c] sm:$0xf0] }
  0x2f   :  { %v8849_v23 = vld [vmem:[#allocation5 + $0x140] sm:$0xf]  ;;  %v9650_v25 = vor.u32 %v13283_v22, %v9649_v20  ;;  %3263 = vmatpush.bf16.msra.mxu2 %v9394_v21 }
  0x30   :  { %v13083_v24 = vld [vmem:[#allocation5 + $0x15c] sm:$0xf0] }
  0x31   :  { %v9105_v26 = vld [vmem:[#allocation5 + $0x340] sm:$0xf]  ;;  %v8850_v29 = vor.u32 %v13083_v24, %v8849_v23  ;;  %3276 = vmatpush.bf16.msra.mxu3 %v9650_v25 }
  0x32   :  { %v13147_v27 = vld [vmem:[#allocation5 + $0x35c] sm:$0xf0] }
  0x33   :  { %v9361_v28 = vld [vmem:[#allocation5 + $0x540] sm:$0xf]  ;;  %v9106_v33 = vor.u32 %v13147_v27, %v9105_v26  ;;  %3238 = vmatpush.bf16.msra.mxu0 %v8850_v29 }
  0x34   :  { %v13211_v30 = vld [vmem:[#allocation5 + $0x55c] sm:$0xf0] }
  0x35   :  { %v9617_v31 = vld [vmem:[#allocation5 + $0x740] sm:$0xf]  ;;  %v9362_v34 = vor.u32 %v13211_v30, %v9361_v28  ;;  %3251 = vmatpush.bf16.msra.mxu1 %v9106_v33 }
  0x36   :  { %v13275_v32 = vld [vmem:[#allocation5 + $0x75c] sm:$0xf0] }
  0x37   :  { %v8817_v35 = vld [vmem:[#allocation5 + $0x100] sm:$0xf]  ;;  %v9618_v38 = vor.u32 %v13275_v32, %v9617_v31  ;;  %3264 = vmatpush.bf16.msra.mxu2 %v9362_v34 }
  0x38   :  { %v13075_v36 = vld [vmem:[#allocation5 + $0x11c] sm:$0xf0] }
  0x39   :  { %v9073_v37 = vld [vmem:[#allocation5 + $0x300] sm:$0xf]  ;;  %v8818_v44 = vor.u32 %v13075_v36, %v8817_v35  ;;  %3277 = vmatpush.bf16.msra.mxu3 %v9618_v38 }
  0x3a   :  { %v13139_v39 = vld [vmem:[#allocation5 + $0x31c] sm:$0xf0] }
  0x3b   :  { %v9329_v40 = vld [vmem:[#allocation5 + $0x500] sm:$0xf]  ;;  %v9074_v45 = vor.u32 %v13139_v39, %v9073_v37  ;;  %3239 = vmatpush.bf16.msra.mxu0 %v8818_v44 }
  0x3c   :  { %v13203_v41 = vld [vmem:[#allocation5 + $0x51c] sm:$0xf0] }
  0x3d   :  { %v9585_v42 = vld [vmem:[#allocation5 + $0x700] sm:$0xf]  ;;  %v9330_v46 = vor.u32 %v13203_v41, %v9329_v40  ;;  %3252 = vmatpush.bf16.msra.mxu1 %v9074_v45 }
  0x3e   :  { %v13267_v43 = vld [vmem:[#allocation5 + $0x71c] sm:$0xf0] }
  0x3f   :  { %v8785_v47 = vld [vmem:[#allocation5 + $0xc0] sm:$0xf]  ;;  %v9586_v50 = vor.u32 %v13267_v43, %v9585_v42  ;;  %3265 = vmatpush.bf16.msra.mxu2 %v9330_v46 }
  0x40   :  { %v13067_v48 = vld [vmem:[#allocation5 + $0xdc] sm:$0xf0] }
  0x41   :  { %v9041_v49 = vld [vmem:[#allocation5 + $0x2c0] sm:$0xf]  ;;  %v8786_v56 = vor.u32 %v13067_v48, %v8785_v47  ;;  %3278 = vmatpush.bf16.msra.mxu3 %v9586_v50 }
  0x42   :  { %v13131_v51 = vld [vmem:[#allocation5 + $0x2dc] sm:$0xf0] }
  0x43   :  { %v9297_v52 = vld [vmem:[#allocation5 + $0x4c0] sm:$0xf]  ;;  %v9042_v57 = vor.u32 %v13131_v51, %v9041_v49  ;;  %3240 = vmatpush.bf16.msra.mxu0 %v8786_v56 }
  0x44   :  { %v13195_v53 = vld [vmem:[#allocation5 + $0x4dc] sm:$0xf0] }
  0x45   :  { %v9553_v54 = vld [vmem:[#allocation5 + $0x6c0] sm:$0xf]  ;;  %v9298_v58 = vor.u32 %v13195_v53, %v9297_v52  ;;  %3253 = vmatpush.bf16.msra.mxu1 %v9042_v57 }
  0x46   :  { %v13259_v55 = vld [vmem:[#allocation5 + $0x6dc] sm:$0xf0] }
  0x47   :  { %v8753_v59 = vld [vmem:[#allocation5 + $0x80] sm:$0xf]  ;;  %v9554_v62 = vor.u32 %v13259_v55, %v9553_v54  ;;  %3266 = vmatpush.bf16.msra.mxu2 %v9298_v58 }
  0x48   :  { %v13059_v60 = vld [vmem:[#allocation5 + $0x9c] sm:$0xf0] }
  0x49   :  { %v9009_v61 = vld [vmem:[#allocation5 + $0x280] sm:$0xf]  ;;  %v8754_v4 = vor.u32 %v13059_v60, %v8753_v59  ;;  %3279 = vmatpush.bf16.msra.mxu3 %v9554_v62 }
  0x4a   :  { %v13123_v63 = vld [vmem:[#allocation5 + $0x29c] sm:$0xf0] }
  0x4b   :  { %v9265_v0 = vld [vmem:[#allocation5 + $0x480] sm:$0xf]  ;;  %v9010_v5 = vor.u32 %v13123_v63, %v9009_v61  ;;  %3241 = vmatpush.bf16.msra.mxu0 %v8754_v4 }
  0x4c   :  { %v13187_v1 = vld [vmem:[#allocation5 + $0x49c] sm:$0xf0] }
  0x4d   :  { %v9521_v2 = vld [vmem:[#allocation5 + $0x680] sm:$0xf]  ;;  %v9266_v6 = vor.u32 %v13187_v1, %v9265_v0  ;;  %3254 = vmatpush.bf16.msra.mxu1 %v9010_v5 }
  0x4e   :  { %v13251_v3 = vld [vmem:[#allocation5 + $0x69c] sm:$0xf0] }
  0x4f   :  { %v8721_v7 = vld [vmem:[#allocation5 + $0x40] sm:$0xf]  ;;  %v9522_v10 = vor.u32 %v13251_v3, %v9521_v2  ;;  %3267 = vmatpush.bf16.msra.mxu2 %v9266_v6  ;;  %v132_v3 = vld [vmem:[#allocation2 + $0x10] sm:$0xff] }
  0x50   :  { %v13051_v8 = vld [vmem:[#allocation5 + $0x5c] sm:$0xf0] }
  0x51   :  { %v8977_v9 = vld [vmem:[#allocation5 + $0x240] sm:$0xf]  ;;  %v8722_v16 = vor.u32 %v13051_v8, %v8721_v7  ;;  %3280 = vmatpush.bf16.msra.mxu3 %v9522_v10  ;;  %v14433_v8 = vpack.c.bf16 %v132_v3, %v132_v3  ;;  %v133_v10 = vld [vmem:[#allocation2 + $0x18] sm:$0xff] }
  0x52   :  { %v13115_v11 = vld [vmem:[#allocation5 + $0x25c] sm:$0xf0] }
  0x53   :  { %v9233_v12 = vld [vmem:[#allocation5 + $0x440] sm:$0xf]  ;;  %v8978_v19 = vor.u32 %v13115_v11, %v8977_v9  ;;  %3242 = vmatpush.bf16.msra.mxu0 %v8722_v16 }
  0x54   :  { %v13179_v13 = vld [vmem:[#allocation5 + $0x45c] sm:$0xf0] }
  0x55   :  { %v9489_v14 = vld [vmem:[#allocation5 + $0x640] sm:$0xf]  ;;  %v9234_v20 = vor.u32 %v13179_v13, %v9233_v12  ;;  %3255 = vmatpush.bf16.msra.mxu1 %v8978_v19  ;;  %v131_v19 = vld [vmem:[#allocation2 + $0x8] sm:$0xff] }
  0x56   :  { %v13243_v15 = vld [vmem:[#allocation5 + $0x65c] sm:$0xf0] }
  0x57   :  { %v8689_v17 = vld [vmem:[#allocation5] sm:$0xf]  ;;  %v9490_v24 = vor.u32 %v13243_v15, %v9489_v14  ;;  %3268 = vmatpush.bf16.msra.mxu2 %v9234_v20  ;;  %v14437_v15 = vpack.c.bf16 %v133_v10, %v133_v10  ;;  %v9171_v10 = vld [vmem:[#allocation5 + $0x3e0] sm:$0xf0] }
  0x58   :  { %v13043_v18 = vld [vmem:[#allocation5 + $0x1c] sm:$0xf0] }
  0x59   :  { %v8945_v21 = vld [vmem:[#allocation5 + $0x200] sm:$0xf]  ;;  %v8690_v31 = vor.u32 %v13043_v18, %v8689_v17  ;;  %3281 = vmatpush.bf16.msra.mxu3 %v9490_v24 }
  0x5a   :  { %v13107_v22 = vld [vmem:[#allocation5 + $0x21c] sm:$0xf0] }
  0x5b   :  { %v9201_v23 = vld [vmem:[#allocation5 + $0x400] sm:$0xf]  ;;  %v8946_v35 = vor.u32 %v13107_v22, %v8945_v21  ;;  %3243 = vmatpush.bf16.msra.mxu0 %v8690_v31 }
  0x5c   :  { %v13171_v25 = vld [vmem:[#allocation5 + $0x41c] sm:$0xf0] }
  0x5d   :  { %v9457_v26 = vld [vmem:[#allocation5 + $0x600] sm:$0xf]  ;;  %v9202_v36 = vor.u32 %v13171_v25, %v9201_v23  ;;  %3256 = vmatpush.bf16.msra.mxu1 %v8946_v35  ;;  %v14442_v25 = vpack.c.bf16 %v131_v19, %v131_v19 }
  0x5e   :  { %v13235_v27 = vld [vmem:[#allocation5 + $0x61c] sm:$0xf0] }
  0x5f   :  { %v9937_v28 = vld [vmem:[#allocation5 + $0x9c0] sm:$0xf]  ;;  %v9458_v39 = vor.u32 %v13235_v27, %v9457_v26  ;;  %3269 = vmatpush.bf16.msra.mxu2 %v9202_v36 }
  0x60   :  { %v13355_v29 = vld [vmem:[#allocation5 + $0x9dc] sm:$0xf0]  ;;  %3257 = vmatmul.bf16.vlgmr.msra.gmra.mxu1 %v14442_v25 }
  0x61   :  { %v10193_v30 = vld [vmem:[#allocation5 + $0xbc0] sm:$0xf]  ;;  %v9938_v40 = vor.u32 %v13355_v29, %v9937_v28  ;;  %3282 = vmatpush.bf16.msra.mxu3 %v9458_v39 }
  0x62   :  { %v13419_v32 = vld [vmem:[#allocation5 + $0xbdc] sm:$0xf0]  ;;  %3270 = vmatmul.bf16.vlgmr.msra.gmra.mxu2 %v14433_v8 }
  0x63   :  { %v10449_v33 = vld [vmem:[#allocation5 + $0xdc0] sm:$0xf]  ;;  %v10194_v41 = vor.u32 %v13419_v32, %v10193_v30  ;;  %3288 = vmatpush.bf16.msrb.mxu0 %v9938_v40 }
  0x64   :  { %v13483_v34 = vld [vmem:[#allocation5 + $0xddc] sm:$0xf0]  ;;  %3283 = vmatmul.bf16.vlgmr.msra.gmra.mxu3 %v14437_v15 }
  0x65   :  { %v10705_v37 = vld [vmem:[#allocation5 + $0xfc0] sm:$0xf]  ;;  %v10450_v42 = vor.u32 %v13483_v34, %v10449_v33  ;;  %3301 = vmatpush.bf16.msrb.mxu1 %v10194_v41 }
  0x66   :  { %v13547_v38 = vld [vmem:[#allocation5 + $0xfdc] sm:$0xf0] }
  0x67   :  { %v9905_v43 = vld [vmem:[#allocation5 + $0x980] sm:$0xf]  ;;  %v10706_v46 = vor.u32 %v13547_v38, %v10705_v37  ;;  %3314 = vmatpush.bf16.msrb.mxu2 %v10450_v42 }
  0x68   :  { %v13347_v44 = vld [vmem:[#allocation5 + $0x99c] sm:$0xf0] }
  0x69   :  { %v10161_v45 = vld [vmem:[#allocation5 + $0xb80] sm:$0xf]  ;;  %v9906_v52 = vor.u32 %v13347_v44, %v9905_v43  ;;  %3327 = vmatpush.bf16.msrb.mxu3 %v10706_v46 }
  0x6a   :  { %v13411_v47 = vld [vmem:[#allocation5 + $0xb9c] sm:$0xf0] }
  0x6b   :  { %v10417_v48 = vld [vmem:[#allocation5 + $0xd80] sm:$0xf]  ;;  %v10162_v54 = vor.u32 %v13411_v47, %v10161_v45  ;;  %3289 = vmatpush.bf16.msrb.mxu0 %v9906_v52 }
  0x6c   :  { %v13475_v49 = vld [vmem:[#allocation5 + $0xd9c] sm:$0xf0] }
  0x6d   :  { %v10673_v50 = vld [vmem:[#allocation5 + $0xf80] sm:$0xf]  ;;  %v10418_v55 = vor.u32 %v13475_v49, %v10417_v48  ;;  %3302 = vmatpush.bf16.msrb.mxu1 %v10162_v54 }
  0x6e   :  { %v13539_v51 = vld [vmem:[#allocation5 + $0xf9c] sm:$0xf0] }
  0x6f   :  { %v9873_v53 = vld [vmem:[#allocation5 + $0x940] sm:$0xf]  ;;  %v10674_v59 = vor.u32 %v13539_v51, %v10673_v50  ;;  %3315 = vmatpush.bf16.msrb.mxu2 %v10418_v55 }
  0x70   :  { %v13339_v56 = vld [vmem:[#allocation5 + $0x95c] sm:$0xf0] }
  0x71   :  { %v10129_v57 = vld [vmem:[#allocation5 + $0xb40] sm:$0xf]  ;;  %v9874_v0 = vor.u32 %v13339_v56, %v9873_v53  ;;  %3328 = vmatpush.bf16.msrb.mxu3 %v10674_v59 }
  0x72   :  { %v13403_v58 = vld [vmem:[#allocation5 + $0xb5c] sm:$0xf0] }
  0x73   :  { %v10385_v60 = vld [vmem:[#allocation5 + $0xd40] sm:$0xf]  ;;  %v10130_v1 = vor.u32 %v13403_v58, %v10129_v57  ;;  %3290 = vmatpush.bf16.msrb.mxu0 %v9874_v0 }
  0x74   :  { %v13467_v61 = vld [vmem:[#allocation5 + $0xd5c] sm:$0xf0] }
  0x75   :  { %v10641_v62 = vld [vmem:[#allocation5 + $0xf40] sm:$0xf]  ;;  %v10386_v5 = vor.u32 %v13467_v61, %v10385_v60  ;;  %3303 = vmatpush.bf16.msrb.mxu1 %v10130_v1 }
  0x76   :  { %v13531_v63 = vld [vmem:[#allocation5 + $0xf5c] sm:$0xf0] }
  0x77   :  { %v9841_v2 = vld [vmem:[#allocation5 + $0x900] sm:$0xf]  ;;  %v10642_v11 = vor.u32 %v13531_v63, %v10641_v62  ;;  %3316 = vmatpush.bf16.msrb.mxu2 %v10386_v5  ;;  %v8915_v5 = vld [vmem:[#allocation5 + $0x1e0] sm:$0xf0] }
  0x78   :  { %v130_v4 = vld [vmem:[#allocation2] sm:$0xff] }
  0x79   :  { %v13331_v6 = vld [vmem:[#allocation5 + $0x91c] sm:$0xf0]  ;;  %v14435_v9 = vpack.c.bf16 %v130_v4, %v130_v4  ;;  %3329 = vmatpush.bf16.msrb.mxu3 %v10642_v11  ;;  %v13095_v4 = vld [vmem:[#allocation5 + $0x1c4] sm:$0xf] }
  0x7a   :  { %v10097_v7 = vld [vmem:[#allocation5 + $0xb00] sm:$0xf]  ;;  %v9842_v18 = vor.u32 %v13331_v6, %v9841_v2  ;;  %v13159_v6 = vld [vmem:[#allocation5 + $0x3c4] sm:$0xf] }
  0x7b   :  { %v13395_v12 = vld [vmem:[#allocation5 + $0xb1c] sm:$0xf0]  ;;  %3244 = vmatmul.bf16.vlgmr.msra.gmra.mxu0 %v14435_v9  ;;  %v13223_v11 = vld [vmem:[#allocation5 + $0x5c4] sm:$0xf] }
  0x7c   :  { %v10353_v13 = vld [vmem:[#allocation5 + $0xd00] sm:$0xf]  ;;  %v10098_v20 = vor.u32 %v13395_v12, %v10097_v7  ;;  %3291 = vmatpush.bf16.msrb.mxu0 %v9842_v18  ;;  %v9427_v12 = vld [vmem:[#allocation5 + $0x5e0] sm:$0xf0]  ;;  %v136_v18 = vld [vmem:[#allocation2 + $0x30] sm:$0xff] }
  0x7d   :  { %v13459_v14 = vld [vmem:[#allocation5 + $0xd1c] sm:$0xf0] }
  0x7e   :  { %v10609_v16 = vld [vmem:[#allocation5 + $0xf00] sm:$0xf]  ;;  %v10354_v21 = vor.u32 %v13459_v14, %v10353_v13  ;;  %3304 = vmatpush.bf16.msrb.mxu1 %v10098_v20  ;;  %v8918_v20 = vor.u32 %v13095_v4, %v8915_v5  ;;  %v8787_v4 = vld [vmem:[#allocation5 + $0xe0] sm:$0xf0] }
  0x7f   :  { %v13523_v17 = vld [vmem:[#allocation5 + $0xf1c] sm:$0xf0]  ;;  %v13127_v5 = vld [vmem:[#allocation5 + $0x2c4] sm:$0xf] }
  0x80   :  { %v9809_v22 = vld [vmem:[#allocation5 + $0x8c0] sm:$0xf]  ;;  %v10610_v26 = vor.u32 %v13523_v17, %v10609_v16  ;;  %3317 = vmatpush.bf16.msrb.mxu2 %v10354_v21  ;;  %v13287_v16 = vld [vmem:[#allocation5 + $0x7c4] sm:$0xf] }
  0x81   :  { %v13323_v23 = vld [vmem:[#allocation5 + $0x8dc] sm:$0xf0]  ;;  %v9683_v17 = vld [vmem:[#allocation5 + $0x7e0] sm:$0xf0] }
  0x82   :  { %v10065_v24 = vld [vmem:[#allocation5 + $0xac0] sm:$0xf]  ;;  %v9810_v32 = vor.u32 %v13323_v23, %v9809_v22  ;;  %3330 = vmatpush.bf16.msrb.mxu3 %v10610_v26  ;;  %v13087_v21 = vld [vmem:[#allocation5 + $0x184] sm:$0xf]  ;;  %v137_v23 = vld [vmem:[#allocation2 + $0x38] sm:$0xff]  ;;  %v9430_v26 = vor.u32 %v13223_v11, %v9427_v12 }
  0x83   :  { %v13387_v27 = vld [vmem:[#allocation5 + $0xadc] sm:$0xf0]  ;;  %v9299_v11 = vld [vmem:[#allocation5 + $0x4e0] sm:$0xf0] }
  0x84   :  { %v10321_v28 = vld [vmem:[#allocation5 + $0xcc0] sm:$0xf]  ;;  %v10066_v33 = vor.u32 %v13387_v27, %v10065_v24  ;;  %3292 = vmatpush.bf16.msrb.mxu0 %v9810_v32  ;;  %v9174_v24 = vor.u32 %v13159_v6, %v9171_v10  ;;  %v8883_v27 = vld [vmem:[#allocation5 + $0x1a0] sm:$0xf0] }
  0x85   :  { %v13451_v29 = vld [vmem:[#allocation5 + $0xcdc] sm:$0xf0]  ;;  %v13215_v32 = vld [vmem:[#allocation5 + $0x584] sm:$0xf] }
  0x86   :  { %v10577_v30 = vld [vmem:[#allocation5 + $0xec0] sm:$0xf]  ;;  %v10322_v34 = vor.u32 %v13451_v29, %v10321_v28  ;;  %3305 = vmatpush.bf16.msrb.mxu1 %v10066_v33  ;;  %v13151_v28 = vld [vmem:[#allocation5 + $0x384] sm:$0xf]  ;;  %v135_v29 = vld [vmem:[#allocation2 + $0x28] sm:$0xff] }
  0x87   :  { %v13515_v31 = vld [vmem:[#allocation5 + $0xedc] sm:$0xf0]  ;;  %v9395_v33 = vld [vmem:[#allocation5 + $0x5a0] sm:$0xf0] }
  0x88   :  { %v9777_v35 = vld [vmem:[#allocation5 + $0x880] sm:$0xf]  ;;  %v10578_v38 = vor.u32 %v13515_v31, %v10577_v30  ;;  %3318 = vmatpush.bf16.msrb.mxu2 %v10322_v34  ;;  %v9686_v30 = vor.u32 %v13287_v16, %v9683_v17  ;;  %v9139_v31 = vld [vmem:[#allocation5 + $0x3a0] sm:$0xf0]  ;;  %v14445_v34 = vpack.c.bf16 %v136_v18, %v136_v18 }
  0x89   :  { %v13315_v36 = vld [vmem:[#allocation5 + $0x89c] sm:$0xf0]  ;;  %v13191_v10 = vld [vmem:[#allocation5 + $0x4c4] sm:$0xf] }
  0x8a   :  { %v10033_v37 = vld [vmem:[#allocation5 + $0xa80] sm:$0xf]  ;;  %v9778_v44 = vor.u32 %v13315_v36, %v9777_v35  ;;  %3331 = vmatpush.bf16.msrb.mxu3 %v10578_v38  ;;  %v13279_v35 = vld [vmem:[#allocation5 + $0x784] sm:$0xf]  ;;  %v14449_v38 = vpack.c.bf16 %v137_v23, %v137_v23  ;;  %v9302_v17 = vor.u32 %v13191_v10, %v9299_v11 }
  0x8b   :  { %v13379_v39 = vld [vmem:[#allocation5 + $0xa9c] sm:$0xf0]  ;;  %v9651_v36 = vld [vmem:[#allocation5 + $0x7a0] sm:$0xf0] }
  0x8c   :  { %v10289_v40 = vld [vmem:[#allocation5 + $0xc80] sm:$0xf]  ;;  %v10034_v45 = vor.u32 %v13379_v39, %v10033_v37  ;;  %3293 = vmatpush.bf16.msrb.mxu0 %v9778_v44  ;;  %v8886_v39 = vor.u32 %v13087_v21, %v8883_v27  ;;  %v8851_v44 = vld [vmem:[#allocation5 + $0x160] sm:$0xf0] }
  0x8d   :  { %v13443_v41 = vld [vmem:[#allocation5 + $0xc9c] sm:$0xf0]  ;;  %v13255_v12 = vld [vmem:[#allocation5 + $0x6c4] sm:$0xf] }
  0x8e   :  { %v10545_v42 = vld [vmem:[#allocation5 + $0xe80] sm:$0xf]  ;;  %v10290_v46 = vor.u32 %v13443_v41, %v10289_v40  ;;  %3306 = vmatpush.bf16.msrb.mxu1 %v10034_v45  ;;  %v14451_v40 = vpack.c.bf16 %v135_v29, %v135_v29  ;;  %v9142_v41 = vor.u32 %v13151_v28, %v9139_v31  ;;  %v13143_v45 = vld [vmem:[#allocation5 + $0x344] sm:$0xf] }
  0x8f   :  { %v13507_v43 = vld [vmem:[#allocation5 + $0xe9c] sm:$0xf0]  ;;  %v13055_v18 = vld [vmem:[#allocation5 + $0x84] sm:$0xf] }
  0x90   :  { %v9745_v47 = vld [vmem:[#allocation5 + $0x840] sm:$0xf]  ;;  %v10546_v50 = vor.u32 %v13507_v43, %v10545_v42  ;;  %3319 = vmatpush.bf16.msrb.mxu2 %v10290_v46  ;;  %v9398_v42 = vor.u32 %v13215_v32, %v9395_v33  ;;  %v13079_v43 = vld [vmem:[#allocation5 + $0x144] sm:$0xf]  ;;  %v9654_v46 = vor.u32 %v13279_v35, %v9651_v36 }
  0x91   :  { %v13307_v48 = vld [vmem:[#allocation5 + $0x85c] sm:$0xf0]  ;;  %v13183_v23 = vld [vmem:[#allocation5 + $0x484] sm:$0xf] }
  0x92   :  { %v10001_v49 = vld [vmem:[#allocation5 + $0xa40] sm:$0xf]  ;;  %v9746_v56 = vor.u32 %v13307_v48, %v9745_v47  ;;  %3332 = vmatpush.bf16.msrb.mxu3 %v10546_v50  ;;  %v9107_v47 = vld [vmem:[#allocation5 + $0x360] sm:$0xf0] }
  0x93   :  { %v13371_v51 = vld [vmem:[#allocation5 + $0xa5c] sm:$0xf0]  ;;  %v13207_v48 = vld [vmem:[#allocation5 + $0x544] sm:$0xf] }
  0x94   :  { %v10257_v52 = vld [vmem:[#allocation5 + $0xc40] sm:$0xf]  ;;  %v10002_v59 = vor.u32 %v13371_v51, %v10001_v49  ;;  %3294 = vmatpush.bf16.msrb.mxu0 %v9746_v56  ;;  %v9363_v49 = vld [vmem:[#allocation5 + $0x560] sm:$0xf0] }
  0x95   :  { %v13435_v53 = vld [vmem:[#allocation5 + $0xc5c] sm:$0xf0]  ;;  %v13271_v50 = vld [vmem:[#allocation5 + $0x744] sm:$0xf] }
  0x96   :  { %v10513_v54 = vld [vmem:[#allocation5 + $0xe40] sm:$0xf]  ;;  %v10258_v60 = vor.u32 %v13435_v53, %v10257_v52  ;;  %3307 = vmatpush.bf16.msrb.mxu1 %v10002_v59  ;;  %v9619_v51 = vld [vmem:[#allocation5 + $0x760] sm:$0xf0]  ;;  %v8854_v52 = vor.u32 %v13079_v43, %v8851_v44  ;;  %v9110_v53 = vor.u32 %v13143_v45, %v9107_v47 }
  0x97   :  { %v13499_v55 = vld [vmem:[#allocation5 + $0xe5c] sm:$0xf0]  ;;  %v8819_v56 = vld [vmem:[#allocation5 + $0x120] sm:$0xf0] }
  0x98   :  { %v9713_v57 = vld [vmem:[#allocation5 + $0x800] sm:$0xf]  ;;  %v10514_v0 = vor.u32 %v13499_v55, %v10513_v54  ;;  %3320 = vmatpush.bf16.msrb.mxu2 %v10258_v60  ;;  %v9366_v54 = vor.u32 %v13207_v48, %v9363_v49  ;;  %v13071_v55 = vld [vmem:[#allocation5 + $0x104] sm:$0xf] }
  0x99   :  { %v13299_v58 = vld [vmem:[#allocation5 + $0x81c] sm:$0xf0]  ;;  %v9075_v59 = vld [vmem:[#allocation5 + $0x320] sm:$0xf0] }
  0x9a   :  { %v9969_v61 = vld [vmem:[#allocation5 + $0xa00] sm:$0xf]  ;;  %v9714_v7 = vor.u32 %v13299_v58, %v9713_v57  ;;  %3333 = vmatpush.bf16.msrb.mxu3 %v10514_v0  ;;  %v13135_v57 = vld [vmem:[#allocation5 + $0x304] sm:$0xf]  ;;  %v9622_v58 = vor.u32 %v13271_v50, %v9619_v51  ;;  %v8822_v0 = vor.u32 %v13071_v55, %v8819_v56 }
  0x9b   :  { %v13363_v62 = vld [vmem:[#allocation5 + $0xa1c] sm:$0xf0]  ;;  %v13199_v60 = vld [vmem:[#allocation5 + $0x504] sm:$0xf] }
  0x9c   :  { %v10225_v63 = vld [vmem:[#allocation5 + $0xc00] sm:$0xf]  ;;  %v9970_v13 = vor.u32 %v13363_v62, %v9969_v61  ;;  %3295 = vmatpush.bf16.msrb.mxu0 %v9714_v7  ;;  %v9331_v61 = vld [vmem:[#allocation5 + $0x520] sm:$0xf0] }
  0x9d   :  { %v13427_v1 = vld [vmem:[#allocation5 + $0xc1c] sm:$0xf0]  ;;  %v13263_v62 = vld [vmem:[#allocation5 + $0x704] sm:$0xf] }
  0x9e   :  { %v10481_v2 = vld [vmem:[#allocation5 + $0xe00] sm:$0xf]  ;;  %v10226_v14 = vor.u32 %v13427_v1, %v10225_v63  ;;  %3308 = vmatpush.bf16.msrb.mxu1 %v9970_v13  ;;  %v9587_v63 = vld [vmem:[#allocation5 + $0x720] sm:$0xf0]  ;;  %v9078_v1 = vor.u32 %v13135_v57, %v9075_v59 }
  0x9f   :  { %v13491_v3 = vld [vmem:[#allocation5 + $0xe1c] sm:$0xf0]  ;;  %v9590_v6 = vor.u32 %v13263_v62, %v9587_v63  ;;  %v9043_v7 = vld [vmem:[#allocation5 + $0x2e0] sm:$0xf0] }
  0xa0   :  { %v10482_v19 = vor.u32 %v13491_v3, %v10481_v2  ;;  %v134_v22 = vld [vmem:[#allocation2 + $0x20] sm:$0xff]  ;;  %3321 = vmatpush.bf16.msrb.mxu2 %v10226_v14  ;;  %3340 = vmatpush.bf16.msra.mxu0 %v8918_v20  ;;  %v9334_v2 = vor.u32 %v13199_v60, %v9331_v61  ;;  %v9046_v16 = vor.u32 %v13127_v5, %v9043_v7 }
  0xa1   :  { %v14447_v37 = vpack.c.bf16 %v134_v22, %v134_v22  ;;  %3309 = vmatmul.bf16.vlgmr.msrb.gmra.mxu1 %v14451_v40  ;;  %v13063_v3 = vld [vmem:[#allocation5 + $0xc4] sm:$0xf] }
  0xa2   :  { %3334 = vmatpush.bf16.msrb.mxu3 %v10482_v19  ;;  %3353 = vmatpush.bf16.msra.mxu1 %v9174_v24  ;;  %v9555_v13 = vld [vmem:[#allocation5 + $0x6e0] sm:$0xf0]  ;;  %v8790_v14 = vor.u32 %v13063_v3, %v8787_v4 }
  0xa3   :  { %3322 = vmatmul.bf16.vlgmr.msrb.gmra.mxu2 %v14445_v34  ;;  %3296 = vmatmul.bf16.vlgmr.msrb.gmra.mxu0 %v14447_v37  ;;  %v8755_v19 = vld [vmem:[#allocation5 + $0xa0] sm:$0xf0]  ;;  %v9558_v21 = vor.u32 %v13255_v12, %v9555_v13 }
  0xa4   :  { %3366 = vmatpush.bf16.msra.mxu2 %v9430_v26  ;;  %3341 = vmatpush.bf16.msra.mxu0 %v8886_v39  ;;  %v13119_v20 = vld [vmem:[#allocation5 + $0x284] sm:$0xf]  ;;  %v8758_v28 = vor.u32 %v13055_v18, %v8755_v19 }
  0xa5   :  { %3335 = vmatmul.bf16.vlgmr.msrb.gmra.mxu3 %v14449_v38  ;;  %v9011_v22 = vld [vmem:[#allocation5 + $0x2a0] sm:$0xf0] }
  0xa6   :  { %3379 = vmatpush.bf16.msra.mxu3 %v9686_v30  ;;  %3354 = vmatpush.bf16.msra.mxu1 %v9142_v41  ;;  %v9267_v24 = vld [vmem:[#allocation5 + $0x4a0] sm:$0xf0]  ;;  %v9014_v29 = vor.u32 %v13119_v20, %v9011_v22 }
  0xa7   :  { %v13247_v26 = vld [vmem:[#allocation5 + $0x684] sm:$0xf]  ;;  %v9270_v30 = vor.u32 %v13183_v23, %v9267_v24 }
  0xa8   :  { %3367 = vmatpush.bf16.msra.mxu2 %v9398_v42  ;;  %3342 = vmatpush.bf16.msra.mxu0 %v8854_v52  ;;  %v9523_v27 = vld [vmem:[#allocation5 + $0x6a0] sm:$0xf0] }
  0xa9   :  { %v13047_v31 = vld [vmem:[#allocation5 + $0x44] sm:$0xf]  ;;  %v9526_v35 = vor.u32 %v13247_v26, %v9523_v27 }
  0xaa   :  { %3380 = vmatpush.bf16.msra.mxu3 %v9654_v46  ;;  %3355 = vmatpush.bf16.msra.mxu1 %v9110_v53  ;;  %v8723_v32 = vld [vmem:[#allocation5 + $0x60] sm:$0xf0] }
  0xab   :  { %v13111_v33 = vld [vmem:[#allocation5 + $0x244] sm:$0xf]  ;;  %v8726_v44 = vor.u32 %v13047_v31, %v8723_v32 }
  0xac   :  { %3368 = vmatpush.bf16.msra.mxu2 %v9366_v54  ;;  %3343 = vmatpush.bf16.msra.mxu0 %v8822_v0  ;;  %v8979_v36 = vld [vmem:[#allocation5 + $0x260] sm:$0xf0] }
  0xad   :  { %v13175_v39 = vld [vmem:[#allocation5 + $0x444] sm:$0xf]  ;;  %v8982_v47 = vor.u32 %v13111_v33, %v8979_v36 }
  0xae   :  { %3381 = vmatpush.bf16.msra.mxu3 %v9622_v58  ;;  %3356 = vmatpush.bf16.msra.mxu1 %v9078_v1  ;;  %v9235_v41 = vld [vmem:[#allocation5 + $0x460] sm:$0xf0] }
  0xaf   :  { %v13239_v42 = vld [vmem:[#allocation5 + $0x644] sm:$0xf]  ;;  %v9238_v48 = vor.u32 %v13175_v39, %v9235_v41 }
  0xb0   :  { %3369 = vmatpush.bf16.msra.mxu2 %v9334_v2  ;;  %3344 = vmatpush.bf16.msra.mxu0 %v8790_v14  ;;  %v9491_v43 = vld [vmem:[#allocation5 + $0x660] sm:$0xf0] }
  0xb1   :  { %v13039_v45 = vld [vmem:[#allocation5 + $0x4] sm:$0xf]  ;;  %v9494_v52 = vor.u32 %v13239_v42, %v9491_v43 }
  0xb2   :  { %3382 = vmatpush.bf16.msra.mxu3 %v9590_v6  ;;  %3357 = vmatpush.bf16.msra.mxu1 %v9046_v16  ;;  %v8691_v46 = vld [vmem:[#allocation5 + $0x20] sm:$0xf0] }
  0xb3   :  { %v13103_v49 = vld [vmem:[#allocation5 + $0x204] sm:$0xf]  ;;  %v8694_v59 = vor.u32 %v13039_v45, %v8691_v46 }
  0xb4   :  { %3370 = vmatpush.bf16.msra.mxu2 %v9302_v17  ;;  %3345 = vmatpush.bf16.msra.mxu0 %v8758_v28  ;;  %v8947_v50 = vld [vmem:[#allocation5 + $0x220] sm:$0xf0] }
  0xb5   :  { %v13167_v51 = vld [vmem:[#allocation5 + $0x404] sm:$0xf]  ;;  %v8950_v63 = vor.u32 %v13103_v49, %v8947_v50 }
  0xb6   :  { %3383 = vmatpush.bf16.msra.mxu3 %v9558_v21  ;;  %3358 = vmatpush.bf16.msra.mxu1 %v9014_v29  ;;  %v9203_v53 = vld [vmem:[#allocation5 + $0x420] sm:$0xf0] }
  0xb7   :  { %v13231_v54 = vld [vmem:[#allocation5 + $0x604] sm:$0xf]  ;;  %v9206_v0 = vor.u32 %v13167_v51, %v9203_v53 }
  0xb8   :  { %3371 = vmatpush.bf16.msra.mxu2 %v9270_v30  ;;  %v9459_v55 = vld [vmem:[#allocation5 + $0x620] sm:$0xf0]  ;;  %3346 = vmatpush.bf16.msra.mxu0 %v8726_v44 }
  0xb9   :  { %v13351_v56 = vld [vmem:[#allocation5 + $0x9c4] sm:$0xf]  ;;  %v9462_v3 = vor.u32 %v13231_v54, %v9459_v55 }
  0xba   :  { %3384 = vmatpush.bf16.msra.mxu3 %v9526_v35  ;;  %v9939_v57 = vld [vmem:[#allocation5 + $0x9e0] sm:$0xf0]  ;;  %3359 = vmatpush.bf16.msra.mxu1 %v8982_v47 }
  0xbb   :  { %v13415_v58 = vld [vmem:[#allocation5 + $0xbc4] sm:$0xf]  ;;  %v9942_v4 = vor.u32 %v13351_v56, %v9939_v57 }
  0xbc   :  { %v10195_v60 = vld [vmem:[#allocation5 + $0xbe0] sm:$0xf0]  ;;  %3372 = vmatpush.bf16.msra.mxu2 %v9238_v48  ;;  %3347 = vmatpush.bf16.msra.mxu0 %v8694_v59 }
  0xbd   :  { %v13479_v61 = vld [vmem:[#allocation5 + $0xdc4] sm:$0xf]  ;;  %v10198_v5 = vor.u32 %v13415_v58, %v10195_v60 }
  0xbe   :  { %v10451_v62 = vld [vmem:[#allocation5 + $0xde0] sm:$0xf0]  ;;  %3385 = vmatpush.bf16.msra.mxu3 %v9494_v52  ;;  %3360 = vmatpush.bf16.msra.mxu1 %v8950_v63 }
  0xbf   :  { %v13543_v1 = vld [vmem:[#allocation5 + $0xfc4] sm:$0xf]  ;;  %v10454_v6 = vor.u32 %v13479_v61, %v10451_v62  ;;  %3348 = vmatmul.bf16.vlgmr.msra.gmra.mxu0 %v14435_v9 }
  0xc0   :  { %v10707_v2 = vld [vmem:[#allocation5 + $0xfe0] sm:$0xf0]  ;;  %3373 = vmatpush.bf16.msra.mxu2 %v9206_v0  ;;  %3392 = vmatpush.bf16.msrb.mxu0 %v9942_v4 }
  0xc1   :  { %v13343_v7 = vld [vmem:[#allocation5 + $0x984] sm:$0xf]  ;;  %v10710_v12 = vor.u32 %v13543_v1, %v10707_v2  ;;  %3361 = vmatmul.bf16.vlgmr.msra.gmra.mxu1 %v14442_v25 }
  0xc2   :  { %v9907_v10 = vld [vmem:[#allocation5 + $0x9a0] sm:$0xf0]  ;;  %3386 = vmatpush.bf16.msra.mxu3 %v9462_v3  ;;  %3405 = vmatpush.bf16.msrb.mxu1 %v10198_v5 }
  0xc3   :  { %v13407_v11 = vld [vmem:[#allocation5 + $0xb84] sm:$0xf]  ;;  %v9910_v19 = vor.u32 %v13343_v7, %v9907_v10  ;;  %3374 = vmatmul.bf16.vlgmr.msra.gmra.mxu2 %v14433_v8 }
  0xc4   :  { %v10163_v13 = vld [vmem:[#allocation5 + $0xba0] sm:$0xf0]  ;;  %3418 = vmatpush.bf16.msrb.mxu2 %v10454_v6 }
  0xc5   :  { %v13471_v14 = vld [vmem:[#allocation5 + $0xd84] sm:$0xf]  ;;  %v10166_v20 = vor.u32 %v13407_v11, %v10163_v13  ;;  %3387 = vmatmul.bf16.vlgmr.msra.gmra.mxu3 %v14437_v15  ;;  %3393 = vmatpush.bf16.msrb.mxu0 %v9910_v19 }
  0xc6   :  { %v10419_v16 = vld [vmem:[#allocation5 + $0xda0] sm:$0xf0]  ;;  %3431 = vmatpush.bf16.msrb.mxu3 %v10710_v12 }
  0xc7   :  { %v13535_v17 = vld [vmem:[#allocation5 + $0xf84] sm:$0xf]  ;;  %v10422_v21 = vor.u32 %v13471_v14, %v10419_v16  ;;  %3406 = vmatpush.bf16.msrb.mxu1 %v10166_v20 }
  0xc8   :  { %v10675_v18 = vld [vmem:[#allocation5 + $0xfa0] sm:$0xf0] }
  0xc9   :  { %v13335_v22 = vld [vmem:[#allocation5 + $0x944] sm:$0xf]  ;;  %v10678_v26 = vor.u32 %v13535_v17, %v10675_v18  ;;  %3419 = vmatpush.bf16.msrb.mxu2 %v10422_v21 }
  0xca   :  { %v9875_v23 = vld [vmem:[#allocation5 + $0x960] sm:$0xf0] }
  0xcb   :  { %v13399_v24 = vld [vmem:[#allocation5 + $0xb44] sm:$0xf]  ;;  %v9878_v32 = vor.u32 %v13335_v22, %v9875_v23  ;;  %3432 = vmatpush.bf16.msrb.mxu3 %v10678_v26 }
  0xcc   :  { %v10131_v27 = vld [vmem:[#allocation5 + $0xb60] sm:$0xf0] }
  0xcd   :  { %v13463_v28 = vld [vmem:[#allocation5 + $0xd44] sm:$0xf]  ;;  %v10134_v33 = vor.u32 %v13399_v24, %v10131_v27  ;;  %3394 = vmatpush.bf16.msrb.mxu0 %v9878_v32 }
  0xce   :  { %v10387_v29 = vld [vmem:[#allocation5 + $0xd60] sm:$0xf0] }
  0xcf   :  { %v13527_v30 = vld [vmem:[#allocation5 + $0xf44] sm:$0xf]  ;;  %v10390_v35 = vor.u32 %v13463_v28, %v10387_v29  ;;  %3407 = vmatpush.bf16.msrb.mxu1 %v10134_v33 }
  0xd0   :  { %v10643_v31 = vld [vmem:[#allocation5 + $0xf60] sm:$0xf0] }
  0xd1   :  { %v13327_v36 = vld [vmem:[#allocation5 + $0x904] sm:$0xf]  ;;  %v10646_v42 = vor.u32 %v13527_v30, %v10643_v31  ;;  %3420 = vmatpush.bf16.msrb.mxu2 %v10390_v35 }
  0xd2   :  { %v9843_v39 = vld [vmem:[#allocation5 + $0x920] sm:$0xf0] }
  0xd3   :  { %v13391_v41 = vld [vmem:[#allocation5 + $0xb04] sm:$0xf]  ;;  %v9846_v48 = vor.u32 %v13327_v36, %v9843_v39  ;;  %3433 = vmatpush.bf16.msrb.mxu3 %v10646_v42  ;;  %v8921_v39 = vld [vmem:[#allocation5 + $0x1c8] sm:$0xf] }
  0xd4   :  { %v10099_v43 = vld [vmem:[#allocation5 + $0xb20] sm:$0xf0]  ;;  %v9177_v42 = vld [vmem:[#allocation5 + $0x3c8] sm:$0xf] }
  0xd5   :  { %v13455_v44 = vld [vmem:[#allocation5 + $0xd04] sm:$0xf]  ;;  %v10102_v49 = vor.u32 %v13391_v41, %v10099_v43  ;;  %3395 = vmatpush.bf16.msrb.mxu0 %v9846_v48  ;;  %v13100_v41 = vld [vmem:[#allocation5 + $0x1e4] sm:$0xf0] }
  0xd6   :  { %v10355_v45 = vld [vmem:[#allocation5 + $0xd20] sm:$0xf0] }
  0xd7   :  { %v13519_v46 = vld [vmem:[#allocation5 + $0xf04] sm:$0xf]  ;;  %v10358_v50 = vor.u32 %v13455_v44, %v10355_v45  ;;  %3408 = vmatpush.bf16.msrb.mxu1 %v10102_v49  ;;  %v13164_v44 = vld [vmem:[#allocation5 + $0x3e4] sm:$0xf0] }
  0xd8   :  { %v10611_v47 = vld [vmem:[#allocation5 + $0xf20] sm:$0xf0]  ;;  %v9433_v45 = vld [vmem:[#allocation5 + $0x5c8] sm:$0xf] }
  0xd9   :  { %v13319_v51 = vld [vmem:[#allocation5 + $0x8c4] sm:$0xf]  ;;  %v10614_v54 = vor.u32 %v13519_v46, %v10611_v47  ;;  %3421 = vmatpush.bf16.msrb.mxu2 %v10358_v50  ;;  %v13228_v46 = vld [vmem:[#allocation5 + $0x5e4] sm:$0xf0] }
  0xda   :  { %v9811_v52 = vld [vmem:[#allocation5 + $0x8e0] sm:$0xf0]  ;;  %v9689_v49 = vld [vmem:[#allocation5 + $0x7c8] sm:$0xf] }
  0xdb   :  { %v13383_v53 = vld [vmem:[#allocation5 + $0xac4] sm:$0xf]  ;;  %v9814_v60 = vor.u32 %v13319_v51, %v9811_v52  ;;  %3434 = vmatpush.bf16.msrb.mxu3 %v10614_v54  ;;  %v13292_v50 = vld [vmem:[#allocation5 + $0x7e4] sm:$0xf0]  ;;  %v8922_v52 = vor.u32 %v13100_v41, %v8921_v39  ;;  %v9434_v54 = vor.u32 %v13228_v46, %v9433_v45 }
  0xdc   :  { %v10067_v55 = vld [vmem:[#allocation5 + $0xae0] sm:$0xf0]  ;;  %v9305_v39 = vld [vmem:[#allocation5 + $0x4c8] sm:$0xf] }
  0xdd   :  { %v13447_v56 = vld [vmem:[#allocation5 + $0xcc4] sm:$0xf]  ;;  %v10070_v61 = vor.u32 %v13383_v53, %v10067_v55  ;;  %3396 = vmatpush.bf16.msrb.mxu0 %v9814_v60  ;;  %v9178_v53 = vor.u32 %v13164_v44, %v9177_v42  ;;  %v8889_v55 = vld [vmem:[#allocation5 + $0x188] sm:$0xf] }
  0xde   :  { %v10323_v57 = vld [vmem:[#allocation5 + $0xce0] sm:$0xf0]  ;;  %v9401_v60 = vld [vmem:[#allocation5 + $0x588] sm:$0xf] }
  0xdf   :  { %v13511_v58 = vld [vmem:[#allocation5 + $0xec4] sm:$0xf]  ;;  %v10326_v62 = vor.u32 %v13447_v56, %v10323_v57  ;;  %3409 = vmatpush.bf16.msrb.mxu1 %v10070_v61  ;;  %v13092_v56 = vld [vmem:[#allocation5 + $0x1a4] sm:$0xf0] }
  0xe0   :  { %v10579_v59 = vld [vmem:[#allocation5 + $0xee0] sm:$0xf0]  ;;  %v9145_v57 = vld [vmem:[#allocation5 + $0x388] sm:$0xf] }
  0xe1   :  { %v13311_v63 = vld [vmem:[#allocation5 + $0x884] sm:$0xf]  ;;  %v10582_v2 = vor.u32 %v13511_v58, %v10579_v59  ;;  %3422 = vmatpush.bf16.msrb.mxu2 %v10326_v62  ;;  %v9690_v58 = vor.u32 %v13292_v50, %v9689_v49  ;;  %v13156_v59 = vld [vmem:[#allocation5 + $0x3a4] sm:$0xf0] }
  0xe2   :  { %v9779_v0 = vld [vmem:[#allocation5 + $0x8a0] sm:$0xf0]  ;;  %v13220_v61 = vld [vmem:[#allocation5 + $0x5a4] sm:$0xf0] }
  0xe3   :  { %v13375_v1 = vld [vmem:[#allocation5 + $0xa84] sm:$0xf]  ;;  %v9782_v10 = vor.u32 %v13311_v63, %v9779_v0  ;;  %3435 = vmatpush.bf16.msrb.mxu3 %v10582_v2  ;;  %v9657_v62 = vld [vmem:[#allocation5 + $0x788] sm:$0xf]  ;;  %v8890_v0 = vor.u32 %v13092_v56, %v8889_v55  ;;  %v9402_v2 = vor.u32 %v13220_v61, %v9401_v60 }
  0xe4   :  { %v10035_v3 = vld [vmem:[#allocation5 + $0xaa0] sm:$0xf0]  ;;  %v13284_v63 = vld [vmem:[#allocation5 + $0x7a4] sm:$0xf0] }
  0xe5   :  { %v13439_v4 = vld [vmem:[#allocation5 + $0xc84] sm:$0xf]  ;;  %v10038_v11 = vor.u32 %v13375_v1, %v10035_v3  ;;  %3397 = vmatpush.bf16.msrb.mxu0 %v9782_v10  ;;  %v9146_v1 = vor.u32 %v13156_v59, %v9145_v57  ;;  %v8857_v3 = vld [vmem:[#allocation5 + $0x148] sm:$0xf] }
  0xe6   :  { %v10291_v5 = vld [vmem:[#allocation5 + $0xca0] sm:$0xf0]  ;;  %v9369_v10 = vld [vmem:[#allocation5 + $0x548] sm:$0xf] }
  0xe7   :  { %v13503_v6 = vld [vmem:[#allocation5 + $0xe84] sm:$0xf]  ;;  %v10294_v12 = vor.u32 %v13439_v4, %v10291_v5  ;;  %3410 = vmatpush.bf16.msrb.mxu1 %v10038_v11  ;;  %v13084_v4 = vld [vmem:[#allocation5 + $0x164] sm:$0xf0] }
  0xe8   :  { %v10547_v7 = vld [vmem:[#allocation5 + $0xea0] sm:$0xf0]  ;;  %v9113_v5 = vld [vmem:[#allocation5 + $0x348] sm:$0xf] }
  0xe9   :  { %v13303_v13 = vld [vmem:[#allocation5 + $0x844] sm:$0xf]  ;;  %v10550_v17 = vor.u32 %v13503_v6, %v10547_v7  ;;  %3423 = vmatpush.bf16.msrb.mxu2 %v10294_v12  ;;  %v9658_v6 = vor.u32 %v13284_v63, %v9657_v62  ;;  %v13148_v7 = vld [vmem:[#allocation5 + $0x364] sm:$0xf0] }
  0xea   :  { %v9747_v14 = vld [vmem:[#allocation5 + $0x860] sm:$0xf0]  ;;  %v13212_v11 = vld [vmem:[#allocation5 + $0x564] sm:$0xf0] }
  0xeb   :  { %v13367_v16 = vld [vmem:[#allocation5 + $0xa44] sm:$0xf]  ;;  %v9750_v23 = vor.u32 %v13303_v13, %v9747_v14  ;;  %3436 = vmatpush.bf16.msrb.mxu3 %v10550_v17  ;;  %v9625_v12 = vld [vmem:[#allocation5 + $0x748] sm:$0xf]  ;;  %v8858_v14 = vor.u32 %v13084_v4, %v8857_v3  ;;  %v9370_v17 = vor.u32 %v13212_v11, %v9369_v10 }
  0xec   :  { %v10003_v18 = vld [vmem:[#allocation5 + $0xa60] sm:$0xf0]  ;;  %v13276_v13 = vld [vmem:[#allocation5 + $0x764] sm:$0xf0] }
  0xed   :  { %v13431_v19 = vld [vmem:[#allocation5 + $0xc44] sm:$0xf]  ;;  %v10006_v27 = vor.u32 %v13367_v16, %v10003_v18  ;;  %3398 = vmatpush.bf16.msrb.mxu0 %v9750_v23  ;;  %v9114_v16 = vor.u32 %v13148_v7, %v9113_v5  ;;  %v8825_v18 = vld [vmem:[#allocation5 + $0x108] sm:$0xf] }
  0xee   :  { %v10259_v20 = vld [vmem:[#allocation5 + $0xc60] sm:$0xf0]  ;;  %v9337_v23 = vld [vmem:[#allocation5 + $0x508] sm:$0xf] }
  0xef   :  { %v13495_v21 = vld [vmem:[#allocation5 + $0xe44] sm:$0xf]  ;;  %v10262_v28 = vor.u32 %v13431_v19, %v10259_v20  ;;  %3411 = vmatpush.bf16.msrb.mxu1 %v10006_v27  ;;  %v13076_v19 = vld [vmem:[#allocation5 + $0x124] sm:$0xf0] }
  0xf0   :  { %v10515_v22 = vld [vmem:[#allocation5 + $0xe60] sm:$0xf0]  ;;  %v9081_v20 = vld [vmem:[#allocation5 + $0x308] sm:$0xf] }
  0xf1   :  { %v13295_v24 = vld [vmem:[#allocation5 + $0x804] sm:$0xf]  ;;  %v10518_v32 = vor.u32 %v13495_v21, %v10515_v22  ;;  %3424 = vmatpush.bf16.msrb.mxu2 %v10262_v28  ;;  %v9626_v21 = vor.u32 %v13276_v13, %v9625_v12  ;;  %v13140_v22 = vld [vmem:[#allocation5 + $0x324] sm:$0xf0]  ;;  %v8826_v28 = vor.u32 %v13076_v19, %v8825_v18 }
  0xf2   :  { %v9715_v26 = vld [vmem:[#allocation5 + $0x820] sm:$0xf0]  ;;  %v13268_v27 = vld [vmem:[#allocation5 + $0x724] sm:$0xf0] }
  0xf3   :  { %v13359_v29 = vld [vmem:[#allocation5 + $0xa04] sm:$0xf]  ;;  %v9718_v43 = vor.u32 %v13295_v24, %v9715_v26  ;;  %3437 = vmatpush.bf16.msrb.mxu3 %v10518_v32  ;;  %v13204_v24 = vld [vmem:[#allocation5 + $0x524] sm:$0xf0] }
  0xf4   :  { %v9971_v30 = vld [vmem:[#allocation5 + $0xa20] sm:$0xf0]  ;;  %v9593_v26 = vld [vmem:[#allocation5 + $0x708] sm:$0xf] }
  0xf5   :  { %v13423_v31 = vld [vmem:[#allocation5 + $0xc04] sm:$0xf]  ;;  %v9974_v47 = vor.u32 %v13359_v29, %v9971_v30  ;;  %3399 = vmatpush.bf16.msrb.mxu0 %v9718_v43  ;;  %v9082_v29 = vor.u32 %v13140_v22, %v9081_v20  ;;  %v9338_v30 = vor.u32 %v13204_v24, %v9337_v23  ;;  %v13068_v32 = vld [vmem:[#allocation5 + $0xe4] sm:$0xf0] }
  0xf6   :  { %v10227_v33 = vld [vmem:[#allocation5 + $0xc20] sm:$0xf0]  ;;  %v13196_v41 = vld [vmem:[#allocation5 + $0x4e4] sm:$0xf0] }
  0xf7   :  { %v13487_v35 = vld [vmem:[#allocation5 + $0xe04] sm:$0xf]  ;;  %v10230_v48 = vor.u32 %v13423_v31, %v10227_v33  ;;  %3412 = vmatpush.bf16.msrb.mxu1 %v9974_v47  ;;  %v8793_v31 = vld [vmem:[#allocation5 + $0xc8] sm:$0xf]  ;;  %v9306_v46 = vor.u32 %v13196_v41, %v9305_v39 }
  0xf8   :  { %v10483_v36 = vld [vmem:[#allocation5 + $0xe20] sm:$0xf0]  ;;  %3400 = vmatmul.bf16.vlgmr.msrb.gmra.mxu0 %v14447_v37  ;;  %v9049_v33 = vld [vmem:[#allocation5 + $0x2c8] sm:$0xf]  ;;  %v8794_v44 = vor.u32 %v13068_v32, %v8793_v31 }
  0xf9   :  { %v10486_v51 = vor.u32 %v13487_v35, %v10483_v36  ;;  %3425 = vmatpush.bf16.msrb.mxu2 %v10230_v48  ;;  %3444 = vmatpush.bf16.msra.mxu0 %v8922_v52  ;;  %v9594_v35 = vor.u32 %v13268_v27, %v9593_v26  ;;  %v13132_v36 = vld [vmem:[#allocation5 + $0x2e4] sm:$0xf0] }
  0xfa   :  { %3413 = vmatmul.bf16.vlgmr.msrb.gmra.mxu1 %v14451_v40  ;;  %v9561_v42 = vld [vmem:[#allocation5 + $0x6c8] sm:$0xf]  ;;  %v9050_v45 = vor.u32 %v13132_v36, %v9049_v33 }
  0xfb   :  { %3438 = vmatpush.bf16.msrb.mxu3 %v10486_v51  ;;  %3457 = vmatpush.bf16.msra.mxu1 %v9178_v53  ;;  %v13260_v43 = vld [vmem:[#allocation5 + $0x6e4] sm:$0xf0] }
  0xfc   :  { %3426 = vmatmul.bf16.vlgmr.msrb.gmra.mxu2 %v14445_v34  ;;  %v8761_v47 = vld [vmem:[#allocation5 + $0x88] sm:$0xf]  ;;  %v9562_v50 = vor.u32 %v13260_v43, %v9561_v42 }
  0xfd   :  { %3470 = vmatpush.bf16.msra.mxu2 %v9434_v54  ;;  %3445 = vmatpush.bf16.msra.mxu0 %v8890_v0  ;;  %v13060_v48 = vld [vmem:[#allocation5 + $0xa4] sm:$0xf0] }
  0xfe   :  { %3439 = vmatmul.bf16.vlgmr.msrb.gmra.mxu3 %v14449_v38  ;;  %v9017_v49 = vld [vmem:[#allocation5 + $0x288] sm:$0xf]  ;;  %v8762_v56 = vor.u32 %v13060_v48, %v8761_v47 }
  0xff   :  { %3483 = vmatpush.bf16.msra.mxu3 %v9690_v58  ;;  %3458 = vmatpush.bf16.msra.mxu1 %v9146_v1  ;;  %v13124_v51 = vld [vmem:[#allocation5 + $0x2a4] sm:$0xf0] }
 0x100   :  { %v9273_v52 = vld [vmem:[#allocation5 + $0x488] sm:$0xf]  ;;  %v9018_v57 = vor.u32 %v13124_v51, %v9017_v49 }
 0x101   :  { %3471 = vmatpush.bf16.msra.mxu2 %v9402_v2  ;;  %3446 = vmatpush.bf16.msra.mxu0 %v8858_v14  ;;  %v13188_v53 = vld [vmem:[#allocation5 + $0x4a4] sm:$0xf0] }
 0x102   :  { %v9529_v54 = vld [vmem:[#allocation5 + $0x688] sm:$0xf]  ;;  %v9274_v58 = vor.u32 %v13188_v53, %v9273_v52 }
 0x103   :  { %3484 = vmatpush.bf16.msra.mxu3 %v9658_v6  ;;  %3459 = vmatpush.bf16.msra.mxu1 %v9114_v16  ;;  %v13252_v55 = vld [vmem:[#allocation5 + $0x6a4] sm:$0xf0] }
 0x104   :  { %v8729_v59 = vld [vmem:[#allocation5 + $0x48] sm:$0xf]  ;;  %v9530_v62 = vor.u32 %v13252_v55, %v9529_v54 }
 0x105   :  { %3472 = vmatpush.bf16.msra.mxu2 %v9370_v17  ;;  %3447 = vmatpush.bf16.msra.mxu0 %v8826_v28  ;;  %v13052_v60 = vld [vmem:[#allocation5 + $0x64] sm:$0xf0] }
 0x106   :  { %v8985_v61 = vld [vmem:[#allocation5 + $0x248] sm:$0xf]  ;;  %v8730_v4 = vor.u32 %v13052_v60, %v8729_v59 }
 0x107   :  { %3485 = vmatpush.bf16.msra.mxu3 %v9626_v21  ;;  %3460 = vmatpush.bf16.msra.mxu1 %v9082_v29  ;;  %v13116_v63 = vld [vmem:[#allocation5 + $0x264] sm:$0xf0] }
 0x108   :  { %v9241_v0 = vld [vmem:[#allocation5 + $0x448] sm:$0xf]  ;;  %v8986_v7 = vor.u32 %v13116_v63, %v8985_v61 }
 0x109   :  { %3473 = vmatpush.bf16.msra.mxu2 %v9338_v30  ;;  %3448 = vmatpush.bf16.msra.mxu0 %v8794_v44  ;;  %v13180_v1 = vld [vmem:[#allocation5 + $0x464] sm:$0xf0] }
 0x10a   :  { %v9497_v2 = vld [vmem:[#allocation5 + $0x648] sm:$0xf]  ;;  %v9242_v10 = vor.u32 %v13180_v1, %v9241_v0 }
 0x10b   :  { %3486 = vmatpush.bf16.msra.mxu3 %v9594_v35  ;;  %3461 = vmatpush.bf16.msra.mxu1 %v9050_v45  ;;  %v13244_v3 = vld [vmem:[#allocation5 + $0x664] sm:$0xf0] }
 0x10c   :  { %v8697_v5 = vld [vmem:[#allocation5 + $0x8] sm:$0xf]  ;;  %v9498_v14 = vor.u32 %v13244_v3, %v9497_v2 }
 0x10d   :  { %3474 = vmatpush.bf16.msra.mxu2 %v9306_v46  ;;  %3449 = vmatpush.bf16.msra.mxu0 %v8762_v56  ;;  %v13044_v6 = vld [vmem:[#allocation5 + $0x24] sm:$0xf0] }
 0x10e   :  { %v8953_v11 = vld [vmem:[#allocation5 + $0x208] sm:$0xf]  ;;  %v8698_v22 = vor.u32 %v13044_v6, %v8697_v5  ;;  %v14469_v6 = vld [vmem:[#allocation7] sm:$0xff] }
 0x10f   :  { %3487 = vmatpush.bf16.msra.mxu3 %v9562_v50  ;;  %3462 = vmatpush.bf16.msra.mxu1 %v9018_v57  ;;  %v13108_v12 = vld [vmem:[#allocation5 + $0x224] sm:$0xf0] }
 0x110   :  { %v9209_v13 = vld [vmem:[#allocation5 + $0x408] sm:$0xf]  ;;  %v8954_v27 = vor.u32 %v13108_v12, %v8953_v11 }
 0x111   :  { %3475 = vmatpush.bf16.msra.mxu2 %v9274_v58  ;;  %v13172_v16 = vld [vmem:[#allocation5 + $0x424] sm:$0xf0]  ;;  %3450 = vmatpush.bf16.msra.mxu0 %v8730_v4 }
 0x112   :  { %v9465_v17 = vld [vmem:[#allocation5 + $0x608] sm:$0xf]  ;;  %v9210_v28 = vor.u32 %v13172_v16, %v9209_v13 }
 0x113   :  { %3488 = vmatpush.bf16.msra.mxu3 %v9530_v62  ;;  %v13236_v18 = vld [vmem:[#allocation5 + $0x624] sm:$0xf0]  ;;  %3463 = vmatpush.bf16.msra.mxu1 %v8986_v7 }
 0x114   :  { %v9945_v19 = vld [vmem:[#allocation5 + $0x9c8] sm:$0xf]  ;;  %v9466_v31 = vor.u32 %v13236_v18, %v9465_v17  ;;  %v660_v18 = vperm.slane %v14469_v6, 0 }
 0x115   :  { %v13356_v20 = vld [vmem:[#allocation5 + $0x9e4] sm:$0xf0]  ;;  %3476 = vmatpush.bf16.msra.mxu2 %v9242_v10  ;;  %3451 = vmatpush.bf16.msra.mxu0 %v8698_v22 }
 0x116   :  { %v10201_v21 = vld [vmem:[#allocation5 + $0xbc8] sm:$0xf]  ;;  %v9946_v32 = vor.u32 %v13356_v20, %v9945_v19 }
 0x117   :  { %v13420_v23 = vld [vmem:[#allocation5 + $0xbe4] sm:$0xf0]  ;;  %3489 = vmatpush.bf16.msra.mxu3 %v9498_v14  ;;  %3464 = vmatpush.bf16.msra.mxu1 %v8954_v27  ;;  %v3245_v27 = vpop.f32.mrf.mxu0 }
 0x118   :  { %v10457_v24 = vld [vmem:[#allocation5 + $0xdc8] sm:$0xf]  ;;  %v10202_v33 = vor.u32 %v13420_v23, %v10201_v21  ;;  %3452 = vmatmul.bf16.vlgmr.msra.gmra.mxu0 %v14435_v9 }
 0x119   :  { %v13484_v26 = vld [vmem:[#allocation5 + $0xde4] sm:$0xf0]  ;;  %3477 = vmatpush.bf16.msra.mxu2 %v9210_v28  ;;  %3496 = vmatpush.bf16.msrb.mxu0 %v9946_v32 }
 0x11a   :  { %v10713_v29 = vld [vmem:[#allocation5 + $0xfc8] sm:$0xf]  ;;  %v10458_v35 = vor.u32 %v13484_v26, %v10457_v24  ;;  %3465 = vmatmul.bf16.vlgmr.msra.gmra.mxu1 %v14442_v25 }
 0x11b   :  { %v13548_v30 = vld [vmem:[#allocation5 + $0xfe4] sm:$0xf0]  ;;  %3490 = vmatpush.bf16.msra.mxu3 %v9466_v31  ;;  %3509 = vmatpush.bf16.msrb.mxu1 %v10202_v33  ;;  %v3246_v33 = vadd.f32 %v3245_v27, %v660_v18  ;;  %v9691_v27 = vld [vmem:[#allocation5 + $0x7e8] sm:$0xf0] }
 0x11c   :  { %v9913_v36 = vld [vmem:[#allocation5 + $0x988] sm:$0xf]  ;;  %v10714_v42 = vor.u32 %v13548_v30, %v10713_v29  ;;  %3478 = vmatmul.bf16.vlgmr.msra.gmra.mxu2 %v14433_v8 }
 0x11d   :  { %v13348_v39 = vld [vmem:[#allocation5 + $0x9a4] sm:$0xf0]  ;;  %3522 = vmatpush.bf16.msrb.mxu2 %v10458_v35 }
 0x11e   :  { %v10169_v41 = vld [vmem:[#allocation5 + $0xb88] sm:$0xf]  ;;  %v9914_v48 = vor.u32 %v13348_v39, %v9913_v36  ;;  %3491 = vmatmul.bf16.vlgmr.msra.gmra.mxu3 %v14437_v15 }
 0x11f   :  { %v13412_v43 = vld [vmem:[#allocation5 + $0xba4] sm:$0xf0]  ;;  %3535 = vmatpush.bf16.msrb.mxu3 %v10714_v42 }
 0x120   :  { %v10425_v44 = vld [vmem:[#allocation5 + $0xd88] sm:$0xf]  ;;  %v10170_v49 = vor.u32 %v13412_v43, %v10169_v41  ;;  %3497 = vmatpush.bf16.msrb.mxu0 %v9914_v48 }
 0x121   :  { %v13476_v45 = vld [vmem:[#allocation5 + $0xda4] sm:$0xf0] }
 0x122   :  { %v10681_v46 = vld [vmem:[#allocation5 + $0xf88] sm:$0xf]  ;;  %v10426_v50 = vor.u32 %v13476_v45, %v10425_v44  ;;  %3510 = vmatpush.bf16.msrb.mxu1 %v10170_v49  ;;  %v3258_v45 = vpop.f32.mrf.mxu1 }
 0x123   :  { %v13540_v47 = vld [vmem:[#allocation5 + $0xfa4] sm:$0xf0] }
 0x124   :  { %v9881_v51 = vld [vmem:[#allocation5 + $0x948] sm:$0xf]  ;;  %v10682_v54 = vor.u32 %v13540_v47, %v10681_v46  ;;  %3523 = vmatpush.bf16.msrb.mxu2 %v10426_v50 }
 0x125   :  { %v13340_v52 = vld [vmem:[#allocation5 + $0x964] sm:$0xf0] }
 0x126   :  { %v10137_v53 = vld [vmem:[#allocation5 + $0xb48] sm:$0xf]  ;;  %v9882_v60 = vor.u32 %v13340_v52, %v9881_v51  ;;  %3536 = vmatpush.bf16.msrb.mxu3 %v10682_v54  ;;  %v3259_v51 = vadd.f32 %v3258_v45, %v3246_v33  ;;  %v13088_v33 = vld [vmem:[#allocation5 + $0x18c] sm:$0xf] }
 0x127   :  { %v13404_v55 = vld [vmem:[#allocation5 + $0xb64] sm:$0xf0]  ;;  %v13280_v45 = vld [vmem:[#allocation5 + $0x78c] sm:$0xf] }
 0x128   :  { %v10393_v56 = vld [vmem:[#allocation5 + $0xd48] sm:$0xf]  ;;  %v10138_v62 = vor.u32 %v13404_v55, %v10137_v53  ;;  %3498 = vmatpush.bf16.msrb.mxu0 %v9882_v60  ;;  %v3284_v60 = vpop.f32.mrf.mxu3 }
 0x129   :  { %v13468_v57 = vld [vmem:[#allocation5 + $0xd64] sm:$0xf0] }
 0x12a   :  { %v10649_v58 = vld [vmem:[#allocation5 + $0xf48] sm:$0xf]  ;;  %v10394_v63 = vor.u32 %v13468_v57, %v10393_v56  ;;  %3511 = vmatpush.bf16.msrb.mxu1 %v10138_v62  ;;  %v3271_v56 = vpop.f32.mrf.mxu2 }
 0x12b   :  { %v13532_v59 = vld [vmem:[#allocation5 + $0xf64] sm:$0xf0] }
 0x12c   :  { %v9849_v61 = vld [vmem:[#allocation5 + $0x908] sm:$0xf]  ;;  %v10650_v3 = vor.u32 %v13532_v59, %v10649_v58  ;;  %3524 = vmatpush.bf16.msrb.mxu2 %v10394_v63  ;;  %v3272_v59 = vadd.f32 %v3271_v56, %v3259_v51  ;;  %v8859_v51 = vld [vmem:[#allocation5 + $0x168] sm:$0xf0] }
 0x12d   :  { %v13332_v0 = vld [vmem:[#allocation5 + $0x924] sm:$0xf0]  ;;  %v9371_v56 = vld [vmem:[#allocation5 + $0x568] sm:$0xf0] }
 0x12e   :  { %v10105_v1 = vld [vmem:[#allocation5 + $0xb08] sm:$0xf]  ;;  %v9850_v11 = vor.u32 %v13332_v0, %v9849_v61  ;;  %3537 = vmatpush.bf16.msrb.mxu3 %v10650_v3  ;;  %v3247_v0 = vpop.f32.mrf.mxu0 }
 0x12f   :  { %v13396_v2 = vld [vmem:[#allocation5 + $0xb24] sm:$0xf0]  ;;  %v13136_v0 = vld [vmem:[#allocation5 + $0x30c] sm:$0xf] }
 0x130   :  { %v10361_v4 = vld [vmem:[#allocation5 + $0xd08] sm:$0xf]  ;;  %v10106_v13 = vor.u32 %v13396_v2, %v10105_v1  ;;  %3499 = vmatpush.bf16.msrb.mxu0 %v9850_v11 }
 0x131   :  { %v13460_v5 = vld [vmem:[#allocation5 + $0xd24] sm:$0xf0] }
 0x132   :  { %v10617_v7 = vld [vmem:[#allocation5 + $0xf08] sm:$0xf]  ;;  %v10362_v14 = vor.u32 %v13460_v5, %v10361_v4  ;;  %3512 = vmatpush.bf16.msrb.mxu1 %v10106_v13 }
 0x133   :  { %v13524_v10 = vld [vmem:[#allocation5 + $0xf24] sm:$0xf0] }
 0x134   :  { %v9817_v12 = vld [vmem:[#allocation5 + $0x8c8] sm:$0xf]  ;;  %v10618_v19 = vor.u32 %v13524_v10, %v10617_v7  ;;  %3525 = vmatpush.bf16.msrb.mxu2 %v10362_v14  ;;  %v14472_v7 = vadd.f32 %v3284_v60, %v3272_v59  ;;  %v13096_v14 = vld [vmem:[#allocation5 + $0x1cc] sm:$0xf] }
 0x135   :  { %v13324_v16 = vld [vmem:[#allocation5 + $0x8e4] sm:$0xf0] }
 0x136   :  { %v10073_v17 = vld [vmem:[#allocation5 + $0xac8] sm:$0xf]  ;;  %v9818_v26 = vor.u32 %v13324_v16, %v9817_v12  ;;  %3538 = vmatpush.bf16.msrb.mxu3 %v10618_v19  ;;  %v8923_v16 = vld [vmem:[#allocation5 + $0x1e8] sm:$0xf0] }
 0x137   :  { %v13388_v20 = vld [vmem:[#allocation5 + $0xae4] sm:$0xf0]  ;;  %v9179_v19 = vld [vmem:[#allocation5 + $0x3e8] sm:$0xf0] }
 0x138   :  { %v10329_v21 = vld [vmem:[#allocation5 + $0xcc8] sm:$0xf]  ;;  %v10074_v28 = vor.u32 %v13388_v20, %v10073_v17  ;;  %3500 = vmatpush.bf16.msrb.mxu0 %v9818_v26  ;;  %v13160_v17 = vld [vmem:[#allocation5 + $0x3cc] sm:$0xf] }
 0x139   :  { %v13452_v22 = vld [vmem:[#allocation5 + $0xce4] sm:$0xf0]  ;;  %v13224_v20 = vld [vmem:[#allocation5 + $0x5cc] sm:$0xf] }
 0x13a   :  { %v10585_v23 = vld [vmem:[#allocation5 + $0xec8] sm:$0xf]  ;;  %v10330_v29 = vor.u32 %v13452_v22, %v10329_v21  ;;  %3513 = vmatpush.bf16.msrb.mxu1 %v10074_v28  ;;  %v9435_v21 = vld [vmem:[#allocation5 + $0x5e8] sm:$0xf0]  ;;  %v3260_v22 = vpop.f32.mrf.mxu1 }
 0x13b   :  { %v13516_v24 = vld [vmem:[#allocation5 + $0xee4] sm:$0xf0]  ;;  %v13288_v26 = vld [vmem:[#allocation5 + $0x7cc] sm:$0xf] }
 0x13c   :  { %v9785_v30 = vld [vmem:[#allocation5 + $0x888] sm:$0xf]  ;;  %v10586_v35 = vor.u32 %v13516_v24, %v10585_v23  ;;  %3526 = vmatpush.bf16.msrb.mxu2 %v10330_v29  ;;  %v8926_v29 = vor.u32 %v13096_v14, %v8923_v16  ;;  %v13064_v16 = vld [vmem:[#allocation5 + $0xcc] sm:$0xf] }
 0x13d   :  { %v13316_v31 = vld [vmem:[#allocation5 + $0x8a4] sm:$0xf0]  ;;  %v9051_v22 = vld [vmem:[#allocation5 + $0x2e8] sm:$0xf0] }
 0x13e   :  { %v10041_v32 = vld [vmem:[#allocation5 + $0xa88] sm:$0xf]  ;;  %v9786_v44 = vor.u32 %v13316_v31, %v9785_v30  ;;  %3539 = vmatpush.bf16.msrb.mxu3 %v10586_v35  ;;  %v3273_v30 = vpop.f32.mrf.mxu2  ;;  %v9182_v31 = vor.u32 %v13160_v17, %v9179_v19  ;;  %v8891_v35 = vld [vmem:[#allocation5 + $0x1a8] sm:$0xf0] }
 0x13f   :  { %v13380_v36 = vld [vmem:[#allocation5 + $0xaa4] sm:$0xf0]  ;;  %v8795_v17 = vld [vmem:[#allocation5 + $0xe8] sm:$0xf0] }
 0x140   :  { %v10297_v39 = vld [vmem:[#allocation5 + $0xc88] sm:$0xf]  ;;  %v10042_v46 = vor.u32 %v13380_v36, %v10041_v32  ;;  %3501 = vmatpush.bf16.msrb.mxu0 %v9786_v44  ;;  %v9438_v32 = vor.u32 %v13224_v20, %v9435_v21  ;;  %v13152_v36 = vld [vmem:[#allocation5 + $0x38c] sm:$0xf] }
 0x141   :  { %v13444_v41 = vld [vmem:[#allocation5 + $0xca4] sm:$0xf0]  ;;  %v9403_v44 = vld [vmem:[#allocation5 + $0x5a8] sm:$0xf0] }
 0x142   :  { %v10553_v42 = vld [vmem:[#allocation5 + $0xe88] sm:$0xf]  ;;  %v10298_v47 = vor.u32 %v13444_v41, %v10297_v39  ;;  %3514 = vmatpush.bf16.msrb.mxu1 %v10042_v46  ;;  %v3286_v39 = vpop.f32.mrf.mxu3  ;;  %v9694_v41 = vor.u32 %v13288_v26, %v9691_v27  ;;  %v9659_v46 = vld [vmem:[#allocation5 + $0x7a8] sm:$0xf0]  ;;  %v3310_v20 = vpop.f32.mrf.mxu1 }
 0x143   :  { %v13508_v43 = vld [vmem:[#allocation5 + $0xea4] sm:$0xf0]  ;;  %v13256_v26 = vld [vmem:[#allocation5 + $0x6cc] sm:$0xf] }
 0x144   :  { %v9753_v48 = vld [vmem:[#allocation5 + $0x848] sm:$0xf]  ;;  %v10554_v52 = vor.u32 %v13508_v43, %v10553_v42  ;;  %3527 = vmatpush.bf16.msrb.mxu2 %v10298_v47  ;;  %v9147_v42 = vld [vmem:[#allocation5 + $0x3a8] sm:$0xf0]  ;;  %v8894_v47 = vor.u32 %v13088_v33, %v8891_v35 }
 0x145   :  { %v13308_v49 = vld [vmem:[#allocation5 + $0x864] sm:$0xf0]  ;;  %v13216_v43 = vld [vmem:[#allocation5 + $0x58c] sm:$0xf] }
 0x146   :  { %v10009_v50 = vld [vmem:[#allocation5 + $0xa48] sm:$0xf]  ;;  %v9754_v61 = vor.u32 %v13308_v49, %v9753_v48  ;;  %3540 = vmatpush.bf16.msrb.mxu3 %v10554_v52  ;;  %v9150_v48 = vor.u32 %v13152_v36, %v9147_v42  ;;  %v9406_v49 = vor.u32 %v13216_v43, %v9403_v44  ;;  %v13144_v52 = vld [vmem:[#allocation5 + $0x34c] sm:$0xf]  ;;  %v3323_v36 = vpop.f32.mrf.mxu2 }
 0x147   :  { %v13372_v53 = vld [vmem:[#allocation5 + $0xa64] sm:$0xf0]  ;;  %v9563_v27 = vld [vmem:[#allocation5 + $0x6e8] sm:$0xf0] }
 0x148   :  { %v10265_v54 = vld [vmem:[#allocation5 + $0xc48] sm:$0xf]  ;;  %v10010_v1 = vor.u32 %v13372_v53, %v10009_v50  ;;  %3502 = vmatpush.bf16.msrb.mxu0 %v9754_v61  ;;  %v13080_v50 = vld [vmem:[#allocation5 + $0x14c] sm:$0xf]  ;;  %v9662_v53 = vor.u32 %v13280_v45, %v9659_v46 }
 0x149   :  { %v13436_v55 = vld [vmem:[#allocation5 + $0xc64] sm:$0xf0]  ;;  %v8862_v59 = vor.u32 %v13080_v50, %v8859_v51  ;;  %v8763_v33 = vld [vmem:[#allocation5 + $0xa8] sm:$0xf0] }
 0x14a   :  { %v10521_v57 = vld [vmem:[#allocation5 + $0xe48] sm:$0xf]  ;;  %v10266_v2 = vor.u32 %v13436_v55, %v10265_v54  ;;  %3515 = vmatpush.bf16.msrb.mxu1 %v10010_v1  ;;  %v9115_v54 = vld [vmem:[#allocation5 + $0x368] sm:$0xf0]  ;;  %v3336_v44 = vpop.f32.mrf.mxu3 }
 0x14b   :  { %v13500_v58 = vld [vmem:[#allocation5 + $0xe64] sm:$0xf0]  ;;  %v13208_v55 = vld [vmem:[#allocation5 + $0x54c] sm:$0xf]  ;;  %v9118_v60 = vor.u32 %v13144_v52, %v9115_v54 }
 0x14c   :  { %v9721_v62 = vld [vmem:[#allocation5 + $0x808] sm:$0xf]  ;;  %v10522_v10 = vor.u32 %v13500_v58, %v10521_v57  ;;  %3528 = vmatpush.bf16.msrb.mxu2 %v10266_v2  ;;  %v13272_v57 = vld [vmem:[#allocation5 + $0x74c] sm:$0xf]  ;;  %v9374_v61 = vor.u32 %v13208_v55, %v9371_v56  ;;  %v3312_v55 = vpop.f32.mrf.mxu1 }
 0x14d   :  { %v13300_v63 = vld [vmem:[#allocation5 + $0x824] sm:$0xf0]  ;;  %v9627_v58 = vld [vmem:[#allocation5 + $0x768] sm:$0xf0] }
 0x14e   :  { %v9977_v3 = vld [vmem:[#allocation5 + $0xa08] sm:$0xf]  ;;  %v9722_v18 = vor.u32 %v13300_v63, %v9721_v62  ;;  %3541 = vmatpush.bf16.msrb.mxu3 %v10522_v10  ;;  %v13072_v62 = vld [vmem:[#allocation5 + $0x10c] sm:$0xf]  ;;  %v9630_v1 = vor.u32 %v13272_v57, %v9627_v58 }
 0x14f   :  { %v13364_v4 = vld [vmem:[#allocation5 + $0xa24] sm:$0xf0]  ;;  %v8827_v63 = vld [vmem:[#allocation5 + $0x128] sm:$0xf0] }
 0x150   :  { %v10233_v5 = vld [vmem:[#allocation5 + $0xc08] sm:$0xf]  ;;  %v9978_v23 = vor.u32 %v13364_v4, %v9977_v3  ;;  %3503 = vmatpush.bf16.msrb.mxu0 %v9722_v18  ;;  %v9083_v2 = vld [vmem:[#allocation5 + $0x328] sm:$0xf0] }
 0x151   :  { %v13428_v11 = vld [vmem:[#allocation5 + $0xc24] sm:$0xf0]  ;;  %v13200_v3 = vld [vmem:[#allocation5 + $0x50c] sm:$0xf] }
 0x152   :  { %v10489_v12 = vld [vmem:[#allocation5 + $0xe08] sm:$0xf]  ;;  %v10234_v24 = vor.u32 %v13428_v11, %v10233_v5  ;;  %3516 = vmatpush.bf16.msrb.mxu1 %v9978_v23  ;;  %v9339_v4 = vld [vmem:[#allocation5 + $0x528] sm:$0xf0]  ;;  %v8830_v11 = vor.u32 %v13072_v62, %v8827_v63 }
 0x153   :  { %v13492_v13 = vld [vmem:[#allocation5 + $0xe24] sm:$0xf0]  ;;  %3504 = vmatmul.bf16.vlgmr.msrb.gmra.mxu0 %v14447_v37  ;;  %v13264_v5 = vld [vmem:[#allocation5 + $0x70c] sm:$0xf]  ;;  %v9342_v14 = vor.u32 %v13200_v3, %v9339_v4 }
 0x154   :  { %v10490_v28 = vor.u32 %v13492_v13, %v10489_v12  ;;  %3529 = vmatpush.bf16.msrb.mxu2 %v10234_v24  ;;  %3548 = vmatpush.bf16.msra.mxu0 %v8926_v29  ;;  %v9595_v10 = vld [vmem:[#allocation5 + $0x728] sm:$0xf0]  ;;  %v3297_v12 = vpop.f32.mrf.mxu0  ;;  %v9086_v13 = vor.u32 %v13136_v0, %v9083_v2  ;;  %v8798_v29 = vor.u32 %v13064_v16, %v8795_v17  ;;  %v3338_v16 = vpop.f32.mrf.mxu3 }
 0x155   :  { %3517 = vmatmul.bf16.vlgmr.msrb.gmra.mxu1 %v14451_v40  ;;  %v13128_v18 = vld [vmem:[#allocation5 + $0x2cc] sm:$0xf]  ;;  %v3298_v19 = vadd.f32 %v3297_v12, %v14472_v7  ;;  %v9598_v21 = vor.u32 %v13264_v5, %v9595_v10  ;;  %v9566_v7 = vor.u32 %v13256_v26, %v9563_v27  ;;  %v3325_v10 = vpop.f32.mrf.mxu2 }
 0x156   :  { %3542 = vmatpush.bf16.msrb.mxu3 %v10490_v28  ;;  %3561 = vmatpush.bf16.msra.mxu1 %v9182_v31  ;;  %v13192_v23 = vld [vmem:[#allocation5 + $0x4cc] sm:$0xf]  ;;  %v9054_v30 = vor.u32 %v13128_v18, %v9051_v22 }
 0x157   :  { %3530 = vmatmul.bf16.vlgmr.msrb.gmra.mxu2 %v14445_v34  ;;  %v9307_v24 = vld [vmem:[#allocation5 + $0x4e8] sm:$0xf0]  ;;  %v3311_v28 = vadd.f32 %v3310_v20, %v3298_v19 }
 0x158   :  { %3574 = vmatpush.bf16.msra.mxu2 %v9438_v32  ;;  %3549 = vmatpush.bf16.msra.mxu0 %v8894_v47  ;;  %v9310_v31 = vor.u32 %v13192_v23, %v9307_v24  ;;  %v13056_v32 = vld [vmem:[#allocation5 + $0x8c] sm:$0xf] }
 0x159   :  { %3543 = vmatmul.bf16.vlgmr.msrb.gmra.mxu3 %v14449_v38  ;;  %v13120_v35 = vld [vmem:[#allocation5 + $0x28c] sm:$0xf]  ;;  %v3324_v43 = vadd.f32 %v3323_v36, %v3311_v28  ;;  %v8766_v47 = vor.u32 %v13056_v32, %v8763_v33 }
 0x15a   :  { %3587 = vmatpush.bf16.msra.mxu3 %v9694_v41  ;;  %3562 = vmatpush.bf16.msra.mxu1 %v9150_v48  ;;  %v9019_v39 = vld [vmem:[#allocation5 + $0x2a8] sm:$0xf0] }
 0x15b   :  { %v13184_v41 = vld [vmem:[#allocation5 + $0x48c] sm:$0xf]  ;;  %v14479_v48 = vadd.f32 %v3336_v44, %v3324_v43  ;;  %v9022_v50 = vor.u32 %v13120_v35, %v9019_v39 }
 0x15c   :  { %3575 = vmatpush.bf16.msra.mxu2 %v9406_v49  ;;  %3550 = vmatpush.bf16.msra.mxu0 %v8862_v59  ;;  %v9275_v42 = vld [vmem:[#allocation5 + $0x4a8] sm:$0xf0]  ;;  %v3299_v49 = vpop.f32.mrf.mxu0 }
 0x15d   :  { %v13248_v45 = vld [vmem:[#allocation5 + $0x68c] sm:$0xf]  ;;  %v9278_v51 = vor.u32 %v13184_v41, %v9275_v42 }
 0x15e   :  { %3588 = vmatpush.bf16.msra.mxu3 %v9662_v53  ;;  %3563 = vmatpush.bf16.msra.mxu1 %v9118_v60  ;;  %v9531_v46 = vld [vmem:[#allocation5 + $0x6a8] sm:$0xf0] }
 0x15f   :  { %v13048_v52 = vld [vmem:[#allocation5 + $0x4c] sm:$0xf]  ;;  %v9534_v56 = vor.u32 %v13248_v45, %v9531_v46 }
 0x160   :  { %3576 = vmatpush.bf16.msra.mxu2 %v9374_v61  ;;  %3551 = vmatpush.bf16.msra.mxu0 %v8830_v11  ;;  %v8731_v53 = vld [vmem:[#allocation5 + $0x68] sm:$0xf0] }
 0x161   :  { %v13112_v54 = vld [vmem:[#allocation5 + $0x24c] sm:$0xf]  ;;  %v8734_v62 = vor.u32 %v13048_v52, %v8731_v53 }
 0x162   :  { %3589 = vmatpush.bf16.msra.mxu3 %v9630_v1  ;;  %3564 = vmatpush.bf16.msra.mxu1 %v9086_v13  ;;  %v8987_v57 = vld [vmem:[#allocation5 + $0x268] sm:$0xf0] }
 0x163   :  { %v13176_v58 = vld [vmem:[#allocation5 + $0x44c] sm:$0xf]  ;;  %v8990_v1 = vor.u32 %v13112_v54, %v8987_v57 }
 0x164   :  { %3577 = vmatpush.bf16.msra.mxu2 %v9342_v14  ;;  %3552 = vmatpush.bf16.msra.mxu0 %v8798_v29  ;;  %v9243_v59 = vld [vmem:[#allocation5 + $0x468] sm:$0xf0] }
 0x165   :  { %v13240_v60 = vld [vmem:[#allocation5 + $0x64c] sm:$0xf]  ;;  %v9246_v2 = vor.u32 %v13176_v58, %v9243_v59 }
 0x166   :  { %3590 = vmatpush.bf16.msra.mxu3 %v9598_v21  ;;  %3565 = vmatpush.bf16.msra.mxu1 %v9054_v30  ;;  %v9499_v61 = vld [vmem:[#allocation5 + $0x668] sm:$0xf0] }
 0x167   :  { %v13040_v63 = vld [vmem:[#allocation5 + $0xc] sm:$0xf]  ;;  %v9502_v11 = vor.u32 %v13240_v60, %v9499_v61 }
 0x168   :  { %3578 = vmatpush.bf16.msra.mxu2 %v9310_v31  ;;  %3553 = vmatpush.bf16.msra.mxu0 %v8766_v47  ;;  %v8699_v0 = vld [vmem:[#allocation5 + $0x28] sm:$0xf0] }
 0x169   :  { %v13104_v3 = vld [vmem:[#allocation5 + $0x20c] sm:$0xf]  ;;  %v8702_v20 = vor.u32 %v13040_v63, %v8699_v0  ;;  %v661_v0 = vperm.slane %v14469_v6, 1 }
 0x16a   :  { %3591 = vmatpush.bf16.msra.mxu3 %v9566_v7  ;;  %3566 = vmatpush.bf16.msra.mxu1 %v9022_v50  ;;  %v8955_v4 = vld [vmem:[#allocation5 + $0x228] sm:$0xf0] }
 0x16b   :  { %v13168_v5 = vld [vmem:[#allocation5 + $0x40c] sm:$0xf]  ;;  %v8958_v24 = vor.u32 %v13104_v3, %v8955_v4 }
 0x16c   :  { %3579 = vmatpush.bf16.msra.mxu2 %v9278_v51  ;;  %v9211_v12 = vld [vmem:[#allocation5 + $0x428] sm:$0xf0]  ;;  %3554 = vmatpush.bf16.msra.mxu0 %v8734_v62 }
 0x16d   :  { %v13232_v13 = vld [vmem:[#allocation5 + $0x60c] sm:$0xf]  ;;  %v9214_v26 = vor.u32 %v13168_v5, %v9211_v12  ;;  %v3349_v12 = vpop.f32.mrf.mxu0 }
 0x16e   :  { %3592 = vmatpush.bf16.msra.mxu3 %v9534_v56  ;;  %v9467_v14 = vld [vmem:[#allocation5 + $0x628] sm:$0xf0]  ;;  %3567 = vmatpush.bf16.msra.mxu1 %v8990_v1 }
 0x16f   :  { %v13352_v17 = vld [vmem:[#allocation5 + $0x9cc] sm:$0xf]  ;;  %v9470_v29 = vor.u32 %v13232_v13, %v9467_v14 }
 0x170   :  { %v9947_v18 = vld [vmem:[#allocation5 + $0x9e8] sm:$0xf0]  ;;  %3580 = vmatpush.bf16.msra.mxu2 %v9246_v2  ;;  %3555 = vmatpush.bf16.msra.mxu0 %v8702_v20  ;;  %v3362_v20 = vpop.f32.mrf.mxu1 }
 0x171   :  { %v13416_v19 = vld [vmem:[#allocation5 + $0xbcc] sm:$0xf]  ;;  %v9950_v30 = vor.u32 %v13352_v17, %v9947_v18 }
 0x172   :  { %v10203_v21 = vld [vmem:[#allocation5 + $0xbe8] sm:$0xf0]  ;;  %3593 = vmatpush.bf16.msra.mxu3 %v9502_v11  ;;  %3568 = vmatpush.bf16.msra.mxu1 %v8958_v24 }
 0x173   :  { %v13480_v22 = vld [vmem:[#allocation5 + $0xdcc] sm:$0xf]  ;;  %v10206_v31 = vor.u32 %v13416_v19, %v10203_v21  ;;  %3556 = vmatmul.bf16.vlgmr.msra.gmra.mxu0 %v14435_v9  ;;  %v3350_v19 = vadd.f32 %v3349_v12, %v661_v0 }
 0x174   :  { %v10459_v23 = vld [vmem:[#allocation5 + $0xde8] sm:$0xf0]  ;;  %3581 = vmatpush.bf16.msra.mxu2 %v9214_v26  ;;  %3600 = vmatpush.bf16.msrb.mxu0 %v9950_v30 }
 0x175   :  { %v13544_v27 = vld [vmem:[#allocation5 + $0xfcc] sm:$0xf]  ;;  %v10462_v32 = vor.u32 %v13480_v22, %v10459_v23  ;;  %3569 = vmatmul.bf16.vlgmr.msra.gmra.mxu1 %v14442_v25 }
 0x176   :  { %v10715_v28 = vld [vmem:[#allocation5 + $0xfe8] sm:$0xf0]  ;;  %3594 = vmatpush.bf16.msra.mxu3 %v9470_v29  ;;  %3613 = vmatpush.bf16.msrb.mxu1 %v10206_v31 }
 0x177   :  { %v13344_v33 = vld [vmem:[#allocation5 + $0x98c] sm:$0xf]  ;;  %v10718_v7 = vor.u32 %v13544_v27, %v10715_v28  ;;  %3582 = vmatmul.bf16.vlgmr.msra.gmra.mxu2 %v14433_v8  ;;  %v3363_v27 = vadd.f32 %v3362_v20, %v3350_v19  ;;  %v9185_v19 = vld [vmem:[#allocation5 + $0x3d0] sm:$0xf] }
 0x178   :  { %v9915_v35 = vld [vmem:[#allocation5 + $0x9a8] sm:$0xf0]  ;;  %3626 = vmatpush.bf16.msrb.mxu2 %v10462_v32 }
 0x179   :  { %v13408_v36 = vld [vmem:[#allocation5 + $0xb8c] sm:$0xf]  ;;  %v9918_v45 = vor.u32 %v13344_v33, %v9915_v35  ;;  %3595 = vmatmul.bf16.vlgmr.msra.gmra.mxu3 %v14437_v15  ;;  %v3375_v35 = vpop.f32.mrf.mxu2 }
 0x17a   :  { %v10171_v39 = vld [vmem:[#allocation5 + $0xba8] sm:$0xf0]  ;;  %3639 = vmatpush.bf16.msrb.mxu3 %v10718_v7 }
 0x17b   :  { %v13472_v41 = vld [vmem:[#allocation5 + $0xd8c] sm:$0xf]  ;;  %v10174_v46 = vor.u32 %v13408_v36, %v10171_v39  ;;  %3601 = vmatpush.bf16.msrb.mxu0 %v9918_v45 }
 0x17c   :  { %v10427_v42 = vld [vmem:[#allocation5 + $0xda8] sm:$0xf0] }
 0x17d   :  { %v13536_v43 = vld [vmem:[#allocation5 + $0xf8c] sm:$0xf]  ;;  %v10430_v47 = vor.u32 %v13472_v41, %v10427_v42  ;;  %3614 = vmatpush.bf16.msrb.mxu1 %v10174_v46  ;;  %v3376_v42 = vadd.f32 %v3375_v35, %v3363_v27  ;;  %v13293_v27 = vld [vmem:[#allocation5 + $0x7ec] sm:$0xf0] }
 0x17e   :  { %v10683_v44 = vld [vmem:[#allocation5 + $0xfa8] sm:$0xf0]  ;;  %v9153_v35 = vld [vmem:[#allocation5 + $0x390] sm:$0xf] }
 0x17f   :  { %v13336_v49 = vld [vmem:[#allocation5 + $0x94c] sm:$0xf]  ;;  %v10686_v52 = vor.u32 %v13536_v43, %v10683_v44  ;;  %3627 = vmatpush.bf16.msrb.mxu2 %v10430_v47  ;;  %v3388_v43 = vpop.f32.mrf.mxu3 }
 0x180   :  { %v9883_v50 = vld [vmem:[#allocation5 + $0x968] sm:$0xf0]  ;;  %v14486_v47 = vadd.f32 %v3388_v43, %v3376_v42  ;;  %v9665_v42 = vld [vmem:[#allocation5 + $0x790] sm:$0xf] }
 0x181   :  { %v13400_v51 = vld [vmem:[#allocation5 + $0xb4c] sm:$0xf]  ;;  %v9886_v58 = vor.u32 %v13336_v49, %v9883_v50  ;;  %3640 = vmatpush.bf16.msrb.mxu3 %v10686_v52  ;;  %v3351_v49 = vpop.f32.mrf.mxu0  ;;  %v13285_v43 = vld [vmem:[#allocation5 + $0x7ac] sm:$0xf0] }
 0x182   :  { %v10139_v53 = vld [vmem:[#allocation5 + $0xb68] sm:$0xf0]  ;;  %v8865_v49 = vld [vmem:[#allocation5 + $0x150] sm:$0xf] }
 0x183   :  { %v13464_v54 = vld [vmem:[#allocation5 + $0xd4c] sm:$0xf]  ;;  %v10142_v60 = vor.u32 %v13400_v51, %v10139_v53  ;;  %3602 = vmatpush.bf16.msrb.mxu0 %v9886_v58 }
 0x184   :  { %v10395_v55 = vld [vmem:[#allocation5 + $0xd68] sm:$0xf0] }
 0x185   :  { %v13528_v56 = vld [vmem:[#allocation5 + $0xf4c] sm:$0xf]  ;;  %v10398_v61 = vor.u32 %v13464_v54, %v10395_v55  ;;  %3615 = vmatpush.bf16.msrb.mxu1 %v10142_v60  ;;  %v3364_v55 = vpop.f32.mrf.mxu1 }
 0x186   :  { %v10651_v57 = vld [vmem:[#allocation5 + $0xf68] sm:$0xf0]  ;;  %v13213_v55 = vld [vmem:[#allocation5 + $0x56c] sm:$0xf0] }
 0x187   :  { %v13328_v59 = vld [vmem:[#allocation5 + $0x90c] sm:$0xf]  ;;  %v10654_v1 = vor.u32 %v13528_v56, %v10651_v57  ;;  %3628 = vmatpush.bf16.msrb.mxu2 %v10398_v61 }
 0x188   :  { %v9851_v62 = vld [vmem:[#allocation5 + $0x928] sm:$0xf0] }
 0x189   :  { %v13392_v63 = vld [vmem:[#allocation5 + $0xb0c] sm:$0xf]  ;;  %v9854_v11 = vor.u32 %v13328_v59, %v9851_v62  ;;  %3641 = vmatpush.bf16.msrb.mxu3 %v10654_v1 }
 0x18a   :  { %v10107_v2 = vld [vmem:[#allocation5 + $0xb28] sm:$0xf0] }
 0x18b   :  { %v13456_v3 = vld [vmem:[#allocation5 + $0xd0c] sm:$0xf]  ;;  %v10110_v13 = vor.u32 %v13392_v63, %v10107_v2  ;;  %3603 = vmatpush.bf16.msrb.mxu0 %v9854_v11 }
 0x18c   :  { %v10363_v4 = vld [vmem:[#allocation5 + $0xd28] sm:$0xf0] }
 0x18d   :  { %v13520_v5 = vld [vmem:[#allocation5 + $0xf0c] sm:$0xf]  ;;  %v10366_v14 = vor.u32 %v13456_v3, %v10363_v4  ;;  %3616 = vmatpush.bf16.msrb.mxu1 %v10110_v13 }
 0x18e   :  { %v10619_v10 = vld [vmem:[#allocation5 + $0xf28] sm:$0xf0] }
 0x18f   :  { %v13320_v16 = vld [vmem:[#allocation5 + $0x8cc] sm:$0xf]  ;;  %v10622_v6 = vor.u32 %v13520_v5, %v10619_v10  ;;  %3629 = vmatpush.bf16.msrb.mxu2 %v10366_v14  ;;  %v3377_v10 = vpop.f32.mrf.mxu2 }
 0x190   :  { %v9819_v17 = vld [vmem:[#allocation5 + $0x8e8] sm:$0xf0] }
 0x191   :  { %v13384_v18 = vld [vmem:[#allocation5 + $0xacc] sm:$0xf]  ;;  %v9822_v28 = vor.u32 %v13320_v16, %v9819_v17  ;;  %3642 = vmatpush.bf16.msrb.mxu3 %v10622_v6  ;;  %v3390_v16 = vpop.f32.mrf.mxu3  ;;  %v8929_v17 = vld [vmem:[#allocation5 + $0x1d0] sm:$0xf] }
 0x192   :  { %v10075_v21 = vld [vmem:[#allocation5 + $0xae8] sm:$0xf0]  ;;  %v13165_v6 = vld [vmem:[#allocation5 + $0x3ec] sm:$0xf0] }
 0x193   :  { %v13448_v22 = vld [vmem:[#allocation5 + $0xccc] sm:$0xf]  ;;  %v10078_v29 = vor.u32 %v13384_v18, %v10075_v21  ;;  %3604 = vmatpush.bf16.msrb.mxu0 %v9822_v28  ;;  %v13101_v18 = vld [vmem:[#allocation5 + $0x1ec] sm:$0xf0] }
 0x194   :  { %v10331_v23 = vld [vmem:[#allocation5 + $0xce8] sm:$0xf0]  ;;  %v9441_v21 = vld [vmem:[#allocation5 + $0x5d0] sm:$0xf] }
 0x195   :  { %v13512_v24 = vld [vmem:[#allocation5 + $0xecc] sm:$0xf]  ;;  %v10334_v30 = vor.u32 %v13448_v22, %v10331_v23  ;;  %3617 = vmatpush.bf16.msrb.mxu1 %v10078_v29  ;;  %v13229_v22 = vld [vmem:[#allocation5 + $0x5ec] sm:$0xf0]  ;;  %v8930_v29 = vor.u32 %v13101_v18, %v8929_v17 }
 0x196   :  { %v10587_v26 = vld [vmem:[#allocation5 + $0xee8] sm:$0xf0]  ;;  %v13069_v16 = vld [vmem:[#allocation5 + $0xec] sm:$0xf0] }
 0x197   :  { %v13312_v31 = vld [vmem:[#allocation5 + $0x88c] sm:$0xf]  ;;  %v10590_v36 = vor.u32 %v13512_v24, %v10587_v26  ;;  %3630 = vmatpush.bf16.msrb.mxu2 %v10334_v30  ;;  %v9697_v26 = vld [vmem:[#allocation5 + $0x7d0] sm:$0xf]  ;;  %v9186_v30 = vor.u32 %v13165_v6, %v9185_v19  ;;  %v3414_v19 = vpop.f32.mrf.mxu1 }
 0x198   :  { %v9787_v32 = vld [vmem:[#allocation5 + $0x8a8] sm:$0xf0]  ;;  %v9057_v17 = vld [vmem:[#allocation5 + $0x2d0] sm:$0xf] }
 0x199   :  { %v13376_v33 = vld [vmem:[#allocation5 + $0xa8c] sm:$0xf]  ;;  %v9790_v46 = vor.u32 %v13312_v31, %v9787_v32  ;;  %3643 = vmatpush.bf16.msrb.mxu3 %v10590_v36  ;;  %v9442_v31 = vor.u32 %v13229_v22, %v9441_v21  ;;  %v8897_v32 = vld [vmem:[#allocation5 + $0x190] sm:$0xf]  ;;  %v9698_v36 = vor.u32 %v13293_v27, %v9697_v26 }
 0x19a   :  { %v10043_v7 = vld [vmem:[#allocation5 + $0xaa8] sm:$0xf0]  ;;  %v13133_v6 = vld [vmem:[#allocation5 + $0x2ec] sm:$0xf0] }
 0x19b   :  { %v13440_v39 = vld [vmem:[#allocation5 + $0xc8c] sm:$0xf]  ;;  %v10046_v50 = vor.u32 %v13376_v33, %v10043_v7  ;;  %3605 = vmatpush.bf16.msrb.mxu0 %v9790_v46  ;;  %v13093_v33 = vld [vmem:[#allocation5 + $0x1ac] sm:$0xf0] }
 0x19c   :  { %v10299_v41 = vld [vmem:[#allocation5 + $0xca8] sm:$0xf0]  ;;  %v13157_v7 = vld [vmem:[#allocation5 + $0x3ac] sm:$0xf0] }
 0x19d   :  { %v13504_v44 = vld [vmem:[#allocation5 + $0xe8c] sm:$0xf]  ;;  %v10302_v51 = vor.u32 %v13440_v39, %v10299_v41  ;;  %3618 = vmatpush.bf16.msrb.mxu1 %v10046_v50  ;;  %v9409_v39 = vld [vmem:[#allocation5 + $0x590] sm:$0xf] }
 0x19e   :  { %v10555_v45 = vld [vmem:[#allocation5 + $0xea8] sm:$0xf0]  ;;  %v13221_v41 = vld [vmem:[#allocation5 + $0x5ac] sm:$0xf0] }
 0x19f   :  { %v13304_v52 = vld [vmem:[#allocation5 + $0x84c] sm:$0xf]  ;;  %v10558_v56 = vor.u32 %v13504_v44, %v10555_v45  ;;  %3631 = vmatpush.bf16.msrb.mxu2 %v10302_v51  ;;  %v8898_v44 = vor.u32 %v13093_v33, %v8897_v32  ;;  %v9154_v45 = vor.u32 %v13157_v7, %v9153_v35  ;;  %v9410_v46 = vor.u32 %v13221_v41, %v9409_v39  ;;  %v13085_v50 = vld [vmem:[#allocation5 + $0x16c] sm:$0xf0]  ;;  %v3427_v33 = vpop.f32.mrf.mxu2  ;;  %v3440_v41 = vpop.f32.mrf.mxu3 }
 0x1a0   :  { %v9755_v53 = vld [vmem:[#allocation5 + $0x868] sm:$0xf0]  ;;  %v9121_v51 = vld [vmem:[#allocation5 + $0x350] sm:$0xf] }
 0x1a1   :  { %v13368_v54 = vld [vmem:[#allocation5 + $0xa4c] sm:$0xf]  ;;  %v9758_v62 = vor.u32 %v13304_v52, %v9755_v53  ;;  %3644 = vmatpush.bf16.msrb.mxu3 %v10558_v56  ;;  %v9666_v52 = vor.u32 %v13285_v43, %v9665_v42  ;;  %v13149_v53 = vld [vmem:[#allocation5 + $0x36c] sm:$0xf0] }
 0x1a2   :  { %v10011_v57 = vld [vmem:[#allocation5 + $0xa68] sm:$0xf0]  ;;  %v9633_v56 = vld [vmem:[#allocation5 + $0x750] sm:$0xf] }
 0x1a3   :  { %v13432_v58 = vld [vmem:[#allocation5 + $0xc4c] sm:$0xf]  ;;  %v10014_v1 = vor.u32 %v13368_v54, %v10011_v57  ;;  %3606 = vmatpush.bf16.msrb.mxu0 %v9758_v62  ;;  %v9377_v54 = vld [vmem:[#allocation5 + $0x550] sm:$0xf] }
 0x1a4   :  { %v10267_v59 = vld [vmem:[#allocation5 + $0xc68] sm:$0xf0]  ;;  %v13277_v57 = vld [vmem:[#allocation5 + $0x76c] sm:$0xf0] }
 0x1a5   :  { %v13496_v60 = vld [vmem:[#allocation5 + $0xe4c] sm:$0xf]  ;;  %v10270_v2 = vor.u32 %v13432_v58, %v10267_v59  ;;  %3619 = vmatpush.bf16.msrb.mxu1 %v10014_v1  ;;  %v8866_v58 = vor.u32 %v13085_v50, %v8865_v49  ;;  %v9122_v59 = vor.u32 %v13149_v53, %v9121_v51  ;;  %v13077_v62 = vld [vmem:[#allocation5 + $0x12c] sm:$0xf0] }
 0x1a6   :  { %v10523_v61 = vld [vmem:[#allocation5 + $0xe68] sm:$0xf0]  ;;  %v13141_v1 = vld [vmem:[#allocation5 + $0x32c] sm:$0xf0] }
 0x1a7   :  { %v13296_v63 = vld [vmem:[#allocation5 + $0x80c] sm:$0xf]  ;;  %v10526_v11 = vor.u32 %v13496_v60, %v10523_v61  ;;  %3632 = vmatpush.bf16.msrb.mxu2 %v10270_v2  ;;  %v9378_v60 = vor.u32 %v13213_v55, %v9377_v54  ;;  %v8833_v61 = vld [vmem:[#allocation5 + $0x110] sm:$0xf]  ;;  %v3416_v54 = vpop.f32.mrf.mxu1 }
 0x1a8   :  { %v9723_v0 = vld [vmem:[#allocation5 + $0x828] sm:$0xf0]  ;;  %v9345_v2 = vld [vmem:[#allocation5 + $0x510] sm:$0xf]  ;;  %v8834_v10 = vor.u32 %v13077_v62, %v8833_v61 }
 0x1a9   :  { %v13360_v3 = vld [vmem:[#allocation5 + $0xa0c] sm:$0xf]  ;;  %v9726_v20 = vor.u32 %v13296_v63, %v9723_v0  ;;  %3645 = vmatpush.bf16.msrb.mxu3 %v10526_v11  ;;  %v9089_v63 = vld [vmem:[#allocation5 + $0x310] sm:$0xf]  ;;  %v9634_v0 = vor.u32 %v13277_v57, %v9633_v56  ;;  %v3401_v11 = vpop.f32.mrf.mxu0 }
 0x1aa   :  { %v9979_v4 = vld [vmem:[#allocation5 + $0xa28] sm:$0xf0]  ;;  %v3402_v18 = vadd.f32 %v3401_v11, %v14486_v47  ;;  %v9313_v21 = vld [vmem:[#allocation5 + $0x4d0] sm:$0xf] }
 0x1ab   :  { %v13424_v5 = vld [vmem:[#allocation5 + $0xc0c] sm:$0xf]  ;;  %v9982_v23 = vor.u32 %v13360_v3, %v9979_v4  ;;  %3607 = vmatpush.bf16.msrb.mxu0 %v9726_v20  ;;  %v13205_v3 = vld [vmem:[#allocation5 + $0x52c] sm:$0xf0] }
 0x1ac   :  { %v10235_v12 = vld [vmem:[#allocation5 + $0xc28] sm:$0xf0]  ;;  %v9601_v4 = vld [vmem:[#allocation5 + $0x710] sm:$0xf]  ;;  %v3415_v26 = vadd.f32 %v3414_v19, %v3402_v18 }
 0x1ad   :  { %v13488_v13 = vld [vmem:[#allocation5 + $0xe0c] sm:$0xf]  ;;  %v10238_v24 = vor.u32 %v13424_v5, %v10235_v12  ;;  %3620 = vmatpush.bf16.msrb.mxu1 %v9982_v23  ;;  %v13269_v5 = vld [vmem:[#allocation5 + $0x72c] sm:$0xf0]  ;;  %v9090_v12 = vor.u32 %v13141_v1, %v9089_v63 }
 0x1ae   :  { %v10491_v14 = vld [vmem:[#allocation5 + $0xe28] sm:$0xf0]  ;;  %3608 = vmatmul.bf16.vlgmr.msrb.gmra.mxu0 %v14447_v37  ;;  %v9602_v20 = vor.u32 %v13269_v5, %v9601_v4  ;;  %v13197_v22 = vld [vmem:[#allocation5 + $0x4ec] sm:$0xf0]  ;;  %v3428_v39 = vadd.f32 %v3427_v33, %v3415_v26  ;;  %v3429_v5 = vpop.f32.mrf.mxu2 }
 0x1af   :  { %v10494_v28 = vor.u32 %v13488_v13, %v10491_v14  ;;  %3633 = vmatpush.bf16.msrb.mxu2 %v10238_v24  ;;  %3652 = vmatpush.bf16.msra.mxu0 %v8930_v29  ;;  %v9346_v13 = vor.u32 %v13205_v3, %v9345_v2  ;;  %v8801_v14 = vld [vmem:[#allocation5 + $0xd0] sm:$0xf]  ;;  %v9314_v29 = vor.u32 %v13197_v22, %v9313_v21 }
 0x1b0   :  { %3621 = vmatmul.bf16.vlgmr.msrb.gmra.mxu1 %v14451_v40  ;;  %v9569_v23 = vld [vmem:[#allocation5 + $0x6d0] sm:$0xf]  ;;  %v8802_v27 = vor.u32 %v13069_v16, %v8801_v14  ;;  %v3442_v14 = vpop.f32.mrf.mxu3 }
 0x1b1   :  { %3646 = vmatpush.bf16.msrb.mxu3 %v10494_v28  ;;  %3665 = vmatpush.bf16.msra.mxu1 %v9186_v30  ;;  %v13261_v24 = vld [vmem:[#allocation5 + $0x6ec] sm:$0xf0]  ;;  %v9058_v28 = vor.u32 %v13133_v6, %v9057_v17 }
 0x1b2   :  { %3634 = vmatmul.bf16.vlgmr.msrb.gmra.mxu2 %v14445_v34  ;;  %v8769_v30 = vld [vmem:[#allocation5 + $0x90] sm:$0xf]  ;;  %v9570_v47 = vor.u32 %v13261_v24, %v9569_v23 }
 0x1b3   :  { %3678 = vmatpush.bf16.msra.mxu2 %v9442_v31  ;;  %3653 = vmatpush.bf16.msra.mxu0 %v8898_v44  ;;  %v13061_v31 = vld [vmem:[#allocation5 + $0xac] sm:$0xf0] }
 0x1b4   :  { %3647 = vmatmul.bf16.vlgmr.msrb.gmra.mxu3 %v14449_v38  ;;  %v9025_v32 = vld [vmem:[#allocation5 + $0x290] sm:$0xf]  ;;  %v8770_v44 = vor.u32 %v13061_v31, %v8769_v30 }
 0x1b5   :  { %3691 = vmatpush.bf16.msra.mxu3 %v9698_v36  ;;  %3666 = vmatpush.bf16.msra.mxu1 %v9154_v45  ;;  %v13125_v35 = vld [vmem:[#allocation5 + $0x2ac] sm:$0xf0]  ;;  %v14493_v45 = vadd.f32 %v3440_v41, %v3428_v39 }
 0x1b6   :  { %v9281_v36 = vld [vmem:[#allocation5 + $0x490] sm:$0xf]  ;;  %v9026_v49 = vor.u32 %v13125_v35, %v9025_v32 }
 0x1b7   :  { %3679 = vmatpush.bf16.msra.mxu2 %v9410_v46  ;;  %3654 = vmatpush.bf16.msra.mxu0 %v8866_v58  ;;  %v13189_v7 = vld [vmem:[#allocation5 + $0x4ac] sm:$0xf0]  ;;  %v3403_v46 = vpop.f32.mrf.mxu0 }
 0x1b8   :  { %v9537_v42 = vld [vmem:[#allocation5 + $0x690] sm:$0xf]  ;;  %v9282_v50 = vor.u32 %v13189_v7, %v9281_v36 }
 0x1b9   :  { %3692 = vmatpush.bf16.msra.mxu3 %v9666_v52  ;;  %3667 = vmatpush.bf16.msra.mxu1 %v9122_v59  ;;  %v13253_v43 = vld [vmem:[#allocation5 + $0x6ac] sm:$0xf0] }
 0x1ba   :  { %v8737_v51 = vld [vmem:[#allocation5 + $0x50] sm:$0xf]  ;;  %v9538_v55 = vor.u32 %v13253_v43, %v9537_v42 }
 0x1bb   :  { %3680 = vmatpush.bf16.msra.mxu2 %v9378_v60  ;;  %3655 = vmatpush.bf16.msra.mxu0 %v8834_v10  ;;  %v13053_v52 = vld [vmem:[#allocation5 + $0x6c] sm:$0xf0] }
 0x1bc   :  { %v8993_v53 = vld [vmem:[#allocation5 + $0x250] sm:$0xf]  ;;  %v8738_v61 = vor.u32 %v13053_v52, %v8737_v51 }
 0x1bd   :  { %3693 = vmatpush.bf16.msra.mxu3 %v9634_v0  ;;  %3668 = vmatpush.bf16.msra.mxu1 %v9090_v12  ;;  %v13117_v56 = vld [vmem:[#allocation5 + $0x26c] sm:$0xf0] }
 0x1be   :  { %v9249_v57 = vld [vmem:[#allocation5 + $0x450] sm:$0xf]  ;;  %v8994_v0 = vor.u32 %v13117_v56, %v8993_v53 }
 0x1bf   :  { %3681 = vmatpush.bf16.msra.mxu2 %v9346_v13  ;;  %3656 = vmatpush.bf16.msra.mxu0 %v8802_v27  ;;  %v13181_v58 = vld [vmem:[#allocation5 + $0x46c] sm:$0xf0] }
 0x1c0   :  { %v9505_v59 = vld [vmem:[#allocation5 + $0x650] sm:$0xf]  ;;  %v9250_v1 = vor.u32 %v13181_v58, %v9249_v57 }
 0x1c1   :  { %3694 = vmatpush.bf16.msra.mxu3 %v9602_v20  ;;  %3669 = vmatpush.bf16.msra.mxu1 %v9058_v28  ;;  %v13245_v60 = vld [vmem:[#allocation5 + $0x66c] sm:$0xf0] }
 0x1c2   :  { %v8705_v62 = vld [vmem:[#allocation5 + $0x10] sm:$0xf]  ;;  %v9506_v10 = vor.u32 %v13245_v60, %v9505_v59 }
 0x1c3   :  { %3682 = vmatpush.bf16.msra.mxu2 %v9314_v29  ;;  %3657 = vmatpush.bf16.msra.mxu0 %v8770_v44  ;;  %v13045_v63 = vld [vmem:[#allocation5 + $0x2c] sm:$0xf0] }
 0x1c4   :  { %v8961_v2 = vld [vmem:[#allocation5 + $0x210] sm:$0xf]  ;;  %v8706_v19 = vor.u32 %v13045_v63, %v8705_v62  ;;  %v14499_v63 = vld [vmem:[#allocation7] sm:$0xff] }
 0x1c5   :  { %3695 = vmatpush.bf16.msra.mxu3 %v9570_v47  ;;  %3670 = vmatpush.bf16.msra.mxu1 %v9026_v49  ;;  %v13109_v3 = vld [vmem:[#allocation5 + $0x22c] sm:$0xf0] }
 0x1c6   :  { %v9217_v4 = vld [vmem:[#allocation5 + $0x410] sm:$0xf]  ;;  %v8962_v22 = vor.u32 %v13109_v3, %v8961_v2 }
 0x1c7   :  { %3683 = vmatpush.bf16.msra.mxu2 %v9282_v50  ;;  %v13173_v11 = vld [vmem:[#allocation5 + $0x42c] sm:$0xf0]  ;;  %3658 = vmatpush.bf16.msra.mxu0 %v8738_v61 }
 0x1c8   :  { %v9473_v12 = vld [vmem:[#allocation5 + $0x610] sm:$0xf]  ;;  %v9218_v23 = vor.u32 %v13173_v11, %v9217_v4 }
 0x1c9   :  { %3696 = vmatpush.bf16.msra.mxu3 %v9538_v55  ;;  %v13237_v13 = vld [vmem:[#allocation5 + $0x62c] sm:$0xf0]  ;;  %3671 = vmatpush.bf16.msra.mxu1 %v8994_v0  ;;  %v662_v0 = vperm.slane %v14499_v63, 2 }
 0x1ca   :  { %v9953_v16 = vld [vmem:[#allocation5 + $0x9d0] sm:$0xf]  ;;  %v9474_v27 = vor.u32 %v13237_v13, %v9473_v12  ;;  %v3453_v12 = vpop.f32.mrf.mxu0 }
 0x1cb   :  { %v13357_v17 = vld [vmem:[#allocation5 + $0x9ec] sm:$0xf0]  ;;  %3684 = vmatpush.bf16.msra.mxu2 %v9250_v1  ;;  %3659 = vmatpush.bf16.msra.mxu0 %v8706_v19  ;;  %v3454_v19 = vadd.f32 %v3453_v12, %v662_v0 }
 0x1cc   :  { %v10209_v18 = vld [vmem:[#allocation5 + $0xbd0] sm:$0xf]  ;;  %v9954_v28 = vor.u32 %v13357_v17, %v9953_v16 }
 0x1cd   :  { %v13421_v20 = vld [vmem:[#allocation5 + $0xbec] sm:$0xf0]  ;;  %3697 = vmatpush.bf16.msra.mxu3 %v9506_v10  ;;  %3672 = vmatpush.bf16.msra.mxu1 %v8962_v22 }
 0x1ce   :  { %v10465_v6 = vld [vmem:[#allocation5 + $0xdd0] sm:$0xf]  ;;  %v10210_v29 = vor.u32 %v13421_v20, %v10209_v18  ;;  %3660 = vmatmul.bf16.vlgmr.msra.gmra.mxu0 %v14435_v9  ;;  %v3466_v20 = vpop.f32.mrf.mxu1 }
 0x1cf   :  { %v13485_v21 = vld [vmem:[#allocation5 + $0xdec] sm:$0xf0]  ;;  %3685 = vmatpush.bf16.msra.mxu2 %v9218_v23  ;;  %3704 = vmatpush.bf16.msrb.mxu0 %v9954_v28 }
 0x1d0   :  { %v10721_v24 = vld [vmem:[#allocation5 + $0xfd0] sm:$0xf]  ;;  %v10466_v30 = vor.u32 %v13485_v21, %v10465_v6  ;;  %3673 = vmatmul.bf16.vlgmr.msra.gmra.mxu1 %v14442_v25 }
 0x1d1   :  { %v13549_v26 = vld [vmem:[#allocation5 + $0xfec] sm:$0xf0]  ;;  %3698 = vmatpush.bf16.msra.mxu3 %v9474_v27  ;;  %3717 = vmatpush.bf16.msrb.mxu1 %v10210_v29  ;;  %v3467_v27 = vadd.f32 %v3466_v20, %v3454_v19  ;;  %v13097_v19 = vld [vmem:[#allocation5 + $0x1d4] sm:$0xf] }
 0x1d2   :  { %v9921_v31 = vld [vmem:[#allocation5 + $0x990] sm:$0xf]  ;;  %v10722_v47 = vor.u32 %v13549_v26, %v10721_v24  ;;  %3686 = vmatmul.bf16.vlgmr.msra.gmra.mxu2 %v14433_v8  ;;  %v8931_v20 = vld [vmem:[#allocation5 + $0x1f0] sm:$0xf0] }
 0x1d3   :  { %v13349_v32 = vld [vmem:[#allocation5 + $0x9ac] sm:$0xf0]  ;;  %3730 = vmatpush.bf16.msrb.mxu2 %v10466_v30 }
 0x1d4   :  { %v10177_v33 = vld [vmem:[#allocation5 + $0xb90] sm:$0xf]  ;;  %v9922_v42 = vor.u32 %v13349_v32, %v9921_v31  ;;  %3699 = vmatmul.bf16.vlgmr.msra.gmra.mxu3 %v14437_v15 }
 0x1d5   :  { %v13413_v35 = vld [vmem:[#allocation5 + $0xbac] sm:$0xf0]  ;;  %3743 = vmatpush.bf16.msrb.mxu3 %v10722_v47  ;;  %v3479_v47 = vpop.f32.mrf.mxu2 }
 0x1d6   :  { %v10433_v36 = vld [vmem:[#allocation5 + $0xd90] sm:$0xf]  ;;  %v10178_v43 = vor.u32 %v13413_v35, %v10177_v33  ;;  %3705 = vmatpush.bf16.msrb.mxu0 %v9922_v42  ;;  %v3492_v42 = vpop.f32.mrf.mxu3 }
 0x1d7   :  { %v13477_v7 = vld [vmem:[#allocation5 + $0xdac] sm:$0xf0] }
 0x1d8   :  { %v10689_v39 = vld [vmem:[#allocation5 + $0xf90] sm:$0xf]  ;;  %v10434_v44 = vor.u32 %v13477_v7, %v10433_v36  ;;  %3718 = vmatpush.bf16.msrb.mxu1 %v10178_v43 }
 0x1d9   :  { %v13541_v41 = vld [vmem:[#allocation5 + $0xfac] sm:$0xf0] }
 0x1da   :  { %v9889_v46 = vld [vmem:[#allocation5 + $0x950] sm:$0xf]  ;;  %v10690_v51 = vor.u32 %v13541_v41, %v10689_v39  ;;  %3731 = vmatpush.bf16.msrb.mxu2 %v10434_v44  ;;  %v3480_v41 = vadd.f32 %v3479_v47, %v3467_v27  ;;  %v13089_v47 = vld [vmem:[#allocation5 + $0x194] sm:$0xf] }
 0x1db   :  { %v13341_v49 = vld [vmem:[#allocation5 + $0x96c] sm:$0xf0] }
 0x1dc   :  { %v10145_v50 = vld [vmem:[#allocation5 + $0xb50] sm:$0xf]  ;;  %v9890_v57 = vor.u32 %v13341_v49, %v9889_v46  ;;  %3744 = vmatpush.bf16.msrb.mxu3 %v10690_v51  ;;  %v14502_v49 = vadd.f32 %v3492_v42, %v3480_v41  ;;  %v13217_v41 = vld [vmem:[#allocation5 + $0x594] sm:$0xf] }
 0x1dd   :  { %v13405_v52 = vld [vmem:[#allocation5 + $0xb6c] sm:$0xf0]  ;;  %v3481_v12 = vpop.f32.mrf.mxu2  ;;  %v9411_v42 = vld [vmem:[#allocation5 + $0x5b0] sm:$0xf0] }
 0x1de   :  { %v10401_v53 = vld [vmem:[#allocation5 + $0xd50] sm:$0xf]  ;;  %v10146_v59 = vor.u32 %v13405_v52, %v10145_v50  ;;  %3706 = vmatpush.bf16.msrb.mxu0 %v9890_v57  ;;  %v3455_v50 = vpop.f32.mrf.mxu0  ;;  %v13265_v12 = vld [vmem:[#allocation5 + $0x714] sm:$0xf] }
 0x1df   :  { %v13469_v54 = vld [vmem:[#allocation5 + $0xd6c] sm:$0xf0] }
 0x1e0   :  { %v10657_v55 = vld [vmem:[#allocation5 + $0xf50] sm:$0xf]  ;;  %v10402_v60 = vor.u32 %v13469_v54, %v10401_v53  ;;  %3719 = vmatpush.bf16.msrb.mxu1 %v10146_v59 }
 0x1e1   :  { %v13533_v56 = vld [vmem:[#allocation5 + $0xf6c] sm:$0xf0] }
 0x1e2   :  { %v9857_v58 = vld [vmem:[#allocation5 + $0x910] sm:$0xf]  ;;  %v10658_v1 = vor.u32 %v13533_v56, %v10657_v55  ;;  %3732 = vmatpush.bf16.msrb.mxu2 %v10402_v60  ;;  %v3468_v56 = vpop.f32.mrf.mxu1 }
 0x1e3   :  { %v13333_v61 = vld [vmem:[#allocation5 + $0x92c] sm:$0xf0]  ;;  %v9123_v56 = vld [vmem:[#allocation5 + $0x370] sm:$0xf0] }
 0x1e4   :  { %v10113_v62 = vld [vmem:[#allocation5 + $0xb10] sm:$0xf]  ;;  %v9858_v11 = vor.u32 %v13333_v61, %v9857_v58  ;;  %3745 = vmatpush.bf16.msrb.mxu3 %v10658_v1 }
 0x1e5   :  { %v13397_v2 = vld [vmem:[#allocation5 + $0xb2c] sm:$0xf0] }
 0x1e6   :  { %v10369_v3 = vld [vmem:[#allocation5 + $0xd10] sm:$0xf]  ;;  %v10114_v13 = vor.u32 %v13397_v2, %v10113_v62  ;;  %3707 = vmatpush.bf16.msrb.mxu0 %v9858_v11 }
 0x1e7   :  { %v13461_v4 = vld [vmem:[#allocation5 + $0xd2c] sm:$0xf0] }
 0x1e8   :  { %v10625_v5 = vld [vmem:[#allocation5 + $0xf10] sm:$0xf]  ;;  %v10370_v14 = vor.u32 %v13461_v4, %v10369_v3  ;;  %3720 = vmatpush.bf16.msrb.mxu1 %v10114_v13 }
 0x1e9   :  { %v13525_v10 = vld [vmem:[#allocation5 + $0xf2c] sm:$0xf0] }
 0x1ea   :  { %v9825_v16 = vld [vmem:[#allocation5 + $0x8d0] sm:$0xf]  ;;  %v10626_v6 = vor.u32 %v13525_v10, %v10625_v5  ;;  %3733 = vmatpush.bf16.msrb.mxu2 %v10370_v14 }
 0x1eb   :  { %v13325_v17 = vld [vmem:[#allocation5 + $0x8ec] sm:$0xf0] }
 0x1ec   :  { %v10081_v18 = vld [vmem:[#allocation5 + $0xad0] sm:$0xf]  ;;  %v9826_v28 = vor.u32 %v13325_v17, %v9825_v16  ;;  %3746 = vmatpush.bf16.msrb.mxu3 %v10626_v6  ;;  %v13161_v6 = vld [vmem:[#allocation5 + $0x3d4] sm:$0xf] }
 0x1ed   :  { %v13389_v21 = vld [vmem:[#allocation5 + $0xaec] sm:$0xf0] }
 0x1ee   :  { %v10337_v22 = vld [vmem:[#allocation5 + $0xcd0] sm:$0xf]  ;;  %v10082_v29 = vor.u32 %v13389_v21, %v10081_v18  ;;  %3708 = vmatpush.bf16.msrb.mxu0 %v9826_v28  ;;  %v3494_v18 = vpop.f32.mrf.mxu3  ;;  %v13289_v28 = vld [vmem:[#allocation5 + $0x7d4] sm:$0xf] }
 0x1ef   :  { %v13453_v23 = vld [vmem:[#allocation5 + $0xcec] sm:$0xf0] }
 0x1f0   :  { %v10593_v24 = vld [vmem:[#allocation5 + $0xed0] sm:$0xf]  ;;  %v10338_v30 = vor.u32 %v13453_v23, %v10337_v22  ;;  %3721 = vmatpush.bf16.msrb.mxu1 %v10082_v29  ;;  %v9187_v22 = vld [vmem:[#allocation5 + $0x3f0] sm:$0xf0] }
 0x1f1   :  { %v13517_v26 = vld [vmem:[#allocation5 + $0xeec] sm:$0xf0]  ;;  %v13225_v23 = vld [vmem:[#allocation5 + $0x5d4] sm:$0xf] }
 0x1f2   :  { %v9793_v31 = vld [vmem:[#allocation5 + $0x890] sm:$0xf]  ;;  %v10594_v35 = vor.u32 %v13517_v26, %v10593_v24  ;;  %3734 = vmatpush.bf16.msrb.mxu2 %v10338_v30  ;;  %v9443_v24 = vld [vmem:[#allocation5 + $0x5f0] sm:$0xf0] }
 0x1f3   :  { %v13317_v32 = vld [vmem:[#allocation5 + $0x8ac] sm:$0xf0]  ;;  %v9699_v29 = vld [vmem:[#allocation5 + $0x7f0] sm:$0xf0] }
 0x1f4   :  { %v10049_v33 = vld [vmem:[#allocation5 + $0xa90] sm:$0xf]  ;;  %v9794_v46 = vor.u32 %v13317_v32, %v9793_v31  ;;  %3747 = vmatpush.bf16.msrb.mxu3 %v10594_v35  ;;  %v8934_v31 = vor.u32 %v13097_v19, %v8931_v20  ;;  %v9190_v32 = vor.u32 %v13161_v6, %v9187_v22  ;;  %v8899_v35 = vld [vmem:[#allocation5 + $0x1b0] sm:$0xf0]  ;;  %v3518_v22 = vpop.f32.mrf.mxu1 }
 0x1f5   :  { %v13381_v36 = vld [vmem:[#allocation5 + $0xaac] sm:$0xf0]  ;;  %v13065_v19 = vld [vmem:[#allocation5 + $0xd4] sm:$0xf] }
 0x1f6   :  { %v10305_v7 = vld [vmem:[#allocation5 + $0xc90] sm:$0xf]  ;;  %v10050_v51 = vor.u32 %v13381_v36, %v10049_v33  ;;  %3709 = vmatpush.bf16.msrb.mxu0 %v9794_v46  ;;  %v9446_v33 = vor.u32 %v13225_v23, %v9443_v24  ;;  %v13153_v36 = vld [vmem:[#allocation5 + $0x394] sm:$0xf]  ;;  %v8902_v46 = vor.u32 %v13089_v47, %v8899_v35 }
 0x1f7   :  { %v13445_v39 = vld [vmem:[#allocation5 + $0xcac] sm:$0xf0]  ;;  %v8803_v20 = vld [vmem:[#allocation5 + $0xf0] sm:$0xf0] }
 0x1f8   :  { %v10561_v43 = vld [vmem:[#allocation5 + $0xe90] sm:$0xf]  ;;  %v10306_v52 = vor.u32 %v13445_v39, %v10305_v7  ;;  %3722 = vmatpush.bf16.msrb.mxu1 %v10050_v51  ;;  %v9702_v7 = vor.u32 %v13289_v28, %v9699_v29  ;;  %v9155_v39 = vld [vmem:[#allocation5 + $0x3b0] sm:$0xf0]  ;;  %v9414_v51 = vor.u32 %v13217_v41, %v9411_v42 }
 0x1f9   :  { %v13509_v44 = vld [vmem:[#allocation5 + $0xeac] sm:$0xf0]  ;;  %v9158_v50 = vor.u32 %v13153_v36, %v9155_v39  ;;  %v13129_v6 = vld [vmem:[#allocation5 + $0x2d4] sm:$0xf] }
 0x1fa   :  { %v9761_v53 = vld [vmem:[#allocation5 + $0x850] sm:$0xf]  ;;  %v10562_v57 = vor.u32 %v13509_v44, %v10561_v43  ;;  %3735 = vmatpush.bf16.msrb.mxu2 %v10306_v52  ;;  %v13281_v43 = vld [vmem:[#allocation5 + $0x794] sm:$0xf] }
 0x1fb   :  { %v13309_v54 = vld [vmem:[#allocation5 + $0x86c] sm:$0xf0]  ;;  %v9667_v44 = vld [vmem:[#allocation5 + $0x7b0] sm:$0xf0] }
 0x1fc   :  { %v10017_v55 = vld [vmem:[#allocation5 + $0xa50] sm:$0xf]  ;;  %v9762_v0 = vor.u32 %v13309_v54, %v9761_v53  ;;  %3748 = vmatpush.bf16.msrb.mxu3 %v10562_v57  ;;  %v13081_v52 = vld [vmem:[#allocation5 + $0x154] sm:$0xf] }
 0x1fd   :  { %v13373_v58 = vld [vmem:[#allocation5 + $0xa6c] sm:$0xf0]  ;;  %v8867_v53 = vld [vmem:[#allocation5 + $0x170] sm:$0xf0] }
 0x1fe   :  { %v10273_v59 = vld [vmem:[#allocation5 + $0xc50] sm:$0xf]  ;;  %v10018_v3 = vor.u32 %v13373_v58, %v10017_v55  ;;  %3710 = vmatpush.bf16.msrb.mxu0 %v9762_v0  ;;  %v13145_v54 = vld [vmem:[#allocation5 + $0x354] sm:$0xf]  ;;  %v9670_v55 = vor.u32 %v13281_v43, %v9667_v44  ;;  %v3544_v44 = vpop.f32.mrf.mxu3 }
 0x1ff   :  { %v13437_v60 = vld [vmem:[#allocation5 + $0xc6c] sm:$0xf0]  ;;  %v13209_v57 = vld [vmem:[#allocation5 + $0x554] sm:$0xf] }
 0x200   :  { %v10529_v61 = vld [vmem:[#allocation5 + $0xe50] sm:$0xf]  ;;  %v10274_v4 = vor.u32 %v13437_v60, %v10273_v59  ;;  %3723 = vmatpush.bf16.msrb.mxu1 %v10018_v3  ;;  %v9379_v58 = vld [vmem:[#allocation5 + $0x570] sm:$0xf0] }
 0x201   :  { %v13501_v62 = vld [vmem:[#allocation5 + $0xe6c] sm:$0xf0]  ;;  %v13273_v59 = vld [vmem:[#allocation5 + $0x754] sm:$0xf]  ;;  %v9382_v0 = vor.u32 %v13209_v57, %v9379_v58 }
 0x202   :  { %v9729_v1 = vld [vmem:[#allocation5 + $0x810] sm:$0xf]  ;;  %v10530_v13 = vor.u32 %v13501_v62, %v10529_v61  ;;  %3736 = vmatpush.bf16.msrb.mxu2 %v10274_v4  ;;  %v9635_v60 = vld [vmem:[#allocation5 + $0x770] sm:$0xf0]  ;;  %v8870_v61 = vor.u32 %v13081_v52, %v8867_v53  ;;  %v9126_v62 = vor.u32 %v13145_v54, %v9123_v56 }
 0x203   :  { %v13301_v2 = vld [vmem:[#allocation5 + $0x82c] sm:$0xf0]  ;;  %v13137_v3 = vld [vmem:[#allocation5 + $0x314] sm:$0xf]  ;;  %v9638_v4 = vor.u32 %v13273_v59, %v9635_v60  ;;  %v3520_v59 = vpop.f32.mrf.mxu1 }
 0x204   :  { %v9985_v5 = vld [vmem:[#allocation5 + $0xa10] sm:$0xf]  ;;  %v9730_v21 = vor.u32 %v13301_v2, %v9729_v1  ;;  %3749 = vmatpush.bf16.msrb.mxu3 %v10530_v13  ;;  %v13073_v1 = vld [vmem:[#allocation5 + $0x114] sm:$0xf] }
 0x205   :  { %v13365_v10 = vld [vmem:[#allocation5 + $0xa2c] sm:$0xf0]  ;;  %v8835_v2 = vld [vmem:[#allocation5 + $0x130] sm:$0xf0] }
 0x206   :  { %v10241_v11 = vld [vmem:[#allocation5 + $0xc10] sm:$0xf]  ;;  %v9986_v26 = vor.u32 %v13365_v10, %v9985_v5  ;;  %3711 = vmatpush.bf16.msrb.mxu0 %v9730_v21  ;;  %v9091_v5 = vld [vmem:[#allocation5 + $0x330] sm:$0xf0] }
 0x207   :  { %v13429_v14 = vld [vmem:[#allocation5 + $0xc2c] sm:$0xf0]  ;;  %v13201_v10 = vld [vmem:[#allocation5 + $0x514] sm:$0xf] }
 0x208   :  { %v10497_v16 = vld [vmem:[#allocation5 + $0xe10] sm:$0xf]  ;;  %v10242_v27 = vor.u32 %v13429_v14, %v10241_v11  ;;  %3724 = vmatpush.bf16.msrb.mxu1 %v9986_v26  ;;  %v9347_v11 = vld [vmem:[#allocation5 + $0x530] sm:$0xf0]  ;;  %v8838_v14 = vor.u32 %v13073_v1, %v8835_v2 }
 0x209   :  { %v13493_v17 = vld [vmem:[#allocation5 + $0xe2c] sm:$0xf0]  ;;  %3712 = vmatmul.bf16.vlgmr.msrb.gmra.mxu0 %v14447_v37  ;;  %v9603_v13 = vld [vmem:[#allocation5 + $0x730] sm:$0xf0]  ;;  %v9350_v18 = vor.u32 %v13201_v10, %v9347_v11 }
 0x20a   :  { %v10498_v30 = vor.u32 %v13493_v17, %v10497_v16  ;;  %3737 = vmatpush.bf16.msrb.mxu2 %v10242_v27  ;;  %3756 = vmatpush.bf16.msra.mxu0 %v8934_v31  ;;  %v3505_v16 = vpop.f32.mrf.mxu0  ;;  %v9094_v17 = vor.u32 %v13137_v3, %v9091_v5  ;;  %v9606_v23 = vor.u32 %v13265_v12, %v9603_v13  ;;  %v9059_v24 = vld [vmem:[#allocation5 + $0x2f0] sm:$0xf0] }
 0x20b   :  { %3725 = vmatmul.bf16.vlgmr.msrb.gmra.mxu1 %v14451_v40  ;;  %v3506_v21 = vadd.f32 %v3505_v16, %v14502_v49  ;;  %v13193_v26 = vld [vmem:[#allocation5 + $0x4d4] sm:$0xf]  ;;  %v8806_v31 = vor.u32 %v13065_v19, %v8803_v20 }
 0x20c   :  { %3750 = vmatpush.bf16.msrb.mxu3 %v10498_v30  ;;  %3769 = vmatpush.bf16.msra.mxu1 %v9190_v32  ;;  %v9315_v27 = vld [vmem:[#allocation5 + $0x4f0] sm:$0xf0]  ;;  %v9062_v32 = vor.u32 %v13129_v6, %v9059_v24  ;;  %v3546_v6 = vpop.f32.mrf.mxu3 }
 0x20d   :  { %3738 = vmatmul.bf16.vlgmr.msrb.gmra.mxu2 %v14445_v34  ;;  %v13257_v28 = vld [vmem:[#allocation5 + $0x6d4] sm:$0xf]  ;;  %v3519_v30 = vadd.f32 %v3518_v22, %v3506_v21 }
 0x20e   :  { %3782 = vmatpush.bf16.msra.mxu2 %v9446_v33  ;;  %3757 = vmatpush.bf16.msra.mxu0 %v8902_v46  ;;  %v9571_v29 = vld [vmem:[#allocation5 + $0x6f0] sm:$0xf0]  ;;  %v9318_v33 = vor.u32 %v13193_v26, %v9315_v27 }
 0x20f   :  { %3751 = vmatmul.bf16.vlgmr.msrb.gmra.mxu3 %v14449_v38  ;;  %v13057_v47 = vld [vmem:[#allocation5 + $0x94] sm:$0xf]  ;;  %v9574_v49 = vor.u32 %v13257_v28, %v9571_v29 }
 0x210   :  { %3795 = vmatpush.bf16.msra.mxu3 %v9702_v7  ;;  %3770 = vmatpush.bf16.msra.mxu1 %v9158_v50  ;;  %v8771_v35 = vld [vmem:[#allocation5 + $0xb0] sm:$0xf0]  ;;  %v3531_v7 = vpop.f32.mrf.mxu2 }
 0x211   :  { %v13121_v36 = vld [vmem:[#allocation5 + $0x294] sm:$0xf]  ;;  %v3532_v43 = vadd.f32 %v3531_v7, %v3519_v30 }
 0x212   :  { %3783 = vmatpush.bf16.msra.mxu2 %v9414_v51  ;;  %3758 = vmatpush.bf16.msra.mxu0 %v8870_v61  ;;  %v9027_v39 = vld [vmem:[#allocation5 + $0x2b0] sm:$0xf0]  ;;  %v8774_v51 = vor.u32 %v13057_v47, %v8771_v35  ;;  %v3507_v53 = vpop.f32.mrf.mxu0 }
 0x213   :  { %v13185_v41 = vld [vmem:[#allocation5 + $0x494] sm:$0xf]  ;;  %v14509_v52 = vadd.f32 %v3544_v44, %v3532_v43  ;;  %v9030_v54 = vor.u32 %v13121_v36, %v9027_v39 }
 0x214   :  { %3796 = vmatpush.bf16.msra.mxu3 %v9670_v55  ;;  %3771 = vmatpush.bf16.msra.mxu1 %v9126_v62  ;;  %v9283_v42 = vld [vmem:[#allocation5 + $0x4b0] sm:$0xf0] }
 0x215   :  { %v13249_v46 = vld [vmem:[#allocation5 + $0x694] sm:$0xf]  ;;  %v9286_v55 = vor.u32 %v13185_v41, %v9283_v42 }
 0x216   :  { %3784 = vmatpush.bf16.msra.mxu2 %v9382_v0  ;;  %3759 = vmatpush.bf16.msra.mxu0 %v8838_v14  ;;  %v9539_v50 = vld [vmem:[#allocation5 + $0x6b0] sm:$0xf0] }
 0x217   :  { %v13049_v56 = vld [vmem:[#allocation5 + $0x54] sm:$0xf]  ;;  %v9542_v60 = vor.u32 %v13249_v46, %v9539_v50 }
 0x218   :  { %3797 = vmatpush.bf16.msra.mxu3 %v9638_v4  ;;  %3772 = vmatpush.bf16.msra.mxu1 %v9094_v17  ;;  %v8739_v57 = vld [vmem:[#allocation5 + $0x70] sm:$0xf0]  ;;  %v3533_v16 = vpop.f32.mrf.mxu2 }
 0x219   :  { %v13113_v58 = vld [vmem:[#allocation5 + $0x254] sm:$0xf]  ;;  %v8742_v3 = vor.u32 %v13049_v56, %v8739_v57 }
 0x21a   :  { %3785 = vmatpush.bf16.msra.mxu2 %v9350_v18  ;;  %3760 = vmatpush.bf16.msra.mxu0 %v8806_v31  ;;  %v8995_v61 = vld [vmem:[#allocation5 + $0x270] sm:$0xf0] }
 0x21b   :  { %v13177_v62 = vld [vmem:[#allocation5 + $0x454] sm:$0xf]  ;;  %v8998_v10 = vor.u32 %v13113_v58, %v8995_v61 }
 0x21c   :  { %3798 = vmatpush.bf16.msra.mxu3 %v9606_v23  ;;  %3773 = vmatpush.bf16.msra.mxu1 %v9062_v32  ;;  %v9251_v0 = vld [vmem:[#allocation5 + $0x470] sm:$0xf0] }
 0x21d   :  { %v13241_v1 = vld [vmem:[#allocation5 + $0x654] sm:$0xf]  ;;  %v9254_v11 = vor.u32 %v13177_v62, %v9251_v0 }
 0x21e   :  { %3786 = vmatpush.bf16.msra.mxu2 %v9318_v33  ;;  %v9507_v2 = vld [vmem:[#allocation5 + $0x670] sm:$0xf0]  ;;  %3761 = vmatpush.bf16.msra.mxu0 %v8774_v51 }
 0x21f   :  { %v13041_v4 = vld [vmem:[#allocation5 + $0x14] sm:$0xf]  ;;  %v9510_v17 = vor.u32 %v13241_v1, %v9507_v2 }
 0x220   :  { %3799 = vmatpush.bf16.msra.mxu3 %v9574_v49  ;;  %v8707_v5 = vld [vmem:[#allocation5 + $0x30] sm:$0xf0]  ;;  %3774 = vmatpush.bf16.msra.mxu1 %v9030_v54 }
 0x221   :  { %v13105_v12 = vld [vmem:[#allocation5 + $0x214] sm:$0xf]  ;;  %v8710_v24 = vor.u32 %v13041_v4, %v8707_v5 }
 0x222   :  { %3787 = vmatpush.bf16.msra.mxu2 %v9286_v55  ;;  %v8963_v13 = vld [vmem:[#allocation5 + $0x230] sm:$0xf0]  ;;  %3762 = vmatpush.bf16.msra.mxu0 %v8742_v3 }
 0x223   :  { %v13169_v14 = vld [vmem:[#allocation5 + $0x414] sm:$0xf]  ;;  %v8966_v29 = vor.u32 %v13105_v12, %v8963_v13 }
 0x224   :  { %3800 = vmatpush.bf16.msra.mxu3 %v9542_v60  ;;  %v9219_v18 = vld [vmem:[#allocation5 + $0x430] sm:$0xf0]  ;;  %3775 = vmatpush.bf16.msra.mxu1 %v8998_v10 }
 0x225   :  { %v13233_v19 = vld [vmem:[#allocation5 + $0x614] sm:$0xf]  ;;  %v9222_v30 = vor.u32 %v13169_v14, %v9219_v18 }
 0x226   :  { %v9475_v20 = vld [vmem:[#allocation5 + $0x630] sm:$0xf0]  ;;  %3788 = vmatpush.bf16.msra.mxu2 %v9254_v11  ;;  %3763 = vmatpush.bf16.msra.mxu0 %v8710_v24  ;;  %v663_v11 = vperm.slane %v14499_v63, 3 }
 0x227   :  { %v13353_v21 = vld [vmem:[#allocation5 + $0x9d4] sm:$0xf]  ;;  %v9478_v33 = vor.u32 %v13233_v19, %v9475_v20  ;;  %v3557_v20 = vpop.f32.mrf.mxu0 }
 0x228   :  { %v9955_v22 = vld [vmem:[#allocation5 + $0x9f0] sm:$0xf0]  ;;  %3801 = vmatpush.bf16.msra.mxu3 %v9510_v17  ;;  %3776 = vmatpush.bf16.msra.mxu1 %v8966_v29 }
 0x229   :  { %v13417_v23 = vld [vmem:[#allocation5 + $0xbd4] sm:$0xf]  ;;  %v9958_v47 = vor.u32 %v13353_v21, %v9955_v22  ;;  %3764 = vmatmul.bf16.vlgmr.msra.gmra.mxu0 %v14435_v9 }
 0x22a   :  { %v10211_v26 = vld [vmem:[#allocation5 + $0xbf0] sm:$0xf0]  ;;  %3789 = vmatpush.bf16.msra.mxu2 %v9222_v30 }
 0x22b   :  { %v13481_v27 = vld [vmem:[#allocation5 + $0xdd4] sm:$0xf]  ;;  %v10214_v35 = vor.u32 %v13417_v23, %v10211_v26  ;;  %3808 = vmatpush.bf16.msrb.mxu0 %v9958_v47  ;;  %3777 = vmatmul.bf16.vlgmr.msra.gmra.mxu1 %v14442_v25  ;;  %v3558_v26 = vadd.f32 %v3557_v20, %v663_v11 }
 0x22c   :  { %v10467_v28 = vld [vmem:[#allocation5 + $0xdf0] sm:$0xf0]  ;;  %3802 = vmatpush.bf16.msra.mxu3 %v9478_v33 }
 0x22d   :  { %v13545_v31 = vld [vmem:[#allocation5 + $0xfd4] sm:$0xf]  ;;  %v10470_v36 = vor.u32 %v13481_v27, %v10467_v28  ;;  %3821 = vmatpush.bf16.msrb.mxu1 %v10214_v35  ;;  %3790 = vmatmul.bf16.vlgmr.msra.gmra.mxu2 %v14433_v8  ;;  %v3570_v27 = vpop.f32.mrf.mxu1 }
 0x22e   :  { %v10723_v32 = vld [vmem:[#allocation5 + $0xff0] sm:$0xf0]  ;;  %v3571_v33 = vadd.f32 %v3570_v27, %v3558_v26  ;;  %v8937_v26 = vld [vmem:[#allocation5 + $0x1d8] sm:$0xf] }
 0x22f   :  { %v13345_v7 = vld [vmem:[#allocation5 + $0x994] sm:$0xf]  ;;  %v10726_v41 = vor.u32 %v13545_v31, %v10723_v32  ;;  %3834 = vmatpush.bf16.msrb.mxu2 %v10470_v36  ;;  %3803 = vmatmul.bf16.vlgmr.msra.gmra.mxu3 %v14437_v15  ;;  %v13102_v27 = vld [vmem:[#allocation5 + $0x1f4] sm:$0xf0] }
 0x230   :  { %v9923_v49 = vld [vmem:[#allocation5 + $0x9b0] sm:$0xf0] }
 0x231   :  { %v13409_v39 = vld [vmem:[#allocation5 + $0xb94] sm:$0xf]  ;;  %v9926_v51 = vor.u32 %v13345_v7, %v9923_v49  ;;  %3847 = vmatpush.bf16.msrb.mxu3 %v10726_v41  ;;  %v3583_v41 = vpop.f32.mrf.mxu2 }
 0x232   :  { %v10179_v42 = vld [vmem:[#allocation5 + $0xbb0] sm:$0xf0] }
 0x233   :  { %v13473_v43 = vld [vmem:[#allocation5 + $0xd94] sm:$0xf]  ;;  %v10182_v53 = vor.u32 %v13409_v39, %v10179_v42  ;;  %3809 = vmatpush.bf16.msrb.mxu0 %v9926_v51  ;;  %v3596_v51 = vpop.f32.mrf.mxu3 }
 0x234   :  { %v10435_v44 = vld [vmem:[#allocation5 + $0xdb0] sm:$0xf0] }
 0x235   :  { %v13537_v46 = vld [vmem:[#allocation5 + $0xf94] sm:$0xf]  ;;  %v10438_v54 = vor.u32 %v13473_v43, %v10435_v44  ;;  %3822 = vmatpush.bf16.msrb.mxu1 %v10182_v53 }
 0x236   :  { %v10691_v50 = vld [vmem:[#allocation5 + $0xfb0] sm:$0xf0] }
 0x237   :  { %v13337_v55 = vld [vmem:[#allocation5 + $0x954] sm:$0xf]  ;;  %v10694_v58 = vor.u32 %v13537_v46, %v10691_v50  ;;  %3835 = vmatpush.bf16.msrb.mxu2 %v10438_v54  ;;  %v3584_v50 = vadd.f32 %v3583_v41, %v3571_v33  ;;  %v8905_v41 = vld [vmem:[#allocation5 + $0x198] sm:$0xf] }
 0x238   :  { %v9891_v56 = vld [vmem:[#allocation5 + $0x970] sm:$0xf0] }
 0x239   :  { %v13401_v57 = vld [vmem:[#allocation5 + $0xb54] sm:$0xf]  ;;  %v9894_v1 = vor.u32 %v13337_v55, %v9891_v56  ;;  %3848 = vmatpush.bf16.msrb.mxu3 %v10694_v58  ;;  %v14516_v56 = vadd.f32 %v3596_v51, %v3584_v50  ;;  %v3585_v20 = vpop.f32.mrf.mxu2  ;;  %v9417_v50 = vld [vmem:[#allocation5 + $0x598] sm:$0xf] }
 0x23a   :  { %v10147_v59 = vld [vmem:[#allocation5 + $0xb70] sm:$0xf0]  ;;  %v13222_v51 = vld [vmem:[#allocation5 + $0x5b4] sm:$0xf0] }
 0x23b   :  { %v13465_v60 = vld [vmem:[#allocation5 + $0xd54] sm:$0xf]  ;;  %v10150_v3 = vor.u32 %v13401_v57, %v10147_v59  ;;  %3810 = vmatpush.bf16.msrb.mxu0 %v9894_v1  ;;  %v3559_v57 = vpop.f32.mrf.mxu0  ;;  %v9609_v20 = vld [vmem:[#allocation5 + $0x718] sm:$0xf] }
 0x23c   :  { %v10403_v61 = vld [vmem:[#allocation5 + $0xd70] sm:$0xf0] }
 0x23d   :  { %v13529_v62 = vld [vmem:[#allocation5 + $0xf54] sm:$0xf]  ;;  %v10406_v4 = vor.u32 %v13465_v60, %v10403_v61  ;;  %3823 = vmatpush.bf16.msrb.mxu1 %v10150_v3 }
 0x23e   :  { %v10659_v0 = vld [vmem:[#allocation5 + $0xf70] sm:$0xf0] }
 0x23f   :  { %v13329_v2 = vld [vmem:[#allocation5 + $0x914] sm:$0xf]  ;;  %v10662_v12 = vor.u32 %v13529_v62, %v10659_v0  ;;  %3836 = vmatpush.bf16.msrb.mxu2 %v10406_v4  ;;  %v3572_v0 = vpop.f32.mrf.mxu1 }
 0x240   :  { %v9859_v5 = vld [vmem:[#allocation5 + $0x930] sm:$0xf0]  ;;  %v13150_v0 = vld [vmem:[#allocation5 + $0x374] sm:$0xf0] }
 0x241   :  { %v13393_v10 = vld [vmem:[#allocation5 + $0xb14] sm:$0xf]  ;;  %v9862_v19 = vor.u32 %v13329_v2, %v9859_v5  ;;  %3849 = vmatpush.bf16.msrb.mxu3 %v10662_v12 }
 0x242   :  { %v10115_v13 = vld [vmem:[#allocation5 + $0xb30] sm:$0xf0] }
 0x243   :  { %v13457_v14 = vld [vmem:[#allocation5 + $0xd14] sm:$0xf]  ;;  %v10118_v6 = vor.u32 %v13393_v10, %v10115_v13  ;;  %3811 = vmatpush.bf16.msrb.mxu0 %v9862_v19 }
 0x244   :  { %v10371_v16 = vld [vmem:[#allocation5 + $0xd30] sm:$0xf0] }
 0x245   :  { %v13521_v17 = vld [vmem:[#allocation5 + $0xf14] sm:$0xf]  ;;  %v10374_v21 = vor.u32 %v13457_v14, %v10371_v16  ;;  %3824 = vmatpush.bf16.msrb.mxu1 %v10118_v6 }
 0x246   :  { %v10627_v18 = vld [vmem:[#allocation5 + $0xf30] sm:$0xf0] }
 0x247   :  { %v13321_v22 = vld [vmem:[#allocation5 + $0x8d4] sm:$0xf]  ;;  %v10630_v63 = vor.u32 %v13521_v17, %v10627_v18  ;;  %3837 = vmatpush.bf16.msrb.mxu2 %v10374_v21 }
 0x248   :  { %v9827_v23 = vld [vmem:[#allocation5 + $0x8f0] sm:$0xf0] }
 0x249   :  { %v13385_v24 = vld [vmem:[#allocation5 + $0xad4] sm:$0xf]  ;;  %v9830_v47 = vor.u32 %v13321_v22, %v9827_v23  ;;  %3850 = vmatpush.bf16.msrb.mxu3 %v10630_v63  ;;  %v9193_v63 = vld [vmem:[#allocation5 + $0x3d8] sm:$0xf] }
 0x24a   :  { %v10083_v28 = vld [vmem:[#allocation5 + $0xaf0] sm:$0xf0] }
 0x24b   :  { %v13449_v29 = vld [vmem:[#allocation5 + $0xcd4] sm:$0xf]  ;;  %v10086_v35 = vor.u32 %v13385_v24, %v10083_v28  ;;  %3812 = vmatpush.bf16.msrb.mxu0 %v9830_v47  ;;  %v3598_v24 = vpop.f32.mrf.mxu3  ;;  %v9705_v47 = vld [vmem:[#allocation5 + $0x7d8] sm:$0xf] }
 0x24c   :  { %v10339_v30 = vld [vmem:[#allocation5 + $0xcf0] sm:$0xf0] }
 0x24d   :  { %v13513_v31 = vld [vmem:[#allocation5 + $0xed4] sm:$0xf]  ;;  %v10342_v36 = vor.u32 %v13449_v29, %v10339_v30  ;;  %3825 = vmatpush.bf16.msrb.mxu1 %v10086_v35  ;;  %v13166_v29 = vld [vmem:[#allocation5 + $0x3f4] sm:$0xf0] }
 0x24e   :  { %v10595_v32 = vld [vmem:[#allocation5 + $0xef0] sm:$0xf0]  ;;  %v9449_v30 = vld [vmem:[#allocation5 + $0x5d8] sm:$0xf] }
 0x24f   :  { %v13313_v7 = vld [vmem:[#allocation5 + $0x894] sm:$0xf]  ;;  %v10598_v42 = vor.u32 %v13513_v31, %v10595_v32  ;;  %3838 = vmatpush.bf16.msrb.mxu2 %v10342_v36  ;;  %v13230_v31 = vld [vmem:[#allocation5 + $0x5f4] sm:$0xf0] }
 0x250   :  { %v9795_v49 = vld [vmem:[#allocation5 + $0x8b0] sm:$0xf0]  ;;  %v13294_v35 = vld [vmem:[#allocation5 + $0x7f4] sm:$0xf0] }
 0x251   :  { %v13377_v39 = vld [vmem:[#allocation5 + $0xa94] sm:$0xf]  ;;  %v9798_v55 = vor.u32 %v13313_v7, %v9795_v49  ;;  %3851 = vmatpush.bf16.msrb.mxu3 %v10598_v42  ;;  %v8938_v7 = vor.u32 %v13102_v27, %v8937_v26  ;;  %v9194_v49 = vor.u32 %v13166_v29, %v9193_v63  ;;  %v13094_v42 = vld [vmem:[#allocation5 + $0x1b4] sm:$0xf0]  ;;  %v3622_v29 = vpop.f32.mrf.mxu1 }
 0x252   :  { %v10051_v43 = vld [vmem:[#allocation5 + $0xab0] sm:$0xf0]  ;;  %v8809_v26 = vld [vmem:[#allocation5 + $0xd8] sm:$0xf] }
 0x253   :  { %v13441_v44 = vld [vmem:[#allocation5 + $0xc94] sm:$0xf]  ;;  %v10054_v58 = vor.u32 %v13377_v39, %v10051_v43  ;;  %3813 = vmatpush.bf16.msrb.mxu0 %v9798_v55  ;;  %v9450_v39 = vor.u32 %v13230_v31, %v9449_v30  ;;  %v9161_v43 = vld [vmem:[#allocation5 + $0x398] sm:$0xf]  ;;  %v8906_v55 = vor.u32 %v13094_v42, %v8905_v41 }
 0x254   :  { %v10307_v46 = vld [vmem:[#allocation5 + $0xcb0] sm:$0xf0]  ;;  %v13070_v27 = vld [vmem:[#allocation5 + $0xf4] sm:$0xf0] }
 0x255   :  { %v13505_v53 = vld [vmem:[#allocation5 + $0xe94] sm:$0xf]  ;;  %v10310_v59 = vor.u32 %v13441_v44, %v10307_v46  ;;  %3826 = vmatpush.bf16.msrb.mxu1 %v10054_v58  ;;  %v9706_v44 = vor.u32 %v13294_v35, %v9705_v47  ;;  %v13158_v46 = vld [vmem:[#allocation5 + $0x3b4] sm:$0xf0]  ;;  %v9418_v58 = vor.u32 %v13222_v51, %v9417_v50 }
 0x256   :  { %v10563_v54 = vld [vmem:[#allocation5 + $0xeb0] sm:$0xf0]  ;;  %v9162_v57 = vor.u32 %v13158_v46, %v9161_v43  ;;  %v9065_v63 = vld [vmem:[#allocation5 + $0x2d8] sm:$0xf] }
 0x257   :  { %v13305_v60 = vld [vmem:[#allocation5 + $0x854] sm:$0xf]  ;;  %v10566_v1 = vor.u32 %v13505_v53, %v10563_v54  ;;  %3839 = vmatpush.bf16.msrb.mxu2 %v10310_v59  ;;  %v9673_v53 = vld [vmem:[#allocation5 + $0x798] sm:$0xf] }
 0x258   :  { %v9763_v61 = vld [vmem:[#allocation5 + $0x870] sm:$0xf0]  ;;  %v13286_v54 = vld [vmem:[#allocation5 + $0x7b4] sm:$0xf0] }
 0x259   :  { %v13369_v62 = vld [vmem:[#allocation5 + $0xa54] sm:$0xf]  ;;  %v9766_v11 = vor.u32 %v13305_v60, %v9763_v61  ;;  %3852 = vmatpush.bf16.msrb.mxu3 %v10566_v1  ;;  %v8873_v59 = vld [vmem:[#allocation5 + $0x158] sm:$0xf] }
 0x25a   :  { %v10019_v2 = vld [vmem:[#allocation5 + $0xa70] sm:$0xf0]  ;;  %v13086_v60 = vld [vmem:[#allocation5 + $0x174] sm:$0xf0] }
 0x25b   :  { %v13433_v3 = vld [vmem:[#allocation5 + $0xc54] sm:$0xf]  ;;  %v10022_v14 = vor.u32 %v13369_v62, %v10019_v2  ;;  %3814 = vmatpush.bf16.msrb.mxu0 %v9766_v11  ;;  %v9129_v61 = vld [vmem:[#allocation5 + $0x358] sm:$0xf]  ;;  %v9674_v62 = vor.u32 %v13286_v54, %v9673_v53  ;;  %v3648_v54 = vpop.f32.mrf.mxu3 }
 0x25c   :  { %v10275_v4 = vld [vmem:[#allocation5 + $0xc70] sm:$0xf0]  ;;  %v9385_v1 = vld [vmem:[#allocation5 + $0x558] sm:$0xf] }
 0x25d   :  { %v13497_v5 = vld [vmem:[#allocation5 + $0xe54] sm:$0xf]  ;;  %v10278_v16 = vor.u32 %v13433_v3, %v10275_v4  ;;  %3827 = vmatpush.bf16.msrb.mxu1 %v10022_v14  ;;  %v13214_v2 = vld [vmem:[#allocation5 + $0x574] sm:$0xf0] }
 0x25e   :  { %v10531_v10 = vld [vmem:[#allocation5 + $0xe70] sm:$0xf0]  ;;  %v9641_v3 = vld [vmem:[#allocation5 + $0x758] sm:$0xf]  ;;  %v9386_v11 = vor.u32 %v13214_v2, %v9385_v1 }
 0x25f   :  { %v13297_v12 = vld [vmem:[#allocation5 + $0x814] sm:$0xf]  ;;  %v10534_v6 = vor.u32 %v13497_v5, %v10531_v10  ;;  %3840 = vmatpush.bf16.msrb.mxu2 %v10278_v16  ;;  %v13278_v4 = vld [vmem:[#allocation5 + $0x774] sm:$0xf0]  ;;  %v8874_v5 = vor.u32 %v13086_v60, %v8873_v59  ;;  %v9130_v10 = vor.u32 %v13150_v0, %v9129_v61 }
 0x260   :  { %v9731_v13 = vld [vmem:[#allocation5 + $0x830] sm:$0xf0]  ;;  %v9097_v14 = vld [vmem:[#allocation5 + $0x318] sm:$0xf]  ;;  %v9642_v16 = vor.u32 %v13278_v4, %v9641_v3  ;;  %v3624_v3 = vpop.f32.mrf.mxu1 }
 0x261   :  { %v13361_v17 = vld [vmem:[#allocation5 + $0xa14] sm:$0xf]  ;;  %v9734_v28 = vor.u32 %v13297_v12, %v9731_v13  ;;  %3853 = vmatpush.bf16.msrb.mxu3 %v10534_v6  ;;  %v8841_v12 = vld [vmem:[#allocation5 + $0x118] sm:$0xf] }
 0x262   :  { %v9987_v18 = vld [vmem:[#allocation5 + $0xa30] sm:$0xf0]  ;;  %v13078_v13 = vld [vmem:[#allocation5 + $0x134] sm:$0xf0] }
 0x263   :  { %v13425_v19 = vld [vmem:[#allocation5 + $0xc14] sm:$0xf]  ;;  %v9990_v32 = vor.u32 %v13361_v17, %v9987_v18  ;;  %3815 = vmatpush.bf16.msrb.mxu0 %v9734_v28  ;;  %v13142_v17 = vld [vmem:[#allocation5 + $0x334] sm:$0xf0] }
 0x264   :  { %v10243_v21 = vld [vmem:[#allocation5 + $0xc30] sm:$0xf0]  ;;  %v9353_v18 = vld [vmem:[#allocation5 + $0x518] sm:$0xf] }
 0x265   :  { %v13489_v22 = vld [vmem:[#allocation5 + $0xe14] sm:$0xf]  ;;  %v10246_v33 = vor.u32 %v13425_v19, %v10243_v21  ;;  %3828 = vmatpush.bf16.msrb.mxu1 %v9990_v32  ;;  %v13206_v19 = vld [vmem:[#allocation5 + $0x534] sm:$0xf0]  ;;  %v8842_v21 = vor.u32 %v13078_v13, %v8841_v12 }
 0x266   :  { %v10499_v23 = vld [vmem:[#allocation5 + $0xe30] sm:$0xf0]  ;;  %3816 = vmatmul.bf16.vlgmr.msrb.gmra.mxu0 %v14447_v37  ;;  %v13270_v6 = vld [vmem:[#allocation5 + $0x734] sm:$0xf0]  ;;  %v9354_v24 = vor.u32 %v13206_v19, %v9353_v18 }
 0x267   :  { %v10502_v36 = vor.u32 %v13489_v22, %v10499_v23  ;;  %3841 = vmatpush.bf16.msrb.mxu2 %v10246_v33  ;;  %3860 = vmatpush.bf16.msra.mxu0 %v8938_v7  ;;  %v3609_v22 = vpop.f32.mrf.mxu0  ;;  %v9098_v23 = vor.u32 %v13142_v17, %v9097_v14  ;;  %v9610_v30 = vor.u32 %v13270_v6, %v9609_v20  ;;  %v13134_v31 = vld [vmem:[#allocation5 + $0x2f4] sm:$0xf0] }
 0x268   :  { %3829 = vmatmul.bf16.vlgmr.msrb.gmra.mxu1 %v14451_v40  ;;  %v3610_v28 = vadd.f32 %v3609_v22, %v14516_v56  ;;  %v9321_v32 = vld [vmem:[#allocation5 + $0x4d8] sm:$0xf]  ;;  %v8810_v7 = vor.u32 %v13070_v27, %v8809_v26 }
 0x269   :  { %3854 = vmatpush.bf16.msrb.mxu3 %v10502_v36  ;;  %3873 = vmatpush.bf16.msra.mxu1 %v9194_v49  ;;  %v13198_v33 = vld [vmem:[#allocation5 + $0x4f4] sm:$0xf0]  ;;  %v9066_v49 = vor.u32 %v13134_v31, %v9065_v63  ;;  %v3650_v63 = vpop.f32.mrf.mxu3 }
 0x26a   :  { %3842 = vmatmul.bf16.vlgmr.msrb.gmra.mxu2 %v14445_v34  ;;  %v9577_v47 = vld [vmem:[#allocation5 + $0x6d8] sm:$0xf]  ;;  %v3623_v36 = vadd.f32 %v3622_v29, %v3610_v28 }
 0x26b   :  { %3886 = vmatpush.bf16.msra.mxu2 %v9450_v39  ;;  %3861 = vmatpush.bf16.msra.mxu0 %v8906_v55  ;;  %v13262_v35 = vld [vmem:[#allocation5 + $0x6f4] sm:$0xf0]  ;;  %v9322_v39 = vor.u32 %v13198_v33, %v9321_v32 }
 0x26c   :  { %3855 = vmatmul.bf16.vlgmr.msrb.gmra.mxu3 %v14449_v38  ;;  %v8777_v41 = vld [vmem:[#allocation5 + $0x98] sm:$0xf]  ;;  %v9578_v56 = vor.u32 %v13262_v35, %v9577_v47 }
 0x26d   :  { %3899 = vmatpush.bf16.msra.mxu3 %v9706_v44  ;;  %3874 = vmatpush.bf16.msra.mxu1 %v9162_v57  ;;  %v13062_v42 = vld [vmem:[#allocation5 + $0xb4] sm:$0xf0]  ;;  %v3635_v44 = vpop.f32.mrf.mxu2 }
 0x26e   :  { %v9033_v43 = vld [vmem:[#allocation5 + $0x298] sm:$0xf]  ;;  %v3636_v53 = vadd.f32 %v3635_v44, %v3623_v36 }
 0x26f   :  { %3887 = vmatpush.bf16.msra.mxu2 %v9418_v58  ;;  %3862 = vmatpush.bf16.msra.mxu0 %v8874_v5  ;;  %v13126_v46 = vld [vmem:[#allocation5 + $0x2b4] sm:$0xf0]  ;;  %v8778_v58 = vor.u32 %v13062_v42, %v8777_v41  ;;  %v3611_v60 = vpop.f32.mrf.mxu0 }
 0x270   :  { %v9289_v50 = vld [vmem:[#allocation5 + $0x498] sm:$0xf]  ;;  %v14523_v59 = vadd.f32 %v3648_v54, %v3636_v53  ;;  %v9034_v61 = vor.u32 %v13126_v46, %v9033_v43 }
 0x271   :  { %3900 = vmatpush.bf16.msra.mxu3 %v9674_v62  ;;  %3875 = vmatpush.bf16.msra.mxu1 %v9130_v10  ;;  %v13190_v51 = vld [vmem:[#allocation5 + $0x4b4] sm:$0xf0] }
 0x272   :  { %v9545_v55 = vld [vmem:[#allocation5 + $0x698] sm:$0xf]  ;;  %v9290_v62 = vor.u32 %v13190_v51, %v9289_v50 }
 0x273   :  { %3888 = vmatpush.bf16.msra.mxu2 %v9386_v11  ;;  %3863 = vmatpush.bf16.msra.mxu0 %v8842_v21  ;;  %v13254_v57 = vld [vmem:[#allocation5 + $0x6b4] sm:$0xf0] }
 0x274   :  { %v8745_v0 = vld [vmem:[#allocation5 + $0x58] sm:$0xf]  ;;  %v9546_v4 = vor.u32 %v13254_v57, %v9545_v55 }
 0x275   :  { %3901 = vmatpush.bf16.msra.mxu3 %v9642_v16  ;;  %3876 = vmatpush.bf16.msra.mxu1 %v9098_v23  ;;  %v13054_v1 = vld [vmem:[#allocation5 + $0x74] sm:$0xf0]  ;;  %v3637_v22 = vpop.f32.mrf.mxu2 }
 0x276   :  { %v9001_v2 = vld [vmem:[#allocation5 + $0x258] sm:$0xf]  ;;  %v8746_v14 = vor.u32 %v13054_v1, %v8745_v0 }
 0x277   :  { %3889 = vmatpush.bf16.msra.mxu2 %v9354_v24  ;;  %3864 = vmatpush.bf16.msra.mxu0 %v8810_v7  ;;  %v13118_v5 = vld [vmem:[#allocation5 + $0x274] sm:$0xf0]  ;;  %v3661_v63 = vpop.f32.mrf.mxu0 }
 0x278   :  { %v9257_v10 = vld [vmem:[#allocation5 + $0x458] sm:$0xf]  ;;  %v9002_v18 = vor.u32 %v13118_v5, %v9001_v2 }
 0x279   :  { %3902 = vmatpush.bf16.msra.mxu3 %v9610_v30  ;;  %3877 = vmatpush.bf16.msra.mxu1 %v9066_v49  ;;  %v13182_v11 = vld [vmem:[#allocation5 + $0x474] sm:$0xf0] }
 0x27a   :  { %v9513_v12 = vld [vmem:[#allocation5 + $0x658] sm:$0xf]  ;;  %v9258_v19 = vor.u32 %v13182_v11, %v9257_v10 }
 0x27b   :  { %3890 = vmatpush.bf16.msra.mxu2 %v9322_v39  ;;  %v13246_v13 = vld [vmem:[#allocation5 + $0x674] sm:$0xf0]  ;;  %3865 = vmatpush.bf16.msra.mxu0 %v8778_v58 }
 0x27c   :  { %v8713_v16 = vld [vmem:[#allocation5 + $0x18] sm:$0xf]  ;;  %v9514_v23 = vor.u32 %v13246_v13, %v9513_v12 }
 0x27d   :  { %3903 = vmatpush.bf16.msra.mxu3 %v9578_v56  ;;  %v13046_v17 = vld [vmem:[#allocation5 + $0x34] sm:$0xf0]  ;;  %3878 = vmatpush.bf16.msra.mxu1 %v9034_v61 }
 0x27e   :  { %v8969_v20 = vld [vmem:[#allocation5 + $0x218] sm:$0xf]  ;;  %v8714_v31 = vor.u32 %v13046_v17, %v8713_v16 }
 0x27f   :  { %3891 = vmatpush.bf16.msra.mxu2 %v9290_v62  ;;  %v13110_v6 = vld [vmem:[#allocation5 + $0x234] sm:$0xf0]  ;;  %3866 = vmatpush.bf16.msra.mxu0 %v8746_v14 }
 0x280   :  { %v9225_v21 = vld [vmem:[#allocation5 + $0x418] sm:$0xf]  ;;  %v8970_v35 = vor.u32 %v13110_v6, %v8969_v20 }
 0x281   :  { %3904 = vmatpush.bf16.msra.mxu3 %v9546_v4  ;;  %v13174_v24 = vld [vmem:[#allocation5 + $0x434] sm:$0xf0]  ;;  %3879 = vmatpush.bf16.msra.mxu1 %v9002_v18 }
 0x282   :  { %v9481_v26 = vld [vmem:[#allocation5 + $0x618] sm:$0xf]  ;;  %v9226_v36 = vor.u32 %v13174_v24, %v9225_v21 }
 0x283   :  { %v13238_v27 = vld [vmem:[#allocation5 + $0x634] sm:$0xf0]  ;;  %3892 = vmatpush.bf16.msra.mxu2 %v9258_v19  ;;  %3867 = vmatpush.bf16.msra.mxu0 %v8714_v31  ;;  %v14529_v19 = vld [vmem:[#allocation7] sm:$0xff] }
 0x284   :  { %v9961_v28 = vld [vmem:[#allocation5 + $0x9d8] sm:$0xf]  ;;  %v9482_v39 = vor.u32 %v13238_v27, %v9481_v26  ;;  %v664_v20 = vperm.slane %v14529_v19, 4 }
 0x285   :  { %v13358_v29 = vld [vmem:[#allocation5 + $0x9f4] sm:$0xf0]  ;;  %3905 = vmatpush.bf16.msra.mxu3 %v9514_v23  ;;  %3880 = vmatpush.bf16.msra.mxu1 %v8970_v35 }
 0x286   :  { %v10217_v30 = vld [vmem:[#allocation5 + $0xbd8] sm:$0xf]  ;;  %v9962_v41 = vor.u32 %v13358_v29, %v9961_v28  ;;  %3868 = vmatmul.bf16.vlgmr.msra.gmra.mxu0 %v14435_v9 }
 0x287   :  { %v13422_v32 = vld [vmem:[#allocation5 + $0xbf4] sm:$0xf0]  ;;  %3893 = vmatpush.bf16.msra.mxu2 %v9226_v36 }
 0x288   :  { %v10473_v33 = vld [vmem:[#allocation5 + $0xdd8] sm:$0xf]  ;;  %v10218_v42 = vor.u32 %v13422_v32, %v10217_v30  ;;  %3912 = vmatpush.bf16.msrb.mxu0 %v9962_v41  ;;  %3881 = vmatmul.bf16.vlgmr.msra.gmra.mxu1 %v14442_v25 }
 0x289   :  { %v13486_v47 = vld [vmem:[#allocation5 + $0xdf4] sm:$0xf0]  ;;  %3906 = vmatpush.bf16.msra.mxu3 %v9482_v39 }
 0x28a   :  { %v10729_v7 = vld [vmem:[#allocation5 + $0xfd8] sm:$0xf]  ;;  %v10474_v43 = vor.u32 %v13486_v47, %v10473_v33  ;;  %3925 = vmatpush.bf16.msrb.mxu1 %v10218_v42  ;;  %3894 = vmatmul.bf16.vlgmr.msra.gmra.mxu2 %v14433_v8  ;;  %v3662_v33 = vadd.f32 %v3661_v63, %v664_v20  ;;  %v3674_v47 = vpop.f32.mrf.mxu1 }
 0x28b   :  { %v13550_v49 = vld [vmem:[#allocation5 + $0xff4] sm:$0xf0] }
 0x28c   :  { %v9929_v44 = vld [vmem:[#allocation5 + $0x998] sm:$0xf]  ;;  %v10730_v50 = vor.u32 %v13550_v49, %v10729_v7  ;;  %3938 = vmatpush.bf16.msrb.mxu2 %v10474_v43  ;;  %3907 = vmatmul.bf16.vlgmr.msra.gmra.mxu3 %v14437_v15  ;;  %v3675_v42 = vadd.f32 %v3674_v47, %v3662_v33 }
 0x28d   :  { %v13350_v56 = vld [vmem:[#allocation5 + $0x9b4] sm:$0xf0] }
 0x28e   :  { %v10185_v46 = vld [vmem:[#allocation5 + $0xb98] sm:$0xf]  ;;  %v9930_v58 = vor.u32 %v13350_v56, %v9929_v44  ;;  %3951 = vmatpush.bf16.msrb.mxu3 %v10730_v50 }
 0x28f   :  { %v13414_v51 = vld [vmem:[#allocation5 + $0xbb4] sm:$0xf0] }
 0x290   :  { %v10441_v53 = vld [vmem:[#allocation5 + $0xd98] sm:$0xf]  ;;  %v10186_v60 = vor.u32 %v13414_v51, %v10185_v46  ;;  %3913 = vmatpush.bf16.msrb.mxu0 %v9930_v58 }
 0x291   :  { %v13478_v54 = vld [vmem:[#allocation5 + $0xdb4] sm:$0xf0] }
 0x292   :  { %v10697_v55 = vld [vmem:[#allocation5 + $0xf98] sm:$0xf]  ;;  %v10442_v61 = vor.u32 %v13478_v54, %v10441_v53  ;;  %3926 = vmatpush.bf16.msrb.mxu1 %v10186_v60  ;;  %v3687_v53 = vpop.f32.mrf.mxu2 }
 0x293   :  { %v13542_v57 = vld [vmem:[#allocation5 + $0xfb4] sm:$0xf0]  ;;  %v3688_v60 = vadd.f32 %v3687_v53, %v3675_v42  ;;  %v9451_v42 = vld [vmem:[#allocation5 + $0x5f8] sm:$0xf0] }
 0x294   :  { %v9897_v62 = vld [vmem:[#allocation5 + $0x958] sm:$0xf]  ;;  %v10698_v2 = vor.u32 %v13542_v57, %v10697_v55  ;;  %3939 = vmatpush.bf16.msrb.mxu2 %v10442_v61  ;;  %v3700_v61 = vpop.f32.mrf.mxu3 }
 0x295   :  { %v13342_v0 = vld [vmem:[#allocation5 + $0x974] sm:$0xf0] }
 0x296   :  { %v10153_v1 = vld [vmem:[#allocation5 + $0xb58] sm:$0xf]  ;;  %v9898_v12 = vor.u32 %v13342_v0, %v9897_v62  ;;  %3952 = vmatpush.bf16.msrb.mxu3 %v10698_v2  ;;  %v14532_v2 = vadd.f32 %v3700_v61, %v3688_v60  ;;  %v9163_v61 = vld [vmem:[#allocation5 + $0x3b8] sm:$0xf0] }
 0x297   :  { %v13406_v3 = vld [vmem:[#allocation5 + $0xb74] sm:$0xf0] }
 0x298   :  { %v10409_v4 = vld [vmem:[#allocation5 + $0xd58] sm:$0xf]  ;;  %v10154_v14 = vor.u32 %v13406_v3, %v10153_v1  ;;  %3914 = vmatpush.bf16.msrb.mxu0 %v9898_v12  ;;  %v3663_v3 = vpop.f32.mrf.mxu0 }
 0x299   :  { %v13470_v5 = vld [vmem:[#allocation5 + $0xd74] sm:$0xf0]  ;;  %v9675_v3 = vld [vmem:[#allocation5 + $0x7b8] sm:$0xf0] }
 0x29a   :  { %v10665_v10 = vld [vmem:[#allocation5 + $0xf58] sm:$0xf]  ;;  %v10410_v16 = vor.u32 %v13470_v5, %v10409_v4  ;;  %3927 = vmatpush.bf16.msrb.mxu1 %v10154_v14 }
 0x29b   :  { %v13534_v11 = vld [vmem:[#allocation5 + $0xf74] sm:$0xf0] }
 0x29c   :  { %v9865_v13 = vld [vmem:[#allocation5 + $0x918] sm:$0xf]  ;;  %v10666_v6 = vor.u32 %v13534_v11, %v10665_v10  ;;  %3940 = vmatpush.bf16.msrb.mxu2 %v10410_v16  ;;  %v3702_v47 = vpop.f32.mrf.mxu3 }
 0x29d   :  { %v13334_v17 = vld [vmem:[#allocation5 + $0x934] sm:$0xf0] }
 0x29e   :  { %v10121_v18 = vld [vmem:[#allocation5 + $0xb18] sm:$0xf]  ;;  %v9866_v27 = vor.u32 %v13334_v17, %v9865_v13  ;;  %3953 = vmatpush.bf16.msrb.mxu3 %v10666_v6  ;;  %v3676_v13 = vpop.f32.mrf.mxu1 }
 0x29f   :  { %v13398_v21 = vld [vmem:[#allocation5 + $0xb34] sm:$0xf0]  ;;  %v13146_v13 = vld [vmem:[#allocation5 + $0x35c] sm:$0xf] }
 0x2a0   :  { %v10377_v22 = vld [vmem:[#allocation5 + $0xd18] sm:$0xf]  ;;  %v10122_v28 = vor.u32 %v13398_v21, %v10121_v18  ;;  %3915 = vmatpush.bf16.msrb.mxu0 %v9866_v27  ;;  %v3713_v47 = vpop.f32.mrf.mxu0 }
 0x2a1   :  { %v13462_v23 = vld [vmem:[#allocation5 + $0xd34] sm:$0xf0] }
 0x2a2   :  { %v10633_v24 = vld [vmem:[#allocation5 + $0xf18] sm:$0xf]  ;;  %v10378_v29 = vor.u32 %v13462_v23, %v10377_v22  ;;  %3928 = vmatpush.bf16.msrb.mxu1 %v10122_v28 }
 0x2a3   :  { %v13526_v26 = vld [vmem:[#allocation5 + $0xf34] sm:$0xf0] }
 0x2a4   :  { %v9833_v30 = vld [vmem:[#allocation5 + $0x8d8] sm:$0xf]  ;;  %v10634_v35 = vor.u32 %v13526_v26, %v10633_v24  ;;  %3941 = vmatpush.bf16.msrb.mxu2 %v10378_v29  ;;  %v3689_v29 = vpop.f32.mrf.mxu2 }
 0x2a5   :  { %v13326_v31 = vld [vmem:[#allocation5 + $0x8f4] sm:$0xf0]  ;;  %v13202_v29 = vld [vmem:[#allocation5 + $0x51c] sm:$0xf] }
 0x2a6   :  { %v10089_v32 = vld [vmem:[#allocation5 + $0xad8] sm:$0xf]  ;;  %v9834_v43 = vor.u32 %v13326_v31, %v9833_v30  ;;  %3954 = vmatpush.bf16.msrb.mxu3 %v10634_v35  ;;  %v13098_v35 = vld [vmem:[#allocation5 + $0x1dc] sm:$0xf] }
 0x2a7   :  { %v13390_v36 = vld [vmem:[#allocation5 + $0xaf4] sm:$0xf0] }
 0x2a8   :  { %v10345_v7 = vld [vmem:[#allocation5 + $0xcd8] sm:$0xf]  ;;  %v10090_v44 = vor.u32 %v13390_v36, %v10089_v32  ;;  %3916 = vmatpush.bf16.msrb.mxu0 %v9834_v43  ;;  %v8939_v36 = vld [vmem:[#allocation5 + $0x1f8] sm:$0xf0] }
 0x2a9   :  { %v13454_v49 = vld [vmem:[#allocation5 + $0xcf4] sm:$0xf0] }
 0x2aa   :  { %v10601_v39 = vld [vmem:[#allocation5 + $0xed8] sm:$0xf]  ;;  %v10346_v56 = vor.u32 %v13454_v49, %v10345_v7  ;;  %3929 = vmatpush.bf16.msrb.mxu1 %v10090_v44  ;;  %v13162_v7 = vld [vmem:[#allocation5 + $0x3dc] sm:$0xf] }
 0x2ab   :  { %v13518_v41 = vld [vmem:[#allocation5 + $0xef4] sm:$0xf0] }
 0x2ac   :  { %v9801_v46 = vld [vmem:[#allocation5 + $0x898] sm:$0xf]  ;;  %v10602_v54 = vor.u32 %v13518_v41, %v10601_v39  ;;  %3942 = vmatpush.bf16.msrb.mxu2 %v10346_v56  ;;  %v9195_v39 = vld [vmem:[#allocation5 + $0x3f8] sm:$0xf0] }
 0x2ad   :  { %v13318_v50 = vld [vmem:[#allocation5 + $0x8b4] sm:$0xf0]  ;;  %v13226_v41 = vld [vmem:[#allocation5 + $0x5dc] sm:$0xf]  ;;  %v9198_v53 = vor.u32 %v13162_v7, %v9195_v39 }
 0x2ae   :  { %v10057_v51 = vld [vmem:[#allocation5 + $0xa98] sm:$0xf]  ;;  %v9802_v1 = vor.u32 %v13318_v50, %v9801_v46  ;;  %3955 = vmatpush.bf16.msrb.mxu3 %v10602_v54  ;;  %v13290_v56 = vld [vmem:[#allocation5 + $0x7dc] sm:$0xf]  ;;  %v9454_v54 = vor.u32 %v13226_v41, %v9451_v42  ;;  %v3714_v41 = vadd.f32 %v3713_v47, %v14532_v2  ;;  %v3726_v42 = vpop.f32.mrf.mxu1 }
 0x2af   :  { %v13382_v55 = vld [vmem:[#allocation5 + $0xab4] sm:$0xf0]  ;;  %v9707_v46 = vld [vmem:[#allocation5 + $0x7f8] sm:$0xf0] }
 0x2b0   :  { %v10313_v57 = vld [vmem:[#allocation5 + $0xc98] sm:$0xf]  ;;  %v10058_v4 = vor.u32 %v13382_v55, %v10057_v51  ;;  %3917 = vmatpush.bf16.msrb.mxu0 %v9802_v1  ;;  %v8942_v51 = vor.u32 %v13098_v35, %v8939_v36  ;;  %v13090_v55 = vld [vmem:[#allocation5 + $0x19c] sm:$0xf]  ;;  %v9710_v60 = vor.u32 %v13290_v56, %v9707_v46 }
 0x2b1   :  { %v13446_v58 = vld [vmem:[#allocation5 + $0xcb4] sm:$0xf0]  ;;  %v13282_v1 = vld [vmem:[#allocation5 + $0x79c] sm:$0xf] }
 0x2b2   :  { %v10569_v62 = vld [vmem:[#allocation5 + $0xe98] sm:$0xf]  ;;  %v10314_v5 = vor.u32 %v13446_v58, %v10313_v57  ;;  %3930 = vmatpush.bf16.msrb.mxu1 %v10058_v4  ;;  %v8907_v57 = vld [vmem:[#allocation5 + $0x1b8] sm:$0xf0] }
 0x2b3   :  { %v13510_v0 = vld [vmem:[#allocation5 + $0xeb4] sm:$0xf0]  ;;  %v13154_v58 = vld [vmem:[#allocation5 + $0x39c] sm:$0xf]  ;;  %v8910_v4 = vor.u32 %v13090_v55, %v8907_v57 }
 0x2b4   :  { %v9769_v10 = vld [vmem:[#allocation5 + $0x858] sm:$0xf]  ;;  %v10570_v14 = vor.u32 %v13510_v0, %v10569_v62  ;;  %3943 = vmatpush.bf16.msrb.mxu2 %v10314_v5  ;;  %v13218_v62 = vld [vmem:[#allocation5 + $0x59c] sm:$0xf]  ;;  %v9166_v5 = vor.u32 %v13154_v58, %v9163_v61 }
 0x2b5   :  { %v13310_v11 = vld [vmem:[#allocation5 + $0x874] sm:$0xf0]  ;;  %v9419_v0 = vld [vmem:[#allocation5 + $0x5b8] sm:$0xf0] }
 0x2b6   :  { %v10025_v12 = vld [vmem:[#allocation5 + $0xa58] sm:$0xf]  ;;  %v9770_v21 = vor.u32 %v13310_v11, %v9769_v10  ;;  %3956 = vmatpush.bf16.msrb.mxu3 %v10570_v14  ;;  %v9422_v10 = vor.u32 %v13218_v62, %v9419_v0  ;;  %v13082_v11 = vld [vmem:[#allocation5 + $0x15c] sm:$0xf]  ;;  %v9678_v14 = vor.u32 %v13282_v1, %v9675_v3  ;;  %v3739_v62 = vpop.f32.mrf.mxu2 }
 0x2b7   :  { %v13374_v16 = vld [vmem:[#allocation5 + $0xa74] sm:$0xf0]  ;;  %v13066_v7 = vld [vmem:[#allocation5 + $0xdc] sm:$0xf] }
 0x2b8   :  { %v10281_v17 = vld [vmem:[#allocation5 + $0xc58] sm:$0xf]  ;;  %v10026_v24 = vor.u32 %v13374_v16, %v10025_v12  ;;  %3918 = vmatpush.bf16.msrb.mxu0 %v9770_v21  ;;  %v8875_v12 = vld [vmem:[#allocation5 + $0x178] sm:$0xf0] }
 0x2b9   :  { %v13438_v18 = vld [vmem:[#allocation5 + $0xc74] sm:$0xf0]  ;;  %v9131_v16 = vld [vmem:[#allocation5 + $0x378] sm:$0xf0]  ;;  %v8878_v21 = vor.u32 %v13082_v11, %v8875_v12 }
 0x2ba   :  { %v10537_v20 = vld [vmem:[#allocation5 + $0xe58] sm:$0xf]  ;;  %v10282_v26 = vor.u32 %v13438_v18, %v10281_v17  ;;  %3931 = vmatpush.bf16.msrb.mxu1 %v10026_v24  ;;  %v13210_v17 = vld [vmem:[#allocation5 + $0x55c] sm:$0xf] }
 0x2bb   :  { %v13502_v6 = vld [vmem:[#allocation5 + $0xe74] sm:$0xf0]  ;;  %v9387_v18 = vld [vmem:[#allocation5 + $0x578] sm:$0xf0] }
 0x2bc   :  { %v9737_v22 = vld [vmem:[#allocation5 + $0x818] sm:$0xf]  ;;  %v10538_v30 = vor.u32 %v13502_v6, %v10537_v20  ;;  %3944 = vmatpush.bf16.msrb.mxu2 %v10282_v26  ;;  %v13274_v20 = vld [vmem:[#allocation5 + $0x75c] sm:$0xf] }
 0x2bd   :  { %v13302_v23 = vld [vmem:[#allocation5 + $0x834] sm:$0xf0]  ;;  %v9643_v6 = vld [vmem:[#allocation5 + $0x778] sm:$0xf0] }
 0x2be   :  { %v9993_v27 = vld [vmem:[#allocation5 + $0xa18] sm:$0xf]  ;;  %v9738_v49 = vor.u32 %v13302_v23, %v9737_v22  ;;  %3957 = vmatpush.bf16.msrb.mxu3 %v10538_v30  ;;  %v9134_v22 = vor.u32 %v13146_v13, %v9131_v16  ;;  %v9390_v23 = vor.u32 %v13210_v17, %v9387_v18  ;;  %v13074_v24 = vld [vmem:[#allocation5 + $0x11c] sm:$0xf] }
 0x2bf   :  { %v13366_v63 = vld [vmem:[#allocation5 + $0xa34] sm:$0xf0]  ;;  %v8843_v26 = vld [vmem:[#allocation5 + $0x138] sm:$0xf0] }
 0x2c0   :  { %v10249_v28 = vld [vmem:[#allocation5 + $0xc18] sm:$0xf]  ;;  %v9994_v43 = vor.u32 %v13366_v63, %v9993_v27  ;;  %3919 = vmatpush.bf16.msrb.mxu0 %v9738_v49  ;;  %v13138_v27 = vld [vmem:[#allocation5 + $0x31c] sm:$0xf]  ;;  %v9646_v63 = vor.u32 %v13274_v20, %v9643_v6 }
 0x2c1   :  { %v13430_v31 = vld [vmem:[#allocation5 + $0xc34] sm:$0xf0]  ;;  %v9355_v30 = vld [vmem:[#allocation5 + $0x538] sm:$0xf0] }
 0x2c2   :  { %v10505_v32 = vld [vmem:[#allocation5 + $0xe18] sm:$0xf]  ;;  %v10250_v44 = vor.u32 %v13430_v31, %v10249_v28  ;;  %3932 = vmatpush.bf16.msrb.mxu1 %v9994_v43  ;;  %v9099_v28 = vld [vmem:[#allocation5 + $0x338] sm:$0xf0]  ;;  %v9358_v36 = vor.u32 %v13202_v29, %v9355_v30 }
 0x2c3   :  { %v13494_v33 = vld [vmem:[#allocation5 + $0xe34] sm:$0xf0]  ;;  %3920 = vmatmul.bf16.vlgmr.msrb.gmra.mxu0 %v14447_v37  ;;  %v13266_v31 = vld [vmem:[#allocation5 + $0x71c] sm:$0xf]  ;;  %v9102_v35 = vor.u32 %v13138_v27, %v9099_v28 }
 0x2c4   :  { %v10506_v50 = vor.u32 %v13494_v33, %v10505_v32  ;;  %3945 = vmatpush.bf16.msrb.mxu2 %v10250_v44  ;;  %3964 = vmatpush.bf16.msra.mxu0 %v8942_v51  ;;  %v9611_v32 = vld [vmem:[#allocation5 + $0x738] sm:$0xf0]  ;;  %v8846_v33 = vor.u32 %v13074_v24, %v8843_v26 }
 0x2c5   :  { %3933 = vmatmul.bf16.vlgmr.msrb.gmra.mxu1 %v14451_v40  ;;  %v8811_v49 = vld [vmem:[#allocation5 + $0xf8] sm:$0xf0]  ;;  %v9614_v43 = vor.u32 %v13266_v31, %v9611_v32 }
 0x2c6   :  { %3958 = vmatpush.bf16.msrb.mxu3 %v10506_v50  ;;  %3977 = vmatpush.bf16.msra.mxu1 %v9198_v53  ;;  %v13130_v39 = vld [vmem:[#allocation5 + $0x2dc] sm:$0xf]  ;;  %v3727_v53 = vadd.f32 %v3726_v42, %v3714_v41 }
 0x2c7   :  { %3946 = vmatmul.bf16.vlgmr.msrb.gmra.mxu2 %v14445_v34  ;;  %v9067_v44 = vld [vmem:[#allocation5 + $0x2f8] sm:$0xf0] }
 0x2c8   :  { %3990 = vmatpush.bf16.msra.mxu2 %v9454_v54  ;;  %3965 = vmatpush.bf16.msra.mxu0 %v8910_v4  ;;  %v13194_v56 = vld [vmem:[#allocation5 + $0x4dc] sm:$0xf]  ;;  %v8814_v54 = vor.u32 %v13066_v7, %v8811_v49  ;;  %v9070_v55 = vor.u32 %v13130_v39, %v9067_v44  ;;  %v3740_v4 = vadd.f32 %v3739_v62, %v3727_v53 }
 0x2c9   :  { %3959 = vmatmul.bf16.vlgmr.msrb.gmra.mxu3 %v14449_v38  ;;  %v9323_v46 = vld [vmem:[#allocation5 + $0x4f8] sm:$0xf0] }
 0x2ca   :  { %4003 = vmatpush.bf16.msra.mxu3 %v9710_v60  ;;  %3978 = vmatpush.bf16.msra.mxu1 %v9166_v5  ;;  %v13258_v50 = vld [vmem:[#allocation5 + $0x6dc] sm:$0xf]  ;;  %v9326_v57 = vor.u32 %v13194_v56, %v9323_v46  ;;  %v3752_v5 = vpop.f32.mrf.mxu3 }
 0x2cb   :  { %v9579_v51 = vld [vmem:[#allocation5 + $0x6f8] sm:$0xf0]  ;;  %v14539_v13 = vadd.f32 %v3752_v5, %v3740_v4 }
 0x2cc   :  { %3991 = vmatpush.bf16.msra.mxu2 %v9422_v10  ;;  %3966 = vmatpush.bf16.msra.mxu0 %v8878_v21  ;;  %v13058_v58 = vld [vmem:[#allocation5 + $0x9c] sm:$0xf]  ;;  %v9582_v2 = vor.u32 %v13258_v50, %v9579_v51  ;;  %v3728_v21 = vpop.f32.mrf.mxu1 }
 0x2cd   :  { %v8779_v60 = vld [vmem:[#allocation5 + $0xb8] sm:$0xf0] }
 0x2ce   :  { %4004 = vmatpush.bf16.msra.mxu3 %v9678_v14  ;;  %3979 = vmatpush.bf16.msra.mxu1 %v9134_v22  ;;  %v13122_v61 = vld [vmem:[#allocation5 + $0x29c] sm:$0xf]  ;;  %v8782_v12 = vor.u32 %v13058_v58, %v8779_v60  ;;  %v3715_v14 = vpop.f32.mrf.mxu0 }
 0x2cf   :  { %v9035_v0 = vld [vmem:[#allocation5 + $0x2b8] sm:$0xf0] }
 0x2d0   :  { %3992 = vmatpush.bf16.msra.mxu2 %v9390_v23  ;;  %3967 = vmatpush.bf16.msra.mxu0 %v8846_v33  ;;  %v13186_v1 = vld [vmem:[#allocation5 + $0x49c] sm:$0xf]  ;;  %v9038_v16 = vor.u32 %v13122_v61, %v9035_v0 }
 0x2d1   :  { %v9291_v3 = vld [vmem:[#allocation5 + $0x4b8] sm:$0xf0] }
 0x2d2   :  { %4005 = vmatpush.bf16.msra.mxu3 %v9646_v63  ;;  %3980 = vmatpush.bf16.msra.mxu1 %v9102_v35  ;;  %v13250_v10 = vld [vmem:[#allocation5 + $0x69c] sm:$0xf]  ;;  %v9294_v17 = vor.u32 %v13186_v1, %v9291_v3  ;;  %v3754_v42 = vpop.f32.mrf.mxu3 }
 0x2d3   :  { %v9547_v11 = vld [vmem:[#allocation5 + $0x6b8] sm:$0xf0] }
 0x2d4   :  { %3993 = vmatpush.bf16.msra.mxu2 %v9358_v36  ;;  %3968 = vmatpush.bf16.msra.mxu0 %v8814_v54  ;;  %v13050_v18 = vld [vmem:[#allocation5 + $0x5c] sm:$0xf]  ;;  %v9550_v22 = vor.u32 %v13250_v10, %v9547_v11  ;;  %v3741_v36 = vpop.f32.mrf.mxu2 }
 0x2d5   :  { %v8747_v20 = vld [vmem:[#allocation5 + $0x78] sm:$0xf0] }
 0x2d6   :  { %4006 = vmatpush.bf16.msra.mxu3 %v9614_v43  ;;  %3981 = vmatpush.bf16.msra.mxu1 %v9070_v55  ;;  %v13114_v6 = vld [vmem:[#allocation5 + $0x25c] sm:$0xf]  ;;  %v8750_v28 = vor.u32 %v13050_v18, %v8747_v20 }
 0x2d7   :  { %v9003_v23 = vld [vmem:[#allocation5 + $0x278] sm:$0xf0] }
 0x2d8   :  { %3994 = vmatpush.bf16.msra.mxu2 %v9326_v57  ;;  %v13178_v24 = vld [vmem:[#allocation5 + $0x45c] sm:$0xf]  ;;  %3969 = vmatpush.bf16.msra.mxu0 %v8782_v12  ;;  %v9006_v31 = vor.u32 %v13114_v6, %v9003_v23 }
 0x2d9   :  { %v9259_v26 = vld [vmem:[#allocation5 + $0x478] sm:$0xf0] }
 0x2da   :  { %4007 = vmatpush.bf16.msra.mxu3 %v9582_v2  ;;  %v13242_v27 = vld [vmem:[#allocation5 + $0x65c] sm:$0xf]  ;;  %3982 = vmatpush.bf16.msra.mxu1 %v9038_v16  ;;  %v9262_v32 = vor.u32 %v13178_v24, %v9259_v26 }
 0x2db   :  { %v9515_v63 = vld [vmem:[#allocation5 + $0x678] sm:$0xf0] }
 0x2dc   :  { %v13042_v29 = vld [vmem:[#allocation5 + $0x1c] sm:$0xf]  ;;  %3995 = vmatpush.bf16.msra.mxu2 %v9294_v17  ;;  %v9518_v7 = vor.u32 %v13242_v27, %v9515_v63  ;;  %3970 = vmatpush.bf16.msra.mxu0 %v8750_v28 }
 0x2dd   :  { %v8715_v30 = vld [vmem:[#allocation5 + $0x38] sm:$0xf0] }
 0x2de   :  { %v13106_v33 = vld [vmem:[#allocation5 + $0x21c] sm:$0xf]  ;;  %4008 = vmatpush.bf16.msra.mxu3 %v9550_v22  ;;  %v8718_v46 = vor.u32 %v13042_v29, %v8715_v30  ;;  %3983 = vmatpush.bf16.msra.mxu1 %v9006_v31 }
 0x2df   :  { %v8971_v47 = vld [vmem:[#allocation5 + $0x238] sm:$0xf0] }
 0x2e0   :  { %v13170_v35 = vld [vmem:[#allocation5 + $0x41c] sm:$0xf]  ;;  %3996 = vmatpush.bf16.msra.mxu2 %v9262_v32  ;;  %v8974_v54 = vor.u32 %v13106_v33, %v8971_v47  ;;  %3971 = vmatpush.bf16.msra.mxu0 %v8718_v46 }
 0x2e1   :  { %v9227_v49 = vld [vmem:[#allocation5 + $0x438] sm:$0xf0] }
 0x2e2   :  { %v13234_v39 = vld [vmem:[#allocation5 + $0x61c] sm:$0xf]  ;;  %v9230_v55 = vor.u32 %v13170_v35, %v9227_v49  ;;  %4009 = vmatpush.bf16.msra.mxu3 %v9518_v7  ;;  %3984 = vmatpush.bf16.msra.mxu1 %v8974_v54  ;;  %v14545_v49 = vpop.f32.mrf.mxu0 }
 0x2e3   :  { %v9483_v41 = vld [vmem:[#allocation5 + $0x638] sm:$0xf0]  ;;  %3972 = vmatmul.bf16.vlgmr.msra.gmra.mxu0 %v14435_v9 }
 0x2e4   :  { %v13354_v43 = vld [vmem:[#allocation5 + $0x9dc] sm:$0xf]  ;;  %v9486_v60 = vor.u32 %v13234_v39, %v9483_v41  ;;  %3997 = vmatpush.bf16.msra.mxu2 %v9230_v55 }
 0x2e5   :  { %v9963_v44 = vld [vmem:[#allocation5 + $0x9f8] sm:$0xf0]  ;;  %3985 = vmatmul.bf16.vlgmr.msra.gmra.mxu1 %v14442_v25 }
 0x2e6   :  { %v13418_v56 = vld [vmem:[#allocation5 + $0xbdc] sm:$0xf]  ;;  %v9966_v61 = vor.u32 %v13354_v43, %v9963_v44  ;;  %4010 = vmatpush.bf16.msra.mxu3 %v9486_v60  ;;  %v14547_v44 = vpop.f32.mrf.mxu1 }
 0x2e7   :  { %v10219_v50 = vld [vmem:[#allocation5 + $0xbf8] sm:$0xf0]  ;;  %3998 = vmatmul.bf16.vlgmr.msra.gmra.mxu2 %v14433_v8 }
 0x2e8   :  { %v13482_v51 = vld [vmem:[#allocation5 + $0xddc] sm:$0xf]  ;;  %v10222_v62 = vor.u32 %v13418_v56, %v10219_v50  ;;  %4016 = vmatpush.bf16.msrb.mxu0 %v9966_v61 }
 0x2e9   :  { %v10475_v53 = vld [vmem:[#allocation5 + $0xdf8] sm:$0xf0]  ;;  %4011 = vmatmul.bf16.vlgmr.msra.gmra.mxu3 %v14437_v15 }
 0x2ea   :  { %v13546_v57 = vld [vmem:[#allocation5 + $0xfdc] sm:$0xf]  ;;  %v10478_v2 = vor.u32 %v13482_v51, %v10475_v53  ;;  %4029 = vmatpush.bf16.msrb.mxu1 %v10222_v62 }
 0x2eb   :  { %v10731_v58 = vld [vmem:[#allocation5 + $0xff8] sm:$0xf0] }
 0x2ec   :  { %v13346_v0 = vld [vmem:[#allocation5 + $0x99c] sm:$0xf]  ;;  %v10734_v4 = vor.u32 %v13546_v57, %v10731_v58  ;;  %4042 = vmatpush.bf16.msrb.mxu2 %v10478_v2  ;;  %v14549_v2 = vpop.f32.mrf.mxu2 }
 0x2ed   :  { %v9931_v1 = vld [vmem:[#allocation5 + $0x9b8] sm:$0xf0] }
 0x2ee   :  { %v13410_v3 = vld [vmem:[#allocation5 + $0xb9c] sm:$0xf]  ;;  %v9934_v16 = vor.u32 %v13346_v0, %v9931_v1  ;;  %4055 = vmatpush.bf16.msrb.mxu3 %v10734_v4 }
 0x2ef   :  { %v10187_v5 = vld [vmem:[#allocation5 + $0xbb8] sm:$0xf0] }
 0x2f0   :  { %v13474_v10 = vld [vmem:[#allocation5 + $0xd9c] sm:$0xf]  ;;  %v10190_v17 = vor.u32 %v13410_v3, %v10187_v5  ;;  %4017 = vmatpush.bf16.msrb.mxu0 %v9934_v16  ;;  %v14551_v5 = vpop.f32.mrf.mxu3 }
 0x2f1   :  { %v10443_v11 = vld [vmem:[#allocation5 + $0xdb8] sm:$0xf0] }
 0x2f2   :  { %v13538_v12 = vld [vmem:[#allocation5 + $0xf9c] sm:$0xf]  ;;  %v10446_v18 = vor.u32 %v13474_v10, %v10443_v11  ;;  %4030 = vmatpush.bf16.msrb.mxu1 %v10190_v17 }
 0x2f3   :  { %v10699_v14 = vld [vmem:[#allocation5 + $0xfb8] sm:$0xf0] }
 0x2f4   :  { %v13338_v20 = vld [vmem:[#allocation5 + $0x95c] sm:$0xf]  ;;  %v10702_v22 = vor.u32 %v13538_v12, %v10699_v14  ;;  %4043 = vmatpush.bf16.msrb.mxu2 %v10446_v18  ;;  %v3767_v14 = vpop.f32.mrf.mxu0 }
 0x2f5   :  { %v9899_v6 = vld [vmem:[#allocation5 + $0x978] sm:$0xf0]  ;;  %v13795_v14 = vld [vmem:[#allocation8 + $0x79c] sm:$0xf0] }
 0x2f6   :  { %v13402_v21 = vld [vmem:[#allocation5 + $0xb5c] sm:$0xf]  ;;  %v9902_v28 = vor.u32 %v13338_v20, %v9899_v6  ;;  %4056 = vmatpush.bf16.msrb.mxu3 %v10702_v22 }
 0x2f7   :  { %v10155_v23 = vld [vmem:[#allocation5 + $0xb78] sm:$0xf0] }
 0x2f8   :  { %v13466_v24 = vld [vmem:[#allocation5 + $0xd5c] sm:$0xf]  ;;  %v10158_v29 = vor.u32 %v13402_v21, %v10155_v23  ;;  %4018 = vmatpush.bf16.msrb.mxu0 %v9902_v28  ;;  %v3780_v21 = vpop.f32.mrf.mxu1 }
 0x2f9   :  { %v10411_v26 = vld [vmem:[#allocation5 + $0xd78] sm:$0xf0]  ;;  %v11153_v21 = vld [vmem:[#allocation8 + $0x340] sm:$0xf] }
 0x2fa   :  { %v13530_v27 = vld [vmem:[#allocation5 + $0xf5c] sm:$0xf]  ;;  %v10414_v30 = vor.u32 %v13466_v24, %v10411_v26  ;;  %4031 = vmatpush.bf16.msrb.mxu1 %v10158_v29 }
 0x2fb   :  { %v10667_v63 = vld [vmem:[#allocation5 + $0xf78] sm:$0xf0] }
 0x2fc   :  { %v13330_v31 = vld [vmem:[#allocation5 + $0x91c] sm:$0xf]  ;;  %v10670_v33 = vor.u32 %v13530_v27, %v10667_v63  ;;  %4044 = vmatpush.bf16.msrb.mxu2 %v10414_v30 }
 0x2fd   :  { %v9867_v32 = vld [vmem:[#allocation5 + $0x938] sm:$0xf0] }
 0x2fe   :  { %v13394_v8 = vld [vmem:[#allocation5 + $0xb1c] sm:$0xf]  ;;  %v9870_v15 = vor.u32 %v13330_v31, %v9867_v32  ;;  %4057 = vmatpush.bf16.msrb.mxu3 %v10670_v33 }
 0x2ff   :  { %v10123_v47 = vld [vmem:[#allocation5 + $0xb38] sm:$0xf0] }
 0x300   :  { %v13458_v35 = vld [vmem:[#allocation5 + $0xd1c] sm:$0xf]  ;;  %v10126_v25 = vor.u32 %v13394_v8, %v10123_v47  ;;  %4019 = vmatpush.bf16.msrb.mxu0 %v9870_v15 }
 0x301   :  { %v10379_v36 = vld [vmem:[#allocation5 + $0xd38] sm:$0xf0] }
 0x302   :  { %v13522_v7 = vld [vmem:[#allocation5 + $0xf1c] sm:$0xf]  ;;  %v10382_v39 = vor.u32 %v13458_v35, %v10379_v36  ;;  %4032 = vmatpush.bf16.msrb.mxu1 %v10126_v25  ;;  %v3793_v35 = vpop.f32.mrf.mxu2  ;;  %v3806_v25 = vpop.f32.mrf.mxu3 }
 0x303   :  { %v10635_v9 = vld [vmem:[#allocation5 + $0xf38] sm:$0xf0]  ;;  %v11633_v35 = vld [vmem:[#allocation8 + $0x700] sm:$0xf] }
 0x304   :  { %v13322_v41 = vld [vmem:[#allocation5 + $0x8dc] sm:$0xf]  ;;  %v10638_v56 = vor.u32 %v13522_v7, %v10635_v9  ;;  %4045 = vmatpush.bf16.msrb.mxu2 %v10382_v39  ;;  %v10961_v39 = vld [vmem:[#allocation8 + $0x1c0] sm:$0xf] }
 0x305   :  { %v9835_v42 = vld [vmem:[#allocation5 + $0x8f8] sm:$0xf0]  ;;  %v13579_v25 = vld [vmem:[#allocation8 + $0xdc] sm:$0xf0] }
 0x306   :  { %v13386_v43 = vld [vmem:[#allocation5 + $0xadc] sm:$0xf]  ;;  %v9838_v55 = vor.u32 %v13322_v41, %v9835_v42  ;;  %4058 = vmatpush.bf16.msrb.mxu3 %v10638_v56  ;;  %v13611_v41 = vld [vmem:[#allocation8 + $0x1dc] sm:$0xf0] }
 0x307   :  { %v10091_v46 = vld [vmem:[#allocation5 + $0xaf8] sm:$0xf0]  ;;  %v11217_v42 = vld [vmem:[#allocation8 + $0x3c0] sm:$0xf] }
 0x308   :  { %v13450_v50 = vld [vmem:[#allocation5 + $0xcdc] sm:$0xf]  ;;  %v10094_v57 = vor.u32 %v13386_v43, %v10091_v46  ;;  %4020 = vmatpush.bf16.msrb.mxu0 %v9838_v55  ;;  %v13675_v56 = vld [vmem:[#allocation8 + $0x3dc] sm:$0xf0] }
 0x309   :  { %v10347_v51 = vld [vmem:[#allocation5 + $0xcf8] sm:$0xf0]  ;;  %v11473_v46 = vld [vmem:[#allocation8 + $0x5c0] sm:$0xf] }
 0x30a   :  { %v13514_v53 = vld [vmem:[#allocation5 + $0xedc] sm:$0xf]  ;;  %v10350_v58 = vor.u32 %v13450_v50, %v10347_v51  ;;  %4033 = vmatpush.bf16.msrb.mxu1 %v10094_v57  ;;  %v13739_v50 = vld [vmem:[#allocation8 + $0x5dc] sm:$0xf0] }
 0x30b   :  { %v10603_v54 = vld [vmem:[#allocation5 + $0xef8] sm:$0xf0]  ;;  %v13803_v55 = vld [vmem:[#allocation8 + $0x7dc] sm:$0xf0] }
 0x30c   :  { %v13314_v60 = vld [vmem:[#allocation5 + $0x89c] sm:$0xf]  ;;  %v10606_v0 = vor.u32 %v13514_v53, %v10603_v54  ;;  %4046 = vmatpush.bf16.msrb.mxu2 %v10350_v58  ;;  %v11729_v54 = vld [vmem:[#allocation8 + $0x7c0] sm:$0xf]  ;;  %v10962_v58 = vor.u32 %v13611_v41, %v10961_v39  ;;  %v14559_v41 = vpop.f32.mrf.mxu1 }
 0x30d   :  { %v9803_v61 = vld [vmem:[#allocation5 + $0x8b8] sm:$0xf0]  ;;  %v11089_v39 = vld [vmem:[#allocation8 + $0x2c0] sm:$0xf] }
 0x30e   :  { %v13378_v62 = vld [vmem:[#allocation5 + $0xa9c] sm:$0xf]  ;;  %v9806_v12 = vor.u32 %v13314_v60, %v9803_v61  ;;  %4059 = vmatpush.bf16.msrb.mxu3 %v10606_v0  ;;  %v11218_v60 = vor.u32 %v13675_v56, %v11217_v42  ;;  %v11474_v61 = vor.u32 %v13739_v50, %v11473_v46  ;;  %v13603_v0 = vld [vmem:[#allocation8 + $0x19c] sm:$0xf0] }
 0x30f   :  { %v10059_v1 = vld [vmem:[#allocation5 + $0xab8] sm:$0xf0]  ;;  %v11345_v56 = vld [vmem:[#allocation8 + $0x4c0] sm:$0xf] }
 0x310   :  { %v13442_v3 = vld [vmem:[#allocation5 + $0xc9c] sm:$0xf]  ;;  %v10062_v16 = vor.u32 %v13378_v62, %v10059_v1  ;;  %4021 = vmatpush.bf16.msrb.mxu0 %v9806_v12  ;;  %v10929_v62 = vld [vmem:[#allocation8 + $0x180] sm:$0xf] }
 0x311   :  { %v10315_v4 = vld [vmem:[#allocation5 + $0xcb8] sm:$0xf0]  ;;  %v11185_v1 = vld [vmem:[#allocation8 + $0x380] sm:$0xf] }
 0x312   :  { %v13506_v10 = vld [vmem:[#allocation5 + $0xe9c] sm:$0xf]  ;;  %v10318_v17 = vor.u32 %v13442_v3, %v10315_v4  ;;  %4034 = vmatpush.bf16.msrb.mxu1 %v10062_v16  ;;  %v11730_v3 = vor.u32 %v13803_v55, %v11729_v54  ;;  %v13667_v4 = vld [vmem:[#allocation8 + $0x39c] sm:$0xf0]  ;;  %v10930_v16 = vor.u32 %v13603_v0, %v10929_v62 }
 0x313   :  { %v10571_v11 = vld [vmem:[#allocation5 + $0xeb8] sm:$0xf0]  ;;  %v11697_v12 = vld [vmem:[#allocation8 + $0x780] sm:$0xf] }
 0x314   :  { %v13306_v18 = vld [vmem:[#allocation5 + $0x85c] sm:$0xf]  ;;  %v10574_v22 = vor.u32 %v13506_v10, %v10571_v11  ;;  %4047 = vmatpush.bf16.msrb.mxu2 %v10318_v17  ;;  %v11441_v10 = vld [vmem:[#allocation8 + $0x580] sm:$0xf]  ;;  %v11186_v17 = vor.u32 %v13667_v4, %v11185_v1  ;;  %v14563_v4 = vpop.f32.mrf.mxu3 }
 0x315   :  { %v9771_v20 = vld [vmem:[#allocation5 + $0x878] sm:$0xf0]  ;;  %v13731_v11 = vld [vmem:[#allocation8 + $0x59c] sm:$0xf0] }
 0x316   :  { %v13370_v6 = vld [vmem:[#allocation5 + $0xa5c] sm:$0xf]  ;;  %v9774_v28 = vor.u32 %v13306_v18, %v9771_v20  ;;  %4060 = vmatpush.bf16.msrb.mxu3 %v10574_v22  ;;  %v11442_v18 = vor.u32 %v13731_v11, %v11441_v10  ;;  %v10897_v20 = vld [vmem:[#allocation8 + $0x140] sm:$0xf]  ;;  %v11698_v22 = vor.u32 %v13795_v14, %v11697_v12 }
 0x317   :  { %v10027_v23 = vld [vmem:[#allocation5 + $0xa78] sm:$0xf0]  ;;  %v13707_v46 = vld [vmem:[#allocation8 + $0x4dc] sm:$0xf0] }
 0x318   :  { %v13434_v24 = vld [vmem:[#allocation5 + $0xc5c] sm:$0xf]  ;;  %v10030_v31 = vor.u32 %v13370_v6, %v10027_v23  ;;  %4022 = vmatpush.bf16.msrb.mxu0 %v9774_v28  ;;  %v13595_v6 = vld [vmem:[#allocation8 + $0x15c] sm:$0xf0]  ;;  %v11346_v55 = vor.u32 %v13707_v46, %v11345_v56 }
 0x319   :  { %v10283_v26 = vld [vmem:[#allocation5 + $0xc78] sm:$0xf0]  ;;  %v13659_v23 = vld [vmem:[#allocation8 + $0x35c] sm:$0xf0]  ;;  %v10898_v28 = vor.u32 %v13595_v6, %v10897_v20 }
 0x31a   :  { %v13498_v27 = vld [vmem:[#allocation5 + $0xe5c] sm:$0xf]  ;;  %v10286_v32 = vor.u32 %v13434_v24, %v10283_v26  ;;  %4035 = vmatpush.bf16.msrb.mxu1 %v10030_v31  ;;  %v11409_v24 = vld [vmem:[#allocation8 + $0x540] sm:$0xf] }
 0x31b   :  { %v10539_v63 = vld [vmem:[#allocation5 + $0xe78] sm:$0xf0]  ;;  %v13723_v26 = vld [vmem:[#allocation8 + $0x55c] sm:$0xf0] }
 0x31c   :  { %v13298_v29 = vld [vmem:[#allocation5 + $0x81c] sm:$0xf]  ;;  %v10542_v36 = vor.u32 %v13498_v27, %v10539_v63  ;;  %4048 = vmatpush.bf16.msrb.mxu2 %v10286_v32  ;;  %v11665_v27 = vld [vmem:[#allocation8 + $0x740] sm:$0xf] }
 0x31d   :  { %v9739_v30 = vld [vmem:[#allocation5 + $0x838] sm:$0xf0]  ;;  %v13787_v63 = vld [vmem:[#allocation8 + $0x75c] sm:$0xf0] }
 0x31e   :  { %v13362_v8 = vld [vmem:[#allocation5 + $0xa1c] sm:$0xf]  ;;  %v9742_v43 = vor.u32 %v13298_v29, %v9739_v30  ;;  %4061 = vmatpush.bf16.msrb.mxu3 %v10542_v36  ;;  %v11154_v29 = vor.u32 %v13659_v23, %v11153_v21  ;;  %v11410_v30 = vor.u32 %v13723_v26, %v11409_v24  ;;  %v10865_v31 = vld [vmem:[#allocation8 + $0x100] sm:$0xf]  ;;  %v3832_v21 = vpop.f32.mrf.mxu1 }
 0x31f   :  { %v9995_v33 = vld [vmem:[#allocation5 + $0xa38] sm:$0xf0]  ;;  %v11121_v32 = vld [vmem:[#allocation8 + $0x300] sm:$0xf] }
 0x320   :  { %v13426_v47 = vld [vmem:[#allocation5 + $0xc1c] sm:$0xf]  ;;  %v9998_v51 = vor.u32 %v13362_v8, %v9995_v33  ;;  %4023 = vmatpush.bf16.msrb.mxu0 %v9742_v43  ;;  %v11666_v8 = vor.u32 %v13787_v63, %v11665_v27  ;;  %v13651_v33 = vld [vmem:[#allocation8 + $0x31c] sm:$0xf0]  ;;  %v665_v27 = vperm.slane %v14529_v19, 5  ;;  %v3858_v19 = vpop.f32.mrf.mxu3 }
 0x321   :  { %v10251_v7 = vld [vmem:[#allocation5 + $0xc38] sm:$0xf0]  ;;  %v13643_v43 = vld [vmem:[#allocation8 + $0x2dc] sm:$0xf0] }
 0x322   :  { %v13490_v9 = vld [vmem:[#allocation5 + $0xe1c] sm:$0xf]  ;;  %v10254_v53 = vor.u32 %v13426_v47, %v10251_v7  ;;  %4036 = vmatpush.bf16.msrb.mxu1 %v9998_v51  ;;  %v11377_v47 = vld [vmem:[#allocation8 + $0x500] sm:$0xf]  ;;  %v14557_v7 = vpop.f32.mrf.mxu0  ;;  %v11090_v54 = vor.u32 %v13643_v43, %v11089_v39 }
 0x323   :  { %v10507_v15 = vld [vmem:[#allocation5 + $0xe38] sm:$0xf0]  ;;  %4024 = vmatmul.bf16.vlgmr.msrb.gmra.mxu0 %v14447_v37  ;;  %v13587_v37 = vld [vmem:[#allocation8 + $0x11c] sm:$0xf0] }
 0x324   :  { %v10510_v57 = vor.u32 %v13490_v9, %v10507_v15  ;;  %4049 = vmatpush.bf16.msrb.mxu2 %v10254_v53  ;;  %7174 = vmatpush.bf16.msra.mxu0 %v10962_v58  ;;  %v10866_v36 = vor.u32 %v13587_v37, %v10865_v31  ;;  %v10833_v15 = vld [vmem:[#allocation8 + $0xc0] sm:$0xf] }
 0x325   :  { %4037 = vmatmul.bf16.vlgmr.msrb.gmra.mxu1 %v14451_v40  ;;  %v13715_v40 = vld [vmem:[#allocation8 + $0x51c] sm:$0xf0]  ;;  %v10834_v53 = vor.u32 %v13579_v25, %v10833_v15 }
 0x326   :  { %4062 = vmatpush.bf16.msrb.mxu3 %v10510_v57  ;;  %7187 = vmatpush.bf16.msra.mxu1 %v11218_v60  ;;  %v11378_v9 = vor.u32 %v13715_v40, %v11377_v47  ;;  %v11601_v50 = vld [vmem:[#allocation8 + $0x6c0] sm:$0xf] }
 0x327   :  { %4050 = vmatmul.bf16.vlgmr.msrb.gmra.mxu2 %v14445_v34  ;;  %v13779_v34 = vld [vmem:[#allocation8 + $0x71c] sm:$0xf0] }
 0x328   :  { %7200 = vmatpush.bf16.msra.mxu2 %v11474_v61  ;;  %7175 = vmatpush.bf16.msra.mxu0 %v10930_v16  ;;  %v11634_v42 = vor.u32 %v13779_v34, %v11633_v35  ;;  %v13771_v51 = vld [vmem:[#allocation8 + $0x6dc] sm:$0xf0]  ;;  %v14561_v61 = vpop.f32.mrf.mxu2 }
 0x329   :  { %4063 = vmatmul.bf16.vlgmr.msrb.gmra.mxu3 %v14449_v38  ;;  %v11122_v38 = vor.u32 %v13651_v33, %v11121_v32  ;;  %v10801_v57 = vld [vmem:[#allocation8 + $0x80] sm:$0xf]  ;;  %v11602_v62 = vor.u32 %v13771_v51, %v11601_v50  ;;  %v4068_v50 = vmax.f32 %v14479_v48, 0.0  ;;  %v4069_v51 = vmax.f32 %v14493_v45, 0.0 }
 0x32a   :  { %7213 = vmatpush.bf16.msra.mxu3 %v11730_v3  ;;  %7188 = vmatpush.bf16.msra.mxu1 %v11186_v17  ;;  %v13571_v58 = vld [vmem:[#allocation8 + $0x9c] sm:$0xf0]  ;;  %v3819_v14 = vpop.f32.mrf.mxu0 }
 0x32b   :  { %v11057_v60 = vld [vmem:[#allocation8 + $0x280] sm:$0xf]  ;;  %v10802_v12 = vor.u32 %v13571_v58, %v10801_v57  ;;  %v14574_v14 = vpack.c.bf16 %v4069_v51, %v4069_v51 }
 0x32c   :  { %7201 = vmatpush.bf16.msra.mxu2 %v11442_v18  ;;  %7176 = vmatpush.bf16.msra.mxu0 %v10898_v28  ;;  %v13635_v0 = vld [vmem:[#allocation8 + $0x29c] sm:$0xf0] }
 0x32d   :  { %v11313_v1 = vld [vmem:[#allocation8 + $0x480] sm:$0xf]  ;;  %v11058_v16 = vor.u32 %v13635_v0, %v11057_v60 }
 0x32e   :  { %7214 = vmatpush.bf16.msra.mxu3 %v11698_v22  ;;  %7189 = vmatpush.bf16.msra.mxu1 %v11154_v29  ;;  %v13699_v3 = vld [vmem:[#allocation8 + $0x49c] sm:$0xf0] }
 0x32f   :  { %v11569_v10 = vld [vmem:[#allocation8 + $0x680] sm:$0xf]  ;;  %v11314_v17 = vor.u32 %v13699_v3, %v11313_v1 }
 0x330   :  { %7202 = vmatpush.bf16.msra.mxu2 %v11410_v30  ;;  %7177 = vmatpush.bf16.msra.mxu0 %v10866_v36  ;;  %v13763_v11 = vld [vmem:[#allocation8 + $0x69c] sm:$0xf0]  ;;  %v3845_v40 = vpop.f32.mrf.mxu2 }
 0x331   :  { %v10769_v18 = vld [vmem:[#allocation8 + $0x40] sm:$0xf]  ;;  %v11570_v22 = vor.u32 %v13763_v11, %v11569_v10 }
 0x332   :  { %7215 = vmatpush.bf16.msra.mxu3 %v11666_v8  ;;  %7190 = vmatpush.bf16.msra.mxu1 %v11122_v38  ;;  %v13563_v20 = vld [vmem:[#allocation8 + $0x5c] sm:$0xf0] }
 0x333   :  { %v11025_v6 = vld [vmem:[#allocation8 + $0x240] sm:$0xf]  ;;  %v10770_v29 = vor.u32 %v13563_v20, %v10769_v18 }
 0x334   :  { %7203 = vmatpush.bf16.msra.mxu2 %v11378_v9  ;;  %7178 = vmatpush.bf16.msra.mxu0 %v10834_v53  ;;  %v13627_v23 = vld [vmem:[#allocation8 + $0x25c] sm:$0xf0]  ;;  %v3766_v9 = vadd.f32 %v14545_v49, %v665_v27  ;;  %v4071_v49 = vmax.f32 %v14523_v59, 0.0 }
 0x335   :  { %v11281_v24 = vld [vmem:[#allocation8 + $0x440] sm:$0xf]  ;;  %v11026_v37 = vor.u32 %v13627_v23, %v11025_v6 }
 0x336   :  { %7216 = vmatpush.bf16.msra.mxu3 %v11634_v42  ;;  %7191 = vmatpush.bf16.msra.mxu1 %v11090_v54  ;;  %v13691_v26 = vld [vmem:[#allocation8 + $0x45c] sm:$0xf0]  ;;  %v3779_v60 = vadd.f32 %v14547_v44, %v3766_v9  ;;  %v14578_v59 = vpack.c.bf16 %v4071_v49, %v4071_v49 }
 0x337   :  { %v11537_v63 = vld [vmem:[#allocation8 + $0x640] sm:$0xf]  ;;  %v11282_v32 = vor.u32 %v13691_v26, %v11281_v24 }
 0x338   :  { %7204 = vmatpush.bf16.msra.mxu2 %v11346_v55  ;;  %v13755_v28 = vld [vmem:[#allocation8 + $0x65c] sm:$0xf0]  ;;  %7179 = vmatpush.bf16.msra.mxu0 %v10802_v12  ;;  %v4070_v55 = vmax.f32 %v14509_v52, 0.0  ;;  %v14572_v12 = vpack.c.bf16 %v4068_v50, %v4068_v50  ;;  %v14592_v50 = vpop.f32.mrf.mxu2 }
 0x339   :  { %v10737_v30 = vld [vmem:[#allocation8] sm:$0xf]  ;;  %v11538_v35 = vor.u32 %v13755_v28, %v11537_v63 }
 0x33a   :  { %7217 = vmatpush.bf16.msra.mxu3 %v11602_v62  ;;  %v13555_v31 = vld [vmem:[#allocation8 + $0x1c] sm:$0xf0]  ;;  %7192 = vmatpush.bf16.msra.mxu1 %v11058_v16  ;;  %v14576_v52 = vpack.c.bf16 %v4070_v55, %v4070_v55  ;;  %v3792_v16 = vadd.f32 %v14549_v2, %v3779_v60  ;;  %v14594_v55 = vpop.f32.mrf.mxu3 }
 0x33b   :  { %v10993_v8 = vld [vmem:[#allocation8 + $0x200] sm:$0xf]  ;;  %v10738_v42 = vor.u32 %v13555_v31, %v10737_v30 }
 0x33c   :  { %7205 = vmatpush.bf16.msra.mxu2 %v11314_v17  ;;  %v13619_v33 = vld [vmem:[#allocation8 + $0x21c] sm:$0xf0]  ;;  %7180 = vmatpush.bf16.msra.mxu0 %v10770_v29  ;;  %v3805_v26 = vadd.f32 %v14551_v5, %v3792_v16 }
 0x33d   :  { %v11249_v47 = vld [vmem:[#allocation8 + $0x400] sm:$0xf]  ;;  %v10994_v53 = vor.u32 %v13619_v33, %v10993_v8  ;;  %v14586_v33 = vpop.f32.mrf.mxu0 }
 0x33e   :  { %7218 = vmatpush.bf16.msra.mxu3 %v11570_v22  ;;  %v13683_v34 = vld [vmem:[#allocation8 + $0x41c] sm:$0xf0]  ;;  %7193 = vmatpush.bf16.msra.mxu1 %v11026_v37 }
 0x33f   :  { %v11505_v36 = vld [vmem:[#allocation8 + $0x600] sm:$0xf]  ;;  %v11250_v54 = vor.u32 %v13683_v34, %v11249_v47  ;;  %v3818_v47 = vadd.f32 %v14557_v7, %v3805_v26  ;;  %v13607_v26 = vld [vmem:[#allocation8 + $0x1c4] sm:$0xf] }
 0x340   :  { %v13747_v38 = vld [vmem:[#allocation8 + $0x61c] sm:$0xf0]  ;;  %7206 = vmatpush.bf16.msra.mxu2 %v11282_v32  ;;  %7181 = vmatpush.bf16.msra.mxu0 %v10738_v42 }
 0x341   :  { %v11985_v15 = vld [vmem:[#allocation8 + $0x9c0] sm:$0xf]  ;;  %v11506_v57 = vor.u32 %v13747_v38, %v11505_v36  ;;  %v14589_v38 = vpop.f32.mrf.mxu1 }
 0x342   :  { %v13867_v25 = vld [vmem:[#allocation8 + $0x9dc] sm:$0xf0]  ;;  %7219 = vmatpush.bf16.msra.mxu3 %v11538_v35  ;;  %7194 = vmatpush.bf16.msra.mxu1 %v10994_v53 }
 0x343   :  { %v12241_v39 = vld [vmem:[#allocation8 + $0xbc0] sm:$0xf]  ;;  %v11986_v58 = vor.u32 %v13867_v25, %v11985_v15  ;;  %7182 = vmatmul.bf16.vlgmr.msra.gmra.mxu0 %v14572_v12 }
 0x344   :  { %v13931_v43 = vld [vmem:[#allocation8 + $0xbdc] sm:$0xf0]  ;;  %7207 = vmatpush.bf16.msra.mxu2 %v11250_v54 }
 0x345   :  { %v12497_v56 = vld [vmem:[#allocation8 + $0xdc0] sm:$0xf]  ;;  %v12242_v62 = vor.u32 %v13931_v43, %v12241_v39  ;;  %7226 = vmatpush.bf16.msrb.mxu0 %v11986_v58  ;;  %7195 = vmatmul.bf16.vlgmr.msra.gmra.mxu1 %v14574_v14  ;;  %v3831_v39 = vadd.f32 %v14559_v41, %v3818_v47  ;;  %v11475_v47 = vld [vmem:[#allocation8 + $0x5e0] sm:$0xf0] }
 0x346   :  { %v13995_v46 = vld [vmem:[#allocation8 + $0xddc] sm:$0xf0]  ;;  %7220 = vmatpush.bf16.msra.mxu3 %v11506_v57  ;;  %v3871_v57 = vpop.f32.mrf.mxu0 }
 0x347   :  { %v12498_v0 = vor.u32 %v13995_v46, %v12497_v56  ;;  %v11953_v1 = vld [vmem:[#allocation8 + $0x980] sm:$0xf]  ;;  %7239 = vmatpush.bf16.msrb.mxu1 %v12242_v62  ;;  %7208 = vmatmul.bf16.vlgmr.msra.gmra.mxu2 %v14576_v52  ;;  %v3844_v58 = vadd.f32 %v14561_v61, %v3831_v39  ;;  %v13591_v57 = vld [vmem:[#allocation8 + $0x144] sm:$0xf] }
 0x348   :  { %v13859_v3 = vld [vmem:[#allocation8 + $0x99c] sm:$0xf0] }
 0x349   :  { %v12209_v48 = vld [vmem:[#allocation8 + $0xb80] sm:$0xf]  ;;  %v11954_v44 = vor.u32 %v13859_v3, %v11953_v1  ;;  %7252 = vmatpush.bf16.msrb.mxu2 %v12498_v0  ;;  %7221 = vmatmul.bf16.vlgmr.msra.gmra.mxu3 %v14578_v59  ;;  %v3884_v3 = vpop.f32.mrf.mxu1 }
 0x34a   :  { %v13923_v45 = vld [vmem:[#allocation8 + $0xb9c] sm:$0xf0]  ;;  %v13719_v3 = vld [vmem:[#allocation8 + $0x544] sm:$0xf] }
 0x34b   :  { %v12465_v10 = vld [vmem:[#allocation8 + $0xd80] sm:$0xf]  ;;  %v12210_v17 = vor.u32 %v13923_v45, %v12209_v48  ;;  %7227 = vmatpush.bf16.msrb.mxu0 %v11954_v44 }
 0x34c   :  { %v13987_v11 = vld [vmem:[#allocation8 + $0xd9c] sm:$0xf0] }
 0x34d   :  { %v12466_v18 = vor.u32 %v13987_v11, %v12465_v10  ;;  %v11921_v20 = vld [vmem:[#allocation8 + $0x940] sm:$0xf]  ;;  %7240 = vmatpush.bf16.msrb.mxu1 %v12210_v17  ;;  %v14597_v11 = vld [vmem:[#allocation7] sm:$0xff] }
 0x34e   :  { %v13851_v6 = vld [vmem:[#allocation8 + $0x95c] sm:$0xf0]  ;;  %v666_v44 = vperm.slane %v14597_v11, 6 }
 0x34f   :  { %v12177_v21 = vld [vmem:[#allocation8 + $0xb40] sm:$0xf]  ;;  %v11922_v2 = vor.u32 %v13851_v6, %v11921_v20  ;;  %7253 = vmatpush.bf16.msrb.mxu2 %v12466_v18  ;;  %v3857_v20 = vadd.f32 %v14563_v4, %v3844_v58  ;;  %v13655_v58 = vld [vmem:[#allocation8 + $0x344] sm:$0xf] }
 0x350   :  { %v13915_v22 = vld [vmem:[#allocation8 + $0xb5c] sm:$0xf0] }
 0x351   :  { %v12433_v23 = vld [vmem:[#allocation8 + $0xd40] sm:$0xf]  ;;  %v12178_v27 = vor.u32 %v13915_v22, %v12177_v21  ;;  %7228 = vmatpush.bf16.msrb.mxu0 %v11922_v2  ;;  %v3897_v2 = vpop.f32.mrf.mxu2 }
 0x352   :  { %v13979_v24 = vld [vmem:[#allocation8 + $0xd5c] sm:$0xf0] }
 0x353   :  { %v12434_v63 = vor.u32 %v13979_v24, %v12433_v23  ;;  %v11889_v28 = vld [vmem:[#allocation8 + $0x900] sm:$0xf]  ;;  %7241 = vmatpush.bf16.msrb.mxu1 %v12178_v27  ;;  %v3910_v27 = vpop.f32.mrf.mxu3 }
 0x354   :  { %v13843_v29 = vld [vmem:[#allocation8 + $0x91c] sm:$0xf0]  ;;  %v3921_v27 = vpop.f32.mrf.mxu0 }
 0x355   :  { %v12145_v30 = vld [vmem:[#allocation8 + $0xb00] sm:$0xf]  ;;  %v11890_v8 = vor.u32 %v13843_v29, %v11889_v28  ;;  %7254 = vmatpush.bf16.msrb.mxu2 %v12434_v63  ;;  %v3870_v29 = vadd.f32 %v14586_v33, %v666_v44  ;;  %v13663_v33 = vld [vmem:[#allocation8 + $0x384] sm:$0xf] }
 0x356   :  { %v13907_v31 = vld [vmem:[#allocation8 + $0xb1c] sm:$0xf0] }
 0x357   :  { %v12401_v37 = vld [vmem:[#allocation8 + $0xd00] sm:$0xf]  ;;  %v12146_v40 = vor.u32 %v13907_v31, %v12145_v30  ;;  %7229 = vmatpush.bf16.msrb.mxu0 %v11890_v8  ;;  %v10963_v30 = vld [vmem:[#allocation8 + $0x1e0] sm:$0xf0] }
 0x358   :  { %v13971_v32 = vld [vmem:[#allocation8 + $0xd1c] sm:$0xf0]  ;;  %v13671_v31 = vld [vmem:[#allocation8 + $0x3c4] sm:$0xf] }
 0x359   :  { %v12402_v5 = vor.u32 %v13971_v32, %v12401_v37  ;;  %v11857_v35 = vld [vmem:[#allocation8 + $0x8c0] sm:$0xf]  ;;  %7242 = vmatpush.bf16.msrb.mxu1 %v12146_v40  ;;  %v11219_v37 = vld [vmem:[#allocation8 + $0x3e0] sm:$0xf0]  ;;  %v4072_v40 = vmax.f32 %v14539_v13, 0.0 }
 0x35a   :  { %v13835_v34 = vld [vmem:[#allocation8 + $0x8dc] sm:$0xf0]  ;;  %v13735_v8 = vld [vmem:[#allocation8 + $0x5c4] sm:$0xf] }
 0x35b   :  { %v12113_v36 = vld [vmem:[#allocation8 + $0xac0] sm:$0xf]  ;;  %v11858_v25 = vor.u32 %v13835_v34, %v11857_v35  ;;  %7255 = vmatpush.bf16.msrb.mxu2 %v12402_v5  ;;  %v4073_v5 = vmax.f32 %v3857_v20, 0.0  ;;  %v11478_v39 = vor.u32 %v13735_v8, %v11475_v47  ;;  %v11443_v13 = vld [vmem:[#allocation8 + $0x5a0] sm:$0xf0] }
 0x35c   :  { %v13899_v19 = vld [vmem:[#allocation8 + $0xadc] sm:$0xf0]  ;;  %v10867_v20 = vld [vmem:[#allocation8 + $0x120] sm:$0xf0] }
 0x35d   :  { %v12369_v9 = vld [vmem:[#allocation8 + $0xcc0] sm:$0xf]  ;;  %v12114_v42 = vor.u32 %v13899_v19, %v12113_v36  ;;  %7230 = vmatpush.bf16.msrb.mxu0 %v11858_v25  ;;  %v10966_v36 = vor.u32 %v13607_v26, %v10963_v30  ;;  %v11222_v19 = vor.u32 %v13671_v31, %v11219_v37  ;;  %v3883_v25 = vadd.f32 %v14589_v38, %v3870_v29  ;;  %v10899_v38 = vld [vmem:[#allocation8 + $0x160] sm:$0xf0]  ;;  %v3934_v31 = vpop.f32.mrf.mxu1 }
 0x35e   :  { %v13963_v15 = vld [vmem:[#allocation8 + $0xcdc] sm:$0xf0]  ;;  %v10835_v37 = vld [vmem:[#allocation8 + $0xe0] sm:$0xf0] }
 0x35f   :  { %v12370_v7 = vor.u32 %v13963_v15, %v12369_v9  ;;  %v11825_v43 = vld [vmem:[#allocation8 + $0x880] sm:$0xf]  ;;  %7243 = vmatpush.bf16.msrb.mxu1 %v12114_v42  ;;  %v13599_v9 = vld [vmem:[#allocation8 + $0x184] sm:$0xf] }
 0x360   :  { %v13827_v56 = vld [vmem:[#allocation8 + $0x89c] sm:$0xf0]  ;;  %v10931_v15 = vld [vmem:[#allocation8 + $0x1a0] sm:$0xf0] }
 0x361   :  { %v12081_v46 = vld [vmem:[#allocation8 + $0xa80] sm:$0xf]  ;;  %v11826_v49 = vor.u32 %v13827_v56, %v11825_v43  ;;  %7256 = vmatpush.bf16.msrb.mxu2 %v12370_v7  ;;  %v11187_v42 = vld [vmem:[#allocation8 + $0x3a0] sm:$0xf0] }
 0x362   :  { %v13891_v51 = vld [vmem:[#allocation8 + $0xa9c] sm:$0xf0]  ;;  %v13727_v56 = vld [vmem:[#allocation8 + $0x584] sm:$0xf] }
 0x363   :  { %v12337_v53 = vld [vmem:[#allocation8 + $0xc80] sm:$0xf]  ;;  %v12082_v41 = vor.u32 %v13891_v51, %v12081_v46  ;;  %7231 = vmatpush.bf16.msrb.mxu0 %v11826_v49  ;;  %v14604_v51 = vpack.c.bf16 %v4072_v40, %v4072_v40  ;;  %v11190_v49 = vor.u32 %v13663_v33, %v11187_v42  ;;  %v13703_v8 = vld [vmem:[#allocation8 + $0x4c4] sm:$0xf]  ;;  %v3947_v33 = vpop.f32.mrf.mxu2 }
 0x364   :  { %v13955_v54 = vld [vmem:[#allocation8 + $0xc9c] sm:$0xf0]  ;;  %v11347_v47 = vld [vmem:[#allocation8 + $0x4e0] sm:$0xf0] }
 0x365   :  { %v12338_v60 = vor.u32 %v13955_v54, %v12337_v53  ;;  %v11793_v62 = vld [vmem:[#allocation8 + $0x840] sm:$0xf]  ;;  %7244 = vmatpush.bf16.msrb.mxu1 %v12082_v41  ;;  %v14606_v53 = vpack.c.bf16 %v4073_v5, %v4073_v5  ;;  %v10934_v54 = vor.u32 %v13599_v9, %v10931_v15  ;;  %v3896_v41 = vadd.f32 %v14592_v50, %v3883_v25  ;;  %v10803_v25 = vld [vmem:[#allocation8 + $0xa0] sm:$0xf0] }
 0x366   :  { %v13819_v0 = vld [vmem:[#allocation8 + $0x85c] sm:$0xf0]  ;;  %v11350_v15 = vor.u32 %v13703_v8, %v11347_v47  ;;  %v11059_v42 = vld [vmem:[#allocation8 + $0x2a0] sm:$0xf0] }
 0x367   :  { %v12049_v1 = vld [vmem:[#allocation8 + $0xa40] sm:$0xf]  ;;  %v11794_v16 = vor.u32 %v13819_v0, %v11793_v62  ;;  %7257 = vmatpush.bf16.msrb.mxu2 %v12338_v60  ;;  %v11446_v60 = vor.u32 %v13727_v56, %v11443_v13  ;;  %v11155_v62 = vld [vmem:[#allocation8 + $0x360] sm:$0xf0]  ;;  %v3909_v50 = vadd.f32 %v14594_v55, %v3896_v41 }
 0x368   :  { %v13883_v48 = vld [vmem:[#allocation8 + $0xa5c] sm:$0xf0]  ;;  %v11158_v44 = vor.u32 %v13655_v58, %v11155_v62  ;;  %v13695_v56 = vld [vmem:[#allocation8 + $0x484] sm:$0xf]  ;;  %v3923_v58 = vpop.f32.mrf.mxu0 }
 0x369   :  { %v12305_v45 = vld [vmem:[#allocation8 + $0xc40] sm:$0xf]  ;;  %v12050_v6 = vor.u32 %v13883_v48, %v12049_v1  ;;  %7232 = vmatpush.bf16.msrb.mxu0 %v11794_v16  ;;  %v11411_v48 = vld [vmem:[#allocation8 + $0x560] sm:$0xf0]  ;;  %v3922_v55 = vadd.f32 %v3921_v27, %v3909_v50 }
 0x36a   :  { %v13947_v10 = vld [vmem:[#allocation8 + $0xc5c] sm:$0xf0]  ;;  %v13583_v16 = vld [vmem:[#allocation8 + $0x104] sm:$0xf] }
 0x36b   :  { %v11761_v17 = vld [vmem:[#allocation8 + $0x800] sm:$0xf]  ;;  %v12306_v21 = vor.u32 %v13947_v10, %v12305_v45  ;;  %7245 = vmatpush.bf16.msrb.mxu1 %v12050_v6  ;;  %v10902_v10 = vor.u32 %v13591_v57, %v10899_v38  ;;  %v13647_v6 = vld [vmem:[#allocation8 + $0x304] sm:$0xf]  ;;  %v10870_v2 = vor.u32 %v13583_v16, %v10867_v20  ;;  %v3935_v5 = vadd.f32 %v3934_v31, %v3922_v55  ;;  %v3949_v27 = vpop.f32.mrf.mxu2 }
 0x36c   :  { %v13811_v18 = vld [vmem:[#allocation8 + $0x81c] sm:$0xf0]  ;;  %v11315_v13 = vld [vmem:[#allocation8 + $0x4a0] sm:$0xf0] }
 0x36d   :  { %v12017_v61 = vld [vmem:[#allocation8 + $0xa00] sm:$0xf]  ;;  %v11762_v4 = vor.u32 %v13811_v18, %v11761_v17  ;;  %7258 = vmatpush.bf16.msrb.mxu2 %v12306_v21  ;;  %v11123_v21 = vld [vmem:[#allocation8 + $0x320] sm:$0xf0]  ;;  %v11318_v62 = vor.u32 %v13695_v56, %v11315_v13 }
 0x36e   :  { %v13875_v22 = vld [vmem:[#allocation8 + $0xa1c] sm:$0xf0]  ;;  %v11126_v26 = vor.u32 %v13647_v6, %v11123_v21  ;;  %v13559_v38 = vld [vmem:[#allocation8 + $0x44] sm:$0xf] }
 0x36f   :  { %v12273_v23 = vld [vmem:[#allocation8 + $0xc00] sm:$0xf]  ;;  %v12018_v35 = vor.u32 %v13875_v22, %v12017_v61  ;;  %7233 = vmatpush.bf16.msrb.mxu0 %v11762_v4  ;;  %v11414_v61 = vor.u32 %v13719_v3, %v11411_v48  ;;  %v13711_v22 = vld [vmem:[#allocation8 + $0x504] sm:$0xf]  ;;  %v3936_v48 = vpop.f32.mrf.mxu1 }
 0x370   :  { %v13939_v24 = vld [vmem:[#allocation8 + $0xc1c] sm:$0xf0]  ;;  %v11091_v4 = vld [vmem:[#allocation8 + $0x2e0] sm:$0xf0] }
 0x371   :  { %v12753_v63 = vld [vmem:[#allocation8 + $0xfc0] sm:$0xf]  ;;  %v12274_v34 = vor.u32 %v13939_v24, %v12273_v23  ;;  %7246 = vmatpush.bf16.msrb.mxu1 %v12018_v35  ;;  %v11379_v23 = vld [vmem:[#allocation8 + $0x520] sm:$0xf0] }
 0x372   :  { %v14059_v28 = vld [vmem:[#allocation8 + $0xfdc] sm:$0xf0]  ;;  %7234 = vmatmul.bf16.vlgmr.msrb.gmra.mxu0 %v14604_v51  ;;  %v11382_v30 = vor.u32 %v13711_v22, %v11379_v23  ;;  %v11027_v3 = vld [vmem:[#allocation8 + $0x260] sm:$0xf0] }
 0x373   :  { %v12754_v32 = vor.u32 %v14059_v28, %v12753_v63  ;;  %v12721_v7 = vld [vmem:[#allocation8 + $0xf80] sm:$0xf]  ;;  %7259 = vmatpush.bf16.msrb.mxu2 %v12274_v34  ;;  %7278 = vmatpush.bf16.msra.mxu0 %v10966_v36  ;;  %v13575_v63 = vld [vmem:[#allocation8 + $0xc4] sm:$0xf] }
 0x374   :  { %v14051_v43 = vld [vmem:[#allocation8 + $0xf9c] sm:$0xf0]  ;;  %7247 = vmatmul.bf16.vlgmr.msrb.gmra.mxu1 %v14606_v53  ;;  %v10838_v35 = vor.u32 %v13575_v63, %v10835_v37  ;;  %v13567_v36 = vld [vmem:[#allocation8 + $0x84] sm:$0xf] }
 0x375   :  { %7265 = vmatpush.bf16.msrb.mxu3 %v12754_v32  ;;  %v12722_v46 = vor.u32 %v14051_v43, %v12721_v7  ;;  %7291 = vmatpush.bf16.msra.mxu1 %v11222_v19  ;;  %v12689_v0 = vld [vmem:[#allocation8 + $0xf40] sm:$0xf]  ;;  %v13639_v32 = vld [vmem:[#allocation8 + $0x2c4] sm:$0xf]  ;;  %v3948_v7 = vadd.f32 %v3947_v33, %v3935_v5  ;;  %v3960_v43 = vpop.f32.mrf.mxu3 }
 0x376   :  { %v14043_v1 = vld [vmem:[#allocation8 + $0xf5c] sm:$0xf0]  ;;  %v11094_v34 = vor.u32 %v13639_v32, %v11091_v4  ;;  %v13615_v50 = vld [vmem:[#allocation8 + $0x204] sm:$0xf] }
 0x377   :  { %7304 = vmatpush.bf16.msra.mxu2 %v11478_v39  ;;  %v12690_v45 = vor.u32 %v14043_v1, %v12689_v0  ;;  %7279 = vmatpush.bf16.msra.mxu0 %v10934_v54  ;;  %v12657_v17 = vld [vmem:[#allocation8 + $0xf00] sm:$0xf]  ;;  %v13631_v39 = vld [vmem:[#allocation8 + $0x284] sm:$0xf]  ;;  %v3961_v54 = vadd.f32 %v3960_v43, %v3948_v7 }
 0x378   :  { %v14035_v18 = vld [vmem:[#allocation8 + $0xf1c] sm:$0xf0]  ;;  %v11062_v57 = vor.u32 %v13631_v39, %v11059_v42  ;;  %v10771_v0 = vld [vmem:[#allocation8 + $0x60] sm:$0xf0] }
 0x379   :  { %7266 = vmatpush.bf16.msrb.mxu3 %v12722_v46  ;;  %7292 = vmatpush.bf16.msra.mxu1 %v11190_v49  ;;  %v12658_v24 = vor.u32 %v14035_v18, %v12657_v17  ;;  %v12625_v28 = vld [vmem:[#allocation8 + $0xec0] sm:$0xf]  ;;  %v10806_v49 = vor.u32 %v13567_v36, %v10803_v25  ;;  %v13623_v1 = vld [vmem:[#allocation8 + $0x244] sm:$0xf]  ;;  %v10774_v6 = vor.u32 %v13559_v38, %v10771_v0 }
 0x37a   :  { %v14027_v29 = vld [vmem:[#allocation8 + $0xedc] sm:$0xf0]  ;;  %v13551_v17 = vld [vmem:[#allocation8 + $0x4] sm:$0xf]  ;;  %v11030_v21 = vor.u32 %v13623_v1, %v11027_v3 }
 0x37b   :  { %7305 = vmatpush.bf16.msra.mxu2 %v11446_v60  ;;  %7280 = vmatpush.bf16.msra.mxu0 %v10902_v10  ;;  %v12626_v40 = vor.u32 %v14027_v29, %v12625_v28  ;;  %v12593_v19 = vld [vmem:[#allocation8 + $0xe80] sm:$0xf]  ;;  %v13687_v10 = vld [vmem:[#allocation8 + $0x444] sm:$0xf] }
 0x37c   :  { %v14019_v9 = vld [vmem:[#allocation8 + $0xe9c] sm:$0xf0]  ;;  %v10739_v18 = vld [vmem:[#allocation8 + $0x20] sm:$0xf0] }
 0x37d   :  { %7267 = vmatpush.bf16.msrb.mxu3 %v12690_v45  ;;  %7293 = vmatpush.bf16.msra.mxu1 %v11158_v44  ;;  %v12594_v46 = vor.u32 %v14019_v9, %v12593_v19  ;;  %v12561_v41 = vld [vmem:[#allocation8 + $0xe40] sm:$0xf]  ;;  %v4074_v45 = vmax.f32 %v3961_v54, 0.0  ;;  %v11283_v44 = vld [vmem:[#allocation8 + $0x460] sm:$0xf0]  ;;  %v3962_v31 = vpop.f32.mrf.mxu3 }
 0x37e   :  { %v14011_v60 = vld [vmem:[#allocation8 + $0xe5c] sm:$0xf0]  ;;  %v13679_v22 = vld [vmem:[#allocation8 + $0x404] sm:$0xf] }
 0x37f   :  { %7306 = vmatpush.bf16.msra.mxu2 %v11414_v61  ;;  %7281 = vmatpush.bf16.msra.mxu0 %v10870_v2  ;;  %v12562_v16 = vor.u32 %v14011_v60, %v12561_v41  ;;  %v10995_v61 = vld [vmem:[#allocation8 + $0x220] sm:$0xf0]  ;;  %v14612_v20 = vpack.c.bf16 %v4074_v45, %v4074_v45  ;;  %v12529_v23 = vld [vmem:[#allocation8 + $0xe00] sm:$0xf]  ;;  %v11286_v2 = vor.u32 %v13687_v10, %v11283_v44 }
 0x380   :  { %v13799_v63 = vld [vmem:[#allocation8 + $0x7c4] sm:$0xf]  ;;  %v10998_v5 = vor.u32 %v13615_v50, %v10995_v61 }
 0x381   :  { %7268 = vmatpush.bf16.msrb.mxu3 %v12658_v24  ;;  %7294 = vmatpush.bf16.msra.mxu1 %v11126_v26  ;;  %v14003_v24 = vld [vmem:[#allocation8 + $0xe1c] sm:$0xf0]  ;;  %v11251_v26 = vld [vmem:[#allocation8 + $0x420] sm:$0xf0] }
 0x382   :  { %v11731_v28 = vld [vmem:[#allocation8 + $0x7e0] sm:$0xf0]  ;;  %7260 = vmatmul.bf16.vlgmr.msrb.gmra.mxu2 %v14612_v20  ;;  %v12530_v37 = vor.u32 %v14003_v24, %v12529_v23 }
 0x383   :  { %7307 = vmatpush.bf16.msra.mxu2 %v11382_v30  ;;  %7282 = vmatpush.bf16.msra.mxu0 %v10838_v35  ;;  %v13863_v29 = vld [vmem:[#allocation8 + $0x9c4] sm:$0xf]  ;;  %v11734_v47 = vor.u32 %v13799_v63, %v11731_v28  ;;  %v11254_v35 = vor.u32 %v13679_v22, %v11251_v26 }
 0x384   :  { %v11987_v30 = vld [vmem:[#allocation8 + $0x9e0] sm:$0xf0] }
 0x385   :  { %7269 = vmatpush.bf16.msrb.mxu3 %v12626_v40  ;;  %7295 = vmatpush.bf16.msra.mxu1 %v11094_v34  ;;  %v13927_v55 = vld [vmem:[#allocation8 + $0xbc4] sm:$0xf]  ;;  %v10742_v40 = vor.u32 %v13551_v17, %v10739_v18  ;;  %v11990_v34 = vor.u32 %v13863_v29, %v11987_v30  ;;  %v14617_v29 = vpop.f32.mrf.mxu0 }
 0x386   :  { %v12243_v32 = vld [vmem:[#allocation8 + $0xbe0] sm:$0xf0] }
 0x387   :  { %7308 = vmatpush.bf16.msra.mxu2 %v11350_v15  ;;  %7283 = vmatpush.bf16.msra.mxu0 %v10806_v49  ;;  %v13991_v4 = vld [vmem:[#allocation8 + $0xdc4] sm:$0xf]  ;;  %v12246_v9 = vor.u32 %v13927_v55, %v12243_v32  ;;  %v14620_v55 = vpop.f32.mrf.mxu1 }
 0x388   :  { %v12499_v8 = vld [vmem:[#allocation8 + $0xde0] sm:$0xf0] }
 0x389   :  { %7270 = vmatpush.bf16.msrb.mxu3 %v12594_v46  ;;  %7296 = vmatpush.bf16.msra.mxu1 %v11062_v57  ;;  %v13855_v36 = vld [vmem:[#allocation8 + $0x984] sm:$0xf]  ;;  %v12502_v15 = vor.u32 %v13991_v4, %v12499_v8 }
 0x38a   :  { %v11955_v19 = vld [vmem:[#allocation8 + $0x9a0] sm:$0xf0] }
 0x38b   :  { %7309 = vmatpush.bf16.msra.mxu2 %v11318_v62  ;;  %7284 = vmatpush.bf16.msra.mxu0 %v10774_v6  ;;  %v13919_v33 = vld [vmem:[#allocation8 + $0xb84] sm:$0xf]  ;;  %v11958_v13 = vor.u32 %v13855_v36, %v11955_v19 }
 0x38c   :  { %v13791_v25 = vld [vmem:[#allocation8 + $0x784] sm:$0xf] }
 0x38d   :  { %7271 = vmatpush.bf16.msrb.mxu3 %v12562_v16  ;;  %7297 = vmatpush.bf16.msra.mxu1 %v11030_v21  ;;  %v11699_v39 = vld [vmem:[#allocation8 + $0x7a0] sm:$0xf0] }
 0x38e   :  { %v12211_v42 = vld [vmem:[#allocation8 + $0xba0] sm:$0xf0]  ;;  %v11702_v56 = vor.u32 %v13791_v25, %v11699_v39  ;;  %v14624_v25 = vpop.f32.mrf.mxu3 }
 0x38f   :  { %7310 = vmatpush.bf16.msra.mxu2 %v11286_v2  ;;  %v13983_v7 = vld [vmem:[#allocation8 + $0xd84] sm:$0xf]  ;;  %7285 = vmatpush.bf16.msra.mxu0 %v10742_v40  ;;  %v12214_v49 = vor.u32 %v13919_v33, %v12211_v42  ;;  %v14622_v33 = vpop.f32.mrf.mxu2 }
 0x390   :  { %v12467_v43 = vld [vmem:[#allocation8 + $0xda0] sm:$0xf0] }
 0x391   :  { %7272 = vmatpush.bf16.msrb.mxu3 %v12530_v37  ;;  %7298 = vmatpush.bf16.msra.mxu1 %v10998_v5  ;;  %v13847_v46 = vld [vmem:[#allocation8 + $0x944] sm:$0xf]  ;;  %v12470_v57 = vor.u32 %v13983_v7, %v12467_v43 }
 0x392   :  { %v11923_v54 = vld [vmem:[#allocation8 + $0x960] sm:$0xf0]  ;;  %7286 = vmatmul.bf16.vlgmr.msra.gmra.mxu0 %v14572_v12 }
 0x393   :  { %7311 = vmatpush.bf16.msra.mxu2 %v11254_v35  ;;  %7330 = vmatpush.bf16.msrb.mxu0 %v11990_v34  ;;  %v13911_v38 = vld [vmem:[#allocation8 + $0xb44] sm:$0xf]  ;;  %v11926_v3 = vor.u32 %v13847_v46, %v11923_v54 }
 0x394   :  { %v12179_v58 = vld [vmem:[#allocation8 + $0xb60] sm:$0xf0]  ;;  %7299 = vmatmul.bf16.vlgmr.msra.gmra.mxu1 %v14574_v14 }
 0x395   :  { %7317 = vmatpush.bf16.msra.mxu3 %v11734_v47  ;;  %7343 = vmatpush.bf16.msrb.mxu1 %v12246_v9  ;;  %v13975_v41 = vld [vmem:[#allocation8 + $0xd44] sm:$0xf]  ;;  %v12182_v10 = vor.u32 %v13911_v38, %v12179_v58  ;;  %v3988_v58 = vpop.f32.mrf.mxu1 }
 0x396   :  { %v12435_v60 = vld [vmem:[#allocation8 + $0xd60] sm:$0xf0]  ;;  %7312 = vmatmul.bf16.vlgmr.msra.gmra.mxu2 %v14576_v52  ;;  %v13652_v58 = vld [vmem:[#allocation8 + $0x324] sm:$0xf0] }
 0x397   :  { %7356 = vmatpush.bf16.msrb.mxu2 %v12502_v15  ;;  %v13783_v62 = vld [vmem:[#allocation8 + $0x744] sm:$0xf]  ;;  %7331 = vmatpush.bf16.msrb.mxu0 %v11958_v13  ;;  %v12438_v44 = vor.u32 %v13975_v41, %v12435_v60 }
 0x398   :  { %v11667_v0 = vld [vmem:[#allocation8 + $0x760] sm:$0xf0] }
 0x399   :  { %7318 = vmatpush.bf16.msra.mxu3 %v11702_v56  ;;  %v11670_v1 = vor.u32 %v13783_v62, %v11667_v0  ;;  %v13839_v48 = vld [vmem:[#allocation8 + $0x904] sm:$0xf]  ;;  %7344 = vmatpush.bf16.msrb.mxu1 %v12214_v49  ;;  %v667_v62 = vperm.slane %v14597_v11, 7  ;;  %v11225_v11 = vld [vmem:[#allocation8 + $0x3c8] sm:$0xf] }
 0x39a   :  { %v11891_v45 = vld [vmem:[#allocation8 + $0x920] sm:$0xf0] }
 0x39b   :  { %7357 = vmatpush.bf16.msrb.mxu2 %v12470_v57  ;;  %v13903_v16 = vld [vmem:[#allocation8 + $0xb04] sm:$0xf]  ;;  %7332 = vmatpush.bf16.msrb.mxu0 %v11926_v3  ;;  %v11894_v22 = vor.u32 %v13839_v48, %v11891_v45  ;;  %v3975_v57 = vpop.f32.mrf.mxu0 }
 0x39c   :  { %v13775_v17 = vld [vmem:[#allocation8 + $0x704] sm:$0xf]  ;;  %v13588_v57 = vld [vmem:[#allocation8 + $0x124] sm:$0xf0] }
 0x39d   :  { %v11635_v18 = vld [vmem:[#allocation8 + $0x720] sm:$0xf0]  ;;  %7319 = vmatpush.bf16.msra.mxu3 %v11670_v1  ;;  %7345 = vmatpush.bf16.msrb.mxu1 %v12182_v10 }
 0x39e   :  { %v12147_v50 = vld [vmem:[#allocation8 + $0xb20] sm:$0xf0]  ;;  %v11638_v21 = vor.u32 %v13775_v17, %v11635_v18 }
 0x39f   :  { %v13967_v61 = vld [vmem:[#allocation8 + $0xd04] sm:$0xf]  ;;  %7358 = vmatpush.bf16.msrb.mxu2 %v12438_v44  ;;  %v12150_v2 = vor.u32 %v13903_v16, %v12147_v50  ;;  %7333 = vmatpush.bf16.msrb.mxu0 %v11894_v22  ;;  %v10969_v50 = vld [vmem:[#allocation8 + $0x1c8] sm:$0xf] }
 0x3a0   :  { %v12403_v6 = vld [vmem:[#allocation8 + $0xd20] sm:$0xf0]  ;;  %v13612_v22 = vld [vmem:[#allocation8 + $0x1e4] sm:$0xf0] }
 0x3a1   :  { %v13831_v23 = vld [vmem:[#allocation8 + $0x8c4] sm:$0xf]  ;;  %v12406_v26 = vor.u32 %v13967_v61, %v12403_v6  ;;  %7320 = vmatpush.bf16.msra.mxu3 %v11638_v21  ;;  %7346 = vmatpush.bf16.msrb.mxu1 %v12150_v2  ;;  %v4001_v61 = vpop.f32.mrf.mxu2 }
 0x3a2   :  { %v11859_v24 = vld [vmem:[#allocation8 + $0x8e0] sm:$0xf0] }
 0x3a3   :  { %v13895_v27 = vld [vmem:[#allocation8 + $0xac4] sm:$0xf]  ;;  %v11862_v4 = vor.u32 %v13831_v23, %v11859_v24  ;;  %7359 = vmatpush.bf16.msrb.mxu2 %v12406_v26  ;;  %v13676_v23 = vld [vmem:[#allocation8 + $0x3e4] sm:$0xf0]  ;;  %v4014_v24 = vpop.f32.mrf.mxu3 }
 0x3a4   :  { %v12115_v63 = vld [vmem:[#allocation8 + $0xae0] sm:$0xf0] }
 0x3a5   :  { %v13959_v28 = vld [vmem:[#allocation8 + $0xcc4] sm:$0xf]  ;;  %v12118_v40 = vor.u32 %v13895_v27, %v12115_v63  ;;  %7334 = vmatpush.bf16.msrb.mxu0 %v11862_v4  ;;  %v11481_v27 = vld [vmem:[#allocation8 + $0x5c8] sm:$0xf] }
 0x3a6   :  { %v12371_v30 = vld [vmem:[#allocation8 + $0xce0] sm:$0xf0]  ;;  %v13740_v63 = vld [vmem:[#allocation8 + $0x5e4] sm:$0xf0] }
 0x3a7   :  { %v13767_v31 = vld [vmem:[#allocation8 + $0x6c4] sm:$0xf]  ;;  %v12374_v5 = vor.u32 %v13959_v28, %v12371_v30  ;;  %7347 = vmatpush.bf16.msrb.mxu1 %v12118_v40  ;;  %v10937_v4 = vld [vmem:[#allocation8 + $0x188] sm:$0xf] }
 0x3a8   :  { %v11603_v37 = vld [vmem:[#allocation8 + $0x6e0] sm:$0xf0]  ;;  %v11193_v40 = vld [vmem:[#allocation8 + $0x388] sm:$0xf] }
 0x3a9   :  { %v11606_v32 = vor.u32 %v13767_v31, %v11603_v37  ;;  %v13823_v8 = vld [vmem:[#allocation8 + $0x884] sm:$0xf]  ;;  %7360 = vmatpush.bf16.msrb.mxu2 %v12374_v5  ;;  %v3974_v31 = vadd.f32 %v14617_v29, %v667_v62  ;;  %v10970_v37 = vor.u32 %v13612_v22, %v10969_v50  ;;  %v13668_v5 = vld [vmem:[#allocation8 + $0x3a4] sm:$0xf0] }
 0x3aa   :  { %v11827_v47 = vld [vmem:[#allocation8 + $0x8a0] sm:$0xf0]  ;;  %v10905_v29 = vld [vmem:[#allocation8 + $0x148] sm:$0xf] }
 0x3ab   :  { %v13887_v35 = vld [vmem:[#allocation8 + $0xa84] sm:$0xf]  ;;  %7321 = vmatpush.bf16.msra.mxu3 %v11606_v32  ;;  %v11830_v42 = vor.u32 %v13823_v8, %v11827_v47  ;;  %v11226_v32 = vor.u32 %v13676_v23, %v11225_v11  ;;  %v11482_v8 = vor.u32 %v13740_v63, %v11481_v27  ;;  %v13604_v47 = vld [vmem:[#allocation8 + $0x1a4] sm:$0xf0]  ;;  %v4051_v27 = vpop.f32.mrf.mxu2 }
 0x3ac   :  { %v13759_v34 = vld [vmem:[#allocation8 + $0x684] sm:$0xf]  ;;  %v13708_v50 = vld [vmem:[#allocation8 + $0x4e4] sm:$0xf0] }
 0x3ad   :  { %v11571_v36 = vld [vmem:[#allocation8 + $0x6a0] sm:$0xf0]  ;;  %7335 = vmatpush.bf16.msrb.mxu0 %v11830_v42  ;;  %v11161_v42 = vld [vmem:[#allocation8 + $0x348] sm:$0xf] }
 0x3ae   :  { %v12083_v19 = vld [vmem:[#allocation8 + $0xaa0] sm:$0xf0]  ;;  %v11574_v39 = vor.u32 %v13759_v34, %v11571_v36  ;;  %v13732_v34 = vld [vmem:[#allocation8 + $0x5a4] sm:$0xf0]  ;;  %v3987_v36 = vadd.f32 %v14620_v55, %v3974_v31 }
 0x3af   :  { %v13951_v9 = vld [vmem:[#allocation8 + $0xc84] sm:$0xf]  ;;  %v12086_v56 = vor.u32 %v13887_v35, %v12083_v19  ;;  %v11449_v35 = vld [vmem:[#allocation8 + $0x588] sm:$0xf]  ;;  %v10938_v19 = vor.u32 %v13604_v47, %v10937_v4 }
 0x3b0   :  { %v12339_v15 = vld [vmem:[#allocation8 + $0xca0] sm:$0xf0]  ;;  %7322 = vmatpush.bf16.msra.mxu3 %v11574_v39  ;;  %v13596_v39 = vld [vmem:[#allocation8 + $0x164] sm:$0xf0]  ;;  %v4000_v55 = vadd.f32 %v14622_v33, %v3987_v36 }
 0x3b1   :  { %v13815_v7 = vld [vmem:[#allocation8 + $0x844] sm:$0xf]  ;;  %v12342_v13 = vor.u32 %v13951_v9, %v12339_v15  ;;  %7348 = vmatpush.bf16.msrb.mxu1 %v12086_v56  ;;  %v11194_v9 = vor.u32 %v13668_v5, %v11193_v40  ;;  %v11450_v15 = vor.u32 %v13732_v34, %v11449_v35  ;;  %v13724_v56 = vld [vmem:[#allocation8 + $0x564] sm:$0xf0] }
 0x3b2   :  { %v11795_v43 = vld [vmem:[#allocation8 + $0x860] sm:$0xf0]  ;;  %v4013_v62 = vadd.f32 %v14624_v25, %v4000_v55  ;;  %v10841_v33 = vld [vmem:[#allocation8 + $0xc8] sm:$0xf] }
 0x3b3   :  { %v13879_v46 = vld [vmem:[#allocation8 + $0xa44] sm:$0xf]  ;;  %v11798_v1 = vor.u32 %v13815_v7, %v11795_v43  ;;  %7361 = vmatpush.bf16.msrb.mxu2 %v12342_v13  ;;  %v13660_v7 = vld [vmem:[#allocation8 + $0x364] sm:$0xf0]  ;;  %v10906_v13 = vor.u32 %v13596_v39, %v10905_v29 }
 0x3b4   :  { %v12051_v54 = vld [vmem:[#allocation8 + $0xa60] sm:$0xf0]  ;;  %v11417_v43 = vld [vmem:[#allocation8 + $0x548] sm:$0xf] }
 0x3b5   :  { %v13943_v49 = vld [vmem:[#allocation8 + $0xc44] sm:$0xf]  ;;  %v12054_v10 = vor.u32 %v13879_v46, %v12051_v54  ;;  %7336 = vmatpush.bf16.msrb.mxu0 %v11798_v1  ;;  %v11162_v46 = vor.u32 %v13660_v7, %v11161_v42  ;;  %v10873_v54 = vld [vmem:[#allocation8 + $0x108] sm:$0xf] }
 0x3b6   :  { %v12307_v38 = vld [vmem:[#allocation8 + $0xc60] sm:$0xf0]  ;;  %v10874_v1 = vor.u32 %v13588_v57, %v10873_v54  ;;  %v10809_v25 = vld [vmem:[#allocation8 + $0x88] sm:$0xf] }
 0x3b7   :  { %v13751_v41 = vld [vmem:[#allocation8 + $0x644] sm:$0xf]  ;;  %v12310_v44 = vor.u32 %v13943_v49, %v12307_v38  ;;  %7349 = vmatpush.bf16.msrb.mxu1 %v12054_v10  ;;  %v11418_v49 = vor.u32 %v13724_v56, %v11417_v43  ;;  %v11129_v38 = vld [vmem:[#allocation8 + $0x308] sm:$0xf] }
 0x3b8   :  { %v11539_v60 = vld [vmem:[#allocation8 + $0x660] sm:$0xf0]  ;;  %v13580_v10 = vld [vmem:[#allocation8 + $0xe4] sm:$0xf0] }
 0x3b9   :  { %v11542_v0 = vor.u32 %v13751_v41, %v11539_v60  ;;  %v13807_v3 = vld [vmem:[#allocation8 + $0x804] sm:$0xf]  ;;  %7362 = vmatpush.bf16.msrb.mxu2 %v12310_v44  ;;  %v11385_v41 = vld [vmem:[#allocation8 + $0x508] sm:$0xf]  ;;  %v10842_v61 = vor.u32 %v13580_v10, %v10841_v33 }
 0x3ba   :  { %v11763_v48 = vld [vmem:[#allocation8 + $0x820] sm:$0xf0]  ;;  %v13716_v60 = vld [vmem:[#allocation8 + $0x524] sm:$0xf0] }
 0x3bb   :  { %v13871_v45 = vld [vmem:[#allocation8 + $0xa04] sm:$0xf]  ;;  %7323 = vmatpush.bf16.msra.mxu3 %v11542_v0  ;;  %v11766_v26 = vor.u32 %v13807_v3, %v11763_v48  ;;  %v4025_v0 = vpop.f32.mrf.mxu0  ;;  %v11130_v3 = vor.u32 %v13652_v58, %v11129_v38  ;;  %v4038_v48 = vpop.f32.mrf.mxu1  ;;  %v11097_v44 = vld [vmem:[#allocation8 + $0x2c8] sm:$0xf] }
 0x3bc   :  { %v12019_v16 = vld [vmem:[#allocation8 + $0xa20] sm:$0xf0]  ;;  %v13572_v22 = vld [vmem:[#allocation8 + $0xa4] sm:$0xf0] }
 0x3bd   :  { %v13935_v17 = vld [vmem:[#allocation8 + $0xc04] sm:$0xf]  ;;  %v12022_v28 = vor.u32 %v13871_v45, %v12019_v16  ;;  %7337 = vmatpush.bf16.msrb.mxu0 %v11766_v26  ;;  %v11386_v45 = vor.u32 %v13716_v60, %v11385_v41  ;;  %v13644_v16 = vld [vmem:[#allocation8 + $0x2e4] sm:$0xf0]  ;;  %v10810_v31 = vor.u32 %v13572_v22, %v10809_v25  ;;  %v4053_v41 = vpop.f32.mrf.mxu2 }
 0x3be   :  { %v12275_v18 = vld [vmem:[#allocation8 + $0xc20] sm:$0xf0]  ;;  %v11065_v11 = vld [vmem:[#allocation8 + $0x288] sm:$0xf] }
 0x3bf   :  { %v13743_v6 = vld [vmem:[#allocation8 + $0x604] sm:$0xf]  ;;  %v12278_v30 = vor.u32 %v13935_v17, %v12275_v18  ;;  %7350 = vmatpush.bf16.msrb.mxu1 %v12022_v28  ;;  %v4026_v17 = vadd.f32 %v4025_v0, %v4013_v62  ;;  %v11353_v18 = vld [vmem:[#allocation8 + $0x4c8] sm:$0xf]  ;;  %v4064_v28 = vpop.f32.mrf.mxu3 }
 0x3c0   :  { %v11507_v21 = vld [vmem:[#allocation8 + $0x620] sm:$0xf0]  ;;  %7338 = vmatmul.bf16.vlgmr.msrb.gmra.mxu0 %v14604_v51  ;;  %v13636_v23 = vld [vmem:[#allocation8 + $0x2a4] sm:$0xf0] }
 0x3c1   :  { %v11510_v2 = vor.u32 %v13743_v6, %v11507_v21  ;;  %7363 = vmatpush.bf16.msrb.mxu2 %v12278_v30  ;;  %7382 = vmatpush.bf16.msra.mxu0 %v10970_v37  ;;  %v11098_v6 = vor.u32 %v13644_v16, %v11097_v44  ;;  %v11354_v21 = vor.u32 %v13708_v50, %v11353_v18  ;;  %v13700_v26 = vld [vmem:[#allocation8 + $0x4a4] sm:$0xf0] }
 0x3c2   :  { %7351 = vmatmul.bf16.vlgmr.msrb.gmra.mxu1 %v14606_v53  ;;  %v4039_v24 = vadd.f32 %v4038_v48, %v4026_v17  ;;  %v11066_v37 = vor.u32 %v13636_v23, %v11065_v11  ;;  %v13564_v47 = vld [vmem:[#allocation8 + $0x64] sm:$0xf0]  ;;  %v14047_v48 = vld [vmem:[#allocation8 + $0xf84] sm:$0xf] }
 0x3c3   :  { %7324 = vmatpush.bf16.msra.mxu3 %v11510_v2  ;;  %7395 = vmatpush.bf16.msra.mxu1 %v11226_v32  ;;  %v11321_v2 = vld [vmem:[#allocation8 + $0x488] sm:$0xf]  ;;  %v4027_v30 = vpop.f32.mrf.mxu0  ;;  %v4040_v4 = vpop.f32.mrf.mxu1  ;;  %v14039_v11 = vld [vmem:[#allocation8 + $0xf44] sm:$0xf] }
 0x3c4   :  { %7364 = vmatmul.bf16.vlgmr.msrb.gmra.mxu2 %v14612_v20  ;;  %v4052_v63 = vadd.f32 %v4051_v27, %v4039_v24  ;;  %v10777_v32 = vld [vmem:[#allocation8 + $0x48] sm:$0xf]  ;;  %v12691_v23 = vld [vmem:[#allocation8 + $0xf60] sm:$0xf0] }
 0x3c5   :  { %7408 = vmatpush.bf16.msra.mxu2 %v11482_v8  ;;  %7383 = vmatpush.bf16.msra.mxu0 %v10938_v19  ;;  %v11322_v8 = vor.u32 %v13700_v26, %v11321_v2  ;;  %v11033_v40 = vld [vmem:[#allocation8 + $0x248] sm:$0xf]  ;;  %v14055_v19 = vld [vmem:[#allocation8 + $0xfc4] sm:$0xf]  ;;  %v10778_v39 = vor.u32 %v13564_v47, %v10777_v32 }
 0x3c6   :  { %v13628_v5 = vld [vmem:[#allocation8 + $0x264] sm:$0xf0]  ;;  %v4065_v35 = vadd.f32 %v4064_v28, %v4052_v63  ;;  %v14638_v4 = vld [vmem:[#allocation10] sm:$0xff] }
 0x3c7   :  { %7396 = vmatpush.bf16.msra.mxu1 %v11194_v9  ;;  %v11289_v34 = vld [vmem:[#allocation8 + $0x448] sm:$0xf]  ;;  %v12755_v9 = vld [vmem:[#allocation8 + $0xfe0] sm:$0xf0]  ;;  %v11034_v42 = vor.u32 %v13628_v5, %v11033_v40 }
 0x3c8   :  { %v13692_v36 = vld [vmem:[#allocation8 + $0x464] sm:$0xf0]  ;;  %v12659_v47 = vld [vmem:[#allocation8 + $0xf20] sm:$0xf0] }
 0x3c9   :  { %7409 = vmatpush.bf16.msra.mxu2 %v11450_v15  ;;  %7384 = vmatpush.bf16.msra.mxu0 %v10906_v13  ;;  %v10745_v29 = vld [vmem:[#allocation8 + $0x8] sm:$0xf]  ;;  %v4075_v15 = vmax.f32 %v4065_v35, 0.0  ;;  %v11290_v56 = vor.u32 %v13692_v36, %v11289_v34  ;;  %v4598_v36 = vperm.slane %v14638_v4, 0 }
 0x3ca   :  { %v13556_v7 = vld [vmem:[#allocation8 + $0x24] sm:$0xf0] }
 0x3cb   :  { %7397 = vmatpush.bf16.msra.mxu1 %v11162_v46  ;;  %v11001_v43 = vld [vmem:[#allocation8 + $0x208] sm:$0xf]  ;;  %v14634_v54 = vpack.c.bf16 %v4075_v15, %v4075_v15 }
 0x3cc   :  { %v13620_v55 = vld [vmem:[#allocation8 + $0x224] sm:$0xf0] }
 0x3cd   :  { %7410 = vmatpush.bf16.msra.mxu2 %v11418_v49  ;;  %7385 = vmatpush.bf16.msra.mxu0 %v10874_v1  ;;  %v11257_v13 = vld [vmem:[#allocation8 + $0x408] sm:$0xf]  ;;  %v12758_v49 = vor.u32 %v14055_v19, %v12755_v9  ;;  %v4066_v1 = vpop.f32.mrf.mxu3  ;;  %v11002_v33 = vor.u32 %v13620_v55, %v11001_v43  ;;  %v12627_v43 = vld [vmem:[#allocation8 + $0xee0] sm:$0xf0]  ;;  %v7183_v55 = vpop.f32.mrf.mxu0 }
 0x3ce   :  { %v13684_v46 = vld [vmem:[#allocation8 + $0x424] sm:$0xf0]  ;;  %7273 = vmatmul.bf16.vlgmr.msrb.gmra.mxu3 %v14634_v54  ;;  %v7184_v41 = vadd.f32 %v7183_v55, %v4598_v36 }
 0x3cf   :  { %7398 = vmatpush.bf16.msra.mxu1 %v11130_v3  ;;  %v11993_v57 = vld [vmem:[#allocation8 + $0x9c8] sm:$0xf]  ;;  %v10746_v3 = vor.u32 %v13556_v7, %v10745_v29  ;;  %v11258_v10 = vor.u32 %v13684_v46, %v11257_v13  ;;  %7369 = vmatpush.bf16.msrb.mxu3 %v12758_v49  ;;  %v14023_v7 = vld [vmem:[#allocation8 + $0xec4] sm:$0xf]  ;;  %v7196_v13 = vpop.f32.mrf.mxu1 }
 0x3d0   :  { %v13868_v38 = vld [vmem:[#allocation8 + $0x9e4] sm:$0xf0] }
 0x3d1   :  { %7411 = vmatpush.bf16.msra.mxu2 %v11386_v45  ;;  %7386 = vmatpush.bf16.msra.mxu0 %v10842_v61  ;;  %v12249_v58 = vld [vmem:[#allocation8 + $0xbc8] sm:$0xf]  ;;  %v12723_v45 = vld [vmem:[#allocation8 + $0xfa0] sm:$0xf0]  ;;  %v11994_v44 = vor.u32 %v13868_v38, %v11993_v57 }
 0x3d2   :  { %v13932_v60 = vld [vmem:[#allocation8 + $0xbe4] sm:$0xf0] }
 0x3d3   :  { %7399 = vmatpush.bf16.msra.mxu1 %v11098_v6  ;;  %v12505_v62 = vld [vmem:[#allocation8 + $0xdc8] sm:$0xf]  ;;  %v12250_v16 = vor.u32 %v13932_v60, %v12249_v58  ;;  %v12726_v6 = vor.u32 %v14047_v48, %v12723_v45  ;;  %v12630_v60 = vor.u32 %v14023_v7, %v12627_v43  ;;  %v7197_v48 = vadd.f32 %v7196_v13, %v7184_v41 }
 0x3d4   :  { %v13996_v0 = vld [vmem:[#allocation8 + $0xde4] sm:$0xf0] }
 0x3d5   :  { %7412 = vmatpush.bf16.msra.mxu2 %v11354_v21  ;;  %7387 = vmatpush.bf16.msra.mxu0 %v10810_v31  ;;  %v12506_v17 = vor.u32 %v13996_v0, %v12505_v62  ;;  %v11961_v18 = vld [vmem:[#allocation8 + $0x988] sm:$0xf]  ;;  %v12694_v31 = vor.u32 %v14039_v11, %v12691_v23  ;;  %v7209_v11 = vpop.f32.mrf.mxu2  ;;  %v7222_v23 = vpop.f32.mrf.mxu3 }
 0x3d6   :  { %v13860_v50 = vld [vmem:[#allocation8 + $0x9a4] sm:$0xf0]  ;;  %7370 = vmatpush.bf16.msrb.mxu3 %v12726_v6 }
 0x3d7   :  { %7400 = vmatpush.bf16.msra.mxu1 %v11066_v37  ;;  %v12217_v61 = vld [vmem:[#allocation8 + $0xb88] sm:$0xf]  ;;  %v11962_v24 = vor.u32 %v13860_v50, %v11961_v18 }
 0x3d8   :  { %v13924_v25 = vld [vmem:[#allocation8 + $0xba4] sm:$0xf0] }
 0x3d9   :  { %7413 = vmatpush.bf16.msra.mxu2 %v11322_v8  ;;  %7388 = vmatpush.bf16.msra.mxu0 %v10778_v39  ;;  %v12473_v21 = vld [vmem:[#allocation8 + $0xd88] sm:$0xf]  ;;  %v12218_v26 = vor.u32 %v13924_v25, %v12217_v61  ;;  %v14031_v8 = vld [vmem:[#allocation8 + $0xf04] sm:$0xf] }
 0x3da   :  { %v13988_v22 = vld [vmem:[#allocation8 + $0xda4] sm:$0xf0]  ;;  %7371 = vmatpush.bf16.msrb.mxu3 %v12694_v31  ;;  %v12662_v29 = vor.u32 %v14031_v8, %v12659_v47 }
 0x3db   :  { %7401 = vmatpush.bf16.msra.mxu1 %v11034_v42  ;;  %v11929_v2 = vld [vmem:[#allocation8 + $0x948] sm:$0xf]  ;;  %v12474_v27 = vor.u32 %v13988_v22, %v12473_v21  ;;  %v14007_v21 = vld [vmem:[#allocation8 + $0xe44] sm:$0xf] }
 0x3dc   :  { %v13852_v63 = vld [vmem:[#allocation8 + $0x964] sm:$0xf0]  ;;  %v12563_v22 = vld [vmem:[#allocation8 + $0xe60] sm:$0xf0] }
 0x3dd   :  { %7414 = vmatpush.bf16.msra.mxu2 %v11290_v56  ;;  %7389 = vmatpush.bf16.msra.mxu0 %v10746_v3  ;;  %v12185_v28 = vld [vmem:[#allocation8 + $0xb48] sm:$0xf]  ;;  %v11930_v40 = vor.u32 %v13852_v63, %v11929_v2  ;;  %v14015_v3 = vld [vmem:[#allocation8 + $0xe84] sm:$0xf]  ;;  %v7210_v2 = vadd.f32 %v7209_v11, %v7197_v48  ;;  %v7224_v41 = vpop.f32.mrf.mxu3 }
 0x3de   :  { %v13916_v30 = vld [vmem:[#allocation8 + $0xb64] sm:$0xf0]  ;;  %7372 = vmatpush.bf16.msrb.mxu3 %v12662_v29 }
 0x3df   :  { %7402 = vmatpush.bf16.msra.mxu1 %v11002_v33  ;;  %v12441_v37 = vld [vmem:[#allocation8 + $0xd48] sm:$0xf]  ;;  %v12186_v35 = vor.u32 %v13916_v30, %v12185_v28  ;;  %v12595_v33 = vld [vmem:[#allocation8 + $0xea0] sm:$0xf0]  ;;  %7325 = vmatmul.bf16.vlgmr.msra.gmra.mxu3 %v14578_v59 }
 0x3e0   :  { %7390 = vmatmul.bf16.vlgmr.msra.gmra.mxu0 %v14572_v12  ;;  %v13980_v32 = vld [vmem:[#allocation8 + $0xd64] sm:$0xf0]  ;;  %v12598_v50 = vor.u32 %v14015_v3, %v12595_v33 }
 0x3e1   :  { %7415 = vmatpush.bf16.msra.mxu2 %v11258_v10  ;;  %7434 = vmatpush.bf16.msrb.mxu0 %v11994_v44  ;;  %v11897_v5 = vld [vmem:[#allocation8 + $0x908] sm:$0xf]  ;;  %v12442_v34 = vor.u32 %v13980_v32, %v12441_v37  ;;  %v12566_v32 = vor.u32 %v14007_v21, %v12563_v22  ;;  %v11451_v21 = vld [vmem:[#allocation8 + $0x5a8] sm:$0xf0] }
 0x3e2   :  { %7403 = vmatmul.bf16.vlgmr.msra.gmra.mxu1 %v14574_v14  ;;  %v13844_v19 = vld [vmem:[#allocation8 + $0x924] sm:$0xf0]  ;;  %7373 = vmatpush.bf16.msrb.mxu3 %v12630_v60 }
 0x3e3   :  { %7447 = vmatpush.bf16.msrb.mxu1 %v12250_v16  ;;  %v12153_v9 = vld [vmem:[#allocation8 + $0xb08] sm:$0xf]  ;;  %v11898_v56 = vor.u32 %v13844_v19, %v11897_v5  ;;  %v14644_v5 = vadd.f32 %v7222_v23, %v7210_v2 }
 0x3e4   :  { %7416 = vmatmul.bf16.vlgmr.msra.gmra.mxu2 %v14576_v52  ;;  %v13908_v15 = vld [vmem:[#allocation8 + $0xb24] sm:$0xf0] }
 0x3e5   :  { %7460 = vmatpush.bf16.msrb.mxu2 %v12506_v17  ;;  %7435 = vmatpush.bf16.msrb.mxu0 %v11962_v24  ;;  %v12409_v39 = vld [vmem:[#allocation8 + $0xd08] sm:$0xf]  ;;  %v12154_v46 = vor.u32 %v13908_v15, %v12153_v9 }
 0x3e6   :  { %v13972_v42 = vld [vmem:[#allocation8 + $0xd24] sm:$0xf0]  ;;  %7374 = vmatpush.bf16.msrb.mxu3 %v12598_v50  ;;  %v13664_v50 = vld [vmem:[#allocation8 + $0x38c] sm:$0xf] }
 0x3e7   :  { %7448 = vmatpush.bf16.msrb.mxu1 %v12218_v26  ;;  %v12410_v49 = vor.u32 %v13972_v42, %v12409_v39  ;;  %v11865_v57 = vld [vmem:[#allocation8 + $0x8c8] sm:$0xf]  ;;  %v7185_v26 = vpop.f32.mrf.mxu0 }
 0x3e8   :  { %v13836_v38 = vld [vmem:[#allocation8 + $0x8e4] sm:$0xf0]  ;;  %v13592_v26 = vld [vmem:[#allocation8 + $0x14c] sm:$0xf] }
 0x3e9   :  { %7461 = vmatpush.bf16.msrb.mxu2 %v12474_v27  ;;  %7436 = vmatpush.bf16.msrb.mxu0 %v11930_v40  ;;  %v12121_v58 = vld [vmem:[#allocation8 + $0xac8] sm:$0xf]  ;;  %v11866_v45 = vor.u32 %v13836_v38, %v11865_v57  ;;  %v7198_v27 = vpop.f32.mrf.mxu1  ;;  %v10971_v57 = vld [vmem:[#allocation8 + $0x1e8] sm:$0xf0] }
 0x3ea   :  { %v13900_v62 = vld [vmem:[#allocation8 + $0xae4] sm:$0xf0]  ;;  %7375 = vmatpush.bf16.msrb.mxu3 %v12566_v32  ;;  %v13672_v38 = vld [vmem:[#allocation8 + $0x3cc] sm:$0xf] }
 0x3eb   :  { %7449 = vmatpush.bf16.msrb.mxu1 %v12186_v35  ;;  %v12377_v0 = vld [vmem:[#allocation8 + $0xcc8] sm:$0xf]  ;;  %v12122_v10 = vor.u32 %v13900_v62, %v12121_v58  ;;  %v13999_v35 = vld [vmem:[#allocation8 + $0xe04] sm:$0xf]  ;;  %v7211_v58 = vpop.f32.mrf.mxu2  ;;  %v11227_v62 = vld [vmem:[#allocation8 + $0x3e8] sm:$0xf0] }
 0x3ec   :  { %v13964_v1 = vld [vmem:[#allocation8 + $0xce4] sm:$0xf0]  ;;  %v10907_v27 = vld [vmem:[#allocation8 + $0x168] sm:$0xf0] }
 0x3ed   :  { %7462 = vmatpush.bf16.msrb.mxu2 %v12442_v34  ;;  %7437 = vmatpush.bf16.msrb.mxu0 %v11898_v56  ;;  %v12378_v44 = vor.u32 %v13964_v1, %v12377_v0  ;;  %v11833_v16 = vld [vmem:[#allocation8 + $0x888] sm:$0xf]  ;;  %v12531_v34 = vld [vmem:[#allocation8 + $0xe20] sm:$0xf0]  ;;  %v13736_v0 = vld [vmem:[#allocation8 + $0x5cc] sm:$0xf] }
 0x3ee   :  { %v13828_v17 = vld [vmem:[#allocation8 + $0x8a4] sm:$0xf0]  ;;  %v12534_v43 = vor.u32 %v13999_v35, %v12531_v34  ;;  %v11483_v1 = vld [vmem:[#allocation8 + $0x5e8] sm:$0xf0] }
 0x3ef   :  { %7450 = vmatpush.bf16.msrb.mxu1 %v12154_v46  ;;  %v12089_v18 = vld [vmem:[#allocation8 + $0xa88] sm:$0xf]  ;;  %v11834_v24 = vor.u32 %v13828_v17, %v11833_v16  ;;  %v11486_v16 = vor.u32 %v13736_v0, %v11483_v1  ;;  %v13600_v17 = vld [vmem:[#allocation8 + $0x18c] sm:$0xf] }
 0x3f0   :  { %v13892_v61 = vld [vmem:[#allocation8 + $0xaa4] sm:$0xf0]  ;;  %7376 = vmatpush.bf16.msrb.mxu3 %v12534_v43  ;;  %v13584_v34 = vld [vmem:[#allocation8 + $0x10c] sm:$0xf]  ;;  %v7235_v43 = vpop.f32.mrf.mxu0 }
 0x3f1   :  { %7463 = vmatpush.bf16.msrb.mxu2 %v12410_v49  ;;  %v12345_v6 = vld [vmem:[#allocation8 + $0xc88] sm:$0xf]  ;;  %7438 = vmatpush.bf16.msrb.mxu0 %v11866_v45  ;;  %v12090_v63 = vor.u32 %v13892_v61, %v12089_v18  ;;  %v13608_v49 = vld [vmem:[#allocation8 + $0x1cc] sm:$0xf] }
 0x3f2   :  { %v13956_v25 = vld [vmem:[#allocation8 + $0xca4] sm:$0xf0]  ;;  %v10939_v18 = vld [vmem:[#allocation8 + $0x1a8] sm:$0xf0] }
 0x3f3   :  { %7451 = vmatpush.bf16.msrb.mxu1 %v12122_v10  ;;  %v12346_v28 = vor.u32 %v13956_v25, %v12345_v6  ;;  %v11801_v30 = vld [vmem:[#allocation8 + $0x848] sm:$0xf]  ;;  %v10974_v10 = vor.u32 %v13608_v49, %v10971_v57  ;;  %v11195_v6 = vld [vmem:[#allocation8 + $0x3a8] sm:$0xf0]  ;;  %7377 = vmatmul.bf16.vlgmr.msrb.gmra.mxu3 %v14634_v54  ;;  %v10942_v23 = vor.u32 %v13600_v17, %v10939_v18 }
 0x3f4   :  { %v13820_v31 = vld [vmem:[#allocation8 + $0x864] sm:$0xf0]  ;;  %v13728_v25 = vld [vmem:[#allocation8 + $0x58c] sm:$0xf] }
 0x3f5   :  { %7464 = vmatpush.bf16.msrb.mxu2 %v12378_v44  ;;  %v12057_v37 = vld [vmem:[#allocation8 + $0xa48] sm:$0xf]  ;;  %7439 = vmatpush.bf16.msrb.mxu0 %v11834_v24  ;;  %v11802_v36 = vor.u32 %v13820_v31, %v11801_v30  ;;  %v11230_v44 = vor.u32 %v13672_v38, %v11227_v62  ;;  %v11198_v24 = vor.u32 %v13664_v50, %v11195_v6  ;;  %v11163_v30 = vld [vmem:[#allocation8 + $0x368] sm:$0xf0] }
 0x3f6   :  { %v13884_v8 = vld [vmem:[#allocation8 + $0xa64] sm:$0xf0]  ;;  %v11454_v2 = vor.u32 %v13728_v25, %v11451_v21  ;;  %v13720_v31 = vld [vmem:[#allocation8 + $0x54c] sm:$0xf] }
 0x3f7   :  { %v12313_v47 = vld [vmem:[#allocation8 + $0xc48] sm:$0xf]  ;;  %7452 = vmatpush.bf16.msrb.mxu1 %v12090_v63  ;;  %v12058_v29 = vor.u32 %v13884_v8, %v12057_v37  ;;  %v13656_v63 = vld [vmem:[#allocation8 + $0x34c] sm:$0xf] }
 0x3f8   :  { %v13948_v40 = vld [vmem:[#allocation8 + $0xc64] sm:$0xf0]  ;;  %v11419_v37 = vld [vmem:[#allocation8 + $0x568] sm:$0xf0]  ;;  %v7237_v21 = vpop.f32.mrf.mxu0 }
 0x3f9   :  { %v11737_v19 = vld [vmem:[#allocation8 + $0x7c8] sm:$0xf]  ;;  %7465 = vmatpush.bf16.msrb.mxu2 %v12346_v28  ;;  %v12314_v15 = vor.u32 %v13948_v40, %v12313_v47  ;;  %7440 = vmatpush.bf16.msrb.mxu0 %v11802_v36  ;;  %v10910_v47 = vor.u32 %v13592_v26, %v10907_v27  ;;  %v11166_v40 = vor.u32 %v13656_v63, %v11163_v30  ;;  %v10875_v36 = vld [vmem:[#allocation8 + $0x128] sm:$0xf0] }
 0x3fa   :  { %v13804_v9 = vld [vmem:[#allocation8 + $0x7e4] sm:$0xf0]  ;;  %v11422_v35 = vor.u32 %v13720_v31, %v11419_v37  ;;  %v13576_v57 = vld [vmem:[#allocation8 + $0xcc] sm:$0xf] }
 0x3fb   :  { %v11769_v39 = vld [vmem:[#allocation8 + $0x808] sm:$0xf]  ;;  %v11738_v46 = vor.u32 %v13804_v9, %v11737_v19  ;;  %7453 = vmatpush.bf16.msrb.mxu1 %v12058_v29  ;;  %v13648_v19 = vld [vmem:[#allocation8 + $0x30c] sm:$0xf] }
 0x3fc   :  { %v13812_v42 = vld [vmem:[#allocation8 + $0x824] sm:$0xf0]  ;;  %v11131_v29 = vld [vmem:[#allocation8 + $0x328] sm:$0xf0] }
 0x3fd   :  { %v12025_v7 = vld [vmem:[#allocation8 + $0xa08] sm:$0xf]  ;;  %v11770_v60 = vor.u32 %v13812_v42, %v11769_v39  ;;  %7466 = vmatpush.bf16.msrb.mxu2 %v12314_v15  ;;  %7421 = vmatpush.bf16.msra.mxu3 %v11738_v46  ;;  %v13712_v15 = vld [vmem:[#allocation8 + $0x50c] sm:$0xf]  ;;  %v11134_v46 = vor.u32 %v13648_v19, %v11131_v29 }
 0x3fe   :  { %v13876_v56 = vld [vmem:[#allocation8 + $0xa24] sm:$0xf0]  ;;  %v11387_v39 = vld [vmem:[#allocation8 + $0x528] sm:$0xf0] }
 0x3ff   :  { %v12281_v55 = vld [vmem:[#allocation8 + $0xc08] sm:$0xf]  ;;  %v12026_v3 = vor.u32 %v13876_v56, %v12025_v7  ;;  %7441 = vmatpush.bf16.msrb.mxu0 %v11770_v60  ;;  %v10878_v56 = vor.u32 %v13584_v34, %v10875_v36  ;;  %v11390_v49 = vor.u32 %v13712_v15, %v11387_v39  ;;  %v10843_v38 = vld [vmem:[#allocation8 + $0xe8] sm:$0xf0] }
 0x400   :  { %v13940_v13 = vld [vmem:[#allocation8 + $0xc24] sm:$0xf0]  ;;  %v13640_v58 = vld [vmem:[#allocation8 + $0x2cc] sm:$0xf] }
 0x401   :  { %v12282_v33 = vor.u32 %v13940_v13, %v12281_v55  ;;  %v11705_v48 = vld [vmem:[#allocation8 + $0x788] sm:$0xf]  ;;  %7454 = vmatpush.bf16.msrb.mxu1 %v12026_v3  ;;  %v7236_v55 = vadd.f32 %v7235_v43, %v14644_v5  ;;  %v7248_v13 = vpop.f32.mrf.mxu1  ;;  %v11099_v60 = vld [vmem:[#allocation8 + $0x2e8] sm:$0xf0] }
 0x402   :  { %v13796_v45 = vld [vmem:[#allocation8 + $0x7a4] sm:$0xf0]  ;;  %7442 = vmatmul.bf16.vlgmr.msrb.gmra.mxu0 %v14604_v51  ;;  %v13704_v62 = vld [vmem:[#allocation8 + $0x4cc] sm:$0xf]  ;;  %v11102_v5 = vor.u32 %v13640_v58, %v11099_v60 }
 0x403   :  { %v11706_v61 = vor.u32 %v13796_v45, %v11705_v48  ;;  %7467 = vmatpush.bf16.msrb.mxu2 %v12282_v33  ;;  %v11673_v22 = vld [vmem:[#allocation8 + $0x748] sm:$0xf]  ;;  %7486 = vmatpush.bf16.msra.mxu0 %v10974_v10  ;;  %v11355_v0 = vld [vmem:[#allocation8 + $0x4e8] sm:$0xf0]  ;;  %v14651_v1 = vadd.f32 %v7248_v13, %v7236_v55  ;;  %v10846_v48 = vor.u32 %v13576_v57, %v10843_v38 }
 0x404   :  { %v13788_v11 = vld [vmem:[#allocation8 + $0x764] sm:$0xf0]  ;;  %7455 = vmatmul.bf16.vlgmr.msrb.gmra.mxu1 %v14606_v53  ;;  %v11358_v45 = vor.u32 %v13704_v62, %v11355_v0  ;;  %v13568_v10 = vld [vmem:[#allocation8 + $0x8c] sm:$0xf] }
 0x405   :  { %7499 = vmatpush.bf16.msra.mxu1 %v11230_v44  ;;  %7422 = vmatpush.bf16.msra.mxu3 %v11706_v61  ;;  %v11674_v28 = vor.u32 %v13788_v11, %v11673_v22  ;;  %v11641_v32 = vld [vmem:[#allocation8 + $0x708] sm:$0xf]  ;;  %v10811_v44 = vld [vmem:[#allocation8 + $0xa8] sm:$0xf0] }
 0x406   :  { %7468 = vmatmul.bf16.vlgmr.msrb.gmra.mxu2 %v14612_v20  ;;  %v13780_v8 = vld [vmem:[#allocation8 + $0x724] sm:$0xf0]  ;;  %v11067_v18 = vld [vmem:[#allocation8 + $0x2a8] sm:$0xf0]  ;;  %v10814_v22 = vor.u32 %v13568_v10, %v10811_v44 }
 0x407   :  { %7512 = vmatpush.bf16.msra.mxu2 %v11486_v16  ;;  %7487 = vmatpush.bf16.msra.mxu0 %v10942_v23  ;;  %v11642_v9 = vor.u32 %v13780_v8, %v11641_v32  ;;  %v11609_v42 = vld [vmem:[#allocation8 + $0x6c8] sm:$0xf]  ;;  %v13632_v16 = vld [vmem:[#allocation8 + $0x28c] sm:$0xf] }
 0x408   :  { %v13772_v7 = vld [vmem:[#allocation8 + $0x6e4] sm:$0xf0]  ;;  %v13696_v50 = vld [vmem:[#allocation8 + $0x48c] sm:$0xf]  ;;  %v11070_v23 = vor.u32 %v13632_v16, %v11067_v18 }
 0x409   :  { %7500 = vmatpush.bf16.msra.mxu1 %v11198_v24  ;;  %7423 = vmatpush.bf16.msra.mxu3 %v11674_v28  ;;  %v11610_v41 = vor.u32 %v13772_v7, %v11609_v42  ;;  %v11577_v3 = vld [vmem:[#allocation8 + $0x688] sm:$0xf]  ;;  %v11323_v61 = vld [vmem:[#allocation8 + $0x4a8] sm:$0xf0]  ;;  %v7250_v11 = vpop.f32.mrf.mxu1 }
 0x40a   :  { %v13764_v33 = vld [vmem:[#allocation8 + $0x6a4] sm:$0xf0]  ;;  %v11326_v24 = vor.u32 %v13696_v50, %v11323_v61  ;;  %v10779_v26 = vld [vmem:[#allocation8 + $0x68] sm:$0xf0] }
 0x40b   :  { %7513 = vmatpush.bf16.msra.mxu2 %v11454_v2  ;;  %7488 = vmatpush.bf16.msra.mxu0 %v10910_v47  ;;  %v11578_v17 = vor.u32 %v13764_v33, %v11577_v3  ;;  %v11545_v6 = vld [vmem:[#allocation8 + $0x648] sm:$0xf]  ;;  %v13560_v2 = vld [vmem:[#allocation8 + $0x4c] sm:$0xf] }
 0x40c   :  { %v13756_v25 = vld [vmem:[#allocation8 + $0x664] sm:$0xf0]  ;;  %v13624_v27 = vld [vmem:[#allocation8 + $0x24c] sm:$0xf]  ;;  %v10782_v8 = vor.u32 %v13560_v2, %v10779_v26 }
 0x40d   :  { %7501 = vmatpush.bf16.msra.mxu1 %v11166_v40  ;;  %7424 = vmatpush.bf16.msra.mxu3 %v11642_v9  ;;  %v11546_v63 = vor.u32 %v13756_v25, %v11545_v6  ;;  %v11035_v28 = vld [vmem:[#allocation8 + $0x268] sm:$0xf0]  ;;  %v11513_v37 = vld [vmem:[#allocation8 + $0x608] sm:$0xf] }
 0x40e   :  { %v13688_v30 = vld [vmem:[#allocation8 + $0x44c] sm:$0xf]  ;;  %v13748_v32 = vld [vmem:[#allocation8 + $0x624] sm:$0xf0] }
 0x40f   :  { %7514 = vmatpush.bf16.msra.mxu2 %v11422_v35  ;;  %7489 = vmatpush.bf16.msra.mxu0 %v10878_v56  ;;  %v11291_v31 = vld [vmem:[#allocation8 + $0x468] sm:$0xf0]  ;;  %v12761_v47 = vld [vmem:[#allocation8 + $0xfc8] sm:$0xf]  ;;  %v11038_v35 = vor.u32 %v13624_v27, %v11035_v28  ;;  %v11514_v29 = vor.u32 %v13748_v32, %v11513_v37  ;;  %v4599_v28 = vperm.slane %v14638_v4, 1  ;;  %v14658_v37 = vpop.f32.mrf.mxu2 }
 0x410   :  { %v14060_v40 = vld [vmem:[#allocation8 + $0xfe4] sm:$0xf0]  ;;  %v11294_v34 = vor.u32 %v13688_v30, %v11291_v31  ;;  %v13552_v36 = vld [vmem:[#allocation8 + $0xc] sm:$0xf] }
 0x411   :  { %7502 = vmatpush.bf16.msra.mxu1 %v11134_v46  ;;  %7425 = vmatpush.bf16.msra.mxu3 %v11610_v41  ;;  %v10747_v19 = vld [vmem:[#allocation8 + $0x28] sm:$0xf0]  ;;  %v12762_v7 = vor.u32 %v14060_v40, %v12761_v47  ;;  %v12729_v58 = vld [vmem:[#allocation8 + $0xf88] sm:$0xf] }
 0x412   :  { %v13616_v9 = vld [vmem:[#allocation8 + $0x20c] sm:$0xf]  ;;  %v10750_v13 = vor.u32 %v13552_v36, %v10747_v19  ;;  %v14052_v41 = vld [vmem:[#allocation8 + $0xfa4] sm:$0xf0] }
 0x413   :  { %7515 = vmatpush.bf16.msra.mxu2 %v11390_v49  ;;  %7490 = vmatpush.bf16.msra.mxu0 %v10846_v48  ;;  %v11003_v15 = vld [vmem:[#allocation8 + $0x228] sm:$0xf0]  ;;  %v14044_v18 = vld [vmem:[#allocation8 + $0xf64] sm:$0xf0] }
 0x414   :  { %v13680_v39 = vld [vmem:[#allocation8 + $0x40c] sm:$0xf]  ;;  %v11006_v38 = vor.u32 %v13616_v9, %v11003_v15  ;;  %v12665_v26 = vld [vmem:[#allocation8 + $0xf08] sm:$0xf]  ;;  %v7300_v15 = vpop.f32.mrf.mxu1 }
 0x415   :  { %7503 = vmatpush.bf16.msra.mxu1 %v11102_v5  ;;  %7426 = vmatpush.bf16.msra.mxu3 %v11578_v17  ;;  %v11259_v42 = vld [vmem:[#allocation8 + $0x428] sm:$0xf0]  ;;  %v12697_v17 = vld [vmem:[#allocation8 + $0xf48] sm:$0xf] }
 0x416   :  { %v13864_v43 = vld [vmem:[#allocation8 + $0x9cc] sm:$0xf]  ;;  %v11262_v60 = vor.u32 %v13680_v39, %v11259_v42  ;;  %v12698_v11 = vor.u32 %v14044_v18, %v12697_v17  ;;  %v14036_v27 = vld [vmem:[#allocation8 + $0xf24] sm:$0xf0] }
 0x417   :  { %7516 = vmatpush.bf16.msra.mxu2 %v11358_v45  ;;  %7491 = vmatpush.bf16.msra.mxu0 %v10814_v22  ;;  %v11995_v56 = vld [vmem:[#allocation8 + $0x9e8] sm:$0xf0]  ;;  %v12730_v45 = vor.u32 %v14052_v41, %v12729_v58  ;;  %v12666_v40 = vor.u32 %v14036_v27, %v12665_v26  ;;  %v12633_v19 = vld [vmem:[#allocation8 + $0xec8] sm:$0xf] }
 0x418   :  { %v13928_v55 = vld [vmem:[#allocation8 + $0xbcc] sm:$0xf]  ;;  %v11998_v62 = vor.u32 %v13864_v43, %v11995_v56  ;;  %v14028_v9 = vld [vmem:[#allocation8 + $0xee4] sm:$0xf0] }
 0x419   :  { %7504 = vmatpush.bf16.msra.mxu1 %v11070_v23  ;;  %7427 = vmatpush.bf16.msra.mxu3 %v11546_v63  ;;  %v12251_v46 = vld [vmem:[#allocation8 + $0xbe8] sm:$0xf0]  ;;  %v12601_v58 = vld [vmem:[#allocation8 + $0xe88] sm:$0xf] }
 0x41a   :  { %v13992_v49 = vld [vmem:[#allocation8 + $0xdcc] sm:$0xf]  ;;  %v12254_v0 = vor.u32 %v13928_v55, %v12251_v46  ;;  %v14020_v41 = vld [vmem:[#allocation8 + $0xea4] sm:$0xf0] }
 0x41b   :  { %7517 = vmatpush.bf16.msra.mxu2 %v11326_v24  ;;  %7492 = vmatpush.bf16.msra.mxu0 %v10782_v8  ;;  %v12507_v57 = vld [vmem:[#allocation8 + $0xde8] sm:$0xf0]  ;;  %v12569_v17 = vld [vmem:[#allocation8 + $0xe48] sm:$0xf] }
 0x41c   :  { %v12510_v3 = vor.u32 %v13992_v49, %v12507_v57  ;;  %v13856_v33 = vld [vmem:[#allocation8 + $0x98c] sm:$0xf]  ;;  %v14012_v18 = vld [vmem:[#allocation8 + $0xe64] sm:$0xf0] }
 0x41d   :  { %7505 = vmatpush.bf16.msra.mxu1 %v11038_v35  ;;  %7428 = vmatpush.bf16.msra.mxu3 %v11514_v29  ;;  %v11963_v48 = vld [vmem:[#allocation8 + $0x9a8] sm:$0xf0]  ;;  %v7287_v29 = vpop.f32.mrf.mxu0 }
 0x41e   :  { %v13920_v5 = vld [vmem:[#allocation8 + $0xb8c] sm:$0xf]  ;;  %v11966_v50 = vor.u32 %v13856_v33, %v11963_v48  ;;  %v7288_v39 = vadd.f32 %v7287_v29, %v4599_v28  ;;  %v14004_v28 = vld [vmem:[#allocation8 + $0xe24] sm:$0xf0] }
 0x41f   :  { %7518 = vmatpush.bf16.msra.mxu2 %v11294_v34  ;;  %7493 = vmatpush.bf16.msra.mxu0 %v10750_v13  ;;  %v12219_v10 = vld [vmem:[#allocation8 + $0xba8] sm:$0xf0]  ;;  %v12634_v13 = vor.u32 %v14028_v9, %v12633_v19 }
 0x420   :  { %v13984_v44 = vld [vmem:[#allocation8 + $0xd8c] sm:$0xf]  ;;  %7429 = vmatmul.bf16.vlgmr.msra.gmra.mxu3 %v14578_v59  ;;  %v12222_v61 = vor.u32 %v13920_v5, %v12219_v10 }
 0x421   :  { %7473 = vmatpush.bf16.msrb.mxu3 %v12762_v7  ;;  %v12475_v16 = vld [vmem:[#allocation8 + $0xda8] sm:$0xf0]  ;;  %7506 = vmatpush.bf16.msra.mxu1 %v11006_v38  ;;  %v7301_v38 = vadd.f32 %v7300_v15, %v7288_v39 }
 0x422   :  { %v12478_v6 = vor.u32 %v13984_v44, %v12475_v16  ;;  %v13848_v25 = vld [vmem:[#allocation8 + $0x94c] sm:$0xf]  ;;  %7494 = vmatmul.bf16.vlgmr.msra.gmra.mxu0 %v14572_v12 }
 0x423   :  { %7519 = vmatpush.bf16.msra.mxu2 %v11262_v60  ;;  %7538 = vmatpush.bf16.msrb.mxu0 %v11998_v62  ;;  %v11931_v21 = vld [vmem:[#allocation8 + $0x968] sm:$0xf0] }
 0x424   :  { %v13912_v22 = vld [vmem:[#allocation8 + $0xb4c] sm:$0xf]  ;;  %7507 = vmatmul.bf16.vlgmr.msra.gmra.mxu1 %v14574_v14  ;;  %v11934_v63 = vor.u32 %v13848_v25, %v11931_v21 }
 0x425   :  { %7551 = vmatpush.bf16.msrb.mxu1 %v12254_v0  ;;  %7474 = vmatpush.bf16.msrb.mxu3 %v12730_v45  ;;  %v12187_v23 = vld [vmem:[#allocation8 + $0xb68] sm:$0xf0]  ;;  %v12602_v45 = vor.u32 %v14020_v41, %v12601_v58 }
 0x426   :  { %v13976_v24 = vld [vmem:[#allocation8 + $0xd4c] sm:$0xf]  ;;  %7520 = vmatmul.bf16.vlgmr.msra.gmra.mxu2 %v14576_v52  ;;  %v12190_v30 = vor.u32 %v13912_v22, %v12187_v23 }
 0x427   :  { %7564 = vmatpush.bf16.msrb.mxu2 %v12510_v3  ;;  %v12443_v2 = vld [vmem:[#allocation8 + $0xd68] sm:$0xf0]  ;;  %7539 = vmatpush.bf16.msrb.mxu0 %v11966_v50  ;;  %v7263_v3 = vpop.f32.mrf.mxu2  ;;  %v7289_v50 = vpop.f32.mrf.mxu0 }
 0x428   :  { %v12446_v31 = vor.u32 %v13976_v24, %v12443_v2  ;;  %v13840_v32 = vld [vmem:[#allocation8 + $0x90c] sm:$0xf]  ;;  %v12570_v24 = vor.u32 %v14012_v18, %v12569_v17  ;;  %v13605_v3 = vld [vmem:[#allocation8 + $0x1ac] sm:$0xf0] }
 0x429   :  { %7552 = vmatpush.bf16.msrb.mxu1 %v12222_v61  ;;  %v11899_v8 = vld [vmem:[#allocation8 + $0x928] sm:$0xf0]  ;;  %7475 = vmatpush.bf16.msrb.mxu3 %v12698_v11  ;;  %v7302_v61 = vpop.f32.mrf.mxu1 }
 0x42a   :  { %v13904_v47 = vld [vmem:[#allocation8 + $0xb0c] sm:$0xf]  ;;  %v11902_v4 = vor.u32 %v13840_v32, %v11899_v8 }
 0x42b   :  { %7565 = vmatpush.bf16.msrb.mxu2 %v12478_v6  ;;  %v12155_v35 = vld [vmem:[#allocation8 + $0xb28] sm:$0xf0]  ;;  %7540 = vmatpush.bf16.msrb.mxu0 %v11934_v63  ;;  %v12537_v63 = vld [vmem:[#allocation8 + $0xe08] sm:$0xf] }
 0x42c   :  { %v13968_v34 = vld [vmem:[#allocation8 + $0xd0c] sm:$0xf]  ;;  %v12158_v42 = vor.u32 %v13904_v47, %v12155_v35 }
 0x42d   :  { %v12411_v36 = vld [vmem:[#allocation8 + $0xd28] sm:$0xf0]  ;;  %7553 = vmatpush.bf16.msrb.mxu1 %v12190_v30  ;;  %7476 = vmatpush.bf16.msrb.mxu3 %v12666_v40 }
 0x42e   :  { %v12414_v7 = vor.u32 %v13968_v34, %v12411_v36  ;;  %v13832_v43 = vld [vmem:[#allocation8 + $0x8cc] sm:$0xf]  ;;  %v12538_v36 = vor.u32 %v14004_v28, %v12537_v63 }
 0x42f   :  { %7566 = vmatpush.bf16.msrb.mxu2 %v12446_v31  ;;  %v11867_v56 = vld [vmem:[#allocation8 + $0x8e8] sm:$0xf0]  ;;  %7541 = vmatpush.bf16.msrb.mxu0 %v11902_v4  ;;  %v7313_v19 = vpop.f32.mrf.mxu2 }
 0x430   :  { %v13896_v55 = vld [vmem:[#allocation8 + $0xacc] sm:$0xf]  ;;  %v11870_v60 = vor.u32 %v13832_v43, %v11867_v56  ;;  %v14660_v39 = vadd.f32 %v7313_v19, %v7301_v38  ;;  %v11233_v43 = vld [vmem:[#allocation8 + $0x3d0] sm:$0xf] }
 0x431   :  { %v12123_v46 = vld [vmem:[#allocation8 + $0xae8] sm:$0xf0]  ;;  %7554 = vmatpush.bf16.msrb.mxu1 %v12158_v42  ;;  %7477 = vmatpush.bf16.msrb.mxu3 %v12634_v13  ;;  %v10977_v42 = vld [vmem:[#allocation8 + $0x1d0] sm:$0xf] }
 0x432   :  { %v13960_v49 = vld [vmem:[#allocation8 + $0xccc] sm:$0xf]  ;;  %v12126_v62 = vor.u32 %v13896_v55, %v12123_v46  ;;  %v13677_v55 = vld [vmem:[#allocation8 + $0x3ec] sm:$0xf0] }
 0x433   :  { %v12379_v57 = vld [vmem:[#allocation8 + $0xce8] sm:$0xf0]  ;;  %7567 = vmatpush.bf16.msrb.mxu2 %v12414_v7  ;;  %7542 = vmatpush.bf16.msrb.mxu0 %v11870_v60  ;;  %v13613_v7 = vld [vmem:[#allocation8 + $0x1ec] sm:$0xf0] }
 0x434   :  { %v12382_v0 = vor.u32 %v13960_v49, %v12379_v57  ;;  %v13824_v33 = vld [vmem:[#allocation8 + $0x88c] sm:$0xf]  ;;  %v11489_v13 = vld [vmem:[#allocation8 + $0x5d0] sm:$0xf]  ;;  %v10978_v60 = vor.u32 %v13613_v7, %v10977_v42 }
 0x435   :  { %v11835_v48 = vld [vmem:[#allocation8 + $0x8a8] sm:$0xf0]  ;;  %7555 = vmatpush.bf16.msrb.mxu1 %v12126_v62  ;;  %7478 = vmatpush.bf16.msrb.mxu3 %v12602_v45  ;;  %v13741_v46 = vld [vmem:[#allocation8 + $0x5ec] sm:$0xf0]  ;;  %v11234_v62 = vor.u32 %v13677_v55, %v11233_v43 }
 0x436   :  { %v13888_v5 = vld [vmem:[#allocation8 + $0xa8c] sm:$0xf]  ;;  %v11838_v6 = vor.u32 %v13824_v33, %v11835_v48  ;;  %v11490_v38 = vor.u32 %v13741_v46, %v11489_v13  ;;  %v11201_v33 = vld [vmem:[#allocation8 + $0x390] sm:$0xf] }
 0x437   :  { %v12091_v10 = vld [vmem:[#allocation8 + $0xaa8] sm:$0xf0]  ;;  %7568 = vmatpush.bf16.msrb.mxu2 %v12382_v0  ;;  %v10945_v0 = vld [vmem:[#allocation8 + $0x190] sm:$0xf]  ;;  %v7315_v18 = vpop.f32.mrf.mxu2 }
 0x438   :  { %v13952_v44 = vld [vmem:[#allocation8 + $0xc8c] sm:$0xf]  ;;  %v12094_v25 = vor.u32 %v13888_v5, %v12091_v10  ;;  %7543 = vmatpush.bf16.msrb.mxu0 %v11838_v6  ;;  %v13669_v5 = vld [vmem:[#allocation8 + $0x3ac] sm:$0xf0]  ;;  %v10946_v17 = vor.u32 %v13605_v3, %v10945_v0 }
 0x439   :  { %v12347_v16 = vld [vmem:[#allocation8 + $0xca8] sm:$0xf0]  ;;  %7479 = vmatpush.bf16.msrb.mxu3 %v12570_v24  ;;  %v11457_v45 = vld [vmem:[#allocation8 + $0x590] sm:$0xf]  ;;  %v11202_v50 = vor.u32 %v13669_v5, %v11201_v33 }
 0x43a   :  { %v12350_v21 = vor.u32 %v13952_v44, %v12347_v16  ;;  %v13816_v22 = vld [vmem:[#allocation8 + $0x84c] sm:$0xf]  ;;  %7556 = vmatpush.bf16.msrb.mxu1 %v12094_v25  ;;  %v13733_v10 = vld [vmem:[#allocation8 + $0x5ac] sm:$0xf0] }
 0x43b   :  { %v11803_v11 = vld [vmem:[#allocation8 + $0x868] sm:$0xf0]  ;;  %v11458_v61 = vor.u32 %v13733_v10, %v11457_v45  ;;  %v10913_v6 = vld [vmem:[#allocation8 + $0x150] sm:$0xf] }
 0x43c   :  { %v13880_v23 = vld [vmem:[#allocation8 + $0xa4c] sm:$0xf]  ;;  %v11806_v30 = vor.u32 %v13816_v22, %v11803_v11  ;;  %7569 = vmatpush.bf16.msrb.mxu2 %v12350_v21  ;;  %v13597_v25 = vld [vmem:[#allocation8 + $0x16c] sm:$0xf0] }
 0x43d   :  { %v12059_v2 = vld [vmem:[#allocation8 + $0xa68] sm:$0xf0]  ;;  %7480 = vmatpush.bf16.msrb.mxu3 %v12538_v36  ;;  %v11169_v21 = vld [vmem:[#allocation8 + $0x350] sm:$0xf] }
 0x43e   :  { %v13944_v26 = vld [vmem:[#allocation8 + $0xc4c] sm:$0xf]  ;;  %v12062_v8 = vor.u32 %v13880_v23, %v12059_v2  ;;  %7544 = vmatpush.bf16.msrb.mxu0 %v11806_v30  ;;  %v13661_v11 = vld [vmem:[#allocation8 + $0x36c] sm:$0xf0] }
 0x43f   :  { %v12315_v27 = vld [vmem:[#allocation8 + $0xc68] sm:$0xf0]  ;;  %v11425_v23 = vld [vmem:[#allocation8 + $0x550] sm:$0xf]  ;;  %v11170_v63 = vor.u32 %v13661_v11, %v11169_v21 }
 0x440   :  { %v13800_v31 = vld [vmem:[#allocation8 + $0x7cc] sm:$0xf]  ;;  %v12318_v47 = vor.u32 %v13944_v26, %v12315_v27  ;;  %7557 = vmatpush.bf16.msrb.mxu1 %v12062_v8  ;;  %7481 = vmatmul.bf16.vlgmr.msrb.gmra.mxu3 %v14634_v54  ;;  %v13725_v24 = vld [vmem:[#allocation8 + $0x56c] sm:$0xf0]  ;;  %v10914_v27 = vor.u32 %v13597_v25, %v10913_v6 }
 0x441   :  { %v11739_v32 = vld [vmem:[#allocation8 + $0x7e8] sm:$0xf0]  ;;  %v11426_v28 = vor.u32 %v13725_v24, %v11425_v23  ;;  %v10881_v30 = vld [vmem:[#allocation8 + $0x110] sm:$0xf] }
 0x442   :  { %v13808_v40 = vld [vmem:[#allocation8 + $0x80c] sm:$0xf]  ;;  %v11742_v4 = vor.u32 %v13800_v31, %v11739_v32  ;;  %7570 = vmatpush.bf16.msrb.mxu2 %v12318_v47  ;;  %v13589_v31 = vld [vmem:[#allocation8 + $0x12c] sm:$0xf0] }
 0x443   :  { %v11771_v35 = vld [vmem:[#allocation8 + $0x828] sm:$0xf0]  ;;  %v11137_v32 = vld [vmem:[#allocation8 + $0x310] sm:$0xf] }
 0x444   :  { %v13872_v34 = vld [vmem:[#allocation8 + $0xa0c] sm:$0xf]  ;;  %v11774_v56 = vor.u32 %v13808_v40, %v11771_v35  ;;  %7525 = vmatpush.bf16.msra.mxu3 %v11742_v4  ;;  %v13653_v47 = vld [vmem:[#allocation8 + $0x32c] sm:$0xf0] }
 0x445   :  { %v12027_v9 = vld [vmem:[#allocation8 + $0xa28] sm:$0xf0]  ;;  %v11393_v40 = vld [vmem:[#allocation8 + $0x510] sm:$0xf] }
 0x446   :  { %v13936_v29 = vld [vmem:[#allocation8 + $0xc0c] sm:$0xf]  ;;  %v12030_v49 = vor.u32 %v13872_v34, %v12027_v9  ;;  %7545 = vmatpush.bf16.msrb.mxu0 %v11774_v56  ;;  %v13717_v35 = vld [vmem:[#allocation8 + $0x52c] sm:$0xf0]  ;;  %v14666_v34 = vpop.f32.mrf.mxu0  ;;  %v14668_v9 = vpop.f32.mrf.mxu1 }
 0x447   :  { %v12283_v15 = vld [vmem:[#allocation8 + $0xc28] sm:$0xf0]  ;;  %v11394_v4 = vor.u32 %v13717_v35, %v11393_v40  ;;  %v10849_v42 = vld [vmem:[#allocation8 + $0xd0] sm:$0xf]  ;;  %v14670_v3 = vpop.f32.mrf.mxu2 }
 0x448   :  { %v13792_v57 = vld [vmem:[#allocation8 + $0x78c] sm:$0xf]  ;;  %v12286_v41 = vor.u32 %v13936_v29, %v12283_v15  ;;  %7558 = vmatpush.bf16.msrb.mxu1 %v12030_v49  ;;  %v10882_v29 = vor.u32 %v13589_v31, %v10881_v30  ;;  %v11138_v15 = vor.u32 %v13653_v47, %v11137_v32  ;;  %v13581_v7 = vld [vmem:[#allocation8 + $0xec] sm:$0xf0] }
 0x449   :  { %v11707_v58 = vld [vmem:[#allocation8 + $0x7a8] sm:$0xf0]  ;;  %7546 = vmatmul.bf16.vlgmr.msrb.gmra.mxu0 %v14604_v51  ;;  %v11105_v43 = vld [vmem:[#allocation8 + $0x2d0] sm:$0xf] }
 0x44a   :  { %v11710_v48 = vor.u32 %v13792_v57, %v11707_v58  ;;  %v13784_v44 = vld [vmem:[#allocation8 + $0x74c] sm:$0xf]  ;;  %7571 = vmatpush.bf16.msrb.mxu2 %v12286_v41  ;;  %7590 = vmatpush.bf16.msra.mxu0 %v10978_v60  ;;  %v13645_v55 = vld [vmem:[#allocation8 + $0x2ec] sm:$0xf0]  ;;  %v10850_v58 = vor.u32 %v13581_v7, %v10849_v42 }
 0x44b   :  { %v11675_v16 = vld [vmem:[#allocation8 + $0x768] sm:$0xf0]  ;;  %7559 = vmatmul.bf16.vlgmr.msrb.gmra.mxu1 %v14606_v53  ;;  %v11361_v13 = vld [vmem:[#allocation8 + $0x4d0] sm:$0xf]  ;;  %v11106_v41 = vor.u32 %v13645_v55, %v11105_v43 }
 0x44c   :  { %7603 = vmatpush.bf16.msra.mxu1 %v11234_v62  ;;  %7526 = vmatpush.bf16.msra.mxu3 %v11710_v48  ;;  %v11678_v22 = vor.u32 %v13784_v44, %v11675_v16  ;;  %v13776_v2 = vld [vmem:[#allocation8 + $0x70c] sm:$0xf]  ;;  %v13709_v46 = vld [vmem:[#allocation8 + $0x4ec] sm:$0xf0] }
 0x44d   :  { %7572 = vmatmul.bf16.vlgmr.msrb.gmra.mxu2 %v14612_v20  ;;  %v11643_v26 = vld [vmem:[#allocation8 + $0x728] sm:$0xf0]  ;;  %v11362_v60 = vor.u32 %v13709_v46, %v11361_v13  ;;  %v10817_v62 = vld [vmem:[#allocation8 + $0x90] sm:$0xf] }
 0x44e   :  { %7616 = vmatpush.bf16.msra.mxu2 %v11490_v38  ;;  %7591 = vmatpush.bf16.msra.mxu0 %v10946_v17  ;;  %v11646_v8 = vor.u32 %v13776_v2, %v11643_v26  ;;  %v13768_v36 = vld [vmem:[#allocation8 + $0x6cc] sm:$0xf]  ;;  %v13573_v38 = vld [vmem:[#allocation8 + $0xac] sm:$0xf0]  ;;  %v7341_v10 = vpop.f32.mrf.mxu0  ;;  %v7354_v17 = vpop.f32.mrf.mxu1 }
 0x44f   :  { %v11611_v19 = vld [vmem:[#allocation8 + $0x6e8] sm:$0xf0]  ;;  %v11073_v0 = vld [vmem:[#allocation8 + $0x290] sm:$0xf]  ;;  %v10818_v18 = vor.u32 %v13573_v38, %v10817_v62  ;;  %v7367_v40 = vpop.f32.mrf.mxu2 }
 0x450   :  { %7604 = vmatpush.bf16.msra.mxu1 %v11202_v50  ;;  %7527 = vmatpush.bf16.msra.mxu3 %v11678_v22  ;;  %v11614_v56 = vor.u32 %v13768_v36, %v11611_v19  ;;  %v13760_v49 = vld [vmem:[#allocation8 + $0x68c] sm:$0xf]  ;;  %v13637_v48 = vld [vmem:[#allocation8 + $0x2ac] sm:$0xf0] }
 0x451   :  { %v11579_v57 = vld [vmem:[#allocation8 + $0x6a8] sm:$0xf0]  ;;  %v11329_v5 = vld [vmem:[#allocation8 + $0x490] sm:$0xf]  ;;  %v11074_v50 = vor.u32 %v13637_v48, %v11073_v0 }
 0x452   :  { %7617 = vmatpush.bf16.msra.mxu2 %v11458_v61  ;;  %7592 = vmatpush.bf16.msra.mxu0 %v10914_v27  ;;  %v11582_v33 = vor.u32 %v13760_v49, %v11579_v57  ;;  %v13701_v45 = vld [vmem:[#allocation8 + $0x4ac] sm:$0xf0]  ;;  %v13752_v44 = vld [vmem:[#allocation8 + $0x64c] sm:$0xf] }
 0x453   :  { %v11547_v16 = vld [vmem:[#allocation8 + $0x668] sm:$0xf0]  ;;  %v11330_v61 = vor.u32 %v13701_v45, %v11329_v5  ;;  %v10785_v6 = vld [vmem:[#allocation8 + $0x50] sm:$0xf] }
 0x454   :  { %7605 = vmatpush.bf16.msra.mxu1 %v11170_v63  ;;  %7528 = vmatpush.bf16.msra.mxu3 %v11646_v8  ;;  %v13565_v25 = vld [vmem:[#allocation8 + $0x6c] sm:$0xf0]  ;;  %v11550_v22 = vor.u32 %v13752_v44, %v11547_v16  ;;  %v13744_v2 = vld [vmem:[#allocation8 + $0x60c] sm:$0xf] }
 0x455   :  { %v11041_v21 = vld [vmem:[#allocation8 + $0x250] sm:$0xf]  ;;  %v11515_v26 = vld [vmem:[#allocation8 + $0x628] sm:$0xf0]  ;;  %v10786_v27 = vor.u32 %v13565_v25, %v10785_v6 }
 0x456   :  { %7618 = vmatpush.bf16.msra.mxu2 %v11426_v28  ;;  %7593 = vmatpush.bf16.msra.mxu0 %v10882_v29  ;;  %v13629_v11 = vld [vmem:[#allocation8 + $0x26c] sm:$0xf0]  ;;  %v14056_v63 = vld [vmem:[#allocation8 + $0xfcc] sm:$0xf]  ;;  %v11518_v35 = vor.u32 %v13744_v2, %v11515_v26 }
 0x457   :  { %v11297_v23 = vld [vmem:[#allocation8 + $0x450] sm:$0xf]  ;;  %v12763_v28 = vld [vmem:[#allocation8 + $0xfe8] sm:$0xf0]  ;;  %v11042_v30 = vor.u32 %v13629_v11, %v11041_v21 }
 0x458   :  { %7606 = vmatpush.bf16.msra.mxu1 %v11138_v15  ;;  %7529 = vmatpush.bf16.msra.mxu3 %v11614_v56  ;;  %v13693_v24 = vld [vmem:[#allocation8 + $0x46c] sm:$0xf0]  ;;  %v12766_v15 = vor.u32 %v14056_v63, %v12763_v28  ;;  %v14048_v49 = vld [vmem:[#allocation8 + $0xf8c] sm:$0xf] }
 0x459   :  { %v11298_v31 = vor.u32 %v13693_v24, %v11297_v23  ;;  %v10753_v32 = vld [vmem:[#allocation8 + $0x10] sm:$0xf]  ;;  %v12731_v57 = vld [vmem:[#allocation8 + $0xfa8] sm:$0xf0] }
 0x45a   :  { %7619 = vmatpush.bf16.msra.mxu2 %v11394_v4  ;;  %7594 = vmatpush.bf16.msra.mxu0 %v10850_v58  ;;  %v13557_v8 = vld [vmem:[#allocation8 + $0x2c] sm:$0xf0]  ;;  %v12734_v48 = vor.u32 %v14048_v49, %v12731_v57  ;;  %v14040_v44 = vld [vmem:[#allocation8 + $0xf4c] sm:$0xf] }
 0x45b   :  { %v11009_v47 = vld [vmem:[#allocation8 + $0x210] sm:$0xf]  ;;  %v10754_v43 = vor.u32 %v13557_v8, %v10753_v32  ;;  %v12699_v16 = vld [vmem:[#allocation8 + $0xf68] sm:$0xf0] }
 0x45c   :  { %7607 = vmatpush.bf16.msra.mxu1 %v11106_v41  ;;  %7530 = vmatpush.bf16.msra.mxu3 %v11582_v33  ;;  %v13621_v36 = vld [vmem:[#allocation8 + $0x22c] sm:$0xf0]  ;;  %v12702_v21 = vor.u32 %v14040_v44, %v12699_v16  ;;  %v14032_v24 = vld [vmem:[#allocation8 + $0xf0c] sm:$0xf] }
 0x45d   :  { %v11265_v19 = vld [vmem:[#allocation8 + $0x410] sm:$0xf]  ;;  %v11010_v46 = vor.u32 %v13621_v36, %v11009_v47  ;;  %v12667_v2 = vld [vmem:[#allocation8 + $0xf28] sm:$0xf0]  ;;  %v7262_v47 = vadd.f32 %v14658_v37, %v14651_v1 }
 0x45e   :  { %7620 = vmatpush.bf16.msra.mxu2 %v11362_v60  ;;  %7595 = vmatpush.bf16.msra.mxu0 %v10818_v18  ;;  %v13685_v29 = vld [vmem:[#allocation8 + $0x42c] sm:$0xf0]  ;;  %v12670_v40 = vor.u32 %v14032_v24, %v12667_v2 }
 0x45f   :  { %v12001_v4 = vld [vmem:[#allocation8 + $0x9d0] sm:$0xf]  ;;  %v11266_v58 = vor.u32 %v13685_v29, %v11265_v19  ;;  %v7391_v29 = vpop.f32.mrf.mxu0 }
 0x460   :  { %7608 = vmatpush.bf16.msra.mxu1 %v11074_v50  ;;  %7531 = vmatpush.bf16.msra.mxu3 %v11550_v22  ;;  %v13869_v42 = vld [vmem:[#allocation8 + $0x9ec] sm:$0xf0] }
 0x461   :  { %v12257_v7 = vld [vmem:[#allocation8 + $0xbd0] sm:$0xf]  ;;  %v12002_v41 = vor.u32 %v13869_v42, %v12001_v4  ;;  %v14024_v4 = vld [vmem:[#allocation8 + $0xecc] sm:$0xf] }
 0x462   :  { %7621 = vmatpush.bf16.msra.mxu2 %v11330_v61  ;;  %7596 = vmatpush.bf16.msra.mxu0 %v10786_v27  ;;  %v13933_v56 = vld [vmem:[#allocation8 + $0xbec] sm:$0xf0]  ;;  %v14676_v27 = vld [vmem:[#allocation10] sm:$0xff]  ;;  %v12635_v42 = vld [vmem:[#allocation8 + $0xee8] sm:$0xf0] }
 0x463   :  { %v12513_v55 = vld [vmem:[#allocation8 + $0xdd0] sm:$0xf]  ;;  %v12258_v60 = vor.u32 %v13933_v56, %v12257_v7  ;;  %v4600_v63 = vperm.slane %v14676_v27, 2 }
 0x464   :  { %v13997_v13 = vld [vmem:[#allocation8 + $0xdec] sm:$0xf0]  ;;  %7609 = vmatpush.bf16.msra.mxu1 %v11042_v30  ;;  %7532 = vmatpush.bf16.msra.mxu3 %v11518_v35 }
 0x465   :  { %v12514_v62 = vor.u32 %v13997_v13, %v12513_v55  ;;  %v11969_v38 = vld [vmem:[#allocation8 + $0x990] sm:$0xf]  ;;  %v7392_v7 = vadd.f32 %v7391_v29, %v4600_v63 }
 0x466   :  { %7622 = vmatpush.bf16.msra.mxu2 %v11298_v31  ;;  %v13861_v0 = vld [vmem:[#allocation8 + $0x9ac] sm:$0xf0]  ;;  %7597 = vmatpush.bf16.msra.mxu0 %v10754_v43  ;;  %v7404_v43 = vpop.f32.mrf.mxu1 }
 0x467   :  { %v12225_v33 = vld [vmem:[#allocation8 + $0xb90] sm:$0xf]  ;;  %7533 = vmatmul.bf16.vlgmr.msra.gmra.mxu3 %v14578_v59  ;;  %v11970_v17 = vor.u32 %v13861_v0, %v11969_v38  ;;  %v14016_v0 = vld [vmem:[#allocation8 + $0xe8c] sm:$0xf] }
 0x468   :  { %7577 = vmatpush.bf16.msrb.mxu3 %v12766_v15  ;;  %v13925_v5 = vld [vmem:[#allocation8 + $0xbac] sm:$0xf0]  ;;  %7610 = vmatpush.bf16.msra.mxu1 %v11010_v46  ;;  %v7274_v15 = vpop.f32.mrf.mxu3 }
 0x469   :  { %v12481_v45 = vld [vmem:[#allocation8 + $0xd90] sm:$0xf]  ;;  %v12226_v18 = vor.u32 %v13925_v5, %v12225_v33  ;;  %7598 = vmatmul.bf16.vlgmr.msra.gmra.mxu0 %v14572_v12  ;;  %v7275_v56 = vadd.f32 %v7274_v15, %v7262_v47  ;;  %v12603_v33 = vld [vmem:[#allocation8 + $0xea8] sm:$0xf0] }
 0x46a   :  { %v13989_v10 = vld [vmem:[#allocation8 + $0xdac] sm:$0xf0]  ;;  %7623 = vmatpush.bf16.msra.mxu2 %v11266_v58  ;;  %7642 = vmatpush.bf16.msrb.mxu0 %v12002_v41  ;;  %v7405_v58 = vadd.f32 %v7404_v43, %v7392_v7 }
 0x46b   :  { %v12482_v50 = vor.u32 %v13989_v10, %v12481_v45  ;;  %v11937_v61 = vld [vmem:[#allocation8 + $0x950] sm:$0xf]  ;;  %7611 = vmatmul.bf16.vlgmr.msra.gmra.mxu1 %v14574_v14  ;;  %v8006_v41 = vmax.f32 %v7275_v56, 0.0 }
 0x46c   :  { %7655 = vmatpush.bf16.msrb.mxu1 %v12258_v60  ;;  %v13853_v6 = vld [vmem:[#allocation8 + $0x96c] sm:$0xf0]  ;;  %7578 = vmatpush.bf16.msrb.mxu3 %v12734_v48  ;;  %v12638_v60 = vor.u32 %v14024_v4, %v12635_v42 }
 0x46d   :  { %v12193_v25 = vld [vmem:[#allocation8 + $0xb50] sm:$0xf]  ;;  %7624 = vmatmul.bf16.vlgmr.msra.gmra.mxu2 %v14576_v52  ;;  %v11938_v26 = vor.u32 %v13853_v6, %v11937_v61  ;;  %8014 = vst [vmem:[#allocation14] sm:$0xff] %v8006_v41  ;;  %v10979_v41 = vld [vmem:[#allocation8 + $0x1f0] sm:$0xf0] }
 0x46e   :  { %7668 = vmatpush.bf16.msrb.mxu2 %v12514_v62  ;;  %v13917_v22 = vld [vmem:[#allocation8 + $0xb6c] sm:$0xf0]  ;;  %7643 = vmatpush.bf16.msrb.mxu0 %v11970_v17  ;;  %v7417_v17 = vpop.f32.mrf.mxu2  ;;  %v7406_v24 = vpop.f32.mrf.mxu1 }
 0x46f   :  { %v12449_v11 = vld [vmem:[#allocation8 + $0xd50] sm:$0xf]  ;;  %v12194_v28 = vor.u32 %v13917_v22, %v12193_v25  ;;  %v14681_v25 = vadd.f32 %v7417_v17, %v7405_v58  ;;  %v13609_v58 = vld [vmem:[#allocation8 + $0x1d4] sm:$0xf] }
 0x470   :  { %v13981_v23 = vld [vmem:[#allocation8 + $0xd6c] sm:$0xf0]  ;;  %7656 = vmatpush.bf16.msrb.mxu1 %v12226_v18  ;;  %7579 = vmatpush.bf16.msrb.mxu3 %v12702_v21  ;;  %v12606_v18 = vor.u32 %v14016_v0, %v12603_v33  ;;  %v7393_v21 = vpop.f32.mrf.mxu0  ;;  %v7276_v22 = vpop.f32.mrf.mxu3  ;;  %v13737_v0 = vld [vmem:[#allocation8 + $0x5d4] sm:$0xf] }
 0x471   :  { %v12450_v30 = vor.u32 %v13981_v23, %v12449_v11  ;;  %v11905_v31 = vld [vmem:[#allocation8 + $0x910] sm:$0xf]  ;;  %v14008_v11 = vld [vmem:[#allocation8 + $0xe4c] sm:$0xf]  ;;  %v11491_v33 = vld [vmem:[#allocation8 + $0x5f0] sm:$0xf0] }
 0x472   :  { %7669 = vmatpush.bf16.msrb.mxu2 %v12482_v50  ;;  %v13845_v32 = vld [vmem:[#allocation8 + $0x92c] sm:$0xf0]  ;;  %7644 = vmatpush.bf16.msrb.mxu0 %v11938_v26  ;;  %v12571_v23 = vld [vmem:[#allocation8 + $0xe68] sm:$0xf0]  ;;  %v11494_v17 = vor.u32 %v13737_v0, %v11491_v33  ;;  %v11203_v22 = vld [vmem:[#allocation8 + $0x3b0] sm:$0xf0] }
 0x473   :  { %v12161_v8 = vld [vmem:[#allocation8 + $0xb10] sm:$0xf]  ;;  %v11906_v55 = vor.u32 %v13845_v32, %v11905_v31  ;;  %v12574_v32 = vor.u32 %v14008_v11, %v12571_v23  ;;  %v13729_v11 = vld [vmem:[#allocation8 + $0x594] sm:$0xf] }
 0x474   :  { %v13909_v35 = vld [vmem:[#allocation8 + $0xb2c] sm:$0xf0]  ;;  %7657 = vmatpush.bf16.msrb.mxu1 %v12194_v28  ;;  %7580 = vmatpush.bf16.msrb.mxu3 %v12670_v40  ;;  %v11459_v23 = vld [vmem:[#allocation8 + $0x5b0] sm:$0xf0] }
 0x475   :  { %v12417_v36 = vld [vmem:[#allocation8 + $0xd10] sm:$0xf]  ;;  %v12162_v46 = vor.u32 %v13909_v35, %v12161_v8  ;;  %v14000_v35 = vld [vmem:[#allocation8 + $0xe0c] sm:$0xf]  ;;  %v10851_v0 = vld [vmem:[#allocation8 + $0xf0] sm:$0xf0] }
 0x476   :  { %v13973_v19 = vld [vmem:[#allocation8 + $0xd2c] sm:$0xf0]  ;;  %7670 = vmatpush.bf16.msrb.mxu2 %v12450_v30  ;;  %7645 = vmatpush.bf16.msrb.mxu0 %v11906_v55  ;;  %v7419_v55 = vpop.f32.mrf.mxu2  ;;  %v13641_v33 = vld [vmem:[#allocation8 + $0x2d4] sm:$0xf] }
 0x477   :  { %v11873_v13 = vld [vmem:[#allocation8 + $0x8d0] sm:$0xf]  ;;  %v12418_v49 = vor.u32 %v13973_v19, %v12417_v36  ;;  %v12539_v36 = vld [vmem:[#allocation8 + $0xe28] sm:$0xf0]  ;;  %v11139_v55 = vld [vmem:[#allocation8 + $0x330] sm:$0xf0] }
 0x478   :  { %v13837_v1 = vld [vmem:[#allocation8 + $0x8ec] sm:$0xf0]  ;;  %7658 = vmatpush.bf16.msrb.mxu1 %v12162_v46  ;;  %7581 = vmatpush.bf16.msrb.mxu3 %v12638_v60  ;;  %v13673_v60 = vld [vmem:[#allocation8 + $0x3d4] sm:$0xf] }
 0x479   :  { %v12129_v37 = vld [vmem:[#allocation8 + $0xad0] sm:$0xf]  ;;  %v11874_v48 = vor.u32 %v13837_v1, %v11873_v13  ;;  %v12542_v13 = vor.u32 %v14000_v35, %v12539_v36  ;;  %v13721_v35 = vld [vmem:[#allocation8 + $0x554] sm:$0xf] }
 0x47a   :  { %v13901_v57 = vld [vmem:[#allocation8 + $0xaec] sm:$0xf0]  ;;  %7671 = vmatpush.bf16.msrb.mxu2 %v12418_v49  ;;  %v11427_v36 = vld [vmem:[#allocation8 + $0x570] sm:$0xf0] }
 0x47b   :  { %v12385_v62 = vld [vmem:[#allocation8 + $0xcd0] sm:$0xf]  ;;  %v12130_v5 = vor.u32 %v13901_v57, %v12129_v37  ;;  %7646 = vmatpush.bf16.msrb.mxu0 %v11874_v48  ;;  %v7326_v57 = vpop.f32.mrf.mxu3 }
 0x47c   :  { %v13965_v38 = vld [vmem:[#allocation8 + $0xcec] sm:$0xf0]  ;;  %7582 = vmatpush.bf16.msrb.mxu3 %v12606_v18  ;;  %v13601_v18 = vld [vmem:[#allocation8 + $0x194] sm:$0xf] }
 0x47d   :  { %v12386_v45 = vor.u32 %v13965_v38, %v12385_v62  ;;  %v11841_v10 = vld [vmem:[#allocation8 + $0x890] sm:$0xf]  ;;  %7659 = vmatpush.bf16.msrb.mxu1 %v12130_v5  ;;  %v11235_v38 = vld [vmem:[#allocation8 + $0x3f0] sm:$0xf0] }
 0x47e   :  { %v13829_v44 = vld [vmem:[#allocation8 + $0x8ac] sm:$0xf0] }
 0x47f   :  { %v12097_v16 = vld [vmem:[#allocation8 + $0xa90] sm:$0xf]  ;;  %v11842_v2 = vor.u32 %v13829_v44, %v11841_v10  ;;  %7672 = vmatpush.bf16.msrb.mxu2 %v12386_v45  ;;  %v10982_v44 = vor.u32 %v13609_v58, %v10979_v41 }
 0x480   :  { %v13893_v50 = vld [vmem:[#allocation8 + $0xaac] sm:$0xf0]  ;;  %7583 = vmatpush.bf16.msrb.mxu3 %v12574_v32  ;;  %v13657_v32 = vld [vmem:[#allocation8 + $0x354] sm:$0xf] }
 0x481   :  { %v12353_v61 = vld [vmem:[#allocation8 + $0xc90] sm:$0xf]  ;;  %v12098_v26 = vor.u32 %v13893_v50, %v12097_v16  ;;  %7647 = vmatpush.bf16.msrb.mxu0 %v11842_v2  ;;  %v11238_v16 = vor.u32 %v13673_v60, %v11235_v38  ;;  %v10947_v50 = vld [vmem:[#allocation8 + $0x1b0] sm:$0xf0]  ;;  %v14692_v58 = vpop.f32.mrf.mxu1 }
 0x482   :  { %v13957_v6 = vld [vmem:[#allocation8 + $0xcac] sm:$0xf0]  ;;  %v13577_v38 = vld [vmem:[#allocation8 + $0xd4] sm:$0xf] }
 0x483   :  { %v12354_v63 = vor.u32 %v13957_v6, %v12353_v61  ;;  %v11809_v28 = vld [vmem:[#allocation8 + $0x850] sm:$0xf]  ;;  %7660 = vmatpush.bf16.msrb.mxu1 %v12098_v26  ;;  %v13665_v61 = vld [vmem:[#allocation8 + $0x394] sm:$0xf]  ;;  %v7327_v6 = vadd.f32 %v7326_v57, %v14660_v39  ;;  %v10950_v26 = vor.u32 %v13601_v18, %v10947_v50  ;;  %v10854_v50 = vor.u32 %v13577_v38, %v10851_v0 }
 0x484   :  { %v13821_v30 = vld [vmem:[#allocation8 + $0x86c] sm:$0xf0]  ;;  %7584 = vmatpush.bf16.msrb.mxu3 %v12542_v13  ;;  %v10915_v39 = vld [vmem:[#allocation8 + $0x170] sm:$0xf0] }
 0x485   :  { %v12065_v31 = vld [vmem:[#allocation8 + $0xa50] sm:$0xf]  ;;  %v11810_v19 = vor.u32 %v13821_v30, %v11809_v28  ;;  %7673 = vmatpush.bf16.msrb.mxu2 %v12354_v63  ;;  %v11206_v63 = vor.u32 %v13665_v61, %v11203_v22  ;;  %v11462_v28 = vor.u32 %v13729_v11, %v11459_v23  ;;  %v7328_v30 = vpop.f32.mrf.mxu3  ;;  %v13713_v13 = vld [vmem:[#allocation8 + $0x514] sm:$0xf] }
 0x486   :  { %v13885_v8 = vld [vmem:[#allocation8 + $0xa6c] sm:$0xf0]  ;;  %v13569_v61 = vld [vmem:[#allocation8 + $0x94] sm:$0xf] }
 0x487   :  { %v12321_v47 = vld [vmem:[#allocation8 + $0xc50] sm:$0xf]  ;;  %v12066_v4 = vor.u32 %v13885_v8, %v12065_v31  ;;  %7648 = vmatpush.bf16.msrb.mxu0 %v11810_v19  ;;  %7585 = vmatmul.bf16.vlgmr.msrb.gmra.mxu3 %v14634_v54  ;;  %v13593_v31 = vld [vmem:[#allocation8 + $0x154] sm:$0xf]  ;;  %v7340_v8 = vadd.f32 %v14666_v34, %v7327_v6 }
 0x488   :  { %v13949_v40 = vld [vmem:[#allocation8 + $0xc6c] sm:$0xf0]  ;;  %v13585_v34 = vld [vmem:[#allocation8 + $0x114] sm:$0xf] }
 0x489   :  { %v11745_v29 = vld [vmem:[#allocation8 + $0x7d0] sm:$0xf]  ;;  %v12322_v42 = vor.u32 %v13949_v40, %v12321_v47  ;;  %7661 = vmatpush.bf16.msrb.mxu1 %v12066_v4  ;;  %v11171_v40 = vld [vmem:[#allocation8 + $0x370] sm:$0xf0] }
 0x48a   :  { %v13805_v15 = vld [vmem:[#allocation8 + $0x7ec] sm:$0xf0]  ;;  %v11174_v4 = vor.u32 %v13657_v32, %v11171_v40  ;;  %v10819_v22 = vld [vmem:[#allocation8 + $0xb0] sm:$0xf0] }
 0x48b   :  { %v11777_v7 = vld [vmem:[#allocation8 + $0x810] sm:$0xf]  ;;  %v11746_v37 = vor.u32 %v13805_v15, %v11745_v29  ;;  %7674 = vmatpush.bf16.msrb.mxu2 %v12322_v42  ;;  %v10918_v15 = vor.u32 %v13593_v31, %v10915_v39  ;;  %v11430_v42 = vor.u32 %v13721_v35, %v11427_v36  ;;  %v13633_v11 = vld [vmem:[#allocation8 + $0x294] sm:$0xf]  ;;  %v7458_v39 = vpop.f32.mrf.mxu1  ;;  %v10822_v32 = vor.u32 %v13569_v61, %v10819_v22 }
 0x48c   :  { %v13813_v43 = vld [vmem:[#allocation8 + $0x82c] sm:$0xf0]  ;;  %v11075_v23 = vld [vmem:[#allocation8 + $0x2b0] sm:$0xf0] }
 0x48d   :  { %v12033_v56 = vld [vmem:[#allocation8 + $0xa10] sm:$0xf]  ;;  %v11778_v62 = vor.u32 %v13813_v43, %v11777_v7  ;;  %7629 = vmatpush.bf16.msra.mxu3 %v11746_v37  ;;  %v10883_v7 = vld [vmem:[#allocation8 + $0x130] sm:$0xf0] }
 0x48e   :  { %v13877_v46 = vld [vmem:[#allocation8 + $0xa2c] sm:$0xf0]  ;;  %v13649_v43 = vld [vmem:[#allocation8 + $0x314] sm:$0xf]  ;;  %v10886_v41 = vor.u32 %v13585_v34, %v10883_v7 }
 0x48f   :  { %v12289_v49 = vld [vmem:[#allocation8 + $0xc10] sm:$0xf]  ;;  %v12034_v48 = vor.u32 %v13877_v46, %v12033_v56  ;;  %7649 = vmatpush.bf16.msrb.mxu0 %v11778_v62  ;;  %v11395_v46 = vld [vmem:[#allocation8 + $0x530] sm:$0xf0]  ;;  %v11142_v60 = vor.u32 %v13649_v43, %v11139_v55 }
 0x490   :  { %v13941_v1 = vld [vmem:[#allocation8 + $0xc2c] sm:$0xf0]  ;;  %v11398_v62 = vor.u32 %v13713_v13, %v11395_v46  ;;  %v13561_v40 = vld [vmem:[#allocation8 + $0x54] sm:$0xf] }
 0x491   :  { %v11713_v5 = vld [vmem:[#allocation8 + $0x790] sm:$0xf]  ;;  %v12290_v10 = vor.u32 %v13941_v1, %v12289_v49  ;;  %7662 = vmatpush.bf16.msrb.mxu1 %v12034_v48  ;;  %v7353_v49 = vadd.f32 %v14668_v9, %v7340_v8  ;;  %v14690_v1 = vpop.f32.mrf.mxu0  ;;  %v11107_v9 = vld [vmem:[#allocation8 + $0x2f0] sm:$0xf0]  ;;  %v11078_v8 = vor.u32 %v13633_v11, %v11075_v23 }
 0x492   :  { %v13797_v45 = vld [vmem:[#allocation8 + $0x7ac] sm:$0xf0]  ;;  %7650 = vmatmul.bf16.vlgmr.msrb.gmra.mxu0 %v14604_v51  ;;  %v11110_v6 = vor.u32 %v13641_v33, %v11107_v9  ;;  %v10787_v35 = vld [vmem:[#allocation8 + $0x70] sm:$0xf0] }
 0x493   :  { %v11714_v21 = vor.u32 %v13797_v45, %v11713_v5  ;;  %v11681_v24 = vld [vmem:[#allocation8 + $0x750] sm:$0xf]  ;;  %7675 = vmatpush.bf16.msrb.mxu2 %v12290_v10  ;;  %7694 = vmatpush.bf16.msra.mxu0 %v10982_v44  ;;  %v7366_v5 = vadd.f32 %v14670_v3, %v7353_v49  ;;  %v13705_v45 = vld [vmem:[#allocation8 + $0x4d4] sm:$0xf]  ;;  %v7378_v44 = vpop.f32.mrf.mxu3  ;;  %v14695_v3 = vpop.f32.mrf.mxu2  ;;  %v10790_v43 = vor.u32 %v13561_v40, %v10787_v35 }
 0x494   :  { %v13789_v2 = vld [vmem:[#allocation8 + $0x76c] sm:$0xf0]  ;;  %7663 = vmatmul.bf16.vlgmr.msrb.gmra.mxu1 %v14606_v53  ;;  %v11363_v10 = vld [vmem:[#allocation8 + $0x4f0] sm:$0xf0] }
 0x495   :  { %7707 = vmatpush.bf16.msra.mxu1 %v11238_v16  ;;  %7630 = vmatpush.bf16.msra.mxu3 %v11714_v21  ;;  %v11682_v47 = vor.u32 %v13789_v2, %v11681_v24  ;;  %v11649_v19 = vld [vmem:[#allocation8 + $0x710] sm:$0xf]  ;;  %v7379_v18 = vadd.f32 %v7378_v44, %v7366_v5  ;;  %v11366_v21 = vor.u32 %v13705_v45, %v11363_v10  ;;  %v13625_v36 = vld [vmem:[#allocation8 + $0x254] sm:$0xf] }
 0x496   :  { %7676 = vmatmul.bf16.vlgmr.msrb.gmra.mxu2 %v14612_v20  ;;  %v13781_v29 = vld [vmem:[#allocation8 + $0x72c] sm:$0xf0]  ;;  %v13553_v49 = vld [vmem:[#allocation8 + $0x14] sm:$0xf] }
 0x497   :  { %7720 = vmatpush.bf16.msra.mxu2 %v11494_v17  ;;  %7695 = vmatpush.bf16.msra.mxu0 %v10950_v26  ;;  %v11650_v56 = vor.u32 %v13781_v29, %v11649_v19  ;;  %v11617_v37 = vld [vmem:[#allocation8 + $0x6d0] sm:$0xf]  ;;  %v8007_v24 = vmax.f32 %v7379_v18, 0.0  ;;  %v13697_v26 = vld [vmem:[#allocation8 + $0x494] sm:$0xf] }
 0x498   :  { %v13773_v57 = vld [vmem:[#allocation8 + $0x6ec] sm:$0xf0]  ;;  %v11043_v29 = vld [vmem:[#allocation8 + $0x270] sm:$0xf0] }
 0x499   :  { %7708 = vmatpush.bf16.msra.mxu1 %v11206_v63  ;;  %7631 = vmatpush.bf16.msra.mxu3 %v11682_v47  ;;  %v11618_v48 = vor.u32 %v13773_v57, %v11617_v37  ;;  %v11585_v16 = vld [vmem:[#allocation8 + $0x690] sm:$0xf]  ;;  %v11331_v63 = vld [vmem:[#allocation8 + $0x4b0] sm:$0xf0]  ;;  %8015 = vst [vmem:[#allocation14 + $0x8] sm:$0xff] %v8007_v24  ;;  %v11046_v13 = vor.u32 %v13625_v36, %v11043_v29 }
 0x49a   :  { %v13765_v17 = vld [vmem:[#allocation8 + $0x6ac] sm:$0xf0]  ;;  %v11334_v47 = vor.u32 %v13697_v26, %v11331_v63  ;;  %v10755_v37 = vld [vmem:[#allocation8 + $0x30] sm:$0xf0] }
 0x49b   :  { %7721 = vmatpush.bf16.msra.mxu2 %v11462_v28  ;;  %7696 = vmatpush.bf16.msra.mxu0 %v10918_v15  ;;  %v11586_v2 = vor.u32 %v13765_v17, %v11585_v16  ;;  %v7445_v28 = vpop.f32.mrf.mxu0  ;;  %v11553_v30 = vld [vmem:[#allocation8 + $0x650] sm:$0xf]  ;;  %v13689_v15 = vld [vmem:[#allocation8 + $0x454] sm:$0xf]  ;;  %v10758_v45 = vor.u32 %v13553_v49, %v10755_v37 }
 0x49c   :  { %v13757_v31 = vld [vmem:[#allocation8 + $0x66c] sm:$0xf0]  ;;  %v13617_v57 = vld [vmem:[#allocation8 + $0x214] sm:$0xf] }
 0x49d   :  { %7709 = vmatpush.bf16.msra.mxu1 %v11174_v4  ;;  %7632 = vmatpush.bf16.msra.mxu3 %v11650_v56  ;;  %v11554_v19 = vor.u32 %v13757_v31, %v11553_v30  ;;  %v11299_v4 = vld [vmem:[#allocation8 + $0x470] sm:$0xf0]  ;;  %v11521_v34 = vld [vmem:[#allocation8 + $0x610] sm:$0xf] }
 0x49e   :  { %v13749_v7 = vld [vmem:[#allocation8 + $0x62c] sm:$0xf0]  ;;  %v11302_v46 = vor.u32 %v13689_v15, %v11299_v4  ;;  %v13681_v38 = vld [vmem:[#allocation8 + $0x414] sm:$0xf] }
 0x49f   :  { %7722 = vmatpush.bf16.msra.mxu2 %v11430_v42  ;;  %7697 = vmatpush.bf16.msra.mxu0 %v10886_v41  ;;  %v7380_v42 = vpop.f32.mrf.mxu3  ;;  %v12769_v56 = vld [vmem:[#allocation8 + $0xfd0] sm:$0xf]  ;;  %v7471_v41 = vpop.f32.mrf.mxu2  ;;  %v11267_v0 = vld [vmem:[#allocation8 + $0x430] sm:$0xf0] }
 0x4a0   :  { %v14061_v55 = vld [vmem:[#allocation8 + $0xfec] sm:$0xf0]  ;;  %v12003_v5 = vld [vmem:[#allocation8 + $0x9f0] sm:$0xf0]  ;;  %v11270_v61 = vor.u32 %v13681_v38, %v11267_v0 }
 0x4a1   :  { %7710 = vmatpush.bf16.msra.mxu1 %v11142_v60  ;;  %7633 = vmatpush.bf16.msra.mxu3 %v11618_v48  ;;  %v11522_v60 = vor.u32 %v13749_v7, %v11521_v34  ;;  %v12770_v33 = vor.u32 %v14061_v55, %v12769_v56  ;;  %v13865_v48 = vld [vmem:[#allocation8 + $0x9d4] sm:$0xf]  ;;  %v12737_v18 = vld [vmem:[#allocation8 + $0xf90] sm:$0xf]  ;;  %v4601_v7 = vperm.slane %v14676_v27, 3 }
 0x4a2   :  { %v13929_v9 = vld [vmem:[#allocation8 + $0xbd4] sm:$0xf]  ;;  %v12705_v30 = vld [vmem:[#allocation8 + $0xf50] sm:$0xf] }
 0x4a3   :  { %7723 = vmatpush.bf16.msra.mxu2 %v11398_v62  ;;  %7698 = vmatpush.bf16.msra.mxu0 %v10854_v50  ;;  %v11011_v62 = vld [vmem:[#allocation8 + $0x230] sm:$0xf0]  ;;  %v14053_v50 = vld [vmem:[#allocation8 + $0xfac] sm:$0xf0] }
 0x4a4   :  { %v12259_v10 = vld [vmem:[#allocation8 + $0xbf0] sm:$0xf0]  ;;  %v11014_v17 = vor.u32 %v13617_v57, %v11011_v62  ;;  %v14045_v31 = vld [vmem:[#allocation8 + $0xf6c] sm:$0xf0] }
 0x4a5   :  { %7711 = vmatpush.bf16.msra.mxu1 %v11110_v6  ;;  %7634 = vmatpush.bf16.msra.mxu3 %v11586_v2  ;;  %v13993_v44 = vld [vmem:[#allocation8 + $0xdd4] sm:$0xf]  ;;  %v12006_v6 = vor.u32 %v13865_v48, %v12003_v5  ;;  %v12738_v2 = vor.u32 %v14053_v50, %v12737_v18  ;;  %v12706_v36 = vor.u32 %v14045_v31, %v12705_v30  ;;  %v12673_v4 = vld [vmem:[#allocation8 + $0xf10] sm:$0xf] }
 0x4a6   :  { %v12515_v16 = vld [vmem:[#allocation8 + $0xdf0] sm:$0xf0]  ;;  %v14037_v42 = vld [vmem:[#allocation8 + $0xf2c] sm:$0xf0] }
 0x4a7   :  { %7724 = vmatpush.bf16.msra.mxu2 %v11366_v21  ;;  %7699 = vmatpush.bf16.msra.mxu0 %v10822_v32  ;;  %v12262_v21 = vor.u32 %v13929_v9, %v12259_v10  ;;  %v12518_v22 = vor.u32 %v13993_v44, %v12515_v16  ;;  %v13857_v11 = vld [vmem:[#allocation8 + $0x994] sm:$0xf]  ;;  %v12674_v49 = vor.u32 %v14037_v42, %v12673_v4  ;;  %v12641_v62 = vld [vmem:[#allocation8 + $0xed0] sm:$0xf] }
 0x4a8   :  { %v11971_v23 = vld [vmem:[#allocation8 + $0x9b0] sm:$0xf0]  ;;  %v14029_v38 = vld [vmem:[#allocation8 + $0xeec] sm:$0xf0] }
 0x4a9   :  { %7712 = vmatpush.bf16.msra.mxu1 %v11078_v8  ;;  %7635 = vmatpush.bf16.msra.mxu3 %v11554_v19  ;;  %v13921_v24 = vld [vmem:[#allocation8 + $0xb94] sm:$0xf]  ;;  %v11974_v39 = vor.u32 %v13857_v11, %v11971_v23  ;;  %v12642_v16 = vor.u32 %v14029_v38, %v12641_v62 }
 0x4aa   :  { %v12227_v26 = vld [vmem:[#allocation8 + $0xbb0] sm:$0xf0] }
 0x4ab   :  { %7725 = vmatpush.bf16.msra.mxu2 %v11334_v47  ;;  %7700 = vmatpush.bf16.msra.mxu0 %v10790_v43  ;;  %v13985_v63 = vld [vmem:[#allocation8 + $0xd94] sm:$0xf]  ;;  %v12230_v32 = vor.u32 %v13921_v24, %v12227_v26 }
 0x4ac   :  { %v12483_v28 = vld [vmem:[#allocation8 + $0xdb0] sm:$0xf0] }
 0x4ad   :  { %7713 = vmatpush.bf16.msra.mxu1 %v11046_v13  ;;  %7636 = vmatpush.bf16.msra.mxu3 %v11522_v60  ;;  %v12486_v8 = vor.u32 %v13985_v63, %v12483_v28  ;;  %v13849_v47 = vld [vmem:[#allocation8 + $0x954] sm:$0xf]  ;;  %v7495_v60 = vpop.f32.mrf.mxu0  ;;  %v7521_v63 = vpop.f32.mrf.mxu2 }
 0x4ae   :  { %v11939_v40 = vld [vmem:[#allocation8 + $0x970] sm:$0xf0]  ;;  %v7496_v0 = vadd.f32 %v7495_v60, %v4601_v7 }
 0x4af   :  { %7726 = vmatpush.bf16.msra.mxu2 %v11302_v46  ;;  %7701 = vmatpush.bf16.msra.mxu0 %v10758_v45  ;;  %v13913_v35 = vld [vmem:[#allocation8 + $0xb54] sm:$0xf]  ;;  %v11942_v34 = vor.u32 %v13849_v47, %v11939_v40  ;;  %v12577_v47 = vld [vmem:[#allocation8 + $0xe50] sm:$0xf] }
 0x4b0   :  { %7637 = vmatmul.bf16.vlgmr.msra.gmra.mxu3 %v14578_v59  ;;  %v12195_v19 = vld [vmem:[#allocation8 + $0xb70] sm:$0xf0]  ;;  %v14013_v40 = vld [vmem:[#allocation8 + $0xe6c] sm:$0xf0] }
 0x4b1   :  { %7681 = vmatpush.bf16.msrb.mxu3 %v12770_v33  ;;  %7714 = vmatpush.bf16.msra.mxu1 %v11014_v17  ;;  %v13977_v29 = vld [vmem:[#allocation8 + $0xd54] sm:$0xf]  ;;  %v12198_v43 = vor.u32 %v13913_v35, %v12195_v19  ;;  %v7508_v33 = vpop.f32.mrf.mxu1  ;;  %v14702_v17 = vpop.f32.mrf.mxu3 }
 0x4b2   :  { %7702 = vmatmul.bf16.vlgmr.msra.gmra.mxu0 %v14572_v12  ;;  %v12451_v15 = vld [vmem:[#allocation8 + $0xd70] sm:$0xf0]  ;;  %v7509_v44 = vadd.f32 %v7508_v33, %v7496_v0 }
 0x4b3   :  { %7727 = vmatpush.bf16.msra.mxu2 %v11270_v61  ;;  %7746 = vmatpush.bf16.msrb.mxu0 %v12006_v6  ;;  %v12454_v56 = vor.u32 %v13977_v29, %v12451_v15  ;;  %v13841_v55 = vld [vmem:[#allocation8 + $0x914] sm:$0xf]  ;;  %v12609_v6 = vld [vmem:[#allocation8 + $0xe90] sm:$0xf] }
 0x4b4   :  { %7715 = vmatmul.bf16.vlgmr.msra.gmra.mxu1 %v14574_v14  ;;  %v11907_v13 = vld [vmem:[#allocation8 + $0x930] sm:$0xf0] }
 0x4b5   :  { %7759 = vmatpush.bf16.msrb.mxu1 %v12262_v21  ;;  %7682 = vmatpush.bf16.msrb.mxu3 %v12738_v2  ;;  %v13905_v46 = vld [vmem:[#allocation8 + $0xb14] sm:$0xf]  ;;  %v11910_v48 = vor.u32 %v13841_v55, %v11907_v13  ;;  %v14021_v21 = vld [vmem:[#allocation8 + $0xeac] sm:$0xf0]  ;;  %v7523_v33 = vpop.f32.mrf.mxu2 }
 0x4b6   :  { %7728 = vmatmul.bf16.vlgmr.msra.gmra.mxu2 %v14576_v52  ;;  %v12163_v37 = vld [vmem:[#allocation8 + $0xb30] sm:$0xf0]  ;;  %v12610_v28 = vor.u32 %v14021_v21, %v12609_v6  ;;  %v12545_v13 = vld [vmem:[#allocation8 + $0xe10] sm:$0xf]  ;;  %v13742_v6 = vld [vmem:[#allocation8 + $0x5f4] sm:$0xf0] }
 0x4b7   :  { %7772 = vmatpush.bf16.msrb.mxu2 %v12518_v22  ;;  %7747 = vmatpush.bf16.msrb.mxu0 %v11974_v39  ;;  %v13969_v57 = vld [vmem:[#allocation8 + $0xd14] sm:$0xf]  ;;  %v12166_v27 = vor.u32 %v13905_v46, %v12163_v37  ;;  %v14005_v46 = vld [vmem:[#allocation8 + $0xe2c] sm:$0xf0]  ;;  %v13718_v33 = vld [vmem:[#allocation8 + $0x534] sm:$0xf0] }
 0x4b8   :  { %v12419_v41 = vld [vmem:[#allocation8 + $0xd30] sm:$0xf0] }
 0x4b9   :  { %7760 = vmatpush.bf16.msrb.mxu1 %v12230_v32  ;;  %7683 = vmatpush.bf16.msrb.mxu3 %v12706_v36  ;;  %v12422_v5 = vor.u32 %v13969_v57, %v12419_v41  ;;  %v13833_v9 = vld [vmem:[#allocation8 + $0x8d4] sm:$0xf]  ;;  %v14704_v32 = vadd.f32 %v7521_v63, %v7509_v44  ;;  %v7510_v35 = vpop.f32.mrf.mxu1  ;;  %v7432_v7 = vpop.f32.mrf.mxu3  ;;  %v13614_v44 = vld [vmem:[#allocation8 + $0x1f4] sm:$0xf0] }
 0x4ba   :  { %v11875_v45 = vld [vmem:[#allocation8 + $0x8f0] sm:$0xf0]  ;;  %v13662_v7 = vld [vmem:[#allocation8 + $0x374] sm:$0xf0] }
 0x4bb   :  { %7773 = vmatpush.bf16.msrb.mxu2 %v12486_v8  ;;  %7748 = vmatpush.bf16.msrb.mxu0 %v11942_v34  ;;  %v13897_v10 = vld [vmem:[#allocation8 + $0xad4] sm:$0xf]  ;;  %v11878_v22 = vor.u32 %v13833_v9, %v11875_v45  ;;  %v7497_v8 = vpop.f32.mrf.mxu0  ;;  %v12578_v34 = vor.u32 %v14013_v40, %v12577_v47  ;;  %v11465_v47 = vld [vmem:[#allocation8 + $0x598] sm:$0xf] }
 0x4bc   :  { %v12131_v18 = vld [vmem:[#allocation8 + $0xaf0] sm:$0xf0]  ;;  %v13670_v8 = vld [vmem:[#allocation8 + $0x3b4] sm:$0xf0] }
 0x4bd   :  { %7761 = vmatpush.bf16.msrb.mxu1 %v12198_v43  ;;  %7684 = vmatpush.bf16.msrb.mxu3 %v12674_v49  ;;  %v13961_v50 = vld [vmem:[#allocation8 + $0xcd4] sm:$0xf]  ;;  %v12134_v11 = vor.u32 %v13897_v10, %v12131_v18  ;;  %v10985_v10 = vld [vmem:[#allocation8 + $0x1d8] sm:$0xf] }
 0x4be   :  { %v12387_v61 = vld [vmem:[#allocation8 + $0xcf0] sm:$0xf0]  ;;  %v13734_v40 = vld [vmem:[#allocation8 + $0x5b4] sm:$0xf0] }
 0x4bf   :  { %7774 = vmatpush.bf16.msrb.mxu2 %v12454_v56  ;;  %7749 = vmatpush.bf16.msrb.mxu0 %v11910_v48  ;;  %v12390_v23 = vor.u32 %v13961_v50, %v12387_v61  ;;  %v13825_v24 = vld [vmem:[#allocation8 + $0x894] sm:$0xf]  ;;  %v12546_v48 = vor.u32 %v14005_v46, %v12545_v13  ;;  %v13678_v50 = vld [vmem:[#allocation8 + $0x3f4] sm:$0xf0] }
 0x4c0   :  { %v11843_v2 = vld [vmem:[#allocation8 + $0x8b0] sm:$0xf0]  ;;  %v11497_v61 = vld [vmem:[#allocation8 + $0x5d8] sm:$0xf] }
 0x4c1   :  { %7762 = vmatpush.bf16.msrb.mxu1 %v12166_v27  ;;  %v13889_v26 = vld [vmem:[#allocation8 + $0xa94] sm:$0xf]  ;;  %7685 = vmatpush.bf16.msrb.mxu3 %v12642_v16  ;;  %v11846_v36 = vor.u32 %v13825_v24, %v11843_v2  ;;  %v11241_v16 = vld [vmem:[#allocation8 + $0x3d8] sm:$0xf]  ;;  %v10986_v24 = vor.u32 %v13614_v44, %v10985_v10  ;;  %v7431_v2 = vadd.f32 %v14702_v17, %v14681_v25 }
 0x4c2   :  { %v12099_v30 = vld [vmem:[#allocation8 + $0xab0] sm:$0xf0]  ;;  %v11498_v63 = vor.u32 %v13742_v6, %v11497_v61 }
 0x4c3   :  { %7775 = vmatpush.bf16.msrb.mxu2 %v12422_v5  ;;  %v13953_v31 = vld [vmem:[#allocation8 + $0xc94] sm:$0xf]  ;;  %7750 = vmatpush.bf16.msrb.mxu0 %v11878_v22  ;;  %v12102_v19 = vor.u32 %v13889_v26, %v12099_v30  ;;  %v11242_v26 = vor.u32 %v13678_v50, %v11241_v16  ;;  %v13606_v30 = vld [vmem:[#allocation8 + $0x1b4] sm:$0xf0]  ;;  %v7444_v25 = vadd.f32 %v14690_v1, %v7431_v2  ;;  %v7482_v6 = vpop.f32.mrf.mxu3 }
 0x4c4   :  { %v12355_v39 = vld [vmem:[#allocation8 + $0xcb0] sm:$0xf0]  ;;  %v11113_v50 = vld [vmem:[#allocation8 + $0x2d8] sm:$0xf] }
 0x4c5   :  { %7763 = vmatpush.bf16.msrb.mxu1 %v12134_v11  ;;  %v12358_v29 = vor.u32 %v13953_v31, %v12355_v39  ;;  %v13817_v15 = vld [vmem:[#allocation8 + $0x854] sm:$0xf]  ;;  %7686 = vmatpush.bf16.msrb.mxu3 %v12610_v28  ;;  %v10953_v28 = vld [vmem:[#allocation8 + $0x198] sm:$0xf] }
 0x4c6   :  { %v11811_v4 = vld [vmem:[#allocation8 + $0x870] sm:$0xf0]  ;;  %v11209_v31 = vld [vmem:[#allocation8 + $0x398] sm:$0xf] }
 0x4c7   :  { %7776 = vmatpush.bf16.msrb.mxu2 %v12390_v23  ;;  %v13881_v42 = vld [vmem:[#allocation8 + $0xa54] sm:$0xf]  ;;  %7751 = vmatpush.bf16.msrb.mxu0 %v11846_v36  ;;  %v11814_v49 = vor.u32 %v13817_v15, %v11811_v4  ;;  %v11210_v17 = vor.u32 %v13670_v8, %v11209_v31  ;;  %v10921_v15 = vld [vmem:[#allocation8 + $0x158] sm:$0xf] }
 0x4c8   :  { %v12067_v43 = vld [vmem:[#allocation8 + $0xa70] sm:$0xf0]  ;;  %v13598_v4 = vld [vmem:[#allocation8 + $0x174] sm:$0xf0] }
 0x4c9   :  { %v13945_v56 = vld [vmem:[#allocation8 + $0xc54] sm:$0xf]  ;;  %7764 = vmatpush.bf16.msrb.mxu1 %v12102_v19  ;;  %v12070_v41 = vor.u32 %v13881_v42, %v12067_v43  ;;  %7687 = vmatpush.bf16.msrb.mxu3 %v12578_v34  ;;  %v10954_v19 = vor.u32 %v13606_v30, %v10953_v28  ;;  %v11177_v42 = vld [vmem:[#allocation8 + $0x358] sm:$0xf]  ;;  %v10922_v13 = vor.u32 %v13598_v4, %v10921_v15 }
 0x4ca   :  { %v12323_v55 = vld [vmem:[#allocation8 + $0xc70] sm:$0xf0]  ;;  %v11433_v43 = vld [vmem:[#allocation8 + $0x558] sm:$0xf]  ;;  %v11178_v46 = vor.u32 %v13662_v7, %v11177_v42 }
 0x4cb   :  { %v13801_v37 = vld [vmem:[#allocation8 + $0x7d4] sm:$0xf]  ;;  %7777 = vmatpush.bf16.msrb.mxu2 %v12358_v29  ;;  %v12326_v60 = vor.u32 %v13945_v56, %v12323_v55  ;;  %7752 = vmatpush.bf16.msrb.mxu0 %v11814_v49  ;;  %v11466_v29 = vor.u32 %v13734_v40, %v11465_v47  ;;  %v13726_v56 = vld [vmem:[#allocation8 + $0x574] sm:$0xf0] }
 0x4cc   :  { %v11747_v57 = vld [vmem:[#allocation8 + $0x7f0] sm:$0xf0]  ;;  %v11434_v49 = vor.u32 %v13726_v56, %v11433_v43  ;;  %v13574_v31 = vld [vmem:[#allocation8 + $0xb4] sm:$0xf0] }
 0x4cd   :  { %v13809_v62 = vld [vmem:[#allocation8 + $0x814] sm:$0xf]  ;;  %v11750_v45 = vor.u32 %v13801_v37, %v11747_v57  ;;  %7765 = vmatpush.bf16.msrb.mxu1 %v12070_v41  ;;  %7688 = vmatpush.bf16.msrb.mxu3 %v12546_v48  ;;  %v10889_v37 = vld [vmem:[#allocation8 + $0x118] sm:$0xf]  ;;  %v14714_v48 = vpop.f32.mrf.mxu0 }
 0x4ce   :  { %v11779_v38 = vld [vmem:[#allocation8 + $0x830] sm:$0xf0]  ;;  %v13590_v57 = vld [vmem:[#allocation8 + $0x134] sm:$0xf0] }
 0x4cf   :  { %v13873_v0 = vld [vmem:[#allocation8 + $0xa14] sm:$0xf]  ;;  %v11782_v18 = vor.u32 %v13809_v62, %v11779_v38  ;;  %7778 = vmatpush.bf16.msrb.mxu2 %v12326_v60  ;;  %v11145_v41 = vld [vmem:[#allocation8 + $0x318] sm:$0xf]  ;;  %v7457_v60 = vadd.f32 %v14692_v58, %v7444_v25 }
 0x4d0   :  { %v12035_v27 = vld [vmem:[#allocation8 + $0xa30] sm:$0xf0]  ;;  %7689 = vmatmul.bf16.vlgmr.msrb.gmra.mxu3 %v14634_v54  ;;  %v13654_v38 = vld [vmem:[#allocation8 + $0x334] sm:$0xf0]  ;;  %v14719_v8 = vpop.f32.mrf.mxu2 }
 0x4d1   :  { %v13937_v5 = vld [vmem:[#allocation8 + $0xc14] sm:$0xf]  ;;  %v12038_v21 = vor.u32 %v13873_v0, %v12035_v27  ;;  %7733 = vmatpush.bf16.msra.mxu3 %v11750_v45  ;;  %7753 = vmatpush.bf16.msrb.mxu0 %v11782_v18  ;;  %v11401_v0 = vld [vmem:[#allocation8 + $0x518] sm:$0xf]  ;;  %v10890_v45 = vor.u32 %v13590_v57, %v10889_v37  ;;  %v11146_v10 = vor.u32 %v13654_v38, %v11145_v41 }
 0x4d2   :  { %v12291_v9 = vld [vmem:[#allocation8 + $0xc30] sm:$0xf0]  ;;  %v11402_v44 = vor.u32 %v13718_v33, %v11401_v0  ;;  %v7470_v16 = vadd.f32 %v14695_v3, %v7457_v60  ;;  %v10857_v58 = vld [vmem:[#allocation8 + $0xd8] sm:$0xf] }
 0x4d3   :  { %v13793_v22 = vld [vmem:[#allocation8 + $0x794] sm:$0xf]  ;;  %v12294_v23 = vor.u32 %v13937_v5, %v12291_v9  ;;  %7766 = vmatpush.bf16.msrb.mxu1 %v12038_v21  ;;  %v14716_v9 = vpop.f32.mrf.mxu1  ;;  %v13582_v18 = vld [vmem:[#allocation8 + $0xf4] sm:$0xf0] }
 0x4d4   :  { %v11715_v11 = vld [vmem:[#allocation8 + $0x7b0] sm:$0xf0]  ;;  %7754 = vmatmul.bf16.vlgmr.msrb.gmra.mxu0 %v14604_v51  ;;  %v13646_v21 = vld [vmem:[#allocation8 + $0x2f4] sm:$0xf0] }
 0x4d5   :  { %v11718_v39 = vor.u32 %v13793_v22, %v11715_v11  ;;  %v13785_v35 = vld [vmem:[#allocation8 + $0x754] sm:$0xf]  ;;  %7779 = vmatpush.bf16.msrb.mxu2 %v12294_v23  ;;  %7798 = vmatpush.bf16.msra.mxu0 %v10986_v24  ;;  %v11369_v22 = vld [vmem:[#allocation8 + $0x4d8] sm:$0xf]  ;;  %v7483_v23 = vadd.f32 %v7482_v6, %v7470_v16  ;;  %v11114_v30 = vor.u32 %v13646_v21, %v11113_v50 }
 0x4d6   :  { %v11683_v36 = vld [vmem:[#allocation8 + $0x770] sm:$0xf0]  ;;  %7767 = vmatmul.bf16.vlgmr.msrb.gmra.mxu1 %v14606_v53  ;;  %v13710_v11 = vld [vmem:[#allocation8 + $0x4f4] sm:$0xf0] }
 0x4d7   :  { %7811 = vmatpush.bf16.msra.mxu1 %v11242_v26  ;;  %7734 = vmatpush.bf16.msra.mxu3 %v11718_v39  ;;  %v11686_v34 = vor.u32 %v13785_v35, %v11683_v36  ;;  %v13777_v55 = vld [vmem:[#allocation8 + $0x714] sm:$0xf]  ;;  %v10858_v26 = vor.u32 %v13582_v18, %v10857_v58  ;;  %v8008_v28 = vmax.f32 %v7483_v23, 0.0  ;;  %v11370_v3 = vor.u32 %v13710_v11, %v11369_v22  ;;  %v11081_v39 = vld [vmem:[#allocation8 + $0x298] sm:$0xf] }
 0x4d8   :  { %7780 = vmatmul.bf16.vlgmr.msrb.gmra.mxu2 %v14612_v20  ;;  %v11651_v1 = vld [vmem:[#allocation8 + $0x730] sm:$0xf0]  ;;  %v13638_v40 = vld [vmem:[#allocation8 + $0x2b4] sm:$0xf0] }
 0x4d9   :  { %7824 = vmatpush.bf16.msra.mxu2 %v11498_v63  ;;  %7799 = vmatpush.bf16.msra.mxu0 %v10954_v19  ;;  %v11654_v62 = vor.u32 %v13777_v55, %v11651_v1  ;;  %v13769_v27 = vld [vmem:[#allocation8 + $0x6d4] sm:$0xf]  ;;  %v10825_v63 = vld [vmem:[#allocation8 + $0x98] sm:$0xf]  ;;  %8016 = vst [vmem:[#allocation14 + $0x10] sm:$0xff] %v8008_v28  ;;  %v7549_v19 = vpop.f32.mrf.mxu0  ;;  %v11082_v4 = vor.u32 %v13638_v40, %v11081_v39  ;;  %v7484_v55 = vpop.f32.mrf.mxu3 }
 0x4da   :  { %v11619_v5 = vld [vmem:[#allocation8 + $0x6f0] sm:$0xf0]  ;;  %v11337_v35 = vld [vmem:[#allocation8 + $0x498] sm:$0xf]  ;;  %v10826_v15 = vor.u32 %v13574_v31, %v10825_v63 }
 0x4db   :  { %7812 = vmatpush.bf16.msra.mxu1 %v11210_v17  ;;  %7735 = vmatpush.bf16.msra.mxu3 %v11686_v34  ;;  %v11622_v61 = vor.u32 %v13769_v27, %v11619_v5  ;;  %v13761_v24 = vld [vmem:[#allocation8 + $0x694] sm:$0xf]  ;;  %v13702_v36 = vld [vmem:[#allocation8 + $0x4b4] sm:$0xf0]  ;;  %v7575_v5 = vpop.f32.mrf.mxu2 }
 0x4dc   :  { %v11587_v2 = vld [vmem:[#allocation8 + $0x6b0] sm:$0xf0]  ;;  %v11338_v42 = vor.u32 %v13702_v36, %v11337_v35  ;;  %v10793_v34 = vld [vmem:[#allocation8 + $0x58] sm:$0xf] }
 0x4dd   :  { %7825 = vmatpush.bf16.msra.mxu2 %v11466_v29  ;;  %7800 = vmatpush.bf16.msra.mxu0 %v10922_v13  ;;  %v11590_v47 = vor.u32 %v13761_v24, %v11587_v2  ;;  %v13753_v25 = vld [vmem:[#allocation8 + $0x654] sm:$0xf]  ;;  %v7562_v29 = vpop.f32.mrf.mxu1  ;;  %v13566_v7 = vld [vmem:[#allocation8 + $0x74] sm:$0xf0] }
 0x4de   :  { %v11555_v17 = vld [vmem:[#allocation8 + $0x670] sm:$0xf0]  ;;  %v11049_v43 = vld [vmem:[#allocation8 + $0x258] sm:$0xf]  ;;  %v10794_v57 = vor.u32 %v13566_v7, %v10793_v34 }
 0x4df   :  { %7813 = vmatpush.bf16.msra.mxu1 %v11178_v46  ;;  %7736 = vmatpush.bf16.msra.mxu3 %v11654_v62  ;;  %v11558_v56 = vor.u32 %v13753_v25, %v11555_v17  ;;  %v13630_v1 = vld [vmem:[#allocation8 + $0x274] sm:$0xf0]  ;;  %v11523_v37 = vld [vmem:[#allocation8 + $0x630] sm:$0xf0] }
 0x4e0   :  { %v11305_v13 = vld [vmem:[#allocation8 + $0x458] sm:$0xf]  ;;  %v14057_v41 = vld [vmem:[#allocation8 + $0xfd4] sm:$0xf]  ;;  %v11050_v62 = vor.u32 %v13630_v1, %v11049_v43 }
 0x4e1   :  { %7826 = vmatpush.bf16.msra.mxu2 %v11434_v49  ;;  %7801 = vmatpush.bf16.msra.mxu0 %v10890_v45  ;;  %v13694_v46 = vld [vmem:[#allocation8 + $0x474] sm:$0xf0]  ;;  %v13745_v49 = vld [vmem:[#allocation8 + $0x614] sm:$0xf] }
 0x4e2   :  { %v12771_v60 = vld [vmem:[#allocation8 + $0xff0] sm:$0xf0]  ;;  %v11306_v38 = vor.u32 %v13694_v46, %v11305_v13  ;;  %v10761_v0 = vld [vmem:[#allocation8 + $0x18] sm:$0xf]  ;;  %v11526_v45 = vor.u32 %v13745_v49, %v11523_v37  ;;  %v14725_v49 = vld [vmem:[#allocation10] sm:$0xff] }
 0x4e3   :  { %7814 = vmatpush.bf16.msra.mxu1 %v11146_v10  ;;  %7737 = vmatpush.bf16.msra.mxu3 %v11622_v61  ;;  %v13558_v33 = vld [vmem:[#allocation8 + $0x34] sm:$0xf0]  ;;  %v12774_v58 = vor.u32 %v14057_v41, %v12771_v60  ;;  %v14049_v24 = vld [vmem:[#allocation8 + $0xf94] sm:$0xf]  ;;  %v4602_v37 = vperm.slane %v14725_v49, 4 }
 0x4e4   :  { %v11017_v27 = vld [vmem:[#allocation8 + $0x218] sm:$0xf]  ;;  %v10762_v6 = vor.u32 %v13558_v33, %v10761_v0  ;;  %v12739_v2 = vld [vmem:[#allocation8 + $0xfb0] sm:$0xf0] }
 0x4e5   :  { %7827 = vmatpush.bf16.msra.mxu2 %v11402_v44  ;;  %7802 = vmatpush.bf16.msra.mxu0 %v10858_v26  ;;  %v13622_v10 = vld [vmem:[#allocation8 + $0x234] sm:$0xf0]  ;;  %v14041_v19 = vld [vmem:[#allocation8 + $0xf54] sm:$0xf] }
 0x4e6   :  { %v11273_v44 = vld [vmem:[#allocation8 + $0x418] sm:$0xf]  ;;  %v11018_v23 = vor.u32 %v13622_v10, %v11017_v27  ;;  %v12707_v25 = vld [vmem:[#allocation8 + $0xf70] sm:$0xf0] }
 0x4e7   :  { %7815 = vmatpush.bf16.msra.mxu1 %v11114_v30  ;;  %7738 = vmatpush.bf16.msra.mxu3 %v11590_v47  ;;  %v13686_v16 = vld [vmem:[#allocation8 + $0x434] sm:$0xf0]  ;;  %v12742_v47 = vor.u32 %v14049_v24, %v12739_v2  ;;  %v12710_v7 = vor.u32 %v14041_v19, %v12707_v25  ;;  %v14033_v1 = vld [vmem:[#allocation8 + $0xf14] sm:$0xf] }
 0x4e8   :  { %v12009_v18 = vld [vmem:[#allocation8 + $0x9d8] sm:$0xf]  ;;  %v11274_v26 = vor.u32 %v13686_v16, %v11273_v44  ;;  %v12675_v13 = vld [vmem:[#allocation8 + $0xf30] sm:$0xf0] }
 0x4e9   :  { %7828 = vmatpush.bf16.msra.mxu2 %v11370_v3  ;;  %7803 = vmatpush.bf16.msra.mxu0 %v10826_v15  ;;  %v13870_v50 = vld [vmem:[#allocation8 + $0x9f4] sm:$0xf0]  ;;  %v12678_v0 = vor.u32 %v14033_v1, %v12675_v13  ;;  %v14025_v10 = vld [vmem:[#allocation8 + $0xed4] sm:$0xf] }
 0x4ea   :  { %v12265_v61 = vld [vmem:[#allocation8 + $0xbd8] sm:$0xf]  ;;  %v12010_v63 = vor.u32 %v13870_v50, %v12009_v18  ;;  %v12643_v44 = vld [vmem:[#allocation8 + $0xef0] sm:$0xf0]  ;;  %v14728_v24 = vpop.f32.mrf.mxu3 }
 0x4eb   :  { %7816 = vmatpush.bf16.msra.mxu1 %v11082_v4  ;;  %7739 = vmatpush.bf16.msra.mxu3 %v11558_v56  ;;  %v13934_v21 = vld [vmem:[#allocation8 + $0xbf4] sm:$0xf0] }
 0x4ec   :  { %v12521_v22 = vld [vmem:[#allocation8 + $0xdd8] sm:$0xf]  ;;  %v12266_v28 = vor.u32 %v13934_v21, %v12265_v61 }
 0x4ed   :  { %7829 = vmatpush.bf16.msra.mxu2 %v11338_v42  ;;  %7804 = vmatpush.bf16.msra.mxu0 %v10794_v57  ;;  %v13998_v11 = vld [vmem:[#allocation8 + $0xdf4] sm:$0xf0] }
 0x4ee   :  { %v12522_v30 = vor.u32 %v13998_v11, %v12521_v22  ;;  %v11977_v3 = vld [vmem:[#allocation8 + $0x998] sm:$0xf] }
 0x4ef   :  { %7817 = vmatpush.bf16.msra.mxu1 %v11050_v62  ;;  %7740 = vmatpush.bf16.msra.mxu3 %v11526_v45  ;;  %v13862_v31 = vld [vmem:[#allocation8 + $0x9b4] sm:$0xf0]  ;;  %v7599_v45 = vpop.f32.mrf.mxu0 }
 0x4f0   :  { %v12233_v39 = vld [vmem:[#allocation8 + $0xb98] sm:$0xf]  ;;  %v11978_v17 = vor.u32 %v13862_v31, %v11977_v3  ;;  %v7600_v16 = vadd.f32 %v7599_v45, %v4602_v37 }
 0x4f1   :  { %7830 = vmatpush.bf16.msra.mxu2 %v11306_v38  ;;  %7805 = vmatpush.bf16.msra.mxu0 %v10762_v6  ;;  %v13926_v40 = vld [vmem:[#allocation8 + $0xbb4] sm:$0xf0] }
 0x4f2   :  { %v12489_v35 = vld [vmem:[#allocation8 + $0xd98] sm:$0xf]  ;;  %7741 = vmatmul.bf16.vlgmr.msra.gmra.mxu3 %v14578_v59  ;;  %v12234_v29 = vor.u32 %v13926_v40, %v12233_v39 }
 0x4f3   :  { %7785 = vmatpush.bf16.msrb.mxu3 %v12774_v58  ;;  %v13990_v36 = vld [vmem:[#allocation8 + $0xdb4] sm:$0xf0]  ;;  %7818 = vmatpush.bf16.msra.mxu1 %v11018_v23  ;;  %v7612_v58 = vpop.f32.mrf.mxu1  ;;  %v12646_v23 = vor.u32 %v14025_v10, %v12643_v44 }
 0x4f4   :  { %v12490_v15 = vor.u32 %v13990_v36, %v12489_v35  ;;  %v11945_v4 = vld [vmem:[#allocation8 + $0x958] sm:$0xf]  ;;  %7806 = vmatmul.bf16.vlgmr.msra.gmra.mxu0 %v14572_v12  ;;  %v7613_v11 = vadd.f32 %v7612_v58, %v7600_v16  ;;  %v7625_v36 = vpop.f32.mrf.mxu2 }
 0x4f5   :  { %7831 = vmatpush.bf16.msra.mxu2 %v11274_v26  ;;  %7850 = vmatpush.bf16.msrb.mxu0 %v12010_v63  ;;  %v13854_v42 = vld [vmem:[#allocation8 + $0x974] sm:$0xf0] }
 0x4f6   :  { %v12201_v34 = vld [vmem:[#allocation8 + $0xb58] sm:$0xf]  ;;  %7819 = vmatmul.bf16.vlgmr.msra.gmra.mxu1 %v14574_v14  ;;  %v11946_v46 = vor.u32 %v13854_v42, %v11945_v4  ;;  %v14009_v42 = vld [vmem:[#allocation8 + $0xe54] sm:$0xf] }
 0x4f7   :  { %7863 = vmatpush.bf16.msrb.mxu1 %v12266_v28  ;;  %7786 = vmatpush.bf16.msrb.mxu3 %v12742_v47  ;;  %v13918_v43 = vld [vmem:[#allocation8 + $0xb74] sm:$0xf0]  ;;  %v14017_v28 = vld [vmem:[#allocation8 + $0xe94] sm:$0xf]  ;;  %v7601_v4 = vpop.f32.mrf.mxu0 }
 0x4f8   :  { %v12457_v56 = vld [vmem:[#allocation8 + $0xd58] sm:$0xf]  ;;  %7832 = vmatmul.bf16.vlgmr.msra.gmra.mxu2 %v14576_v52  ;;  %v12202_v57 = vor.u32 %v13918_v43, %v12201_v34  ;;  %v12579_v34 = vld [vmem:[#allocation8 + $0xe70] sm:$0xf0] }
 0x4f9   :  { %7876 = vmatpush.bf16.msrb.mxu2 %v12522_v30  ;;  %v13982_v55 = vld [vmem:[#allocation8 + $0xd74] sm:$0xf0]  ;;  %7851 = vmatpush.bf16.msrb.mxu0 %v11978_v17  ;;  %v12611_v30 = vld [vmem:[#allocation8 + $0xeb0] sm:$0xf0]  ;;  %v12582_v37 = vor.u32 %v14009_v42, %v12579_v34  ;;  %v11211_v42 = vld [vmem:[#allocation8 + $0x3b8] sm:$0xf0] }
 0x4fa   :  { %v12458_v41 = vor.u32 %v13982_v55, %v12457_v56  ;;  %v11913_v60 = vld [vmem:[#allocation8 + $0x918] sm:$0xf]  ;;  %v12614_v19 = vor.u32 %v14017_v28, %v12611_v30  ;;  %v13738_v28 = vld [vmem:[#allocation8 + $0x5dc] sm:$0xf] }
 0x4fb   :  { %7864 = vmatpush.bf16.msrb.mxu1 %v12234_v29  ;;  %v13846_v62 = vld [vmem:[#allocation8 + $0x934] sm:$0xf0]  ;;  %7787 = vmatpush.bf16.msrb.mxu3 %v12710_v7  ;;  %v7614_v7 = vpop.f32.mrf.mxu1  ;;  %v11499_v30 = vld [vmem:[#allocation8 + $0x5f8] sm:$0xf0] }
 0x4fc   :  { %v12169_v38 = vld [vmem:[#allocation8 + $0xb18] sm:$0xf]  ;;  %v11914_v18 = vor.u32 %v13846_v62, %v11913_v60  ;;  %v13730_v34 = vld [vmem:[#allocation8 + $0x59c] sm:$0xf] }
 0x4fd   :  { %7877 = vmatpush.bf16.msrb.mxu2 %v12490_v15  ;;  %v13910_v33 = vld [vmem:[#allocation8 + $0xb34] sm:$0xf0]  ;;  %7852 = vmatpush.bf16.msrb.mxu0 %v11946_v46  ;;  %v14730_v15 = vadd.f32 %v7625_v36, %v7613_v11  ;;  %v13610_v11 = vld [vmem:[#allocation8 + $0x1dc] sm:$0xf] }
 0x4fe   :  { %v12425_v27 = vld [vmem:[#allocation8 + $0xd18] sm:$0xf]  ;;  %v12170_v50 = vor.u32 %v13910_v33, %v12169_v38  ;;  %v14001_v38 = vld [vmem:[#allocation8 + $0xe14] sm:$0xf]  ;;  %v11467_v7 = vld [vmem:[#allocation8 + $0x5b8] sm:$0xf0] }
 0x4ff   :  { %v13974_v5 = vld [vmem:[#allocation8 + $0xd34] sm:$0xf0]  ;;  %7865 = vmatpush.bf16.msrb.mxu1 %v12202_v57  ;;  %7788 = vmatpush.bf16.msrb.mxu3 %v12678_v0  ;;  %v7536_v57 = vpop.f32.mrf.mxu3  ;;  %v12547_v0 = vld [vmem:[#allocation8 + $0xe30] sm:$0xf0] }
 0x500   :  { %v12426_v61 = vor.u32 %v13974_v5, %v12425_v27  ;;  %v11881_v6 = vld [vmem:[#allocation8 + $0x8d8] sm:$0xf] }
 0x501   :  { %7878 = vmatpush.bf16.msrb.mxu2 %v12458_v41  ;;  %v13838_v21 = vld [vmem:[#allocation8 + $0x8f4] sm:$0xf0]  ;;  %7853 = vmatpush.bf16.msrb.mxu0 %v11914_v18  ;;  %v7627_v18 = vpop.f32.mrf.mxu2 }
 0x502   :  { %v12137_v22 = vld [vmem:[#allocation8 + $0xad8] sm:$0xf]  ;;  %v11882_v3 = vor.u32 %v13838_v21, %v11881_v6  ;;  %v13714_v18 = vld [vmem:[#allocation8 + $0x51c] sm:$0xf] }
 0x503   :  { %v13902_v2 = vld [vmem:[#allocation8 + $0xaf4] sm:$0xf0]  ;;  %7866 = vmatpush.bf16.msrb.mxu1 %v12170_v50  ;;  %7789 = vmatpush.bf16.msrb.mxu3 %v12646_v23  ;;  %v12550_v50 = vor.u32 %v14001_v38, %v12547_v0  ;;  %v10987_v23 = vld [vmem:[#allocation8 + $0x1f8] sm:$0xf0] }
 0x504   :  { %v12393_v26 = vld [vmem:[#allocation8 + $0xcd8] sm:$0xf]  ;;  %v12138_v31 = vor.u32 %v13902_v2, %v12137_v22  ;;  %v13674_v2 = vld [vmem:[#allocation8 + $0x3dc] sm:$0xf] }
 0x505   :  { %v13966_v63 = vld [vmem:[#allocation8 + $0xcf4] sm:$0xf0]  ;;  %7879 = vmatpush.bf16.msrb.mxu2 %v12426_v61  ;;  %7854 = vmatpush.bf16.msrb.mxu0 %v11882_v3 }
 0x506   :  { %v12394_v39 = vor.u32 %v13966_v63, %v12393_v26  ;;  %v11849_v47 = vld [vmem:[#allocation8 + $0x898] sm:$0xf]  ;;  %v11243_v63 = vld [vmem:[#allocation8 + $0x3f8] sm:$0xf0] }
 0x507   :  { %v13830_v40 = vld [vmem:[#allocation8 + $0x8b4] sm:$0xf0]  ;;  %7867 = vmatpush.bf16.msrb.mxu1 %v12138_v31  ;;  %7790 = vmatpush.bf16.msrb.mxu3 %v12614_v19  ;;  %v11246_v36 = vor.u32 %v13674_v2, %v11243_v63  ;;  %v11502_v19 = vor.u32 %v13738_v28, %v11499_v30  ;;  %v10859_v63 = vld [vmem:[#allocation8 + $0xf8] sm:$0xf0] }
 0x508   :  { %v12105_v35 = vld [vmem:[#allocation8 + $0xa98] sm:$0xf]  ;;  %v11850_v43 = vor.u32 %v13830_v40, %v11849_v47  ;;  %v10990_v40 = vor.u32 %v13610_v11, %v10987_v23  ;;  %v13642_v28 = vld [vmem:[#allocation8 + $0x2dc] sm:$0xf] }
 0x509   :  { %v13894_v25 = vld [vmem:[#allocation8 + $0xab4] sm:$0xf0]  ;;  %7880 = vmatpush.bf16.msrb.mxu2 %v12394_v39 }
 0x50a   :  { %v12361_v17 = vld [vmem:[#allocation8 + $0xc98] sm:$0xf]  ;;  %v12106_v56 = vor.u32 %v13894_v25, %v12105_v35  ;;  %7855 = vmatpush.bf16.msrb.mxu0 %v11850_v43  ;;  %v7535_v35 = vadd.f32 %v14728_v24, %v14704_v32  ;;  %v13602_v25 = vld [vmem:[#allocation8 + $0x19c] sm:$0xf] }
 0x50b   :  { %v13958_v29 = vld [vmem:[#allocation8 + $0xcb4] sm:$0xf0]  ;;  %7791 = vmatpush.bf16.msrb.mxu3 %v12582_v37  ;;  %v13658_v37 = vld [vmem:[#allocation8 + $0x35c] sm:$0xf] }
 0x50c   :  { %v12362_v55 = vor.u32 %v13958_v29, %v12361_v17  ;;  %v11817_v1 = vld [vmem:[#allocation8 + $0x858] sm:$0xf]  ;;  %7868 = vmatpush.bf16.msrb.mxu1 %v12106_v56  ;;  %v10955_v17 = vld [vmem:[#allocation8 + $0x1b8] sm:$0xf0]  ;;  %v7548_v32 = vadd.f32 %v14714_v48, %v7535_v35 }
 0x50d   :  { %v13822_v13 = vld [vmem:[#allocation8 + $0x874] sm:$0xf0]  ;;  %v13666_v29 = vld [vmem:[#allocation8 + $0x39c] sm:$0xf] }
 0x50e   :  { %v12073_v46 = vld [vmem:[#allocation8 + $0xa58] sm:$0xf]  ;;  %v11818_v33 = vor.u32 %v13822_v13, %v11817_v1  ;;  %7881 = vmatpush.bf16.msrb.mxu2 %v12362_v55  ;;  %v10958_v55 = vor.u32 %v13602_v25, %v10955_v17  ;;  %v11214_v24 = vor.u32 %v13666_v29, %v11211_v42  ;;  %v11470_v1 = vor.u32 %v13730_v34, %v11467_v7  ;;  %v13594_v13 = vld [vmem:[#allocation8 + $0x15c] sm:$0xf] }
 0x50f   :  { %v13886_v41 = vld [vmem:[#allocation8 + $0xa74] sm:$0xf0]  ;;  %7792 = vmatpush.bf16.msrb.mxu3 %v12550_v50  ;;  %v11403_v50 = vld [vmem:[#allocation8 + $0x538] sm:$0xf0] }
 0x510   :  { %v12329_v60 = vld [vmem:[#allocation8 + $0xc58] sm:$0xf]  ;;  %v12074_v45 = vor.u32 %v13886_v41, %v12073_v46  ;;  %7856 = vmatpush.bf16.msrb.mxu0 %v11818_v33  ;;  %v10923_v46 = vld [vmem:[#allocation8 + $0x178] sm:$0xf0]  ;;  %v11406_v2 = vor.u32 %v13714_v18, %v11403_v50 }
 0x511   :  { %v13950_v62 = vld [vmem:[#allocation8 + $0xc74] sm:$0xf0]  ;;  %v11179_v41 = vld [vmem:[#allocation8 + $0x378] sm:$0xf0]  ;;  %v10926_v0 = vor.u32 %v13594_v13, %v10923_v46 }
 0x512   :  { %v11753_v27 = vld [vmem:[#allocation8 + $0x7d8] sm:$0xf]  ;;  %v12330_v10 = vor.u32 %v13950_v62, %v12329_v60  ;;  %7869 = vmatpush.bf16.msrb.mxu1 %v12074_v45  ;;  %7793 = vmatmul.bf16.vlgmr.msrb.gmra.mxu3 %v14634_v54  ;;  %v13722_v60 = vld [vmem:[#allocation8 + $0x55c] sm:$0xf]  ;;  %v11182_v33 = vor.u32 %v13658_v37, %v11179_v41 }
 0x513   :  { %v13806_v5 = vld [vmem:[#allocation8 + $0x7f4] sm:$0xf0]  ;;  %v11435_v62 = vld [vmem:[#allocation8 + $0x578] sm:$0xf0] }
 0x514   :  { %v11785_v44 = vld [vmem:[#allocation8 + $0x818] sm:$0xf]  ;;  %v11754_v22 = vor.u32 %v13806_v5, %v11753_v27  ;;  %7882 = vmatpush.bf16.msrb.mxu2 %v12330_v10  ;;  %v11438_v27 = vor.u32 %v13722_v60, %v11435_v62  ;;  %v13586_v5 = vld [vmem:[#allocation8 + $0x11c] sm:$0xf] }
 0x515   :  { %v13814_v16 = vld [vmem:[#allocation8 + $0x834] sm:$0xf0]  ;;  %v10891_v45 = vld [vmem:[#allocation8 + $0x138] sm:$0xf0] }
 0x516   :  { %v12041_v58 = vld [vmem:[#allocation8 + $0xa18] sm:$0xf]  ;;  %v11786_v26 = vor.u32 %v13814_v16, %v11785_v44  ;;  %7837 = vmatpush.bf16.msra.mxu3 %v11754_v22  ;;  %v13650_v10 = vld [vmem:[#allocation8 + $0x31c] sm:$0xf]  ;;  %v7561_v44 = vadd.f32 %v14716_v9, %v7548_v32  ;;  %v14742_v22 = vpop.f32.mrf.mxu1  ;;  %v10894_v11 = vor.u32 %v13586_v5, %v10891_v45 }
 0x517   :  { %v13878_v61 = vld [vmem:[#allocation8 + $0xa34] sm:$0xf0]  ;;  %v13578_v9 = vld [vmem:[#allocation8 + $0xdc] sm:$0xf] }
 0x518   :  { %v12297_v6 = vld [vmem:[#allocation8 + $0xc18] sm:$0xf]  ;;  %v12042_v3 = vor.u32 %v13878_v61, %v12041_v58  ;;  %7857 = vmatpush.bf16.msrb.mxu0 %v11786_v26  ;;  %v11147_v58 = vld [vmem:[#allocation8 + $0x338] sm:$0xf0]  ;;  %v14740_v61 = vpop.f32.mrf.mxu0  ;;  %v7574_v26 = vadd.f32 %v14719_v8, %v7561_v44 }
 0x519   :  { %v13942_v21 = vld [vmem:[#allocation8 + $0xc34] sm:$0xf0]  ;;  %v11150_v23 = vor.u32 %v13650_v10, %v11147_v58  ;;  %v13570_v25 = vld [vmem:[#allocation8 + $0x9c] sm:$0xf]  ;;  %v14747_v34 = vpop.f32.mrf.mxu2 }
 0x51a   :  { %v11721_v31 = vld [vmem:[#allocation8 + $0x798] sm:$0xf]  ;;  %v12298_v47 = vor.u32 %v13942_v21, %v12297_v6  ;;  %7870 = vmatpush.bf16.msrb.mxu1 %v12042_v3  ;;  %v7586_v3 = vpop.f32.mrf.mxu3  ;;  %v13634_v42 = vld [vmem:[#allocation8 + $0x29c] sm:$0xf] }
 0x51b   :  { %v13798_v39 = vld [vmem:[#allocation8 + $0x7b4] sm:$0xf0]  ;;  %7858 = vmatmul.bf16.vlgmr.msrb.gmra.mxu0 %v14604_v51  ;;  %v13562_v41 = vld [vmem:[#allocation8 + $0x5c] sm:$0xf] }
 0x51c   :  { %v11722_v4 = vor.u32 %v13798_v39, %v11721_v31  ;;  %v11689_v43 = vld [vmem:[#allocation8 + $0x758] sm:$0xf]  ;;  %7883 = vmatpush.bf16.msrb.mxu2 %v12298_v47  ;;  %7902 = vmatpush.bf16.msra.mxu0 %v10990_v40  ;;  %v11115_v31 = vld [vmem:[#allocation8 + $0x2f8] sm:$0xf0]  ;;  %v7587_v40 = vadd.f32 %v7586_v3, %v7574_v26 }
 0x51d   :  { %v13790_v56 = vld [vmem:[#allocation8 + $0x774] sm:$0xf0]  ;;  %7871 = vmatmul.bf16.vlgmr.msrb.gmra.mxu1 %v14606_v53  ;;  %v13706_v39 = vld [vmem:[#allocation8 + $0x4dc] sm:$0xf]  ;;  %v11118_v8 = vor.u32 %v13642_v28, %v11115_v31 }
 0x51e   :  { %7915 = vmatpush.bf16.msra.mxu1 %v11246_v36  ;;  %7838 = vmatpush.bf16.msra.mxu3 %v11722_v4  ;;  %v11690_v57 = vor.u32 %v13790_v56, %v11689_v43  ;;  %v11657_v38 = vld [vmem:[#allocation8 + $0x718] sm:$0xf]  ;;  %v11371_v47 = vld [vmem:[#allocation8 + $0x4f8] sm:$0xf0]  ;;  %v14745_v17 = vmax.f32 %v7587_v40, 0.0  ;;  %v7666_v13 = vpop.f32.mrf.mxu1 }
 0x51f   :  { %7884 = vmatmul.bf16.vlgmr.msrb.gmra.mxu2 %v14612_v20  ;;  %v13782_v48 = vld [vmem:[#allocation8 + $0x734] sm:$0xf0]  ;;  %v11374_v29 = vor.u32 %v13706_v39, %v11371_v47  ;;  %v10827_v4 = vld [vmem:[#allocation8 + $0xb8] sm:$0xf0] }
 0x520   :  { %7928 = vmatpush.bf16.msra.mxu2 %v11502_v19  ;;  %7903 = vmatpush.bf16.msra.mxu0 %v10958_v55  ;;  %v11658_v16 = vor.u32 %v13782_v48, %v11657_v38  ;;  %v11625_v6 = vld [vmem:[#allocation8 + $0x6d8] sm:$0xf]  ;;  %v10862_v19 = vor.u32 %v13578_v9, %v10859_v63  ;;  %v11083_v43 = vld [vmem:[#allocation8 + $0x2b8] sm:$0xf0]  ;;  %8017 = vst [vmem:[#allocation14 + $0x18] sm:$0xff] %v14745_v17  ;;  %v7653_v32 = vpop.f32.mrf.mxu0 }
 0x521   :  { %v13774_v21 = vld [vmem:[#allocation8 + $0x6f4] sm:$0xf0]  ;;  %v13698_v56 = vld [vmem:[#allocation8 + $0x49c] sm:$0xf]  ;;  %v10830_v46 = vor.u32 %v13570_v25, %v10827_v4  ;;  %v11086_v37 = vor.u32 %v13634_v42, %v11083_v43 }
 0x522   :  { %7916 = vmatpush.bf16.msra.mxu1 %v11214_v24  ;;  %7839 = vmatpush.bf16.msra.mxu3 %v11690_v57  ;;  %v11626_v30 = vor.u32 %v13774_v21, %v11625_v6  ;;  %v11593_v35 = vld [vmem:[#allocation8 + $0x698] sm:$0xf]  ;;  %v11339_v55 = vld [vmem:[#allocation8 + $0x4b8] sm:$0xf0]  ;;  %v7588_v48 = vpop.f32.mrf.mxu3 }
 0x523   :  { %v13766_v36 = vld [vmem:[#allocation8 + $0x6b4] sm:$0xf0]  ;;  %v11342_v57 = vor.u32 %v13698_v56, %v11339_v55  ;;  %v10795_v60 = vld [vmem:[#allocation8 + $0x78] sm:$0xf0] }
 0x524   :  { %7929 = vmatpush.bf16.msra.mxu2 %v11470_v1  ;;  %7904 = vmatpush.bf16.msra.mxu0 %v10926_v0  ;;  %v11594_v7 = vor.u32 %v13766_v36, %v11593_v35  ;;  %v11561_v24 = vld [vmem:[#allocation8 + $0x658] sm:$0xf]  ;;  %v13626_v62 = vld [vmem:[#allocation8 + $0x25c] sm:$0xf]  ;;  %v10798_v10 = vor.u32 %v13562_v41, %v10795_v60 }
 0x525   :  { %v13758_v1 = vld [vmem:[#allocation8 + $0x674] sm:$0xf0]  ;;  %v11051_v0 = vld [vmem:[#allocation8 + $0x278] sm:$0xf0] }
 0x526   :  { %7917 = vmatpush.bf16.msra.mxu1 %v11182_v33  ;;  %7840 = vmatpush.bf16.msra.mxu3 %v11658_v16  ;;  %v11562_v38 = vor.u32 %v13758_v1, %v11561_v24  ;;  %v13690_v33 = vld [vmem:[#allocation8 + $0x45c] sm:$0xf]  ;;  %v11529_v5 = vld [vmem:[#allocation8 + $0x618] sm:$0xf]  ;;  %v11054_v58 = vor.u32 %v13626_v62, %v11051_v0 }
 0x527   :  { %v13750_v45 = vld [vmem:[#allocation8 + $0x634] sm:$0xf0]  ;;  %v13554_v50 = vld [vmem:[#allocation8 + $0x1c] sm:$0xf] }
 0x528   :  { %7930 = vmatpush.bf16.msra.mxu2 %v11438_v27  ;;  %7905 = vmatpush.bf16.msra.mxu0 %v10894_v11  ;;  %v11307_v27 = vld [vmem:[#allocation8 + $0x478] sm:$0xf0]  ;;  %v12777_v44 = vld [vmem:[#allocation8 + $0xfd8] sm:$0xf]  ;;  %v7679_v11 = vpop.f32.mrf.mxu2 }
 0x529   :  { %v14062_v16 = vld [vmem:[#allocation8 + $0xff4] sm:$0xf0]  ;;  %v11310_v18 = vor.u32 %v13690_v33, %v11307_v27  ;;  %v10763_v6 = vld [vmem:[#allocation8 + $0x38] sm:$0xf0] }
 0x52a   :  { %7918 = vmatpush.bf16.msra.mxu1 %v11150_v23  ;;  %7841 = vmatpush.bf16.msra.mxu3 %v11626_v30  ;;  %v13618_v21 = vld [vmem:[#allocation8 + $0x21c] sm:$0xf]  ;;  %v11530_v23 = vor.u32 %v13750_v45, %v11529_v5  ;;  %v12778_v63 = vor.u32 %v14062_v16, %v12777_v44  ;;  %v10766_v31 = vor.u32 %v13554_v50, %v10763_v6  ;;  %v12745_v36 = vld [vmem:[#allocation8 + $0xf98] sm:$0xf] }
 0x52b   :  { %v13682_v26 = vld [vmem:[#allocation8 + $0x41c] sm:$0xf]  ;;  %v12713_v1 = vld [vmem:[#allocation8 + $0xf58] sm:$0xf] }
 0x52c   :  { %7931 = vmatpush.bf16.msra.mxu2 %v11406_v2  ;;  %7906 = vmatpush.bf16.msra.mxu0 %v10862_v19  ;;  %v11019_v2 = vld [vmem:[#allocation8 + $0x238] sm:$0xf0]  ;;  %v14054_v19 = vld [vmem:[#allocation8 + $0xfb4] sm:$0xf0] }
 0x52d   :  { %v11275_v9 = vld [vmem:[#allocation8 + $0x438] sm:$0xf0]  ;;  %v11022_v35 = vor.u32 %v13618_v21, %v11019_v2  ;;  %v12746_v56 = vor.u32 %v14054_v19, %v12745_v36  ;;  %v14046_v13 = vld [vmem:[#allocation8 + $0xf74] sm:$0xf0] }
 0x52e   :  { %7919 = vmatpush.bf16.msra.mxu1 %v11118_v8  ;;  %7842 = vmatpush.bf16.msra.mxu3 %v11594_v7  ;;  %v13866_v28 = vld [vmem:[#allocation8 + $0x9dc] sm:$0xf]  ;;  %v11278_v25 = vor.u32 %v13682_v26, %v11275_v9  ;;  %v12681_v27 = vld [vmem:[#allocation8 + $0xf18] sm:$0xf] }
 0x52f   :  { %v12011_v30 = vld [vmem:[#allocation8 + $0x9f8] sm:$0xf0]  ;;  %v14038_v5 = vld [vmem:[#allocation8 + $0xf34] sm:$0xf0]  ;;  %v7703_v11 = vpop.f32.mrf.mxu0 }
 0x530   :  { %7932 = vmatpush.bf16.msra.mxu2 %v11374_v29  ;;  %7907 = vmatpush.bf16.msra.mxu0 %v10830_v46  ;;  %v13930_v3 = vld [vmem:[#allocation8 + $0xbdc] sm:$0xf]  ;;  %v12014_v8 = vor.u32 %v13866_v28, %v12011_v30  ;;  %v12682_v50 = vor.u32 %v14038_v5, %v12681_v27  ;;  %v12617_v19 = vld [vmem:[#allocation8 + $0xe98] sm:$0xf] }
 0x531   :  { %v12267_v39 = vld [vmem:[#allocation8 + $0xbf8] sm:$0xf0]  ;;  %v7716_v26 = vpop.f32.mrf.mxu1 }
 0x532   :  { %7920 = vmatpush.bf16.msra.mxu1 %v11086_v37  ;;  %7843 = vmatpush.bf16.msra.mxu3 %v11562_v38  ;;  %v13994_v47 = vld [vmem:[#allocation8 + $0xddc] sm:$0xf]  ;;  %v12270_v29 = vor.u32 %v13930_v3, %v12267_v39  ;;  %v12714_v38 = vor.u32 %v14046_v13, %v12713_v1 }
 0x533   :  { %v12523_v40 = vld [vmem:[#allocation8 + $0xdf8] sm:$0xf0] }
 0x534   :  { %7933 = vmatpush.bf16.msra.mxu2 %v11342_v57  ;;  %7908 = vmatpush.bf16.msra.mxu0 %v10798_v10  ;;  %v12526_v4 = vor.u32 %v13994_v47, %v12523_v40  ;;  %v13858_v42 = vld [vmem:[#allocation8 + $0x99c] sm:$0xf]  ;;  %v4603_v10 = vperm.slane %v14725_v49, 5  ;;  %v14755_v47 = vpop.f32.mrf.mxu3 }
 0x535   :  { %v11979_v7 = vld [vmem:[#allocation8 + $0x9b8] sm:$0xf0] }
 0x536   :  { %7921 = vmatpush.bf16.msra.mxu1 %v11054_v58  ;;  %7844 = vmatpush.bf16.msra.mxu3 %v11530_v23  ;;  %v13922_v43 = vld [vmem:[#allocation8 + $0xb9c] sm:$0xf]  ;;  %v11982_v46 = vor.u32 %v13858_v42, %v11979_v7  ;;  %v14030_v23 = vld [vmem:[#allocation8 + $0xef4] sm:$0xf0]  ;;  %v7704_v2 = vadd.f32 %v7703_v11, %v4603_v10 }
 0x537   :  { %v12235_v55 = vld [vmem:[#allocation8 + $0xbb8] sm:$0xf0] }
 0x538   :  { %7934 = vmatpush.bf16.msra.mxu2 %v11310_v18  ;;  %7909 = vmatpush.bf16.msra.mxu0 %v10766_v31  ;;  %v13986_v32 = vld [vmem:[#allocation8 + $0xd9c] sm:$0xf]  ;;  %v12238_v37 = vor.u32 %v13922_v43, %v12235_v55  ;;  %v7717_v31 = vadd.f32 %v7716_v26, %v7704_v2 }
 0x539   :  { %v12491_v24 = vld [vmem:[#allocation8 + $0xdb8] sm:$0xf0]  ;;  %7845 = vmatmul.bf16.vlgmr.msra.gmra.mxu3 %v14578_v59 }
 0x53a   :  { %7889 = vmatpush.bf16.msrb.mxu3 %v12778_v63  ;;  %7922 = vmatpush.bf16.msra.mxu1 %v11022_v35  ;;  %v12494_v57 = vor.u32 %v13986_v32, %v12491_v24  ;;  %v13850_v41 = vld [vmem:[#allocation8 + $0x95c] sm:$0xf] }
 0x53b   :  { %v11947_v60 = vld [vmem:[#allocation8 + $0x978] sm:$0xf0]  ;;  %7910 = vmatmul.bf16.vlgmr.msra.gmra.mxu0 %v14572_v12 }
 0x53c   :  { %7935 = vmatpush.bf16.msra.mxu2 %v11278_v25  ;;  %7954 = vmatpush.bf16.msrb.mxu0 %v12014_v8  ;;  %v13914_v62 = vld [vmem:[#allocation8 + $0xb5c] sm:$0xf]  ;;  %v11950_v45 = vor.u32 %v13850_v41, %v11947_v60  ;;  %v14022_v25 = vld [vmem:[#allocation8 + $0xeb4] sm:$0xf0]  ;;  %v7718_v41 = vpop.f32.mrf.mxu1  ;;  %v7640_v5 = vpop.f32.mrf.mxu3 }
 0x53d   :  { %v12203_v48 = vld [vmem:[#allocation8 + $0xb78] sm:$0xf0]  ;;  %7923 = vmatmul.bf16.vlgmr.msra.gmra.mxu1 %v14574_v14  ;;  %v12618_v55 = vor.u32 %v14022_v25, %v12617_v19  ;;  %v14086_v19 = vld [vmem:[#allocation11 + $0xb8] sm:$0xff]  ;;  %v14083_v41 = vld [vmem:[#allocation11 + $0xa0] sm:$0xff] }
 0x53e   :  { %7967 = vmatpush.bf16.msrb.mxu1 %v12270_v29  ;;  %7890 = vmatpush.bf16.msrb.mxu3 %v12746_v56  ;;  %v13978_v0 = vld [vmem:[#allocation8 + $0xd5c] sm:$0xf]  ;;  %v12206_v44 = vor.u32 %v13914_v62, %v12203_v48  ;;  %v7729_v56 = vpop.f32.mrf.mxu2  ;;  %v14074_v5 = vld [vmem:[#allocation11 + $0x58] sm:$0xff] }
 0x53f   :  { %v12459_v33 = vld [vmem:[#allocation8 + $0xd78] sm:$0xf0]  ;;  %7936 = vmatmul.bf16.vlgmr.msra.gmra.mxu2 %v14576_v52  ;;  %v12649_v52 = vld [vmem:[#allocation8 + $0xed8] sm:$0xf]  ;;  %v14757_v13 = vadd.f32 %v7729_v56, %v7717_v31 }
 0x540   :  { %7980 = vmatpush.bf16.msrb.mxu2 %v12526_v4  ;;  %7955 = vmatpush.bf16.msrb.mxu0 %v11982_v46  ;;  %v12462_v16 = vor.u32 %v13978_v0, %v12459_v33  ;;  %v13842_v58 = vld [vmem:[#allocation8 + $0x91c] sm:$0xf]  ;;  %v12650_v39 = vor.u32 %v14030_v23, %v12649_v52  ;;  %v7705_v46 = vpop.f32.mrf.mxu0 }
 0x541   :  { %v11915_v12 = vld [vmem:[#allocation8 + $0x938] sm:$0xf0] }
 0x542   :  { %7968 = vmatpush.bf16.msrb.mxu1 %v12238_v37  ;;  %v13906_v18 = vld [vmem:[#allocation8 + $0xb1c] sm:$0xf]  ;;  %7891 = vmatpush.bf16.msrb.mxu3 %v12714_v38  ;;  %v11918_v9 = vor.u32 %v13842_v58, %v11915_v12  ;;  %v12585_v37 = vld [vmem:[#allocation8 + $0xe58] sm:$0xf] }
 0x543   :  { %v12171_v6 = vld [vmem:[#allocation8 + $0xb38] sm:$0xf0]  ;;  %v14006_v58 = vld [vmem:[#allocation8 + $0xe34] sm:$0xf0] }
 0x544   :  { %7981 = vmatpush.bf16.msrb.mxu2 %v12494_v57  ;;  %v13970_v21 = vld [vmem:[#allocation8 + $0xd1c] sm:$0xf]  ;;  %7956 = vmatpush.bf16.msrb.mxu0 %v11950_v45  ;;  %v12174_v49 = vor.u32 %v13906_v18, %v12171_v6  ;;  %v14014_v57 = vld [vmem:[#allocation8 + $0xe74] sm:$0xf0] }
 0x545   :  { %v12427_v14 = vld [vmem:[#allocation8 + $0xd38] sm:$0xf0]  ;;  %v12586_v27 = vor.u32 %v14014_v57, %v12585_v37  ;;  %v14075_v57 = vld [vmem:[#allocation11 + $0x60] sm:$0xff] }
 0x546   :  { %7969 = vmatpush.bf16.msrb.mxu1 %v12206_v44  ;;  %v12430_v63 = vor.u32 %v13970_v21, %v12427_v14  ;;  %v13834_v28 = vld [vmem:[#allocation8 + $0x8dc] sm:$0xf]  ;;  %7892 = vmatpush.bf16.msrb.mxu3 %v12682_v50  ;;  %v7731_v52 = vpop.f32.mrf.mxu2 }
 0x547   :  { %v11883_v30 = vld [vmem:[#allocation8 + $0x8f8] sm:$0xf0] }
 0x548   :  { %7982 = vmatpush.bf16.msrb.mxu2 %v12462_v16  ;;  %v13898_v3 = vld [vmem:[#allocation8 + $0xadc] sm:$0xf]  ;;  %7957 = vmatpush.bf16.msrb.mxu0 %v11918_v9  ;;  %v11886_v8 = vor.u32 %v13834_v28, %v11883_v30  ;;  %v12553_v16 = vld [vmem:[#allocation8 + $0xe18] sm:$0xf] }
 0x549   :  { %v12139_v40 = vld [vmem:[#allocation8 + $0xaf8] sm:$0xf0]  ;;  %v12554_v23 = vor.u32 %v14006_v58, %v12553_v16 }
 0x54a   :  { %v13962_v35 = vld [vmem:[#allocation8 + $0xcdc] sm:$0xf]  ;;  %7970 = vmatpush.bf16.msrb.mxu1 %v12174_v49  ;;  %v12142_v29 = vor.u32 %v13898_v3, %v12139_v40  ;;  %7893 = vmatpush.bf16.msrb.mxu3 %v12650_v39  ;;  %v14070_v40 = vld [vmem:[#allocation11 + $0x38] sm:$0xff] }
 0x54b   :  { %v12395_v36 = vld [vmem:[#allocation8 + $0xcf8] sm:$0xf0] }
 0x54c   :  { %7983 = vmatpush.bf16.msrb.mxu2 %v12430_v63  ;;  %v12398_v4 = vor.u32 %v13962_v35, %v12395_v36  ;;  %v13826_v42 = vld [vmem:[#allocation8 + $0x89c] sm:$0xf]  ;;  %7958 = vmatpush.bf16.msrb.mxu0 %v11886_v8  ;;  %v7639_v35 = vadd.f32 %v14755_v47, %v14730_v15  ;;  %v14078_v36 = vld [vmem:[#allocation11 + $0x78] sm:$0xff] }
 0x54d   :  { %v11851_v7 = vld [vmem:[#allocation8 + $0x8b8] sm:$0xf0] }
 0x54e   :  { %v13890_v43 = vld [vmem:[#allocation8 + $0xa9c] sm:$0xf]  ;;  %v11854_v60 = vor.u32 %v13826_v42, %v11851_v7  ;;  %7971 = vmatpush.bf16.msrb.mxu1 %v12142_v29  ;;  %7894 = vmatpush.bf16.msrb.mxu3 %v12618_v55  ;;  %v7652_v42 = vadd.f32 %v14740_v61, %v7639_v35  ;;  %v14068_v55 = vld [vmem:[#allocation11 + $0x28] sm:$0xff]  ;;  %v14079_v35 = vld [vmem:[#allocation11 + $0x80] sm:$0xff] }
 0x54f   :  { %v12107_v32 = vld [vmem:[#allocation8 + $0xab8] sm:$0xf0]  ;;  %v14084_v61 = vld [vmem:[#allocation11 + $0xa8] sm:$0xff] }
 0x550   :  { %v13954_v24 = vld [vmem:[#allocation8 + $0xc9c] sm:$0xf]  ;;  %7984 = vmatpush.bf16.msrb.mxu2 %v12398_v4  ;;  %v12110_v62 = vor.u32 %v13890_v43, %v12107_v32  ;;  %7959 = vmatpush.bf16.msrb.mxu0 %v11854_v60  ;;  %v14076_v32 = vld [vmem:[#allocation11 + $0x68] sm:$0xff] }
 0x551   :  { %v12363_v1 = vld [vmem:[#allocation8 + $0xcb8] sm:$0xf0]  ;;  %v14767_v46 = vpop.f32.mrf.mxu0 }
 0x552   :  { %v12366_v38 = vor.u32 %v13954_v24, %v12363_v1  ;;  %v13818_v48 = vld [vmem:[#allocation8 + $0x85c] sm:$0xf]  ;;  %7972 = vmatpush.bf16.msrb.mxu1 %v12110_v62  ;;  %7895 = vmatpush.bf16.msrb.mxu3 %v12586_v27  ;;  %v7665_v24 = vadd.f32 %v14742_v22, %v7652_v42  ;;  %v14110_v42 = vld [vmem:[#allocation11 + $0x178] sm:$0xff] }
 0x553   :  { %v11819_v0 = vld [vmem:[#allocation8 + $0x878] sm:$0xf0] }
 0x554   :  { %v13882_v33 = vld [vmem:[#allocation8 + $0xa5c] sm:$0xf]  ;;  %v11822_v12 = vor.u32 %v13818_v48, %v11819_v0  ;;  %7985 = vmatpush.bf16.msrb.mxu2 %v12366_v38  ;;  %v7678_v60 = vadd.f32 %v14747_v34, %v7665_v24  ;;  %v7690_v38 = vpop.f32.mrf.mxu3 }
 0x555   :  { %v12075_v45 = vld [vmem:[#allocation8 + $0xa78] sm:$0xf0] }
 0x556   :  { %v13946_v10 = vld [vmem:[#allocation8 + $0xc5c] sm:$0xf]  ;;  %v12078_v6 = vor.u32 %v13882_v33, %v12075_v45  ;;  %7960 = vmatpush.bf16.msrb.mxu0 %v11822_v12  ;;  %7896 = vmatpush.bf16.msrb.mxu3 %v12554_v23  ;;  %v7691_v22 = vadd.f32 %v7690_v38, %v7678_v60  ;;  %v14066_v33 = vld [vmem:[#allocation11 + $0x18] sm:$0xff]  ;;  %v14064_v23 = vld [vmem:[#allocation11 + $0x8] sm:$0xff] }
 0x557   :  { %v12331_v44 = vld [vmem:[#allocation8 + $0xc78] sm:$0xf0]  ;;  %v14082_v45 = vld [vmem:[#allocation11 + $0x98] sm:$0xff]  ;;  %v14108_v60 = vld [vmem:[#allocation11 + $0x168] sm:$0xff] }
 0x558   :  { %v13802_v18 = vld [vmem:[#allocation8 + $0x7dc] sm:$0xf]  ;;  %v12334_v21 = vor.u32 %v13946_v10, %v12331_v44  ;;  %7973 = vmatpush.bf16.msrb.mxu1 %v12078_v6  ;;  %v14772_v27 = vmax.f32 %v7691_v22, 0.0  ;;  %v14099_v22 = vld [vmem:[#allocation11 + $0x120] sm:$0xff] }
 0x559   :  { %v11755_v50 = vld [vmem:[#allocation8 + $0x7f8] sm:$0xf0]  ;;  %7897 = vmatmul.bf16.vlgmr.msrb.gmra.mxu3 %v14634_v54  ;;  %v7757_v34 = vpop.f32.mrf.mxu0 }
 0x55a   :  { %v13810_v14 = vld [vmem:[#allocation8 + $0x81c] sm:$0xf]  ;;  %v11758_v9 = vor.u32 %v13802_v18, %v11755_v50  ;;  %7986 = vmatpush.bf16.msrb.mxu2 %v12334_v21  ;;  %8018 = vst [vmem:[#allocation14 + $0x20] sm:$0xff] %v14772_v27  ;;  %v14098_v34 = vld [vmem:[#allocation11 + $0x118] sm:$0xff] }
 0x55b   :  { %v11787_v11 = vld [vmem:[#allocation8 + $0x838] sm:$0xf0]  ;;  %v14774_v10 = vpop.f32.mrf.mxu2 }
 0x55c   :  { %v13874_v2 = vld [vmem:[#allocation8 + $0xa1c] sm:$0xf]  ;;  %v11790_v28 = vor.u32 %v13810_v14, %v11787_v11  ;;  %7941 = vmatpush.bf16.msra.mxu3 %v11758_v9  ;;  %v7692_v14 = vpop.f32.mrf.mxu3  ;;  %v14072_v9 = vld [vmem:[#allocation11 + $0x48] sm:$0xff] }
 0x55d   :  { %v12043_v26 = vld [vmem:[#allocation8 + $0xa38] sm:$0xf0] }
 0x55e   :  { %v13938_v49 = vld [vmem:[#allocation8 + $0xc1c] sm:$0xf]  ;;  %v12046_v30 = vor.u32 %v13874_v2, %v12043_v26  ;;  %7961 = vmatpush.bf16.msrb.mxu0 %v11790_v28 }
 0x55f   :  { %v12299_v63 = vld [vmem:[#allocation8 + $0xc38] sm:$0xf0] }
 0x560   :  { %v13794_v3 = vld [vmem:[#allocation8 + $0x79c] sm:$0xf]  ;;  %v12302_v39 = vor.u32 %v13938_v49, %v12299_v63  ;;  %7974 = vmatpush.bf16.msrb.mxu1 %v12046_v30  ;;  %v14080_v49 = vld [vmem:[#allocation11 + $0x88] sm:$0xff] }
 0x561   :  { %v11723_v31 = vld [vmem:[#allocation8 + $0x7b8] sm:$0xf0]  ;;  %7962 = vmatmul.bf16.vlgmr.msrb.gmra.mxu0 %v14604_v51 }
 0x562   :  { %v11726_v25 = vor.u32 %v13794_v3, %v11723_v31  ;;  %v13786_v8 = vld [vmem:[#allocation8 + $0x75c] sm:$0xf]  ;;  %7987 = vmatpush.bf16.msrb.mxu2 %v12302_v39  ;;  %8546 = vmatpush.bf16.msra.mxu0 %v14070_v40  ;;  %v14063_v3 = vld [vmem:[#allocation11] sm:$0xff] }
 0x563   :  { %v11691_v29 = vld [vmem:[#allocation8 + $0x778] sm:$0xf0]  ;;  %7975 = vmatmul.bf16.vlgmr.msrb.gmra.mxu1 %v14606_v53  ;;  %v14769_v53 = vpop.f32.mrf.mxu1  ;;  %v7783_v63 = vpop.f32.mrf.mxu2  ;;  %v14071_v40 = vld [vmem:[#allocation11 + $0x40] sm:$0xff] }
 0x564   :  { %v14069_v4 = vld [vmem:[#allocation11 + $0x30] sm:$0xff]  ;;  %8559 = vmatpush.bf16.msra.mxu1 %v14078_v36  ;;  %7942 = vmatpush.bf16.msra.mxu3 %v11726_v25  ;;  %v11694_v15 = vor.u32 %v13786_v8, %v11691_v29  ;;  %v14102_v36 = vld [vmem:[#allocation11 + $0x138] sm:$0xff]  ;;  %v14149_v29 = vld [vmem:[#allocation14] sm:$0xff] }
 0x565   :  { %v14077_v7 = vld [vmem:[#allocation11 + $0x70] sm:$0xff]  ;;  %7988 = vmatmul.bf16.vlgmr.msrb.gmra.mxu2 %v14612_v20  ;;  %v14067_v20 = vld [vmem:[#allocation11 + $0x20] sm:$0xff] }
 0x566   :  { %8572 = vmatpush.bf16.msra.mxu2 %v14086_v19  ;;  %v14085_v43 = vld [vmem:[#allocation11 + $0xb0] sm:$0xff]  ;;  %8547 = vmatpush.bf16.msra.mxu0 %v14069_v4  ;;  %v8022_v4 = vpack.c.bf16 %v14149_v29, %v14149_v29 }
 0x567   :  { %v13778_v47 = vld [vmem:[#allocation8 + $0x71c] sm:$0xf] }
 0x568   :  { %v11659_v56 = vld [vmem:[#allocation8 + $0x738] sm:$0xf0]  ;;  %8560 = vmatpush.bf16.msra.mxu1 %v14077_v7  ;;  %7943 = vmatpush.bf16.msra.mxu3 %v11694_v15  ;;  %v14150_v7 = vld [vmem:[#allocation14 + $0x8] sm:$0xff] }
 0x569   :  { %v11662_v1 = vor.u32 %v13778_v47, %v11659_v56  ;;  %v13770_v51 = vld [vmem:[#allocation8 + $0x6dc] sm:$0xf] }
 0x56a   :  { %8573 = vmatpush.bf16.msra.mxu2 %v14085_v43  ;;  %v11627_v37 = vld [vmem:[#allocation8 + $0x6f8] sm:$0xf0]  ;;  %8548 = vmatpush.bf16.msra.mxu0 %v14068_v55  ;;  %v8023_v43 = vpack.c.bf16 %v14150_v7, %v14150_v7 }
 0x56b   :  { %v11630_v62 = vor.u32 %v13770_v51, %v11627_v37  ;;  %v13762_v48 = vld [vmem:[#allocation8 + $0x69c] sm:$0xf]  ;;  %v7770_v12 = vpop.f32.mrf.mxu1 }
 0x56c   :  { %8561 = vmatpush.bf16.msra.mxu1 %v14076_v32  ;;  %7944 = vmatpush.bf16.msra.mxu3 %v11662_v1  ;;  %v11595_v0 = vld [vmem:[#allocation8 + $0x6b8] sm:$0xf0]  ;;  %v14778_v1 = vld [vmem:[#allocation10] sm:$0xff] }
 0x56d   :  { %v11598_v44 = vor.u32 %v13762_v48, %v11595_v0  ;;  %v13754_v16 = vld [vmem:[#allocation8 + $0x65c] sm:$0xf]  ;;  %v4604_v51 = vperm.slane %v14778_v1, 6 }
 0x56e   :  { %8574 = vmatpush.bf16.msra.mxu2 %v14084_v61  ;;  %8549 = vmatpush.bf16.msra.mxu0 %v14067_v20  ;;  %v11563_v58 = vld [vmem:[#allocation8 + $0x678] sm:$0xf0] }
 0x56f   :  { %v14065_v18 = vld [vmem:[#allocation11 + $0x10] sm:$0xff]  ;;  %v11566_v21 = vor.u32 %v13754_v16, %v11563_v58 }
 0x570   :  { %8562 = vmatpush.bf16.msra.mxu1 %v14075_v57  ;;  %7945 = vmatpush.bf16.msra.mxu3 %v11630_v62  ;;  %v14073_v50 = vld [vmem:[#allocation11 + $0x50] sm:$0xff] }
 0x571   :  { %v14081_v6 = vld [vmem:[#allocation11 + $0x90] sm:$0xff] }
 0x572   :  { %8575 = vmatpush.bf16.msra.mxu2 %v14083_v41  ;;  %8550 = vmatpush.bf16.msra.mxu0 %v14066_v33  ;;  %v13746_v11 = vld [vmem:[#allocation8 + $0x61c] sm:$0xf]  ;;  %v7807_v41 = vpop.f32.mrf.mxu0 }
 0x573   :  { %v11531_v52 = vld [vmem:[#allocation8 + $0x638] sm:$0xf0]  ;;  %v7808_v62 = vadd.f32 %v7807_v41, %v4604_v51  ;;  %v7820_v38 = vpop.f32.mrf.mxu1 }
 0x574   :  { %8563 = vmatpush.bf16.msra.mxu1 %v14074_v5  ;;  %7946 = vmatpush.bf16.msra.mxu3 %v11598_v44  ;;  %v14058_v2 = vld [vmem:[#allocation8 + $0xfdc] sm:$0xf]  ;;  %v11534_v28 = vor.u32 %v13746_v11, %v11531_v52  ;;  %v14107_v44 = vld [vmem:[#allocation11 + $0x160] sm:$0xff] }
 0x575   :  { %v12779_v26 = vld [vmem:[#allocation8 + $0xff8] sm:$0xf0]  ;;  %v7821_v0 = vadd.f32 %v7820_v38, %v7808_v62  ;;  %v7742_v33 = vpop.f32.mrf.mxu3 }
 0x576   :  { %8576 = vmatpush.bf16.msra.mxu2 %v14082_v45  ;;  %8551 = vmatpush.bf16.msra.mxu0 %v14065_v18  ;;  %v12782_v30 = vor.u32 %v14058_v2, %v12779_v26  ;;  %v14050_v31 = vld [vmem:[#allocation8 + $0xf9c] sm:$0xf] }
 0x577   :  { %v12747_v39 = vld [vmem:[#allocation8 + $0xfb8] sm:$0xf0] }
 0x578   :  { %8564 = vmatpush.bf16.msra.mxu1 %v14073_v50  ;;  %7947 = vmatpush.bf16.msra.mxu3 %v11566_v21  ;;  %v12750_v19 = vor.u32 %v14050_v31, %v12747_v39  ;;  %v14042_v25 = vld [vmem:[#allocation8 + $0xf5c] sm:$0xf]  ;;  %v14106_v21 = vld [vmem:[#allocation11 + $0x158] sm:$0xff]  ;;  %v14095_v31 = vld [vmem:[#allocation11 + $0x100] sm:$0xff] }
 0x579   :  { %v12715_v8 = vld [vmem:[#allocation8 + $0xf78] sm:$0xf0] }
 0x57a   :  { %8577 = vmatpush.bf16.msra.mxu2 %v14081_v6  ;;  %8552 = vmatpush.bf16.msra.mxu0 %v14064_v23  ;;  %v14101_v15 = vld [vmem:[#allocation11 + $0x130] sm:$0xff]  ;;  %v12718_v55 = vor.u32 %v14042_v25, %v12715_v8  ;;  %v7809_v6 = vpop.f32.mrf.mxu0  ;;  %v14091_v8 = vld [vmem:[#allocation11 + $0xe0] sm:$0xff] }
 0x57b   :  { %v14151_v47 = vld [vmem:[#allocation14 + $0x10] sm:$0xff]  ;;  %v7833_v58 = vpop.f32.mrf.mxu2  ;;  %v7822_v14 = vpop.f32.mrf.mxu1 }
 0x57c   :  { %8565 = vmatpush.bf16.msra.mxu1 %v14072_v9  ;;  %7948 = vmatpush.bf16.msra.mxu3 %v11534_v28  ;;  %v8024_v56 = vpack.c.bf16 %v14151_v47, %v14151_v47  ;;  %v14034_v32 = vld [vmem:[#allocation8 + $0xf1c] sm:$0xf]  ;;  %v14781_v50 = vadd.f32 %v7833_v58, %v7821_v0 }
 0x57d   :  { %v12683_v61 = vld [vmem:[#allocation8 + $0xf38] sm:$0xf0]  ;;  %v7744_v23 = vpop.f32.mrf.mxu3 }
 0x57e   :  { %8578 = vmatpush.bf16.msra.mxu2 %v14080_v49  ;;  %8553 = vmatpush.bf16.msra.mxu0 %v14063_v3  ;;  %v14109_v24 = vld [vmem:[#allocation11 + $0x170] sm:$0xff]  ;;  %v12686_v37 = vor.u32 %v14034_v32, %v12683_v61  ;;  %v14096_v49 = vld [vmem:[#allocation11 + $0x108] sm:$0xff]  ;;  %v14126_v23 = vld [vmem:[#allocation11 + $0x1f8] sm:$0xff] }
 0x57f   :  { %7949 = vmatmul.bf16.vlgmr.msra.gmra.mxu3 %v14578_v59  ;;  %v14100_v59 = vld [vmem:[#allocation11 + $0x128] sm:$0xff]  ;;  %v14026_v20 = vld [vmem:[#allocation8 + $0xedc] sm:$0xf] }
 0x580   :  { %7993 = vmatpush.bf16.msrb.mxu3 %v12782_v30  ;;  %8566 = vmatpush.bf16.msra.mxu1 %v14071_v40  ;;  %v12651_v57 = vld [vmem:[#allocation8 + $0xef8] sm:$0xf0]  ;;  %v14094_v30 = vld [vmem:[#allocation11 + $0xf8] sm:$0xff]  ;;  %v14104_v3 = vld [vmem:[#allocation11 + $0x148] sm:$0xff]  ;;  %v7743_v40 = vadd.f32 %v7742_v33, %v14757_v13 }
 0x581   :  { %8554 = vmatmul.bf16.vlgmr.msra.gmra.mxu0 %v8022_v4  ;;  %v12654_v48 = vor.u32 %v14026_v20, %v12651_v57  ;;  %v14018_v5 = vld [vmem:[#allocation8 + $0xe9c] sm:$0xf]  ;;  %v14088_v61 = vld [vmem:[#allocation11 + $0xc8] sm:$0xff]  ;;  %v8025_v20 = vpack.c.bf16 %v14745_v17, %v14745_v17  ;;  %v14114_v57 = vld [vmem:[#allocation11 + $0x198] sm:$0xff] }
 0x582   :  { %8579 = vmatpush.bf16.msra.mxu2 %v14079_v35  ;;  %8598 = vmatpush.bf16.msrb.mxu0 %v14102_v36  ;;  %v12619_v45 = vld [vmem:[#allocation8 + $0xeb8] sm:$0xf0]  ;;  %v14103_v35 = vld [vmem:[#allocation11 + $0x140] sm:$0xff]  ;;  %v8026_v36 = vpack.c.bf16 %v14772_v27, %v14772_v27  ;;  %v7756_v25 = vadd.f32 %v14767_v46, %v7743_v40 }
 0x583   :  { %8567 = vmatmul.bf16.vlgmr.msra.gmra.mxu1 %v8023_v43  ;;  %v12622_v16 = vor.u32 %v14018_v5, %v12619_v45  ;;  %v14010_v12 = vld [vmem:[#allocation8 + $0xe5c] sm:$0xf]  ;;  %v7835_v28 = vpop.f32.mrf.mxu2  ;;  %v14111_v5 = vld [vmem:[#allocation11 + $0x180] sm:$0xff] }
 0x584   :  { %7994 = vmatpush.bf16.msrb.mxu3 %v12750_v19  ;;  %8611 = vmatpush.bf16.msrb.mxu1 %v14110_v42  ;;  %v12587_v18 = vld [vmem:[#allocation8 + $0xe78] sm:$0xf0]  ;;  %v14092_v19 = vld [vmem:[#allocation11 + $0xe8] sm:$0xff]  ;;  %v7769_v29 = vadd.f32 %v14769_v53, %v7756_v25  ;;  %v14090_v42 = vld [vmem:[#allocation11 + $0xd8] sm:$0xff] }
 0x585   :  { %8580 = vmatmul.bf16.vlgmr.msra.gmra.mxu2 %v8024_v56  ;;  %v14097_v11 = vld [vmem:[#allocation11 + $0x110] sm:$0xff]  ;;  %v12590_v52 = vor.u32 %v14010_v12, %v12587_v18  ;;  %v14118_v56 = vld [vmem:[#allocation11 + $0x1b8] sm:$0xff] }
 0x586   :  { %8599 = vmatpush.bf16.msrb.mxu0 %v14101_v15  ;;  %v14002_v2 = vld [vmem:[#allocation8 + $0xe1c] sm:$0xf]  ;;  %8624 = vmatpush.bf16.msrb.mxu2 %v14118_v56 }
 0x587   :  { %v12555_v26 = vld [vmem:[#allocation8 + $0xe38] sm:$0xf0] }
 0x588   :  { %7995 = vmatpush.bf16.msrb.mxu3 %v12718_v55  ;;  %8612 = vmatpush.bf16.msrb.mxu1 %v14109_v24  ;;  %v14105_v9 = vld [vmem:[#allocation11 + $0x150] sm:$0xff]  ;;  %v12558_v63 = vor.u32 %v14002_v2, %v12555_v26 }
 0x589   :  { %v14093_v39 = vld [vmem:[#allocation11 + $0xf0] sm:$0xff] }
 0x58a   :  { %8600 = vmatpush.bf16.msrb.mxu0 %v14100_v59  ;;  %v14089_v27 = vld [vmem:[#allocation11 + $0xd0] sm:$0xff]  ;;  %v14087_v59 = vld [vmem:[#allocation11 + $0xc0] sm:$0xff] }
 0x58b   :  { %v14117_v53 = vld [vmem:[#allocation11 + $0x1b0] sm:$0xff] }
 0x58c   :  { %7996 = vmatpush.bf16.msrb.mxu3 %v12686_v37  ;;  %8613 = vmatpush.bf16.msrb.mxu1 %v14108_v60  ;;  %v14115_v37 = vld [vmem:[#allocation11 + $0x1a0] sm:$0xff]  ;;  %v14113_v41 = vld [vmem:[#allocation11 + $0x190] sm:$0xff]  ;;  %v4605_v60 = vperm.slane %v14778_v1, 7 }
 0x58d   :  { %8625 = vmatpush.bf16.msrb.mxu2 %v14117_v53  ;;  %v14125_v28 = vld [vmem:[#allocation11 + $0x1f0] sm:$0xff] }
 0x58e   :  { %8601 = vmatpush.bf16.msrb.mxu0 %v14099_v22  ;;  %v14121_v40 = vld [vmem:[#allocation11 + $0x1d0] sm:$0xff] }
 0x590   :  { %7997 = vmatpush.bf16.msrb.mxu3 %v12654_v48  ;;  %8614 = vmatpush.bf16.msrb.mxu1 %v14107_v44  ;;  %v14112_v48 = vld [vmem:[#allocation11 + $0x188] sm:$0xff] }
 0x592   :  { %8602 = vmatpush.bf16.msrb.mxu0 %v14098_v34 }
 0x594   :  { %7998 = vmatpush.bf16.msrb.mxu3 %v12622_v16  ;;  %8615 = vmatpush.bf16.msrb.mxu1 %v14106_v21 }
 0x595   :  { %v7794_v7 = vpop.f32.mrf.mxu3 }
 0x596   :  { %8603 = vmatpush.bf16.msrb.mxu0 %v14097_v11 }
 0x598   :  { %7999 = vmatpush.bf16.msrb.mxu3 %v12590_v52  ;;  %8616 = vmatpush.bf16.msrb.mxu1 %v14105_v9  ;;  %v7859_v4 = vpop.f32.mrf.mxu0 }
 0x59a   :  { %8604 = vmatpush.bf16.msrb.mxu0 %v14096_v49  ;;  %v7872_v13 = vpop.f32.mrf.mxu1 }
 0x59c   :  { %8000 = vmatpush.bf16.msrb.mxu3 %v12558_v63  ;;  %8617 = vmatpush.bf16.msrb.mxu1 %v14104_v3 }
 0x59d   :  { %v7796_v24 = vpop.f32.mrf.mxu3 }
 0x59e   :  { %8605 = vmatpush.bf16.msrb.mxu0 %v14095_v31  ;;  %v14123_v31 = vld [vmem:[#allocation11 + $0x1e0] sm:$0xff] }
 0x59f   :  { %8001 = vmatmul.bf16.vlgmr.msrb.gmra.mxu3 %v14634_v54  ;;  %v7782_v54 = vadd.f32 %v14774_v10, %v7769_v29  ;;  %v14116_v10 = vld [vmem:[#allocation11 + $0x1a8] sm:$0xff] }
 0x5a0   :  { %8585 = vmatpush.bf16.msra.mxu3 %v14094_v30  ;;  %8618 = vmatpush.bf16.msrb.mxu1 %v14103_v35  ;;  %v7861_v55 = vpop.f32.mrf.mxu0  ;;  %v14139_v35 = vld [vmem:[#allocation13] ss:$0 sm:$0xff] }
 0x5a1   :  { %8606 = vmatmul.bf16.vlgmr.msrb.gmra.mxu0 %v8026_v36  ;;  %v7795_v43 = vadd.f32 %v7794_v7, %v7782_v54  ;;  %8626 = vmatpush.bf16.msrb.mxu2 %v14116_v10 }
 0x5a2   :  { %v7885_v47 = vpop.f32.mrf.mxu2  ;;  %v7874_v32 = vpop.f32.mrf.mxu1 }
 0x5a3   :  { %v8011_v15 = vmax.f32 %v7795_v43, 0.0 }
 0x5a4   :  { %8586 = vmatpush.bf16.msra.mxu3 %v14093_v39  ;;  %v14122_v39 = vld [vmem:[#allocation11 + $0x1d8] sm:$0xff] }
 0x5a5   :  { %8019 = vst [vmem:[#allocation14 + $0x28] sm:$0xff] %v8011_v15  ;;  %v8027_v46 = vpack.c.bf16 %v8011_v15, %v8011_v15  ;;  %8627 = vmatpush.bf16.msrb.mxu2 %v14115_v37 }
 0x5a7   :  { %8619 = vmatmul.bf16.vlgmr.msrb.gmra.mxu1 %v8027_v46 }
 0x5a8   :  { %8587 = vmatpush.bf16.msra.mxu3 %v14092_v19  ;;  %v14120_v19 = vld [vmem:[#allocation11 + $0x1c8] sm:$0xff] }
 0x5a9   :  { %8628 = vmatpush.bf16.msrb.mxu2 %v14114_v57 }
 0x5aa   :  { %v7887_v51 = vpop.f32.mrf.mxu2 }
 0x5ac   :  { %8588 = vmatpush.bf16.msra.mxu3 %v14091_v8 }
 0x5ad   :  { %8629 = vmatpush.bf16.msrb.mxu2 %v14113_v41 }
 0x5b0   :  { %8589 = vmatpush.bf16.msra.mxu3 %v14090_v42 }
 0x5b1   :  { %8630 = vmatpush.bf16.msrb.mxu2 %v14112_v48 }
 0x5b4   :  { %8590 = vmatpush.bf16.msra.mxu3 %v14089_v27 }
 0x5b5   :  { %8631 = vmatpush.bf16.msrb.mxu2 %v14111_v5 }
 0x5b8   :  { %8591 = vmatpush.bf16.msra.mxu3 %v14088_v61  ;;  %v7911_v62 = vpop.f32.mrf.mxu0 }
 0x5b9   :  { %v7912_v38 = vadd.f32 %v7911_v62, %v4605_v60 }
 0x5ba   :  { %v7924_v22 = vpop.f32.mrf.mxu1 }
 0x5bb   :  { %v7925_v0 = vadd.f32 %v7924_v22, %v7912_v38 }
 0x5bc   :  { %8592 = vmatpush.bf16.msra.mxu3 %v14087_v59  ;;  %v7846_v33 = vpop.f32.mrf.mxu3 }
 0x5bd   :  { %v7847_v12 = vadd.f32 %v7846_v33, %v14781_v50  ;;  %v14124_v50 = vld [vmem:[#allocation11 + $0x1e8] sm:$0xff] }
 0x5bf   :  { %8593 = vmatmul.bf16.vlgmr.msra.gmra.mxu3 %v8025_v20  ;;  %v7860_v18 = vadd.f32 %v7859_v4, %v7847_v12 }
 0x5c0   :  { %v7913_v17 = vpop.f32.mrf.mxu0  ;;  %8637 = vmatpush.bf16.msrb.mxu3 %v14126_v23 }
 0x5c1   :  { %v7873_v1 = vadd.f32 %v7872_v13, %v7860_v18  ;;  %v14119_v13 = vld [vmem:[#allocation11 + $0x1c0] sm:$0xff] }
 0x5c2   :  { %v7937_v45 = vpop.f32.mrf.mxu2  ;;  %v7926_v34 = vpop.f32.mrf.mxu1 }
 0x5c3   :  { %v7938_v44 = vadd.f32 %v7937_v45, %v7925_v0  ;;  %v7886_v14 = vadd.f32 %v7885_v47, %v7873_v1 }
 0x5c4   :  { %v7848_v16 = vpop.f32.mrf.mxu3  ;;  %8638 = vmatpush.bf16.msrb.mxu3 %v14125_v28 }
 0x5c8   :  { %8639 = vmatpush.bf16.msrb.mxu3 %v14124_v50 }
 0x5ca   :  { %v7939_v58 = vpop.f32.mrf.mxu2 }
 0x5cc   :  { %8640 = vmatpush.bf16.msrb.mxu3 %v14123_v31 }
 0x5d0   :  { %8641 = vmatpush.bf16.msrb.mxu3 %v14122_v39 }
 0x5d4   :  { %8642 = vmatpush.bf16.msrb.mxu3 %v14121_v40 }
 0x5d8   :  { %8643 = vmatpush.bf16.msrb.mxu3 %v14120_v19 }
 0x5dc   :  { %v7898_v11 = vpop.f32.mrf.mxu3  ;;  %8644 = vmatpush.bf16.msrb.mxu3 %v14119_v13 }
 0x5dd   :  { %v7899_v52 = vadd.f32 %v7898_v11, %v7886_v14 }
 0x5de   :  { %v7963_v6 = vpop.f32.mrf.mxu0 }
 0x5df   :  { %v8012_v2 = vmax.f32 %v7899_v52, 0.0 }
 0x5e0   :  { %v7976_v21 = vpop.f32.mrf.mxu1 }
 0x5e1   :  { %8020 = vst [vmem:[#allocation14 + $0x30] sm:$0xff] %v8012_v2  ;;  %v8028_v9 = vpack.c.bf16 %v8012_v2, %v8012_v2 }
 0x5e3   :  { %8632 = vmatmul.bf16.vlgmr.msrb.gmra.mxu2 %v8028_v9 }
 0x5e4   :  { %v7900_v30 = vpop.f32.mrf.mxu3 }
 0x5e6   :  { %v7965_v49 = vpop.f32.mrf.mxu0 }
 0x5e8   :  { %v7989_v26 = vpop.f32.mrf.mxu2  ;;  %v7978_v63 = vpop.f32.mrf.mxu1 }
 0x5f0   :  { %v7991_v3 = vpop.f32.mrf.mxu2 }
 0x5fe   :  { %v8555_v36 = vpop.f32.mrf.mxu0 }
 0x5ff   :  { %v8556_v25 = vadd.f32 %v14139_v35, %v8555_v36 }
 0x600   :  { %v8568_v8 = vpop.f32.mrf.mxu1 }
 0x601   :  { %v8569_v29 = vadd.f32 %v8568_v8, %v8556_v25 }
 0x602   :  { %v7950_v4 = vpop.f32.mrf.mxu3 }
 0x603   :  { %v7951_v47 = vadd.f32 %v7950_v4, %v7938_v44 }
 0x605   :  { %v7964_v56 = vadd.f32 %v7963_v6, %v7951_v47 }
 0x606   :  { %v8557_v54 = vpop.f32.mrf.mxu0 }
 0x607   :  { %v7977_v46 = vadd.f32 %v7976_v21, %v7964_v56 }
 0x608   :  { %v8581_v42 = vpop.f32.mrf.mxu2  ;;  %v8570_v43 = vpop.f32.mrf.mxu1 }
 0x609   :  { %v8582_v7 = vadd.f32 %v8581_v42, %v8569_v29  ;;  %v7990_v32 = vadd.f32 %v7989_v26, %v7977_v46 }
 0x60a   :  { %v7952_v27 = vpop.f32.mrf.mxu3 }
 0x610   :  { %v8583_v15 = vpop.f32.mrf.mxu2 }
 0x61e   :  { %v8607_v55 = vpop.f32.mrf.mxu0 }
 0x622   :  { %v8002_v61 = vpop.f32.mrf.mxu3 }
 0x623   :  { %v8003_v53 = vadd.f32 %v8002_v61, %v7990_v32 }
 0x624   :  { %v8620_v37 = vpop.f32.mrf.mxu1 }
 0x625   :  { %v8013_v24 = vmax.f32 %v8003_v53, 0.0 }
 0x626   :  { %v8609_v10 = vpop.f32.mrf.mxu0 }
 0x627   :  { %8021 = vst [vmem:[#allocation14 + $0x38] sm:$0xff] %v8013_v24  ;;  %v8029_v59 = vpack.c.bf16 %v8013_v24, %v8013_v24 }
 0x628   :  { %8673 = dma.vmem_to_hbm [thread:$0]  %s8669_s6, 1024, %s8671_s19, [#allocation4]  }
 0x629   :  { %8645 = vmatmul.bf16.vlgmr.msrb.gmra.mxu3 %v8029_v59 }
 0x62a   :  { %v8004_v51 = vpop.f32.mrf.mxu3 }
 0x62c   :  { %v8622_v20 = vpop.f32.mrf.mxu1 }
 0x642   :  { %v8594_v57 = vpop.f32.mrf.mxu3 }
 0x643   :  { %v8595_v41 = vadd.f32 %v8594_v57, %v8582_v7 }
 0x645   :  { %v8608_v60 = vadd.f32 %v8607_v55, %v8595_v41 }
 0x647   :  { %v8621_v62 = vadd.f32 %v8620_v37, %v8608_v60 }
 0x64a   :  { %v8596_v38 = vpop.f32.mrf.mxu3 }
 0x666   :  { %v8633_v22 = vpop.f32.mrf.mxu2 }
 0x667   :  { %v8634_v0 = vadd.f32 %v8633_v22, %v8621_v62 }
 0x66e   :  { %v8635_v48 = vpop.f32.mrf.mxu2 }
 0x6ac   :  { %v8646_v33 = vpop.f32.mrf.mxu3 }
 0x6ad   :  { %v8647_v5 = vadd.f32 %v8646_v33, %v8634_v0 }
 0x6af   :  { %8650 = vmax.xlane.f32.xlu0 %v8647_v5 }
 0x6b4   :  { %v8648_v45 = vpop.f32.mrf.mxu3 }
 0x722   :  { %v8651_v44 = vpop.xlane.xlu0 %8650 }
 0x723   :  { %v8652_v17 = vsub.f32 %v8647_v5, %v8651_v44 }
 0x725   :  { %v8653_v34 = vmul.f32 1.442695, %v8652_v17 }
 0x727   :  { %14140 = vpow2.f32 %v8653_v34 }
 0x72d   :  { %v14141_v16 = vpop.eup %14140 }
 0x72e   :  { %8655 = vadd.xlane.f32.xlu0 %v14141_v16 }
 0x7a1   :  { %v8656_v58 = vpop.xlane.xlu0 %8655 }
 0x7a2   :  { %14142 = vlog2.f32 %v8656_v58 }
 0x7a8   :  { %v14143_v12 = vpop.eup %14142 }
 0x7a9   :  { %v8658_v18 = vmul.f32 0.6931472, %v14143_v12 }
 0x7ab   :  { %v8659_v1 = vadd.f32 %v8658_v18, %v8651_v44 }
 0x7ad   :  { %v8660_v6 = vsub.f32 %v8647_v5, %v8659_v1 }
 0x7af   :  { %8662 = vst.msk [vmem:[%s14808_s8] sm:$0xff] %vm8661_vm0, %v8660_v6 }
 0x7b0   :  { %14353 = dma.done.wait [#allocation4], 1024  }
 0x7b1   :  { %14354 = vsyncadd [#allocation4], 4294966272 }
 0x7b2   :  { %8682 = vsyncpa [#allocation3], 1 }
 0x7b3   :  { %8683 = vsyncpa [#allocation6], 1 }
 0x7b4   :  { %8684 = vsyncpa [#allocation9], 1 }
 0x7b5   :  { %8685 = vsyncpa [#allocation12], 1 }
 0x7b6   :  { %8686 = vsyncpa [#allocation4], 1 }

</bundles_post_ra>
